<compile_context>
chip_gen: v7x
topology: tpu7x:2x2x1
jax: 0.10.0
libtpu: 0.0.40
codegen_flags: <defaults>
</compile_context>

<pallas_src>
import jax
import jax.numpy as jnp
from jax.experimental import pallas as pl
from jax.experimental.pallas import tpu as pltpu


# ----------------------------- sketch setup (glue) ---------------------------

def generate_sketch(key, in_d, out_d, num_s=1):
    """JAX port of the reference generate_sketch (deterministic via PRNG key)."""
    k1, k2 = jax.random.split(key)
    hashed = jax.random.randint(k1, (in_d * num_s,), 0, out_d)
    signs = (jax.random.randint(k2, (num_s, in_d, 1), 0, 2) * 2 - 1).astype(jnp.float32)
    sketch_inds = jnp.tile(jnp.arange(num_s), (in_d,))
    col_inds = jnp.repeat(jnp.arange(in_d), num_s)
    h = jnp.zeros((num_s, out_d, in_d), jnp.float32)
    h = h.at[sketch_inds, hashed, col_inds].set(1.0)
    return h, signs


# --------------------------------- kernels ------------------------------------

def _conv_median(x_ref, w_ref):
    """Folded sketch->conv->unsketch for 3 candidates + elementwise median.

    x_ref: [TH+2, W+2, C] bf16 haloed slab (spatial zero padding included).
    w_ref: [9, C, 3C]     bf16 folded weights (tap = dy*3+dx; 3 candidates
                          concatenated on the last dim).
    returns y: [TH*W, C] f32 median over the 3 candidates.
    """
    thp2, wp2, C = x_ref.shape
    TH, W = thp2 - 2, wp2 - 2
    TM = TH * W
    z = jnp.zeros((TM, 3 * C), jnp.float32)
    # Build the 9 conv taps in-kernel from the haloed slab (no HBM im2col);
    # each tap is a small GEMM with f32 accumulation on the MXU.
    for tap in range(9):
        dy, dx = tap // 3, tap % 3
        t = x_ref[dy:dy + TH, dx:dx + W, :].reshape(TM, C)        # bf16
        z = z + jnp.dot(t, w_ref[tap], preferred_element_type=jnp.float32)
    a = z[:, 0 * C:1 * C]
    b = z[:, 1 * C:2 * C]
    c = z[:, 2 * C:3 * C]
    # median of 3 == max(min(a,b), min(max(a,b), c))  (matches torch.median)
    y = jnp.maximum(jnp.minimum(a, b), jnp.minimum(jnp.maximum(a, b), c))
    return y, TH, W, C


def conv_median_stats_kernel(x_ref, w_ref, stats_ref):
    """Pass 1: centered per-tile BatchNorm partials (tile mean, tile M2)."""
    y, _, _, _ = _conv_median(x_ref, w_ref)
    mu = jnp.mean(y, axis=0, keepdims=True)                       # [1, C]
    d = y - mu
    m2 = jnp.sum(d * d, axis=0, keepdims=True)                    # [1, C]
    stats_ref[...] = jnp.concatenate([mu, m2], axis=0)            # one store


def conv_median_bn_apply_kernel(x_ref, w_ref, ss_ref, o_ref):
    """Pass 2: recompute y, BN scale/shift + ReLU + residual (all f32), store."""
    y, TH, W, C = _conv_median(x_ref, w_ref)
    scale = ss_ref[0:1, :]                                        # [1, C] f32
    shift = ss_ref[1:2, :]
    res = x_ref[1:1 + TH, 1:1 + W, :].reshape(TH * W, C).astype(jnp.float32)
    out = jnp.maximum(y * scale + shift, 0.0) + res
    o_ref[...] = out.reshape(TH, W, C)


# ------------------------------- wrapper --------------------------------------

# Above the 16 MiB v5e scoped default, comfortably inside v7x's 64 MiB VMEM.
_VMEM_LIMIT_BYTES = 32 * 1024 * 1024


def _pick_row_tile(H, W, N):
    """Rows-per-tile TH: a divisor of H with TM = TH*W a multiple of 16 (bf16
    sublane packing) and <= 2048, biased large; prefer >= 2 grid steps (v7x has
    two TensorCores).  Fallback: whole image per tile (never the whole array)."""
    cands = [th for th in range(H, 0, -1)
             if H % th == 0 and (th * W) % 16 == 0 and th * W <= 2048]
    if not cands:
        return H
    th = cands[0]
    if N * (H // th) < 2:
        for c in cands:
            if N * (H // c) >= 2:
                return c
    return th


@jax.jit
def sketch3_residual_block(x_nchw, w1, w2, hs, ss):
    # Branch 1 (w1) of the reference forward is provably dead: its BN+ReLU
    # result is overwritten by the second loop (which re-convolves `x`) before
    # it is ever used, so the output is identical without it.
    del w1
    N, C, H, W = x_nchw.shape
    M = N * H * W

    x_nhwc = jnp.transpose(x_nchw, (0, 2, 3, 1)).astype(jnp.float32)       # NHWC
    xpad = jnp.pad(x_nhwc, ((0, 0), (1, 1), (1, 1), (0, 0)))

    # Haloed bf16 row-slabs: tile g = (n, t) holds padded rows
    # [t*TH, t*TH + TH + 2) of image n, full padded width, all channels.
    TH = _pick_row_tile(H, W, N)
    Ht = H // TH
    G = N * Ht
    slabs = jnp.stack([xpad[:, t * TH:t * TH + TH + 2] for t in range(Ht)],
                      axis=1)
    slabs = slabs.reshape(G, TH + 2, W + 2, C).astype(jnp.bfloat16)

    # Fold sketch + unsketch into one effective weight per candidate, then
    # concatenate the 3 candidates and split per tap -> [9, C, 3C] so the
    # kernel contracts only over C per tap.
    w2_flat = jnp.transpose(w2, (0, 2, 3, 1)).reshape(C, 9 * C)            # (dy,dx,cin)
    w_effs = []
    for h, s in zip(hs, ss):
        w_sk = (h[0] @ (w2_flat * s[0])).T                                 # [9C, C_sk]
        u = h[0] * s[0].reshape(1, -1)                                     # [C_sk, C]
        w_effs.append(w_sk @ u)                                            # [9C, C]
    w_taps = jnp.concatenate(w_effs, axis=1).reshape(9, C, 3 * C)
    w_taps = w_taps.astype(jnp.bfloat16)

    slab_spec = pl.BlockSpec((None, TH + 2, W + 2, C), lambda g: (g, 0, 0, 0))
    wt_spec = pl.BlockSpec((9, C, 3 * C), lambda g: (0, 0, 0))

    # -------- pass 1: conv + median + centered per-tile BN partials --------
    stats = pl.pallas_call(
        conv_median_stats_kernel,
        grid=(G,),
        in_specs=[slab_spec, wt_spec],
        out_specs=pl.BlockSpec((None, 2, C), lambda g: (g, 0, 0)),
        out_shape=jax.ShapeDtypeStruct((G, 2, C), jnp.float32),
        compiler_params=pltpu.CompilerParams(
            dimension_semantics=("parallel",),
            vmem_limit_bytes=_VMEM_LIMIT_BYTES),
    )(slabs, w_taps)

    # -------- BN affine (training mode, biased batch stats); Chan combine ----
    n_tile = float(TH * W)                     # equal sample count per tile
    mu_t = stats[:, 0, :]                                                  # [G, C]
    m2_t = stats[:, 1, :]
    mean = jnp.mean(mu_t, axis=0)
    m2 = jnp.sum(m2_t, axis=0) + n_tile * jnp.sum((mu_t - mean) ** 2, axis=0)
    var = m2 / M
    gamma = jnp.ones((C,), jnp.float32)        # PyTorch BatchNorm2d defaults
    beta = jnp.zeros((C,), jnp.float32)
    scale = gamma * jax.lax.rsqrt(var + 1e-5)
    shift = beta - mean * scale
    scale_shift = jnp.stack([scale, shift]).astype(jnp.float32)            # [2, C]

    # -------- pass 2: recompute conv+median, BN apply + ReLU + residual -----
    out_tiles = pl.pallas_call(
        conv_median_bn_apply_kernel,
        grid=(G,),
        in_specs=[slab_spec, wt_spec,
                  pl.BlockSpec((2, C), lambda g: (0, 0))],
        out_specs=pl.BlockSpec((None, TH, W, C), lambda g: (g, 0, 0, 0)),
        out_shape=jax.ShapeDtypeStruct((G, TH, W, C), jnp.float32),
        compiler_params=pltpu.CompilerParams(
            dimension_semantics=("parallel",),
            vmem_limit_bytes=_VMEM_LIMIT_BYTES),
    )(slabs, w_taps, scale_shift)

    # TODO(synk): for small C the per-tile [TH, W, C] stores are lane-masked
    # (C < 128 lanes); restructure to a lane-dense [TH, W*C] store when this
    # pass shows up on the store path (moot for C >= 128).
    out_nhwc = out_tiles.reshape(N, H, W, C)
    return jnp.transpose(out_nhwc, (0, 3, 1, 2))                           # NCHW


# --------------------------- pure-JAX reference --------------------------------

def ref_forward(x, w1, w2, hs, ss):
    del w1  # dead in the reference forward: its result is overwritten before use

    def branch(Wc):
        outs = []
        for h, s in zip(hs, ss):
            Wflat = Wc.reshape(Wc.shape[0], -1)
            Wsk = (h[0] @ (Wflat * s[0])).reshape(-1, Wc.shape[1], 3, 3)
            conv = jax.lax.conv_general_dilated(
                x, Wsk, window_strides=(1, 1), padding=((1, 1), (1, 1)),
                dimension_numbers=("NCHW", "OIHW", "NCHW"))
            U = h[0] * s[0].reshape(1, -1)
            outs.append(jnp.einsum("njhw,jc->nchw", conv, U))
        return jnp.median(jnp.stack(outs, 0), axis=0)

    def bn_relu(y):
        mean = jnp.mean(y, axis=(0, 2, 3), keepdims=True)
        var = jnp.mean((y - mean) ** 2, axis=(0, 2, 3), keepdims=True)
        return jnp.maximum((y - mean) * jax.lax.rsqrt(var + 1e-5), 0.0)

    return bn_relu(branch(w2)) + x


# --------------------------------- main ----------------------------------------

if __name__ == "__main__":
    key = jax.random.PRNGKey(0)
    kx, kw1, kw2, ks0, ks1, ks2 = jax.random.split(key, 6)

    # forward requires in_channels == out_channels (residual add + w2 conv on x)
    N, C, H, W = 2, 8, 16, 16
    comp_rate = 2

    x = jax.random.normal(kx, (N, C, H, W), jnp.float32)
    w1 = jax.random.normal(kw1, (C, C, 3, 3), jnp.float32) * 0.1
    w2 = jax.random.normal(kw2, (C, C, 3, 3), jnp.float32) * 0.1

    hs, ss = [], []
    for k in (ks0, ks1, ks2):
        h, s = generate_sketch(k, C, C // comp_rate)
        hs.append(h)
        ss.append(s)

    out = jax.block_until_ready(sketch3_residual_block(x, w1, w2, hs, ss))
    ref = ref_forward(x, w1, w2, hs, ss)

    assert out.shape == x.shape
    # Tolerance accounts for bf16 MXU operands (f32 accumulation) and the
    # bf16-staged slab/residual vs the all-f32 reference path.
    if not jnp.allclose(out, ref, atol=5e-2, rtol=5e-2):
        raise AssertionError(
            f"mismatch vs reference, max abs err = {jnp.max(jnp.abs(out - ref))}")
    print("KERNEL_OK")
</pallas_src>

<mosaic_0001>
module attributes {stable_mosaic.version = 11 : i64} {
  func.func @conv_median_stats_kernel(%arg0: i32, %arg1: memref<1x18x18x8xbf16, #tpu.memory_space<vmem>>, %arg2: memref<9x8x24xbf16, #tpu.memory_space<vmem>>, %arg3: memref<1x2x8xf32, #tpu.memory_space<vmem>>) attributes {dimension_semantics = [#tpu.dimension_semantics<parallel>], iteration_bounds = array<i64: 2>, scalar_prefetch = 0 : i64, scratch_operands = 0 : i64, tpu.core_type = #tpu.core_type<tc>, window_params = [{transform_indices = @transform_0, window_bounds = array<i64: 1, 18, 18, 8>}, {pipeline_mode = #tpu.pipeline_mode<synchronous>, transform_indices = @transform_1, window_bounds = array<i64: 9, 8, 24>}, {transform_indices = @transform_2, window_bounds = array<i64: 1, 2, 8>}]} {
    %cst = arith.constant 0.000000e+00 : f32
    %0 = vector.broadcast %cst : f32 to vector<256x24xf32>
    %c0 = arith.constant 0 : index
    %c0_0 = arith.constant 0 : index
    %c0_1 = arith.constant 0 : index
    %c0_2 = arith.constant 0 : index
    %1 = vector.load %arg1[%c0, %c0_0, %c0_1, %c0_2] : memref<1x18x18x8xbf16, #tpu.memory_space<vmem>>, vector<1x16x16x8xbf16>
    %2 = vector.shape_cast %1 : vector<1x16x16x8xbf16> to vector<16x16x8xbf16>
    %3 = vector.shape_cast %2 : vector<16x16x8xbf16> to vector<256x8xbf16>
    %c0_3 = arith.constant 0 : index
    %c0_4 = arith.constant 0 : index
    %c0_5 = arith.constant 0 : index
    %4 = vector.load %arg2[%c0_3, %c0_4, %c0_5] : memref<9x8x24xbf16, #tpu.memory_space<vmem>>, vector<1x8x24xbf16>
    %5 = vector.shape_cast %4 : vector<1x8x24xbf16> to vector<8x24xbf16>
    %cst_6 = arith.constant dense<0.000000e+00> : vector<256x24xf32>
    %6 = tpu.matmul %3, %5, %cst_6 {dimension_numbers = #tpu.dot_dimension_numbers<[1], [0], [0], [1], [0, 0, 1, 1], [], []>} : vector<256x8xbf16>, vector<8x24xbf16>, vector<256x24xf32> -> vector<256x24xf32>
    %7 = arith.addf %0, %6 : vector<256x24xf32>
    %c0_7 = arith.constant 0 : index
    %c0_8 = arith.constant 0 : index
    %c1 = arith.constant 1 : index
    %c0_9 = arith.constant 0 : index
    %8 = vector.load %arg1[%c0_7, %c0_8, %c1, %c0_9] : memref<1x18x18x8xbf16, #tpu.memory_space<vmem>>, vector<1x16x16x8xbf16>
    %9 = vector.shape_cast %8 : vector<1x16x16x8xbf16> to vector<16x16x8xbf16>
    %10 = vector.shape_cast %9 : vector<16x16x8xbf16> to vector<256x8xbf16>
    %c1_10 = arith.constant 1 : index
    %c0_11 = arith.constant 0 : index
    %c0_12 = arith.constant 0 : index
    %11 = vector.load %arg2[%c1_10, %c0_11, %c0_12] : memref<9x8x24xbf16, #tpu.memory_space<vmem>>, vector<1x8x24xbf16>
    %12 = vector.shape_cast %11 : vector<1x8x24xbf16> to vector<8x24xbf16>
    %cst_13 = arith.constant dense<0.000000e+00> : vector<256x24xf32>
    %13 = tpu.matmul %10, %12, %cst_13 {dimension_numbers = #tpu.dot_dimension_numbers<[1], [0], [0], [1], [0, 0, 1, 1], [], []>} : vector<256x8xbf16>, vector<8x24xbf16>, vector<256x24xf32> -> vector<256x24xf32>
    %14 = arith.addf %7, %13 : vector<256x24xf32>
    %c0_14 = arith.constant 0 : index
    %c0_15 = arith.constant 0 : index
    %c2 = arith.constant 2 : index
    %c0_16 = arith.constant 0 : index
    %15 = vector.load %arg1[%c0_14, %c0_15, %c2, %c0_16] : memref<1x18x18x8xbf16, #tpu.memory_space<vmem>>, vector<1x16x16x8xbf16>
    %16 = vector.shape_cast %15 : vector<1x16x16x8xbf16> to vector<16x16x8xbf16>
    %17 = vector.shape_cast %16 : vector<16x16x8xbf16> to vector<256x8xbf16>
    %c2_17 = arith.constant 2 : index
    %c0_18 = arith.constant 0 : index
    %c0_19 = arith.constant 0 : index
    %18 = vector.load %arg2[%c2_17, %c0_18, %c0_19] : memref<9x8x24xbf16, #tpu.memory_space<vmem>>, vector<1x8x24xbf16>
    %19 = vector.shape_cast %18 : vector<1x8x24xbf16> to vector<8x24xbf16>
    %cst_20 = arith.constant dense<0.000000e+00> : vector<256x24xf32>
    %20 = tpu.matmul %17, %19, %cst_20 {dimension_numbers = #tpu.dot_dimension_numbers<[1], [0], [0], [1], [0, 0, 1, 1], [], []>} : vector<256x8xbf16>, vector<8x24xbf16>, vector<256x24xf32> -> vector<256x24xf32>
    %21 = arith.addf %14, %20 : vector<256x24xf32>
    %c0_21 = arith.constant 0 : index
    %c1_22 = arith.constant 1 : index
    %c0_23 = arith.constant 0 : index
    %c0_24 = arith.constant 0 : index
    %22 = vector.load %arg1[%c0_21, %c1_22, %c0_23, %c0_24] : memref<1x18x18x8xbf16, #tpu.memory_space<vmem>>, vector<1x16x16x8xbf16>
    %23 = vector.shape_cast %22 : vector<1x16x16x8xbf16> to vector<16x16x8xbf16>
    %24 = vector.shape_cast %23 : vector<16x16x8xbf16> to vector<256x8xbf16>
    %c3 = arith.constant 3 : index
    %c0_25 = arith.constant 0 : index
    %c0_26 = arith.constant 0 : index
    %25 = vector.load %arg2[%c3, %c0_25, %c0_26] : memref<9x8x24xbf16, #tpu.memory_space<vmem>>, vector<1x8x24xbf16>
    %26 = vector.shape_cast %25 : vector<1x8x24xbf16> to vector<8x24xbf16>
    %cst_27 = arith.constant dense<0.000000e+00> : vector<256x24xf32>
    %27 = tpu.matmul %24, %26, %cst_27 {dimension_numbers = #tpu.dot_dimension_numbers<[1], [0], [0], [1], [0, 0, 1, 1], [], []>} : vector<256x8xbf16>, vector<8x24xbf16>, vector<256x24xf32> -> vector<256x24xf32>
    %28 = arith.addf %21, %27 : vector<256x24xf32>
    %c0_28 = arith.constant 0 : index
    %c1_29 = arith.constant 1 : index
    %c1_30 = arith.constant 1 : index
    %c0_31 = arith.constant 0 : index
    %29 = vector.load %arg1[%c0_28, %c1_29, %c1_30, %c0_31] : memref<1x18x18x8xbf16, #tpu.memory_space<vmem>>, vector<1x16x16x8xbf16>
    %30 = vector.shape_cast %29 : vector<1x16x16x8xbf16> to vector<16x16x8xbf16>
    %31 = vector.shape_cast %30 : vector<16x16x8xbf16> to vector<256x8xbf16>
    %c4 = arith.constant 4 : index
    %c0_32 = arith.constant 0 : index
    %c0_33 = arith.constant 0 : index
    %32 = vector.load %arg2[%c4, %c0_32, %c0_33] : memref<9x8x24xbf16, #tpu.memory_space<vmem>>, vector<1x8x24xbf16>
    %33 = vector.shape_cast %32 : vector<1x8x24xbf16> to vector<8x24xbf16>
    %cst_34 = arith.constant dense<0.000000e+00> : vector<256x24xf32>
    %34 = tpu.matmul %31, %33, %cst_34 {dimension_numbers = #tpu.dot_dimension_numbers<[1], [0], [0], [1], [0, 0, 1, 1], [], []>} : vector<256x8xbf16>, vector<8x24xbf16>, vector<256x24xf32> -> vector<256x24xf32>
    %35 = arith.addf %28, %34 : vector<256x24xf32>
    %c0_35 = arith.constant 0 : index
    %c1_36 = arith.constant 1 : index
    %c2_37 = arith.constant 2 : index
    %c0_38 = arith.constant 0 : index
    %36 = vector.load %arg1[%c0_35, %c1_36, %c2_37, %c0_38] : memref<1x18x18x8xbf16, #tpu.memory_space<vmem>>, vector<1x16x16x8xbf16>
    %37 = vector.shape_cast %36 : vector<1x16x16x8xbf16> to vector<16x16x8xbf16>
    %38 = vector.shape_cast %37 : vector<16x16x8xbf16> to vector<256x8xbf16>
    %c5 = arith.constant 5 : index
    %c0_39 = arith.constant 0 : index
    %c0_40 = arith.constant 0 : index
    %39 = vector.load %arg2[%c5, %c0_39, %c0_40] : memref<9x8x24xbf16, #tpu.memory_space<vmem>>, vector<1x8x24xbf16>
    %40 = vector.shape_cast %39 : vector<1x8x24xbf16> to vector<8x24xbf16>
    %cst_41 = arith.constant dense<0.000000e+00> : vector<256x24xf32>
    %41 = tpu.matmul %38, %40, %cst_41 {dimension_numbers = #tpu.dot_dimension_numbers<[1], [0], [0], [1], [0, 0, 1, 1], [], []>} : vector<256x8xbf16>, vector<8x24xbf16>, vector<256x24xf32> -> vector<256x24xf32>
    %42 = arith.addf %35, %41 : vector<256x24xf32>
    %c0_42 = arith.constant 0 : index
    %c2_43 = arith.constant 2 : index
    %c0_44 = arith.constant 0 : index
    %c0_45 = arith.constant 0 : index
    %43 = vector.load %arg1[%c0_42, %c2_43, %c0_44, %c0_45] : memref<1x18x18x8xbf16, #tpu.memory_space<vmem>>, vector<1x16x16x8xbf16>
    %44 = vector.shape_cast %43 : vector<1x16x16x8xbf16> to vector<16x16x8xbf16>
    %45 = vector.shape_cast %44 : vector<16x16x8xbf16> to vector<256x8xbf16>
    %c6 = arith.constant 6 : index
    %c0_46 = arith.constant 0 : index
    %c0_47 = arith.constant 0 : index
    %46 = vector.load %arg2[%c6, %c0_46, %c0_47] : memref<9x8x24xbf16, #tpu.memory_space<vmem>>, vector<1x8x24xbf16>
    %47 = vector.shape_cast %46 : vector<1x8x24xbf16> to vector<8x24xbf16>
    %cst_48 = arith.constant dense<0.000000e+00> : vector<256x24xf32>
    %48 = tpu.matmul %45, %47, %cst_48 {dimension_numbers = #tpu.dot_dimension_numbers<[1], [0], [0], [1], [0, 0, 1, 1], [], []>} : vector<256x8xbf16>, vector<8x24xbf16>, vector<256x24xf32> -> vector<256x24xf32>
    %49 = arith.addf %42, %48 : vector<256x24xf32>
    %c0_49 = arith.constant 0 : index
    %c2_50 = arith.constant 2 : index
    %c1_51 = arith.constant 1 : index
    %c0_52 = arith.constant 0 : index
    %50 = vector.load %arg1[%c0_49, %c2_50, %c1_51, %c0_52] : memref<1x18x18x8xbf16, #tpu.memory_space<vmem>>, vector<1x16x16x8xbf16>
    %51 = vector.shape_cast %50 : vector<1x16x16x8xbf16> to vector<16x16x8xbf16>
    %52 = vector.shape_cast %51 : vector<16x16x8xbf16> to vector<256x8xbf16>
    %c7 = arith.constant 7 : index
    %c0_53 = arith.constant 0 : index
    %c0_54 = arith.constant 0 : index
    %53 = vector.load %arg2[%c7, %c0_53, %c0_54] : memref<9x8x24xbf16, #tpu.memory_space<vmem>>, vector<1x8x24xbf16>
    %54 = vector.shape_cast %53 : vector<1x8x24xbf16> to vector<8x24xbf16>
    %cst_55 = arith.constant dense<0.000000e+00> : vector<256x24xf32>
    %55 = tpu.matmul %52, %54, %cst_55 {dimension_numbers = #tpu.dot_dimension_numbers<[1], [0], [0], [1], [0, 0, 1, 1], [], []>} : vector<256x8xbf16>, vector<8x24xbf16>, vector<256x24xf32> -> vector<256x24xf32>
    %56 = arith.addf %49, %55 : vector<256x24xf32>
    %c0_56 = arith.constant 0 : index
    %c2_57 = arith.constant 2 : index
    %c2_58 = arith.constant 2 : index
    %c0_59 = arith.constant 0 : index
    %57 = vector.load %arg1[%c0_56, %c2_57, %c2_58, %c0_59] : memref<1x18x18x8xbf16, #tpu.memory_space<vmem>>, vector<1x16x16x8xbf16>
    %58 = vector.shape_cast %57 : vector<1x16x16x8xbf16> to vector<16x16x8xbf16>
    %59 = vector.shape_cast %58 : vector<16x16x8xbf16> to vector<256x8xbf16>
    %c8 = arith.constant 8 : index
    %c0_60 = arith.constant 0 : index
    %c0_61 = arith.constant 0 : index
    %60 = vector.load %arg2[%c8, %c0_60, %c0_61] : memref<9x8x24xbf16, #tpu.memory_space<vmem>>, vector<1x8x24xbf16>
    %61 = vector.shape_cast %60 : vector<1x8x24xbf16> to vector<8x24xbf16>
    %cst_62 = arith.constant dense<0.000000e+00> : vector<256x24xf32>
    %62 = tpu.matmul %59, %61, %cst_62 {dimension_numbers = #tpu.dot_dimension_numbers<[1], [0], [0], [1], [0, 0, 1, 1], [], []>} : vector<256x8xbf16>, vector<8x24xbf16>, vector<256x24xf32> -> vector<256x24xf32>
    %63 = arith.addf %56, %62 : vector<256x24xf32>
    %64 = vector.extract_strided_slice %63 {offsets = [0, 0], sizes = [256, 8], strides = [1, 1]} : vector<256x24xf32> to vector<256x8xf32>
    %65 = vector.extract_strided_slice %63 {offsets = [0, 8], sizes = [256, 8], strides = [1, 1]} : vector<256x24xf32> to vector<256x8xf32>
    %66 = vector.extract_strided_slice %63 {offsets = [0, 16], sizes = [256, 8], strides = [1, 1]} : vector<256x24xf32> to vector<256x8xf32>
    %67 = arith.minimumf %64, %65 : vector<256x8xf32>
    %68 = arith.maximumf %64, %65 : vector<256x8xf32>
    %69 = arith.minimumf %68, %66 : vector<256x8xf32>
    %70 = arith.maximumf %67, %69 : vector<256x8xf32>
    %cst_63 = arith.constant dense<0.000000e+00> : vector<8xf32>
    %71 = vector.multi_reduction <add>, %70, %cst_63 [0] : vector<256x8xf32> to vector<8xf32>
    %72 = vector.shape_cast %71 : vector<8xf32> to vector<1x8xf32>
    %cst_64 = arith.constant 2.560000e+02 : f32
    %73 = vector.broadcast %cst_64 : f32 to vector<1x8xf32>
    %74 = arith.divf %72, %73 : vector<1x8xf32>
    %75 = vector.broadcast %74 : vector<1x8xf32> to vector<256x8xf32>
    %76 = arith.subf %70, %75 : vector<256x8xf32>
    %77 = arith.mulf %76, %76 : vector<256x8xf32>
    %cst_65 = arith.constant dense<0.000000e+00> : vector<8xf32>
    %78 = vector.multi_reduction <add>, %77, %cst_65 [0] : vector<256x8xf32> to vector<8xf32>
    %79 = vector.shape_cast %78 : vector<8xf32> to vector<1x8xf32>
    %80 = tpu.concatenate %74, %79 in 0 : vector<1x8xf32>, vector<1x8xf32> -> vector<2x8xf32>
    %c0_66 = arith.constant 0 : index
    %c0_67 = arith.constant 0 : index
    %c0_68 = arith.constant 0 : index
    %81 = vector.load %arg3[%c0_66, %c0_67, %c0_68] : memref<1x2x8xf32, #tpu.memory_space<vmem>>, vector<1x2x8xf32>
    %82 = vector.shape_cast %81 : vector<1x2x8xf32> to vector<2x8xf32>
    %83 = vector.shape_cast %80 : vector<2x8xf32> to vector<1x2x8xf32>
    tpu.vector_store %arg3[%c0_66, %c0_67, %c0_68], %83 {strides = array<i32>} : memref<1x2x8xf32, #tpu.memory_space<vmem>>, vector<1x2x8xf32>,
    return
  }
  func.func @transform_0(%arg0: i32) -> (i32, i32, i32, i32) {
    %c0_i32 = arith.constant 0 : i32
    %c0_i32_0 = arith.constant 0 : i32
    %c0_i32_1 = arith.constant 0 : i32
    %c0_i32_2 = arith.constant 0 : i32
    return %arg0, %c0_i32, %c0_i32_0, %c0_i32_1 : i32, i32, i32, i32
  }
  func.func @transform_1(%arg0: i32) -> (i32, i32, i32) {
    %c0_i32 = arith.constant 0 : i32
    %c0_i32_0 = arith.constant 0 : i32
    %c0_i32_1 = arith.constant 0 : i32
    %c0_i32_2 = arith.constant 0 : i32
    return %c0_i32, %c0_i32_0, %c0_i32_1 : i32, i32, i32
  }
  func.func @transform_2(%arg0: i32) -> (i32, i32, i32) {
    %c0_i32 = arith.constant 0 : i32
    %c0_i32_0 = arith.constant 0 : i32
    %c0_i32_1 = arith.constant 0 : i32
    return %arg0, %c0_i32, %c0_i32_0 : i32, i32, i32
  }
}

module attributes {stable_mosaic.version = 11 : i64} {
  func.func @conv_median_bn_apply_kernel(%arg0: i32, %arg1: memref<1x18x18x8xbf16, #tpu.memory_space<vmem>>, %arg2: memref<9x8x24xbf16, #tpu.memory_space<vmem>>, %arg3: memref<2x8xf32, #tpu.memory_space<vmem>>, %arg4: memref<1x16x16x8xf32, #tpu.memory_space<vmem>>) attributes {dimension_semantics = [#tpu.dimension_semantics<parallel>], iteration_bounds = array<i64: 2>, scalar_prefetch = 0 : i64, scratch_operands = 0 : i64, tpu.core_type = #tpu.core_type<tc>, window_params = [{transform_indices = @transform_0, window_bounds = array<i64: 1, 18, 18, 8>}, {pipeline_mode = #tpu.pipeline_mode<synchronous>, transform_indices = @transform_1, window_bounds = array<i64: 9, 8, 24>}, {pipeline_mode = #tpu.pipeline_mode<synchronous>, transform_indices = @transform_2, window_bounds = array<i64: 2, 8>}, {transform_indices = @transform_3, window_bounds = array<i64: 1, 16, 16, 8>}]} {
    %cst = arith.constant 0.000000e+00 : f32
    %0 = vector.broadcast %cst : f32 to vector<256x24xf32>
    %c0 = arith.constant 0 : index
    %c0_0 = arith.constant 0 : index
    %c0_1 = arith.constant 0 : index
    %c0_2 = arith.constant 0 : index
    %1 = vector.load %arg1[%c0, %c0_0, %c0_1, %c0_2] : memref<1x18x18x8xbf16, #tpu.memory_space<vmem>>, vector<1x16x16x8xbf16>
    %2 = vector.shape_cast %1 : vector<1x16x16x8xbf16> to vector<16x16x8xbf16>
    %3 = vector.shape_cast %2 : vector<16x16x8xbf16> to vector<256x8xbf16>
    %c0_3 = arith.constant 0 : index
    %c0_4 = arith.constant 0 : index
    %c0_5 = arith.constant 0 : index
    %4 = vector.load %arg2[%c0_3, %c0_4, %c0_5] : memref<9x8x24xbf16, #tpu.memory_space<vmem>>, vector<1x8x24xbf16>
    %5 = vector.shape_cast %4 : vector<1x8x24xbf16> to vector<8x24xbf16>
    %cst_6 = arith.constant dense<0.000000e+00> : vector<256x24xf32>
    %6 = tpu.matmul %3, %5, %cst_6 {dimension_numbers = #tpu.dot_dimension_numbers<[1], [0], [0], [1], [0, 0, 1, 1], [], []>} : vector<256x8xbf16>, vector<8x24xbf16>, vector<256x24xf32> -> vector<256x24xf32>
    %7 = arith.addf %0, %6 : vector<256x24xf32>
    %c0_7 = arith.constant 0 : index
    %c0_8 = arith.constant 0 : index
    %c1 = arith.constant 1 : index
    %c0_9 = arith.constant 0 : index
    %8 = vector.load %arg1[%c0_7, %c0_8, %c1, %c0_9] : memref<1x18x18x8xbf16, #tpu.memory_space<vmem>>, vector<1x16x16x8xbf16>
    %9 = vector.shape_cast %8 : vector<1x16x16x8xbf16> to vector<16x16x8xbf16>
    %10 = vector.shape_cast %9 : vector<16x16x8xbf16> to vector<256x8xbf16>
    %c1_10 = arith.constant 1 : index
    %c0_11 = arith.constant 0 : index
    %c0_12 = arith.constant 0 : index
    %11 = vector.load %arg2[%c1_10, %c0_11, %c0_12] : memref<9x8x24xbf16, #tpu.memory_space<vmem>>, vector<1x8x24xbf16>
    %12 = vector.shape_cast %11 : vector<1x8x24xbf16> to vector<8x24xbf16>
    %cst_13 = arith.constant dense<0.000000e+00> : vector<256x24xf32>
    %13 = tpu.matmul %10, %12, %cst_13 {dimension_numbers = #tpu.dot_dimension_numbers<[1], [0], [0], [1], [0, 0, 1, 1], [], []>} : vector<256x8xbf16>, vector<8x24xbf16>, vector<256x24xf32> -> vector<256x24xf32>
    %14 = arith.addf %7, %13 : vector<256x24xf32>
    %c0_14 = arith.constant 0 : index
    %c0_15 = arith.constant 0 : index
    %c2 = arith.constant 2 : index
    %c0_16 = arith.constant 0 : index
    %15 = vector.load %arg1[%c0_14, %c0_15, %c2, %c0_16] : memref<1x18x18x8xbf16, #tpu.memory_space<vmem>>, vector<1x16x16x8xbf16>
    %16 = vector.shape_cast %15 : vector<1x16x16x8xbf16> to vector<16x16x8xbf16>
    %17 = vector.shape_cast %16 : vector<16x16x8xbf16> to vector<256x8xbf16>
    %c2_17 = arith.constant 2 : index
    %c0_18 = arith.constant 0 : index
    %c0_19 = arith.constant 0 : index
    %18 = vector.load %arg2[%c2_17, %c0_18, %c0_19] : memref<9x8x24xbf16, #tpu.memory_space<vmem>>, vector<1x8x24xbf16>
    %19 = vector.shape_cast %18 : vector<1x8x24xbf16> to vector<8x24xbf16>
    %cst_20 = arith.constant dense<0.000000e+00> : vector<256x24xf32>
    %20 = tpu.matmul %17, %19, %cst_20 {dimension_numbers = #tpu.dot_dimension_numbers<[1], [0], [0], [1], [0, 0, 1, 1], [], []>} : vector<256x8xbf16>, vector<8x24xbf16>, vector<256x24xf32> -> vector<256x24xf32>
    %21 = arith.addf %14, %20 : vector<256x24xf32>
    %c0_21 = arith.constant 0 : index
    %c1_22 = arith.constant 1 : index
    %c0_23 = arith.constant 0 : index
    %c0_24 = arith.constant 0 : index
    %22 = vector.load %arg1[%c0_21, %c1_22, %c0_23, %c0_24] : memref<1x18x18x8xbf16, #tpu.memory_space<vmem>>, vector<1x16x16x8xbf16>
    %23 = vector.shape_cast %22 : vector<1x16x16x8xbf16> to vector<16x16x8xbf16>
    %24 = vector.shape_cast %23 : vector<16x16x8xbf16> to vector<256x8xbf16>
    %c3 = arith.constant 3 : index
    %c0_25 = arith.constant 0 : index
    %c0_26 = arith.constant 0 : index
    %25 = vector.load %arg2[%c3, %c0_25, %c0_26] : memref<9x8x24xbf16, #tpu.memory_space<vmem>>, vector<1x8x24xbf16>
    %26 = vector.shape_cast %25 : vector<1x8x24xbf16> to vector<8x24xbf16>
    %cst_27 = arith.constant dense<0.000000e+00> : vector<256x24xf32>
    %27 = tpu.matmul %24, %26, %cst_27 {dimension_numbers = #tpu.dot_dimension_numbers<[1], [0], [0], [1], [0, 0, 1, 1], [], []>} : vector<256x8xbf16>, vector<8x24xbf16>, vector<256x24xf32> -> vector<256x24xf32>
    %28 = arith.addf %21, %27 : vector<256x24xf32>
    %c0_28 = arith.constant 0 : index
    %c1_29 = arith.constant 1 : index
    %c1_30 = arith.constant 1 : index
    %c0_31 = arith.constant 0 : index
    %29 = vector.load %arg1[%c0_28, %c1_29, %c1_30, %c0_31] : memref<1x18x18x8xbf16, #tpu.memory_space<vmem>>, vector<1x16x16x8xbf16>
    %30 = vector.shape_cast %29 : vector<1x16x16x8xbf16> to vector<16x16x8xbf16>
    %31 = vector.shape_cast %30 : vector<16x16x8xbf16> to vector<256x8xbf16>
    %c4 = arith.constant 4 : index
    %c0_32 = arith.constant 0 : index
    %c0_33 = arith.constant 0 : index
    %32 = vector.load %arg2[%c4, %c0_32, %c0_33] : memref<9x8x24xbf16, #tpu.memory_space<vmem>>, vector<1x8x24xbf16>
    %33 = vector.shape_cast %32 : vector<1x8x24xbf16> to vector<8x24xbf16>
    %cst_34 = arith.constant dense<0.000000e+00> : vector<256x24xf32>
    %34 = tpu.matmul %31, %33, %cst_34 {dimension_numbers = #tpu.dot_dimension_numbers<[1], [0], [0], [1], [0, 0, 1, 1], [], []>} : vector<256x8xbf16>, vector<8x24xbf16>, vector<256x24xf32> -> vector<256x24xf32>
    %35 = arith.addf %28, %34 : vector<256x24xf32>
    %c0_35 = arith.constant 0 : index
    %c1_36 = arith.constant 1 : index
    %c2_37 = arith.constant 2 : index
    %c0_38 = arith.constant 0 : index
    %36 = vector.load %arg1[%c0_35, %c1_36, %c2_37, %c0_38] : memref<1x18x18x8xbf16, #tpu.memory_space<vmem>>, vector<1x16x16x8xbf16>
    %37 = vector.shape_cast %36 : vector<1x16x16x8xbf16> to vector<16x16x8xbf16>
    %38 = vector.shape_cast %37 : vector<16x16x8xbf16> to vector<256x8xbf16>
    %c5 = arith.constant 5 : index
    %c0_39 = arith.constant 0 : index
    %c0_40 = arith.constant 0 : index
    %39 = vector.load %arg2[%c5, %c0_39, %c0_40] : memref<9x8x24xbf16, #tpu.memory_space<vmem>>, vector<1x8x24xbf16>
    %40 = vector.shape_cast %39 : vector<1x8x24xbf16> to vector<8x24xbf16>
    %cst_41 = arith.constant dense<0.000000e+00> : vector<256x24xf32>
    %41 = tpu.matmul %38, %40, %cst_41 {dimension_numbers = #tpu.dot_dimension_numbers<[1], [0], [0], [1], [0, 0, 1, 1], [], []>} : vector<256x8xbf16>, vector<8x24xbf16>, vector<256x24xf32> -> vector<256x24xf32>
    %42 = arith.addf %35, %41 : vector<256x24xf32>
    %c0_42 = arith.constant 0 : index
    %c2_43 = arith.constant 2 : index
    %c0_44 = arith.constant 0 : index
    %c0_45 = arith.constant 0 : index
    %43 = vector.load %arg1[%c0_42, %c2_43, %c0_44, %c0_45] : memref<1x18x18x8xbf16, #tpu.memory_space<vmem>>, vector<1x16x16x8xbf16>
    %44 = vector.shape_cast %43 : vector<1x16x16x8xbf16> to vector<16x16x8xbf16>
    %45 = vector.shape_cast %44 : vector<16x16x8xbf16> to vector<256x8xbf16>
    %c6 = arith.constant 6 : index
    %c0_46 = arith.constant 0 : index
    %c0_47 = arith.constant 0 : index
    %46 = vector.load %arg2[%c6, %c0_46, %c0_47] : memref<9x8x24xbf16, #tpu.memory_space<vmem>>, vector<1x8x24xbf16>
    %47 = vector.shape_cast %46 : vector<1x8x24xbf16> to vector<8x24xbf16>
    %cst_48 = arith.constant dense<0.000000e+00> : vector<256x24xf32>
    %48 = tpu.matmul %45, %47, %cst_48 {dimension_numbers = #tpu.dot_dimension_numbers<[1], [0], [0], [1], [0, 0, 1, 1], [], []>} : vector<256x8xbf16>, vector<8x24xbf16>, vector<256x24xf32> -> vector<256x24xf32>
    %49 = arith.addf %42, %48 : vector<256x24xf32>
    %c0_49 = arith.constant 0 : index
    %c2_50 = arith.constant 2 : index
    %c1_51 = arith.constant 1 : index
    %c0_52 = arith.constant 0 : index
    %50 = vector.load %arg1[%c0_49, %c2_50, %c1_51, %c0_52] : memref<1x18x18x8xbf16, #tpu.memory_space<vmem>>, vector<1x16x16x8xbf16>
    %51 = vector.shape_cast %50 : vector<1x16x16x8xbf16> to vector<16x16x8xbf16>
    %52 = vector.shape_cast %51 : vector<16x16x8xbf16> to vector<256x8xbf16>
    %c7 = arith.constant 7 : index
    %c0_53 = arith.constant 0 : index
    %c0_54 = arith.constant 0 : index
    %53 = vector.load %arg2[%c7, %c0_53, %c0_54] : memref<9x8x24xbf16, #tpu.memory_space<vmem>>, vector<1x8x24xbf16>
    %54 = vector.shape_cast %53 : vector<1x8x24xbf16> to vector<8x24xbf16>
    %cst_55 = arith.constant dense<0.000000e+00> : vector<256x24xf32>
    %55 = tpu.matmul %52, %54, %cst_55 {dimension_numbers = #tpu.dot_dimension_numbers<[1], [0], [0], [1], [0, 0, 1, 1], [], []>} : vector<256x8xbf16>, vector<8x24xbf16>, vector<256x24xf32> -> vector<256x24xf32>
    %56 = arith.addf %49, %55 : vector<256x24xf32>
    %c0_56 = arith.constant 0 : index
    %c2_57 = arith.constant 2 : index
    %c2_58 = arith.constant 2 : index
    %c0_59 = arith.constant 0 : index
    %57 = vector.load %arg1[%c0_56, %c2_57, %c2_58, %c0_59] : memref<1x18x18x8xbf16, #tpu.memory_space<vmem>>, vector<1x16x16x8xbf16>
    %58 = vector.shape_cast %57 : vector<1x16x16x8xbf16> to vector<16x16x8xbf16>
    %59 = vector.shape_cast %58 : vector<16x16x8xbf16> to vector<256x8xbf16>
    %c8 = arith.constant 8 : index
    %c0_60 = arith.constant 0 : index
    %c0_61 = arith.constant 0 : index
    %60 = vector.load %arg2[%c8, %c0_60, %c0_61] : memref<9x8x24xbf16, #tpu.memory_space<vmem>>, vector<1x8x24xbf16>
    %61 = vector.shape_cast %60 : vector<1x8x24xbf16> to vector<8x24xbf16>
    %cst_62 = arith.constant dense<0.000000e+00> : vector<256x24xf32>
    %62 = tpu.matmul %59, %61, %cst_62 {dimension_numbers = #tpu.dot_dimension_numbers<[1], [0], [0], [1], [0, 0, 1, 1], [], []>} : vector<256x8xbf16>, vector<8x24xbf16>, vector<256x24xf32> -> vector<256x24xf32>
    %63 = arith.addf %56, %62 : vector<256x24xf32>
    %64 = vector.extract_strided_slice %63 {offsets = [0, 0], sizes = [256, 8], strides = [1, 1]} : vector<256x24xf32> to vector<256x8xf32>
    %65 = vector.extract_strided_slice %63 {offsets = [0, 8], sizes = [256, 8], strides = [1, 1]} : vector<256x24xf32> to vector<256x8xf32>
    %66 = vector.extract_strided_slice %63 {offsets = [0, 16], sizes = [256, 8], strides = [1, 1]} : vector<256x24xf32> to vector<256x8xf32>
    %67 = arith.minimumf %64, %65 : vector<256x8xf32>
    %68 = arith.maximumf %64, %65 : vector<256x8xf32>
    %69 = arith.minimumf %68, %66 : vector<256x8xf32>
    %70 = arith.maximumf %67, %69 : vector<256x8xf32>
    %c0_63 = arith.constant 0 : index
    %c0_64 = arith.constant 0 : index
    %71 = vector.load %arg3[%c0_63, %c0_64] : memref<2x8xf32, #tpu.memory_space<vmem>>, vector<1x8xf32>
    %c1_65 = arith.constant 1 : index
    %c0_66 = arith.constant 0 : index
    %72 = vector.load %arg3[%c1_65, %c0_66] : memref<2x8xf32, #tpu.memory_space<vmem>>, vector<1x8xf32>
    %c0_67 = arith.constant 0 : index
    %c1_68 = arith.constant 1 : index
    %c1_69 = arith.constant 1 : index
    %c0_70 = arith.constant 0 : index
    %73 = vector.load %arg1[%c0_67, %c1_68, %c1_69, %c0_70] : memref<1x18x18x8xbf16, #tpu.memory_space<vmem>>, vector<1x16x16x8xbf16>
    %74 = vector.shape_cast %73 : vector<1x16x16x8xbf16> to vector<16x16x8xbf16>
    %75 = vector.shape_cast %74 : vector<16x16x8xbf16> to vector<256x8xbf16>
    %76 = arith.extf %75 : vector<256x8xbf16> to vector<256x8xf32>
    %77 = vector.broadcast %71 : vector<1x8xf32> to vector<256x8xf32>
    %78 = arith.mulf %70, %77 : vector<256x8xf32>
    %79 = vector.broadcast %72 : vector<1x8xf32> to vector<256x8xf32>
    %80 = arith.addf %78, %79 : vector<256x8xf32>
    %cst_71 = arith.constant 0.000000e+00 : f32
    %81 = vector.broadcast %cst_71 : f32 to vector<256x8xf32>
    %82 = arith.maximumf %80, %81 : vector<256x8xf32>
    %83 = arith.addf %82, %76 : vector<256x8xf32>
    %84 = vector.shape_cast %83 : vector<256x8xf32> to vector<16x16x8xf32>
    %c0_72 = arith.constant 0 : index
    %c0_73 = arith.constant 0 : index
    %c0_74 = arith.constant 0 : index
    %c0_75 = arith.constant 0 : index
    %85 = vector.load %arg4[%c0_72, %c0_73, %c0_74, %c0_75] : memref<1x16x16x8xf32, #tpu.memory_space<vmem>>, vector<1x16x16x8xf32>
    %86 = vector.shape_cast %85 : vector<1x16x16x8xf32> to vector<16x16x8xf32>
    %87 = vector.shape_cast %84 : vector<16x16x8xf32> to vector<1x16x16x8xf32>
    tpu.vector_store %arg4[%c0_72, %c0_73, %c0_74, %c0_75], %87 {strides = array<i32>} : memref<1x16x16x8xf32, #tpu.memory_space<vmem>>, vector<1x16x16x8xf32>,
    return
  }
  func.func @transform_0(%arg0: i32) -> (i32, i32, i32, i32) {
    %c0_i32 = arith.constant 0 : i32
    %c0_i32_0 = arith.constant 0 : i32
    %c0_i32_1 = arith.constant 0 : i32
    %c0_i32_2 = arith.constant 0 : i32
    return %arg0, %c0_i32, %c0_i32_0, %c0_i32_1 : i32, i32, i32, i32
  }
  func.func @transform_1(%arg0: i32) -> (i32, i32, i32) {
    %c0_i32 = arith.constant 0 : i32
    %c0_i32_0 = arith.constant 0 : i32
    %c0_i32_1 = arith.constant 0 : i32
    %c0_i32_2 = arith.constant 0 : i32
    return %c0_i32, %c0_i32_0, %c0_i32_1 : i32, i32, i32
  }
  func.func @transform_2(%arg0: i32) -> (i32, i32) {
    %c0_i32 = arith.constant 0 : i32
    %c0_i32_0 = arith.constant 0 : i32
    %c0_i32_1 = arith.constant 0 : i32
    return %c0_i32, %c0_i32_0 : i32, i32
  }
  func.func @transform_3(%arg0: i32) -> (i32, i32, i32, i32) {
    %c0_i32 = arith.constant 0 : i32
    %c0_i32_0 = arith.constant 0 : i32
    %c0_i32_1 = arith.constant 0 : i32
    %c0_i32_2 = arith.constant 0 : i32
    return %arg0, %c0_i32, %c0_i32_0, %c0_i32_1 : i32, i32, i32, i32
  }
}

</mosaic_0001>

<bundles_post_ra>
// kernel: sketch3_residual_block.2
= control target key start
LH: loop header
LB: loop body
LE: loop exit
PB: predicated region body
PF: predicated region fallthrough
CT: control target
= control target key end

     0   :  { %s6728_s9 = smov 0   ;;  %s8967_s0 = inlined_call_operand.vmem [shape: bf16[2,18,18,8], index: 0, kind: input, shape index: {}]   ;;  %s8968_s1 = inlined_call_operand.vmem [shape: bf16[9,8,24], index: 1, kind: input, shape index: {}]   ;;  %s8969_s2 = inlined_call_operand.vmem [shape: f32[2,2,8], index: 2, kind: output, shape index: {}]  }
   0x1 LB: > { %s5315_s10 = sadd.s32 4294967295, %s6709_s9   ;;  %p5319_p0 = scmp.ge.s32.totalorder %s6709_s9, 1  ;;  %s6709_s9 = sphi %s6728_s9, %s12_s9  }
   0x2   : > { %p112_p1 = scmp.lt.s32.totalorder %s6709_s9, 3 }
   0x4   : > { %p113_p2 = pnand %p5319_p0, %p112_p1 }
   0x6   : > { %116 = sbr.rel (%p113_p2) target bundleno = 865 (0x361), region = 28 }
   0xd   : > { %vm678_vm0 = vcmask 1043456   ;;  %v5549_v0 = vld [vmem:[%s8968_s1 + $0x10] sm:$0xf]  ;;  %v5322_v1 = vld [vmem:[%s8968_s1 + $0x4] sm:$0xf]  ;;  %p133_p3 = scmp.lt.s32.totalorder %s5315_s10, 1 }
   0xe   : > { %6581 = vmatprep.subr.msk.bf16.mxu0 %vm678_vm0, %v5549_v0  ;;  %6577 = vmatprep.subr.msk.bf16.mxu1 %vm678_vm0, %v5322_v1  ;;  %v6745_v2 = vsel %vm678_vm0, %v5549_v0, 0  ;;  %v680_v3 = vsel %vm678_vm0, %v5322_v1, 0  ;;  %v5614_v4 = vld [vmem:[%s8968_s1 + $0x14] sm:$0xf]  ;;  %v175_v5 = vld [vmem:[%s8968_s1] sm:$0xf] }
   0xf   : > { %8985 = vst [vmem:[#allocation2_spill] sm:$0xff] %v6745_v2  ;;  %6150 = vmatpush3.bf16.msra.mxu0 %v6745_v2  ;;  %6014 = vmatpush3.bf16.msra.mxu1 %v680_v3  ;;  %s9041_s10 = smov (!%p133_p3, %s5315_s10), 1  ;;  %vm192_vm1 = vsmask.f32 3328  ;;  %vm193_vm2 = vsmask.f32 7440 }
  0x10   : > { %6583 = vmatprep.subr.msk.bf16.mxu0 %vm678_vm0, %v5614_v4  ;;  %6578 = vmatprep.subr.msk.bf16.mxu1 %vm678_vm0, %v175_v5  ;;  %s6587_s19 = smul.u32 216, %s9041_s10  ;;  %vm629_vm3 = vcmask 64512   ;;  %v6776_v17 = vsel %vm678_vm0, %v5614_v4, 0  ;;  %v6782_v26 = vld [vmem:[%s8968_s1 + $0x18] sm:$0xf]  ;;  %vm6789_vm4 = vmor %vm192_vm1, %vm193_vm2  ;;  %v6795_v37 = vsel %vm678_vm0, %v175_v5, 0 }
  0x11   : > { %v6799_v41 = vsel %vm678_vm0, %v6782_v26, 0  ;;  %vm1183_vm5 = vcmask 1042432   ;;  %vm1184_vm6 = vcmask 1046532   ;;  %s6711_s7 = smov 112   ;;  %s6712_s8 = smov 120   ;;  %vm5258_vm8 = vcmask 1040384  }
  0x12   : > { %s6763_s22 = scalar_lea.vmem %s8967_s0, %s6587_s19  ;;  %vm7011_vm7 = vmor %vm1183_vm5, %vm1184_vm6  ;;  %s5321_s11 = sshll.u32 %s9041_s10, 1  ;;  %vm5260_vm9 = vcmask 58368  }
  0x13   : > { %v143_v6 = vld [vmem:[%s6763_s22] sm:$0xf]  ;;  %v144_v7 = vld [vmem:[%s6763_s22 + $0x4] sm:$0xf]  ;;  %v176_v8 = vld [vmem:[%s6763_s22 + $0x8] sm:$0x1]  ;;  %s141_s14 = scalar_lea.vmem %s8969_s2, %s5321_s11 }
  0x14   : > { %v196_v9 = vshrl.u32 %v143_v6, 16  ;;  %v199_v10 = vshll.u32 %v143_v6, 16  ;;  %v205_v11 = vshll.u32 %v144_v7, 16  ;;  %v209_v12 = vshrl.u32 %v144_v7, 16  ;;  %v5501_v13 = vld [vmem:[%s6763_s22 + $0xc] sm:$0xf] }
  0x15   : > { %v215_v14 = vshll.u32 %v176_v8, 16  ;;  %v6770_v15 = vld [vmem:[%s6763_s22 + $0x10] sm:$0xf]  ;;  %v6773_v16 = vld [vmem:[%s6763_s22 + $0x14] sm:$0x1]  ;;  %v2000_v23 = vshrl.u32 %v5501_v13, 16 }
  0x16   : > { %v198_v18 = vrot.slane %v196_v9, 4  ;;  %v201_v19 = vrot.slane %v199_v10, 5  ;;  %v207_v20 = vrot.slane %v205_v11, 5  ;;  %v211_v21 = vrot.slane %v209_v12, 4  ;;  %v145_v31 = vld [vmem:[%s6763_s22 + $0xc] sm:$0xf] }
  0x17   : > { %v217_v22 = vrot.slane %v215_v14, 5  ;;  %v2003_v24 = vshll.u32 %v5501_v13, 16  ;;  %v2009_v25 = vshll.u32 %v6770_v15, 16  ;;  %v2013_v29 = vshrl.u32 %v6770_v15, 16  ;;  %v146_v36 = vld [vmem:[%s6763_s22 + $0x10] sm:$0xf] }
  0x18   : > { %v202_v27 = vor.u32 %v201_v19, %v198_v18  ;;  %v212_v28 = vor.u32 %v211_v21, %v207_v20  ;;  %v2019_v30 = vshll.u32 %v6773_v16, 16  ;;  %v2002_v33 = vrot.slane %v2000_v23, 4  ;;  %v177_v44 = vld [vmem:[%s6763_s22 + $0x14] sm:$0x1]  ;;  %v5504_v55 = vld [vmem:[%s6763_s22 + $0x18] sm:$0xf] }
  0x19   : > { %v2005_v34 = vrot.slane %v2003_v24, 5  ;;  %v2011_v35 = vrot.slane %v2009_v25, 5  ;;  %v2015_v40 = vrot.slane %v2013_v29, 4  ;;  %v220_v45 = vshrl.u32 %v145_v31, 16  ;;  %v6808_v60 = vld [vmem:[%s6763_s22 + $0x1c] sm:$0xf] }
  0x1a   : > { %v203_v38 = vrot.slane %v202_v27, 4  ;;  %v213_v39 = vrot.slane %v212_v28, 4  ;;  %v2021_v43 = vrot.slane %v2019_v30, 5  ;;  %v223_v46 = vshll.u32 %v145_v31, 16  ;;  %v6816_v1 = vld [vmem:[%s6763_s22 + $0x20] sm:$0x1] }
  0x1b   : > { %v2006_v42 = vor.u32 %v2005_v34, %v2002_v33  ;;  %v2016_v49 = vor.u32 %v2015_v40, %v2011_v35  ;;  %v229_v50 = vshll.u32 %v146_v36, 16  ;;  %v222_v53 = vrot.slane %v220_v45, 4  ;;  %v147_v18 = vld [vmem:[%s6763_s22 + $0x18] sm:$0xf]  ;;  %v148_v23 = vld [vmem:[%s6763_s22 + $0x1c] sm:$0xf] }
  0x1c   : > { %v208_v47 = vsel %vm6789_vm4, %v203_v38, %v207_v20  ;;  %v218_v48 = vsel %vm6789_vm4, %v213_v39, %v217_v22  ;;  %v225_v54 = vrot.slane %v223_v46, 5  ;;  %v233_v58 = vshrl.u32 %v146_v36, 16  ;;  %v178_v31 = vld [vmem:[%s6763_s22 + $0x20] sm:$0x1]  ;;  %v5507_v40 = vld [vmem:[%s6763_s22 + $0x24] sm:$0xf] }
  0x1d   : > { %v5323_v51 = vcombine.low %v208_v47, %v218_v48  ;;  %v2007_v52 = vrot.slane %v2006_v42, 4  ;;  %v2017_v56 = vrot.slane %v2016_v49, 4  ;;  %v231_v57 = vrot.slane %v229_v50, 5  ;;  %v6839_v46 = vld [vmem:[%s6763_s22 + $0x28] sm:$0xf] }
  0x1e   : > { %v239_v59 = vshll.u32 %v177_v44, 16  ;;  %v2743_v62 = vrot.slane %v6770_v15, 5  ;;  %v2746_v63 = vrot.slane %v6773_v16, 5  ;;  %v226_v0 = vor.u32 %v225_v54, %v222_v53  ;;  %v6845_v53 = vld [vmem:[%s6763_s22 + $0x2c] sm:$0x1] }
  0x1f   : > { %6015 = vmatprep.mubr.msk.bf16.mxu1 %vm629_vm3, %v5323_v51  ;;  %v2012_v61 = vsel %vm6789_vm4, %v2007_v52, %v2011_v35  ;;  %v2022_v3 = vsel %vm6789_vm4, %v2017_v56, %v2021_v43  ;;  %v235_v4 = vrot.slane %v233_v58, 4  ;;  %v2024_v6 = vshrl.u32 %v5504_v55, 16  ;;  %v186_v16 = vld [vmem:[%s6763_s22 + $0x80] sm:$0x1] }
  0x20   : > { %v241_v5 = vrot.slane %v239_v59, 5  ;;  %v5550_v7 = vcombine.low %v2012_v61, %v2022_v3  ;;  %v227_v8 = vrot.slane %v226_v0, 4  ;;  %v2027_v9 = vshll.u32 %v5504_v55, 16  ;;  %v149_v61 = vld [vmem:[%s6763_s22 + $0x24] sm:$0xf] }
  0x21   : > { %v2033_v10 = vshll.u32 %v6808_v60, 16  ;;  %v236_v11 = vor.u32 %v235_v4, %v231_v57  ;;  %v2026_v12 = vrot.slane %v2024_v6, 4  ;;  %v2037_v13 = vshrl.u32 %v6808_v60, 16  ;;  %v150_v6 = vld [vmem:[%s6763_s22 + $0x28] sm:$0xf] }
  0x22   : > { %v2043_v14 = vshll.u32 %v6816_v1, 16  ;;  %6151 = vmatprep.mubr.msk.bf16.mxu0 %vm629_vm3, %v5550_v7  ;;  %v232_v19 = vsel %vm6789_vm4, %v227_v8, %v231_v57  ;;  %v2029_v20 = vrot.slane %v2027_v9, 5  ;;  %v2750_v22 = vrot.slane %v6808_v60, 5 }
  0x23   : > { %v2035_v21 = vrot.slane %v2033_v10, 5  ;;  %v237_v24 = vrot.slane %v236_v11, 4  ;;  %v2039_v25 = vrot.slane %v2037_v13, 4  ;;  %v2753_v28 = vrot.slane %v6816_v1, 5 }
  0x24   : > { %v2045_v27 = vrot.slane %v2043_v14, 5  ;;  %v2030_v29 = vor.u32 %v2029_v20, %v2026_v12  ;;  %v6832_v30 = vrot.slane %v2750_v22, 4  ;;  %v244_v33 = vshrl.u32 %v147_v18, 16 }
  0x25   : > { %v247_v34 = vshll.u32 %v147_v18, 16  ;;  %v242_v35 = vsel %vm6789_vm4, %v237_v24, %v241_v5  ;;  %v2040_v36 = vor.u32 %v2039_v25, %v2035_v21  ;;  %v253_v38 = vshll.u32 %v148_v23, 16 }
  0x26   : > { %v257_v39 = vshrl.u32 %v148_v23, 16  ;;  %v5324_v42 = vcombine.low %v232_v19, %v242_v35  ;;  %v2031_v43 = vrot.slane %v2030_v29, 4  ;;  %v246_v44 = vrot.slane %v244_v33, 4  ;;  %v5510_v23 = vld [vmem:[%s6763_s22 + $0x30] sm:$0xf] }
  0x27   : > { %v249_v45 = vrot.slane %v247_v34, 5  ;;  %v2041_v47 = vrot.slane %v2040_v36, 4  ;;  %v255_v48 = vrot.slane %v253_v38, 5  ;;  %v263_v50 = vshll.u32 %v178_v31, 16  ;;  %v6864_v31 = vld [vmem:[%s6763_s22 + $0x34] sm:$0xf] }
  0x28   : > { %v259_v49 = vrot.slane %v257_v39, 4  ;;  %6016 = vmatmul.mubr.msk.bf16.vlgmr.msra.gmra.mrb[0].mxu1 %vm629_vm3, %v5324_v42  ;;  %v2036_v51 = vsel %vm6789_vm4, %v2031_v43, %v2035_v21  ;;  %v2048_v54 = vshrl.u32 %v5507_v40, 16  ;;  %v2051_v55 = vshll.u32 %v5507_v40, 16  ;;  %v6872_v39 = vld [vmem:[%s6763_s22 + $0x38] sm:$0x1] }
  0x29   : > { %v250_v52 = vor.u32 %v249_v45, %v246_v44  ;;  %v2046_v56 = vsel %vm6789_vm4, %v2041_v47, %v2045_v27  ;;  %v265_v58 = vrot.slane %v263_v50, 5  ;;  %v2057_v59 = vshll.u32 %v6839_v46, 16  ;;  %6048 = vmatpush3.bf16.msra.mxu1 %v6795_v37  ;;  %v179_v37 = vld [vmem:[%s6763_s22 + $0x2c] sm:$0x1] }
  0x2a   : > { %v260_v57 = vor.u32 %v259_v49, %v255_v48  ;;  %v5551_v0 = vcombine.low %v2036_v51, %v2046_v56  ;;  %v2050_v4 = vrot.slane %v2048_v54, 4  ;;  %v2053_v5 = vrot.slane %v2051_v55, 5  ;;  %v151_v51 = vld [vmem:[%s6763_s22 + $0x30] sm:$0xf] }
  0x2b   : > { %v251_v3 = vrot.slane %v250_v52, 4  ;;  %v2059_v8 = vrot.slane %v2057_v59, 5  ;;  %v2061_v9 = vshrl.u32 %v6839_v46, 16  ;;  %v2067_v10 = vshll.u32 %v6845_v53, 16 }
  0x2c   : > { %v261_v7 = vrot.slane %v260_v57, 4  ;;  %6152 = vmatmul.mubr.msk.bf16.vlgmr.msra.gmra.mrb[0].mxu0 %vm629_vm3, %v5551_v0  ;;  %v2054_v12 = vor.u32 %v2053_v5, %v2050_v4  ;;  %v268_v13 = vshrl.u32 %v149_v61, 16  ;;  %v271_v14 = vshll.u32 %v149_v61, 16  ;;  %v152_v57 = vld [vmem:[%s6763_s22 + $0x34] sm:$0xf] }
  0x2d   : > { %v256_v11 = vsel %vm6789_vm4, %v251_v3, %v255_v48  ;;  %6184 = vmatpush3.bf16.msra.mxu0 %v6776_v17  ;;  %v2063_v19 = vrot.slane %v2061_v9, 4  ;;  %v2069_v20 = vrot.slane %v2067_v10, 5  ;;  %v277_v21 = vshll.u32 %v150_v6, 16  ;;  %v180_v3 = vld [vmem:[%s6763_s22 + $0x38] sm:$0x1] }
  0x2e   : > { %v266_v18 = vsel %vm6789_vm4, %v261_v7, %v265_v58  ;;  %v2055_v25 = vrot.slane %v2054_v12, 4  ;;  %v270_v27 = vrot.slane %v268_v13, 4  ;;  %v273_v29 = vrot.slane %v271_v14, 5  ;;  %6584 = vmatprep.subr.msk.bf16.mxu0 %vm678_vm0, %v6782_v26  ;;  %v5513_v12 = vld [vmem:[%s6763_s22 + $0x3c] sm:$0xf] }
  0x2f   : > { %v5325_v24 = vcombine.low %v256_v11, %v266_v18  ;;  %v2064_v33 = vor.u32 %v2063_v19, %v2059_v8  ;;  %v279_v34 = vrot.slane %v277_v21, 5  ;;  %v281_v17 = vshrl.u32 %v150_v6, 16  ;;  %v6889_v19 = vld [vmem:[%s6763_s22 + $0x40] sm:$0xf] }
  0x30   : > { %v287_v35 = vshll.u32 %v179_v37, 16  ;;  %v2060_v36 = vsel %vm6789_vm4, %v2055_v25, %v2059_v8  ;;  %v274_v38 = vor.u32 %v273_v29, %v270_v27  ;;  %v2072_v40 = vshrl.u32 %v5510_v23, 16 }
  0x31   : > { %6019 = vmatprep.mubr.msk.bf16.mxu1 %vm629_vm3, %v5325_v24  ;;  %v2075_v42 = vshll.u32 %v5510_v23, 16  ;;  %v2065_v43 = vrot.slane %v2064_v33, 4  ;;  %v283_v44 = vrot.slane %v281_v17, 4  ;;  %v2081_v26 = vshll.u32 %v6864_v31, 16  ;;  %v6894_v33 = vld [vmem:[%s6763_s22 + $0x44] sm:$0x1] }
  0x32   : > { %v289_v45 = vrot.slane %v287_v35, 5  ;;  %v275_v47 = vrot.slane %v274_v38, 4  ;;  %v2074_v48 = vrot.slane %v2072_v40, 4  ;;  %v2085_v50 = vshrl.u32 %v6864_v31, 16  ;;  %v153_v40 = vld [vmem:[%s6763_s22 + $0x3c] sm:$0xf] }
  0x33   : > { %v2077_v49 = vrot.slane %v2075_v42, 5  ;;  %v2070_v52 = vsel %vm6789_vm4, %v2065_v43, %v2069_v20  ;;  %v284_v54 = vor.u32 %v283_v44, %v279_v34  ;;  %v2083_v55 = vrot.slane %v2081_v26, 5  ;;  %v154_v26 = vld [vmem:[%s6763_s22 + $0x40] sm:$0xf] }
  0x34   : > { %v2091_v56 = vshll.u32 %v6872_v39, 16  ;;  %v5552_v58 = vcombine.low %v2060_v36, %v2070_v52  ;;  %v280_v59 = vsel %vm6789_vm4, %v275_v47, %v279_v34  ;;  %v2087_v0 = vrot.slane %v2085_v50, 4 }
  0x35   : > { %v2078_v61 = vor.u32 %v2077_v49, %v2074_v48  ;;  %v285_v4 = vrot.slane %v284_v54, 4  ;;  %v292_v6 = vshrl.u32 %v151_v51, 16  ;;  %v295_v7 = vshll.u32 %v151_v51, 16 }
  0x36   : > { %v2093_v5 = vrot.slane %v2091_v56, 5  ;;  %6155 = vmatprep.mubr.msk.bf16.mxu0 %vm629_vm3, %v5552_v58  ;;  %v2088_v9 = vor.u32 %v2087_v0, %v2083_v55  ;;  %v301_v10 = vshll.u32 %v152_v57, 16  ;;  %v305_v11 = vshrl.u32 %v152_v57, 16  ;;  %v5516_v0 = vld [vmem:[%s6763_s22 + $0x48] sm:$0xf] }
  0x37   : > { %v2079_v8 = vrot.slane %v2078_v61, 4  ;;  %v290_v37 = vsel %vm6789_vm4, %v285_v4, %v289_v45  ;;  %v294_v13 = vrot.slane %v292_v6, 4  ;;  %v297_v14 = vrot.slane %v295_v7, 5  ;;  %v6912_v7 = vld [vmem:[%s6763_s22 + $0x4c] sm:$0xf] }
  0x38   : > { %v311_v18 = vshll.u32 %v180_v3, 16  ;;  %v5326_v20 = vcombine.low %v280_v59, %v290_v37  ;;  %v2089_v23 = vrot.slane %v2088_v9, 4  ;;  %v303_v24 = vrot.slane %v301_v10, 5  ;;  %v181_v59 = vld [vmem:[%s6763_s22 + $0x44] sm:$0x1] }
  0x39   : > { %v2084_v21 = vsel %vm6789_vm4, %v2079_v8, %v2083_v55  ;;  %v298_v25 = vor.u32 %v297_v14, %v294_v13  ;;  %v307_v27 = vrot.slane %v305_v11, 4  ;;  %v2096_v34 = vshrl.u32 %v5513_v12, 16 }
  0x3a   : > { %v313_v29 = vrot.slane %v311_v18, 5  ;;  %6020 = vmatmul.mubr.msk.bf16.gmra.mrb[4].mxu1 %vm629_vm3, %v5326_v20  ;;  %v2094_v17 = vsel %vm6789_vm4, %v2089_v23, %v2093_v5  ;;  %v2099_v35 = vshll.u32 %v5513_v12, 16  ;;  %v2105_v36 = vshll.u32 %v6889_v19, 16 }
  0x3b   : > { %v2109_v38 = vshrl.u32 %v6889_v19, 16  ;;  %v5553_v42 = vcombine.low %v2084_v21, %v2094_v17  ;;  %v299_v43 = vrot.slane %v298_v25, 4  ;;  %v308_v44 = vor.u32 %v307_v27, %v303_v24  ;;  %v6920_v21 = vld [vmem:[%s6763_s22 + $0x50] sm:$0x1]  ;;  %v6924_v25 = vld [vmem:[%s6763_s22 + $0x48] sm:$0xf] }
  0x3c   : > { %v2098_v45 = vrot.slane %v2096_v34, 4  ;;  %v2101_v47 = vrot.slane %v2099_v35, 5  ;;  %v2107_v48 = vrot.slane %v2105_v36, 5  ;;  %v2115_v50 = vshll.u32 %v6894_v33, 16  ;;  %v6927_v35 = vld [vmem:[%s6763_s22 + $0x4c] sm:$0xf] }
  0x3d   : > { %v2111_v49 = vrot.slane %v2109_v38, 4  ;;  %6156 = vmatmul.mubr.msk.bf16.gmra.mrb[4].mxu0 %vm629_vm3, %v5553_v42  ;;  %v304_v51 = vsel %vm6789_vm4, %v299_v43, %v303_v24  ;;  %v309_v52 = vrot.slane %v308_v44, 4  ;;  %v316_v54 = vshrl.u32 %v153_v40, 16 }
  0x3e   : > { %v319_v55 = vshll.u32 %v153_v40, 16  ;;  %v2102_v56 = vor.u32 %v2101_v47, %v2098_v45  ;;  %v2117_v58 = vrot.slane %v2115_v50, 5  ;;  %v325_v61 = vshll.u32 %v154_v26, 16 }
  0x3f   : > { %v2112_v57 = vor.u32 %v2111_v49, %v2107_v48  ;;  %v314_v3 = vsel %vm6789_vm4, %v309_v52, %v313_v29  ;;  %v318_v4 = vrot.slane %v316_v54, 4  ;;  %v329_v6 = vshrl.u32 %v154_v26, 16  ;;  %v182_v26 = vld [vmem:[%s6763_s22 + $0x50] sm:$0x1]  ;;  %v5519_v52 = vld [vmem:[%s6763_s22 + $0x54] sm:$0xf] }
  0x40   : > { %v321_v5 = vrot.slane %v319_v55, 5  ;;  %v5327_v8 = vcombine.low %v304_v51, %v314_v3  ;;  %v2103_v9 = vrot.slane %v2102_v56, 4  ;;  %v327_v11 = vrot.slane %v325_v61, 5  ;;  %v6943_v3 = vld [vmem:[%s6763_s22 + $0x58] sm:$0xf] }
  0x41   : > { %v2113_v10 = vrot.slane %v2112_v57, 4  ;;  %v331_v37 = vrot.slane %v329_v6, 4  ;;  %v335_v13 = vshll.u32 %v181_v59, 16  ;;  %v2120_v14 = vshrl.u32 %v5516_v0, 16 }
  0x42   : > { %v322_v12 = vor.u32 %v321_v5, %v318_v4  ;;  %6023 = vmatprep.mubr.msk.bf16.mxu1 %vm629_vm3, %v5327_v8  ;;  %v2108_v18 = vsel %vm6789_vm4, %v2103_v9, %v2107_v48  ;;  %v2123_v23 = vshll.u32 %v5516_v0, 16  ;;  %v2129_v24 = vshll.u32 %v6912_v7, 16 }
  0x43   : > { %v2118_v20 = vsel %vm6789_vm4, %v2113_v10, %v2117_v58  ;;  %v332_v34 = vor.u32 %v331_v37, %v327_v11  ;;  %v337_v17 = vrot.slane %v335_v13, 5  ;;  %v2122_v36 = vrot.slane %v2120_v14, 4 }
  0x44   : > { %v5554_v27 = vcombine.low %v2108_v18, %v2118_v20  ;;  %v323_v29 = vrot.slane %v322_v12, 4  ;;  %v2125_v38 = vrot.slane %v2123_v23, 5  ;;  %v2131_v40 = vrot.slane %v2129_v24, 5  ;;  %v6949_v12 = vld [vmem:[%s6763_s22 + $0x5c] sm:$0x1] }
  0x45   : > { %v2133_v42 = vshrl.u32 %v6912_v7, 16  ;;  %v333_v44 = vrot.slane %v332_v34, 4  ;;  %v2139_v45 = vshll.u32 %v6920_v21, 16  ;;  %v340_v47 = vshrl.u32 %v6924_v25, 16  ;;  %v6953_v23 = vld [vmem:[%s6763_s22 + $0x54] sm:$0xf] }
  0x46   : > { %6159 = vmatprep.mubr.msk.bf16.mxu0 %vm629_vm3, %v5554_v27  ;;  %v328_v43 = vsel %vm6789_vm4, %v323_v29, %v327_v11  ;;  %v2126_v48 = vor.u32 %v2125_v38, %v2122_v36  ;;  %v343_v50 = vshll.u32 %v6924_v25, 16  ;;  %v349_v51 = vshll.u32 %v6927_v35, 16 }
  0x47   : > { %v2135_v49 = vrot.slane %v2133_v42, 4  ;;  %v338_v54 = vsel %vm6789_vm4, %v333_v44, %v337_v17  ;;  %v2141_v55 = vrot.slane %v2139_v45, 5  ;;  %v342_v56 = vrot.slane %v340_v47, 4  ;;  %v6959_v17 = vld [vmem:[%s6763_s22 + $0x58] sm:$0xf] }
  0x48   : > { %v353_v57 = vshrl.u32 %v6927_v35, 16  ;;  %v5328_v58 = vcombine.low %v328_v43, %v338_v54  ;;  %v2127_v59 = vrot.slane %v2126_v48, 4  ;;  %v345_v0 = vrot.slane %v343_v50, 5 }
  0x49   : > { %v2136_v61 = vor.u32 %v2135_v49, %v2131_v40  ;;  %v351_v4 = vrot.slane %v349_v51, 5  ;;  %v359_v6 = vshll.u32 %v182_v26, 16  ;;  %v2144_v8 = vshrl.u32 %v5519_v52, 16  ;;  %v183_v26 = vld [vmem:[%s6763_s22 + $0x5c] sm:$0x1] }
  0x4a   : > { %v355_v5 = vrot.slane %v353_v57, 4  ;;  %6024 = vmatmul.mubr.msk.bf16.gmra.mrb[8].mxu1 %vm629_vm3, %v5328_v58  ;;  %v2132_v9 = vsel %vm6789_vm4, %v2127_v59, %v2131_v40  ;;  %v346_v11 = vor.u32 %v345_v0, %v342_v56  ;;  %v2147_v37 = vshll.u32 %v5519_v52, 16  ;;  %v5522_v52 = vld [vmem:[%s6763_s22 + $0x60] sm:$0xf]  ;;  %v6973_v58 = vld [vmem:[%s6763_s22 + $0x64] sm:$0xf] }
  0x4b   : > { %v2137_v10 = vrot.slane %v2136_v61, 4  ;;  %v361_v14 = vrot.slane %v359_v6, 5  ;;  %v2146_v18 = vrot.slane %v2144_v8, 4  ;;  %v2153_v20 = vshll.u32 %v6943_v3, 16  ;;  %v6980_v8 = vld [vmem:[%s6763_s22 + $0x68] sm:$0x1] }
  0x4c   : > { %v356_v13 = vor.u32 %v355_v5, %v351_v4  ;;  %v347_v27 = vrot.slane %v346_v11, 4  ;;  %v2149_v29 = vrot.slane %v2147_v37, 5  ;;  %v2157_v34 = vshrl.u32 %v6943_v3, 16 }
  0x4d   : > { %v2142_v24 = vsel %vm6789_vm4, %v2137_v10, %v2141_v55  ;;  %v2155_v40 = vrot.slane %v2153_v20, 5  ;;  %v2163_v42 = vshll.u32 %v6949_v12, 16  ;;  %v364_v47 = vshrl.u32 %v6953_v23, 16 }
  0x4e   : > { %v5555_v36 = vcombine.low %v2132_v9, %v2142_v24  ;;  %v357_v38 = vrot.slane %v356_v13, 4  ;;  %v352_v43 = vsel %vm6789_vm4, %v347_v27, %v351_v4  ;;  %v2150_v44 = vor.u32 %v2149_v29, %v2146_v18  ;;  %v6984_v18 = vld [vmem:[%s6763_s22 + $0x60] sm:$0xf] }
  0x4f   : > { %v2159_v45 = vrot.slane %v2157_v34, 4  ;;  %v2165_v49 = vrot.slane %v2163_v42, 5  ;;  %v367_v50 = vshll.u32 %v6953_v23, 16  ;;  %v373_v51 = vshll.u32 %v6959_v17, 16  ;;  %v6990_v34 = vld [vmem:[%s6763_s22 + $0x64] sm:$0xf] }
  0x50   : > { %6160 = vmatmul.mubr.msk.bf16.gmra.mrb[8].mxu0 %vm629_vm3, %v5555_v36  ;;  %v362_v48 = vsel %vm6789_vm4, %v357_v38, %v361_v14  ;;  %v2151_v55 = vrot.slane %v2150_v44, 4  ;;  %v366_v57 = vrot.slane %v364_v47, 4  ;;  %v377_v0 = vshrl.u32 %v6959_v17, 16 }
  0x51   : > { %v5329_v54 = vcombine.low %v352_v43, %v362_v48  ;;  %v2160_v56 = vor.u32 %v2159_v45, %v2155_v40  ;;  %v369_v59 = vrot.slane %v367_v50, 5  ;;  %v375_v61 = vrot.slane %v373_v51, 5 }
  0x52   : > { %v383_v4 = vshll.u32 %v183_v26, 16  ;;  %v2156_v5 = vsel %vm6789_vm4, %v2151_v55, %v2155_v40  ;;  %v2168_v9 = vshrl.u32 %v5522_v52, 16  ;;  %v2171_v10 = vshll.u32 %v5522_v52, 16 }
  0x53   : > { %6027 = vmatprep.mubr.msk.bf16.mxu1 %vm629_vm3, %v5329_v54  ;;  %v2161_v6 = vrot.slane %v2160_v56, 4  ;;  %v370_v11 = vor.u32 %v369_v59, %v366_v57  ;;  %v379_v37 = vrot.slane %v377_v0, 4  ;;  %v2177_v14 = vshll.u32 %v6973_v58, 16  ;;  %v5582_v57 = vld [vmem:[%s6763_s22 + $0xc] sm:$0xe] }
  0x54   : > { %v385_v13 = vrot.slane %v383_v4, 5  ;;  %v2170_v24 = vrot.slane %v2168_v9, 4  ;;  %v2173_v27 = vrot.slane %v2171_v10, 5  ;;  %v2181_v29 = vshrl.u32 %v6973_v58, 16 }
  0x55   : > { %v2166_v20 = vsel %vm6789_vm4, %v2161_v6, %v2165_v49  ;;  %v371_v38 = vrot.slane %v370_v11, 4  ;;  %v380_v40 = vor.u32 %v379_v37, %v375_v61  ;;  %v2179_v42 = vrot.slane %v2177_v14, 5  ;;  %v184_v49 = vld [vmem:[%s6763_s22 + $0x68] sm:$0x1] }
  0x56   : > { %v5556_v36 = vcombine.low %v2156_v5, %v2166_v20  ;;  %v2174_v43 = vor.u32 %v2173_v27, %v2170_v24  ;;  %v2183_v44 = vrot.slane %v2181_v29, 4  ;;  %v2187_v45 = vshll.u32 %v6980_v8, 16  ;;  %v7018_v27 = vld [vmem:[%s6763_s22 + $0x70] sm:$0xf] }
  0x57   : > { %v388_v26 = vshrl.u32 %v6984_v18, 16  ;;  %v376_v47 = vsel %vm6789_vm4, %v371_v38, %v375_v61  ;;  %v381_v48 = vrot.slane %v380_v40, 4  ;;  %v391_v50 = vshll.u32 %v6984_v18, 16  ;;  %v7005_v61 = vld [vmem:[%s6763_s22 + $0x6c] sm:$0xf] }
  0x58   : > { %6163 = vmatprep.mubr.msk.bf16.mxu0 %vm629_vm3, %v5556_v36  ;;  %v397_v51 = vshll.u32 %v6990_v34, 16  ;;  %v2175_v52 = vrot.slane %v2174_v43, 4  ;;  %v2184_v54 = vor.u32 %v2183_v44, %v2179_v42  ;;  %v2189_v55 = vrot.slane %v2187_v45, 5 }
  0x59   : > { %v390_v56 = vrot.slane %v388_v26, 4  ;;  %v386_v59 = vsel %vm6789_vm4, %v381_v48, %v385_v13  ;;  %v393_v0 = vrot.slane %v391_v50, 5  ;;  %v401_v5 = vshrl.u32 %v6990_v34, 16  ;;  %v185_v26 = vld [vmem:[%s6763_s22 + $0x74] sm:$0x1] }
  0x5a   : > { %v399_v4 = vrot.slane %v397_v51, 5  ;;  %v5330_v6 = vcombine.low %v376_v47, %v386_v59  ;;  %v2180_v9 = vsel %vm6789_vm4, %v2175_v52, %v2179_v42  ;;  %v2185_v10 = vrot.slane %v2184_v54, 4  ;;  %v5583_v47 = vld [vmem:[%s6763_s22 + $0x18] sm:$0xe] }
  0x5b   : > { %v407_v11 = vshll.u32 %v184_v49, 16  ;;  %v394_v13 = vor.u32 %v393_v0, %v390_v56  ;;  %v403_v14 = vrot.slane %v401_v5, 4  ;;  %v5598_v20 = vrot.slane %v5582_v57, 9  ;;  %v7037_v52 = vld [vmem:[%s6763_s22 + $0x78] sm:$0xf] }
  0x5c   : > { %v2745_v24 = vrot.slane %v2743_v62, 4  ;;  %6028 = vmatmul.mubr.msk.bf16.gmra.mrb[12].mxu1 %vm629_vm3, %v5330_v6  ;;  %v2190_v29 = vsel %vm6789_vm4, %v2185_v10, %v2189_v55  ;;  %v412_v38 = vshrl.u32 %v7005_v61, 16  ;;  %v415_v40 = vshll.u32 %v7005_v61, 16  ;;  %v7044_v56 = vld [vmem:[%s6763_s22 + $0x7c] sm:$0xf] }
  0x5d   : > { %v409_v36 = vrot.slane %v407_v11, 5  ;;  %v5557_v42 = vcombine.low %v2180_v9, %v2190_v29  ;;  %v395_v43 = vrot.slane %v394_v13, 4  ;;  %v404_v44 = vor.u32 %v403_v14, %v399_v4  ;;  %v7050_v5 = vld [vmem:[%s8968_s1 + $0x8] sm:$0xf] }
  0x5e   : > { %v2744_v45 = vsel %vm7011_vm7, %v5598_v20, %v2743_v62  ;;  %v2747_v48 = vsel %vm7011_vm7, %v2745_v24, %v2746_v63  ;;  %v414_v49 = vrot.slane %v412_v38, 4  ;;  %v417_v50 = vrot.slane %v415_v40, 5  ;;  %6579 = vmatprep.subr.msk.bf16.mxu1 %vm678_vm0, %v7050_v5  ;;  %v5584_v24 = vld [vmem:[%s6763_s22 + $0x24] sm:$0xe] }
  0x5f   : > { %v421_v51 = vshll.u32 %v7018_v27, 16  ;;  %6164 = vmatmul.mubr.msk.bf16.gmra.mrb[12].mxu0 %vm629_vm3, %v5557_v42  ;;  %v400_v15 = vsel %vm6789_vm4, %v395_v43, %v399_v4  ;;  %v405_v54 = vrot.slane %v404_v44, 4  ;;  %v5615_v62 = vcombine.low %v2744_v45, %v2747_v48  ;;  %v7083_v43 = vld [vmem:[%s8968_s1 + $0x1c] sm:$0xf] }
  0x60   : > { %v425_v55 = vshrl.u32 %v7018_v27, 16  ;;  %v418_v63 = vor.u32 %v417_v50, %v414_v49  ;;  %v431_v59 = vshll.u32 %v185_v26, 16  ;;  %v5599_v0 = vrot.slane %v5583_v47, 9 }
  0x61   : > { %v423_v57 = vrot.slane %v421_v51, 5  ;;  %v410_v4 = vsel %vm6789_vm4, %v405_v54, %v409_v36  ;;  %6185 = vmatprep.mubr.msk.bf16.mxu0 %vm629_vm3, %v5615_v62  ;;  %v2754_v9 = vsel %vm7011_vm7, %v6832_v30, %v2753_v28  ;;  %v436_v10 = vshrl.u32 %v7037_v52, 16  ;;  %v7070_v30 = vld [vmem:[%s6763_s22 + $0x84] sm:$0xf] }
  0x62   : > { %v427_v6 = vrot.slane %v425_v55, 4  ;;  %v5331_v11 = vcombine.low %v400_v15, %v410_v4  ;;  %v419_v13 = vrot.slane %v418_v63, 4  ;;  %v433_v14 = vrot.slane %v431_v59, 5  ;;  %v187_v15 = vld [vmem:[%s6763_s22 + $0x8c] sm:$0x1] }
  0x63   : > { %v2751_v20 = vsel %vm7011_vm7, %v5599_v0, %v2750_v22  ;;  %v438_v36 = vrot.slane %v436_v10, 4  ;;  %v439_v28 = vshll.u32 %v7037_v52, 16  ;;  %v445_v40 = vshll.u32 %v7044_v56, 16  ;;  %v7078_v22 = vld [vmem:[%s6763_s22 + $0x88] sm:$0xf] }
  0x64   : > { %v428_v1 = vor.u32 %v427_v6, %v423_v57  ;;  %v5616_v29 = vcombine.low %v2751_v20, %v2754_v9  ;;  %6031 = vmatprep.mubr.msk.bf16.mxu1 %vm629_vm3, %v5331_v11  ;;  %v424_v38 = vsel %vm6789_vm4, %v419_v13, %v423_v57  ;;  %v449_v60 = vshrl.u32 %v7044_v56, 16  ;;  %v5585_v63 = vld [vmem:[%s6763_s22 + $0x30] sm:$0xe]  ;;  %v7108_v20 = vld [vmem:[%s6763_s22 + $0x94] sm:$0xf] }
  0x65   : > { %v455_v42 = vshll.u32 %v186_v16, 16  ;;  %v441_v45 = vrot.slane %v439_v28, 5  ;;  %v5600_v26 = vrot.slane %v5584_v24, 9  ;;  %v2757_v47 = vrot.slane %v6839_v46, 5  ;;  %v7102_v10 = vld [vmem:[%s6763_s22 + $0x90] sm:$0xf] }
  0x66   : > { %v429_v44 = vrot.slane %v428_v1, 4  ;;  %v447_v48 = vrot.slane %v445_v40, 5  ;;  %v451_v49 = vrot.slane %v449_v60, 4  ;;  %v2760_v51 = vrot.slane %v6845_v53, 5 }
  0x67   : > { %v457_v50 = vrot.slane %v455_v42, 5  ;;  %6186 = vmatmul.mubr.msk.bf16.vlgmr.msra.gmra.mrb[0].mxu0 %vm629_vm3, %v5616_v29  ;;  %v442_v62 = vor.u32 %v441_v45, %v438_v36  ;;  %v2758_v55 = vsel %vm7011_vm7, %v5600_v26, %v2757_v47  ;;  %v2759_v16 = vrot.slane %v2757_v47, 4  ;;  %v188_v42 = vld [vmem:[%s6763_s22 + $0x98] sm:$0x1] }
  0x68   : > { %v434_v54 = vsel %vm6789_vm4, %v429_v44, %v433_v14  ;;  %6218 = vmatpush3.bf16.msra.mxu0 %v6799_v41  ;;  %v452_v46 = vor.u32 %v451_v49, %v447_v48  ;;  %v460_v53 = vshrl.u32 %v7070_v30, 16  ;;  %v463_v59 = vshll.u32 %v7070_v30, 16 }
  0x69   : > { %v5332_v57 = vcombine.low %v424_v38, %v434_v54  ;;  %v443_v0 = vrot.slane %v442_v62, 4  ;;  %v2761_v4 = vsel %vm7011_vm7, %v2759_v16, %v2760_v51  ;;  %v469_v6 = vshll.u32 %v7078_v22, 16  ;;  %6585 = vmatprep.subr.msk.bf16.mxu0 %vm678_vm0, %v7083_v43  ;;  %v7123_v54 = vld [vmem:[%s6763_s22 + $0x9c] sm:$0xf] }
  0x6a   : > { %v473_v9 = vshrl.u32 %v7078_v22, 16  ;;  %v453_v41 = vrot.slane %v452_v46, 4  ;;  %v5617_v11 = vcombine.low %v2758_v55, %v2761_v4  ;;  %v462_v13 = vrot.slane %v460_v53, 4  ;;  %v7134_v53 = vld [vmem:[%s6763_s22 + $0xa0] sm:$0xf] }
  0x6b   : > { %6032 = vmatmul.mubr.msk.bf16.gmra.mrb[16].mxu1 %vm629_vm3, %v5332_v57  ;;  %v465_v14 = vrot.slane %v463_v59, 5  ;;  %v448_v24 = vsel %vm6789_vm4, %v443_v0, %v447_v48  ;;  %v471_v1 = vrot.slane %v469_v6, 5  ;;  %v479_v36 = vshll.u32 %v187_v15, 16  ;;  %v5586_v48 = vld [vmem:[%s6763_s22 + $0x3c] sm:$0xe] }
  0x6c   : > { %v475_v29 = vrot.slane %v473_v9, 4  ;;  %v458_v28 = vsel %vm6789_vm4, %v453_v41, %v457_v50  ;;  %6189 = vmatprep.mubr.msk.bf16.mxu0 %vm629_vm3, %v5617_v11  ;;  %v5601_v40 = vrot.slane %v5585_v63, 9  ;;  %v2764_v60 = vrot.slane %v6864_v31, 5 }
  0x6d   : > { %v466_v38 = vor.u32 %v465_v14, %v462_v13  ;;  %v5333_v44 = vcombine.low %v448_v24, %v458_v28  ;;  %v481_v26 = vrot.slane %v479_v36, 5  ;;  %v2767_v47 = vrot.slane %v6872_v39, 5  ;;  %v189_v14 = vld [vmem:[%s6763_s22 + $0xa4] sm:$0x1]  ;;  %v5587_v24 = vld [vmem:[%s6763_s22 + $0x48] sm:$0xe] }
  0x6e   : > { %v476_v45 = vor.u32 %v475_v29, %v471_v1  ;;  %v2765_v51 = vsel %vm7011_vm7, %v5601_v40, %v2764_v60  ;;  %v2766_v15 = vrot.slane %v2764_v60, 4  ;;  %v484_v50 = vshrl.u32 %v7102_v10, 16 }
  0x6f   : > { %v467_v49 = vrot.slane %v466_v38, 4  ;;  %6035 = vmatprep.mubr.msk.bf16.mxu1 %vm629_vm3, %v5333_v44  ;;  %v487_v62 = vshll.u32 %v7102_v10, 16  ;;  %v493_v55 = vshll.u32 %v7108_v20, 16  ;;  %v497_v39 = vshrl.u32 %v7108_v20, 16 }
  0x70   : > { %v477_v31 = vrot.slane %v476_v45, 4  ;;  %v2768_v63 = vsel %vm7011_vm7, %v2766_v15, %v2767_v47  ;;  %v486_v57 = vrot.slane %v484_v50, 4  ;;  %v503_v46 = vshll.u32 %v188_v42, 16 }
  0x71   : > { %v472_v16 = vsel %vm6789_vm4, %v467_v49, %v471_v1  ;;  %v5618_v0 = vcombine.low %v2765_v51, %v2768_v63  ;;  %v489_v4 = vrot.slane %v487_v62, 5  ;;  %v495_v6 = vrot.slane %v493_v55, 5  ;;  %v7155_v62 = vld [vmem:[%s6763_s22 + $0xa8] sm:$0xf] }
  0x72   : > { %v482_v59 = vsel %vm6789_vm4, %v477_v31, %v481_v26  ;;  %v499_v41 = vrot.slane %v497_v39, 4  ;;  %v505_v11 = vrot.slane %v503_v46, 5  ;;  %v5602_v13 = vrot.slane %v5586_v48, 9 }
  0x73   : > { %v5334_v9 = vcombine.low %v472_v16, %v482_v59  ;;  %6190 = vmatmul.mubr.msk.bf16.gmra.mrb[4].mxu0 %vm629_vm3, %v5618_v0  ;;  %v490_v1 = vor.u32 %v489_v4, %v486_v57  ;;  %v2771_v29 = vrot.slane %v6889_v19, 5  ;;  %v2774_v36 = vrot.slane %v6894_v33, 5  ;;  %v7160_v57 = vld [vmem:[%s6763_s22 + $0xac] sm:$0xf] }
  0x74   : > { %v508_v28 = vshrl.u32 %v7123_v54, 16  ;;  %v500_v38 = vor.u32 %v499_v41, %v495_v6  ;;  %v511_v40 = vshll.u32 %v7123_v54, 16  ;;  %v517_v60 = vshll.u32 %v7134_v53, 16 }
  0x75   : > { %6036 = vmatmul.mubr.msk.bf16.gmra.mrb[20].mxu1 %vm629_vm3, %v5334_v9  ;;  %v521_v42 = vshrl.u32 %v7134_v53, 16  ;;  %v491_v44 = vrot.slane %v490_v1, 4  ;;  %v2772_v45 = vsel %vm7011_vm7, %v5602_v13, %v2771_v29  ;;  %v2773_v19 = vrot.slane %v2771_v29, 4  ;;  %v5588_v9 = vld [vmem:[%s6763_s22 + $0x54] sm:$0xe] }
  0x76   : > { %v510_v26 = vrot.slane %v508_v28, 4  ;;  %v501_v33 = vrot.slane %v500_v38, 4  ;;  %v513_v47 = vrot.slane %v511_v40, 5  ;;  %v519_v48 = vrot.slane %v517_v60, 5  ;;  %v7175_v29 = vld [vmem:[%s6763_s22 + $0xb4] sm:$0xf] }
  0x77   : > { %v523_v49 = vrot.slane %v521_v42, 4  ;;  %v496_v51 = vsel %vm6789_vm4, %v491_v44, %v495_v6  ;;  %v2775_v15 = vsel %vm7011_vm7, %v2773_v19, %v2774_v36  ;;  %v527_v50 = vshll.u32 %v189_v14, 16  ;;  %v190_v6 = vld [vmem:[%s6763_s22 + $0xb0] sm:$0x1]  ;;  %v7184_v19 = vld [vmem:[%s6763_s22 + $0xb8] sm:$0xf] }
  0x78   : > { %v5603_v31 = vrot.slane %v5587_v24, 9  ;;  %v506_v55 = vsel %vm6789_vm4, %v501_v33, %v505_v11  ;;  %v5619_v39 = vcombine.low %v2772_v45, %v2775_v15  ;;  %v514_v16 = vor.u32 %v513_v47, %v510_v26 }
  0x79   : > { %v524_v63 = vor.u32 %v523_v49, %v519_v48  ;;  %v5335_v46 = vcombine.low %v496_v51, %v506_v55  ;;  %v529_v59 = vrot.slane %v527_v50, 5  ;;  %v2778_v0 = vrot.slane %v6912_v7, 5  ;;  %v191_v50 = vld [vmem:[%s6763_s22 + $0xbc] sm:$0x1] }
  0x7a   : > { %v2781_v4 = vrot.slane %v6920_v21, 5  ;;  %6193 = vmatprep.mubr.msk.bf16.mxu0 %vm629_vm3, %v5619_v39  ;;  %v515_v41 = vrot.slane %v514_v16, 4  ;;  %v532_v11 = vshrl.u32 %v7155_v62, 16  ;;  %v535_v14 = vshll.u32 %v7155_v62, 16 }
  0x7b   : > { %v525_v13 = vrot.slane %v524_v63, 4  ;;  %6039 = vmatprep.mubr.msk.bf16.mxu1 %vm629_vm3, %v5335_v46  ;;  %v2779_v24 = vsel %vm7011_vm7, %v5603_v31, %v2778_v0  ;;  %v2780_v1 = vrot.slane %v2778_v0, 4  ;;  %v541_v7 = vshll.u32 %v7160_v57, 16  ;;  %v5589_v46 = vld [vmem:[%s6763_s22 + $0x60] sm:$0xe] }
  0x7c   : > { %v545_v21 = vshrl.u32 %v7160_v57, 16  ;;  %v520_v36 = vsel %vm6789_vm4, %v515_v41, %v519_v48  ;;  %v534_v38 = vrot.slane %v532_v11, 4  ;;  %v537_v40 = vrot.slane %v535_v14, 5 }
  0x7d   : > { %v530_v28 = vsel %vm6789_vm4, %v525_v13, %v529_v59  ;;  %v2782_v42 = vsel %vm7011_vm7, %v2780_v1, %v2781_v4  ;;  %v543_v44 = vrot.slane %v541_v7, 5  ;;  %v551_v47 = vshll.u32 %v190_v6, 16  ;;  %v5590_v13 = vld [vmem:[%s6763_s22 + $0x6c] sm:$0xe]  ;;  %v5526_v7 = vld [vmem:[%s6763_s22 + $0x70] sm:$0xf] }
  0x7e   : > { %v5336_v60 = vcombine.low %v520_v36, %v530_v28  ;;  %v547_v45 = vrot.slane %v545_v21, 4  ;;  %v5620_v26 = vcombine.low %v2779_v24, %v2782_v42  ;;  %v538_v33 = vor.u32 %v537_v40, %v534_v38  ;;  %v5527_v21 = vld [vmem:[%s6763_s22 + $0x74] sm:$0x1] }
  0x7f   : > { %v5604_v49 = vrot.slane %v5588_v9, 9  ;;  %v2785_v51 = vrot.slane %v6943_v3, 5  ;;  %v2788_v15 = vrot.slane %v6949_v12, 5  ;;  %v556_v31 = vshrl.u32 %v7175_v29, 16 }
  0x80   : > { %6040 = vmatmul.mubr.msk.bf16.gmra.mrb[24].mxu1 %vm629_vm3, %v5336_v60  ;;  %v548_v48 = vor.u32 %v547_v45, %v543_v44  ;;  %6194 = vmatmul.mubr.msk.bf16.gmra.mrb[8].mxu0 %vm629_vm3, %v5620_v26  ;;  %v539_v55 = vrot.slane %v538_v33, 4  ;;  %v553_v39 = vrot.slane %v551_v47, 5  ;;  %v559_v16 = vshll.u32 %v7175_v29, 16 }
  0x81   : > { %v565_v63 = vshll.u32 %v7184_v19, 16  ;;  %v2786_v3 = vsel %vm7011_vm7, %v5604_v49, %v2785_v51  ;;  %v2787_v12 = vrot.slane %v2785_v51, 4  ;;  %v558_v0 = vrot.slane %v556_v31, 4  ;;  %v5591_v51 = vld [vmem:[%s6763_s22 + $0x78] sm:$0xe] }
  0x82   : > { %v549_v59 = vrot.slane %v548_v48, 4  ;;  %v544_v4 = vsel %vm6789_vm4, %v539_v55, %v543_v44  ;;  %v561_v6 = vrot.slane %v559_v16, 5  ;;  %v569_v41 = vshrl.u32 %v7184_v19, 16  ;;  %v7222_v16 = vld [vmem:[%s6763_s22 + $0x4] sm:$0xf] }
  0x83   : > { %v567_v9 = vrot.slane %v565_v63, 5  ;;  %v2789_v14 = vsel %vm7011_vm7, %v2787_v12, %v2788_v15  ;;  %v575_v24 = vshll.u32 %v191_v50, 16  ;;  %v5605_v1 = vrot.slane %v5589_v46, 9  ;;  %v7226_v46 = vld [vmem:[%s6763_s22 + $0x7c] sm:$0xf] }
  0x84   : > { %v554_v11 = vsel %vm6789_vm4, %v549_v59, %v553_v39  ;;  %v5621_v28 = vcombine.low %v2786_v3, %v2789_v14  ;;  %v562_v38 = vor.u32 %v561_v6, %v558_v0  ;;  %v571_v40 = vrot.slane %v569_v41, 4  ;;  %v6646_v39 = vld [vmem:[%s6763_s22] sm:$0xf]  ;;  %v5592_v3 = vld [vmem:[%s6763_s22 + $0x84] sm:$0xe] }
  0x85   : > { %v5337_v36 = vcombine.low %v544_v4, %v554_v11  ;;  %v577_v60 = vrot.slane %v575_v24, 5  ;;  %v2792_v42 = vrot.slane %v6973_v58, 5  ;;  %v2795_v44 = vrot.slane %v6980_v8, 5  ;;  %v7229_v59 = vld [vmem:[%s6763_s22 + $0x80] sm:$0x1] }
  0x86   : > { %v5606_v45 = vrot.slane %v5590_v13, 9  ;;  %6197 = vmatprep.mubr.msk.bf16.mxu0 %vm629_vm3, %v5621_v28  ;;  %v563_v26 = vrot.slane %v562_v38, 4  ;;  %v572_v33 = vor.u32 %v571_v40, %v567_v9  ;;  %v2799_v47 = vrot.slane %v5526_v7, 5  ;;  %v5533_v41 = vld [vmem:[%s6763_s22 + $0x8c] sm:$0x1] }
  0x87   : > { %6043 = vmatprep.mubr.msk.bf16.mxu1 %vm629_vm3, %v5337_v36  ;;  %v2802_v49 = vrot.slane %v5527_v21, 5  ;;  %v2793_v48 = vsel %vm7011_vm7, %v5605_v1, %v2792_v42  ;;  %v2794_v58 = vrot.slane %v2792_v42, 4  ;;  %v5355_v63 = vcombine.low %v6646_v39, %v7222_v16  ;;  %v5535_v14 = vld [vmem:[%s6763_s22 + $0x94] sm:$0xf]  ;;  %v5536_v28 = vld [vmem:[%s6763_s22 + $0x98] sm:$0x1] }
  0x88   : > { %v568_v8 = vsel %vm6789_vm4, %v563_v26, %v567_v9  ;;  %v573_v15 = vrot.slane %v572_v33, 4  ;;  %v2800_v50 = vsel %vm7011_vm7, %v5606_v45, %v2799_v47  ;;  %v2801_v31 = vrot.slane %v2799_v47, 4  ;;  %v5532_v9 = vld [vmem:[%s6763_s22 + $0x88] sm:$0xf]  ;;  %v5593_v38 = vld [vmem:[%s6763_s22 + $0x90] sm:$0xe] }
  0x89   : > { %v2796_v55 = vsel %vm7011_vm7, %v2794_v58, %v2795_v44  ;;  %v5607_v6 = vrot.slane %v5591_v51, 9  ;;  %v2806_v24 = vrot.slane %v7226_v46, 5  ;;  %v2809_v1 = vrot.slane %v7229_v59, 5  ;;  %v5538_v44 = vld [vmem:[%s6763_s22 + $0xa0] sm:$0xf] }
  0x8a   : > { %v578_v12 = vsel %vm6789_vm4, %v573_v15, %v577_v60  ;;  %v5622_v0 = vcombine.low %v2793_v48, %v2796_v55  ;;  %v2803_v4 = vsel %vm7011_vm7, %v2801_v31, %v2802_v49  ;;  %v5608_v7 = vrot.slane %v5592_v3, 9  ;;  %v5539_v33 = vld [vmem:[%s6763_s22 + $0xa4] sm:$0x1]  ;;  %v5594_v47 = vld [vmem:[%s6763_s22 + $0x9c] sm:$0xe] }
  0x8b   : > { %v5338_v13 = vcombine.low %v568_v8, %v578_v12  ;;  %v5623_v11 = vcombine.low %v2800_v50, %v2803_v4  ;;  %v2813_v21 = vrot.slane %v5532_v9, 5  ;;  %v2816_v36 = vrot.slane %v5533_v41, 5  ;;  %v6648_v49 = vld [vmem:[%s6763_s22 + $0xc] sm:$0xf]  ;;  %v7256_v48 = vld [vmem:[%s6763_s22 + $0x10] sm:$0xf] }
  0x8c   : > { %6198 = vmatmul.mubr.msk.bf16.gmra.mrb[12].mxu0 %vm629_vm3, %v5622_v0  ;;  %v2807_v40 = vsel %vm7011_vm7, %v5607_v6, %v2806_v24  ;;  %v2808_v60 = vrot.slane %v2806_v24, 4  ;;  %v2820_v42 = vrot.slane %v5535_v14, 5  ;;  %v5356_v58 = vcombine.low %v6648_v49, %v7256_v48  ;;  %v7265_v3 = vld [vmem:[%s6763_s22 + $0x1c] sm:$0xf]  ;;  %v5541_v9 = vld [vmem:[%s6763_s22 + $0xac] sm:$0xf] }
  0x8d   : > { %6044 = vmatmul.mubr.msk.bf16.gmra.mrb[28].mxu1 %vm629_vm3, %v5338_v13  ;;  %6201 = vmatprep.mubr.msk.bf16.mxu0 %vm629_vm3, %v5623_v11  ;;  %v2814_v45 = vsel %vm7011_vm7, %v5608_v7, %v2813_v21  ;;  %v2815_v26 = vrot.slane %v2813_v21, 4  ;;  %v5609_v8 = vrot.slane %v5593_v38, 9  ;;  %v2823_v15 = vrot.slane %v5536_v28, 5  ;;  %v5544_v41 = vld [vmem:[%s6763_s22 + $0xb8] sm:$0xf] }
  0x8e   : > { %6049 = vmatprep.mubr.msk.bf16.mxu1 %vm629_vm3, %v5355_v63  ;;  %v2810_v51 = vsel %vm7011_vm7, %v2808_v60, %v2809_v1  ;;  %v2822_v55 = vrot.slane %v2820_v42, 4  ;;  %v2827_v39 = vrot.slane %v5538_v44, 5  ;;  %v6650_v63 = vld [vmem:[%s6763_s22 + $0x18] sm:$0xf]  ;;  %v5610_v4 = vrot.slane %v5594_v47, 9 }
  0x8f   : > { %v5624_v50 = vcombine.low %v2807_v40, %v2810_v51  ;;  %v2817_v31 = vsel %vm7011_vm7, %v2815_v26, %v2816_v36  ;;  %v5357_v12 = vcombine.low %v6650_v63, %v7265_v3  ;;  %v2830_v6 = vrot.slane %v5539_v33, 5  ;;  %v5542_v24 = vld [vmem:[%s6763_s22 + $0xb0] sm:$0x1]  ;;  %v5595_v1 = vld [vmem:[%s6763_s22 + $0xa8] sm:$0xe] }
  0x90   : > { %v5625_v0 = vcombine.low %v2814_v45, %v2817_v31  ;;  %v2829_v13 = vrot.slane %v2827_v39, 4  ;;  %v2821_v11 = vsel %vm7011_vm7, %v5609_v8, %v2820_v42  ;;  %v2824_v14 = vsel %vm7011_vm7, %v2822_v55, %v2823_v15  ;;  %v5545_v38 = vld [vmem:[%s6763_s22 + $0xbc] sm:$0x1]  ;;  %v5596_v40 = vld [vmem:[%s6763_s22 + $0xb4] sm:$0xe] }
  0x91   : > { %v2834_v7 = vrot.slane %v5541_v9, 5  ;;  %v2828_v21 = vsel %vm7011_vm7, %v5610_v4, %v2827_v39  ;;  %v2841_v28 = vrot.slane %v5544_v41, 5  ;;  %v7289_v60 = vld [vmem:[%s8968_s1 + $0xc] sm:$0xf]  ;;  %v5626_v42 = vcombine.low %v2821_v11, %v2824_v14  ;;  %v6652_v26 = vld [vmem:[%s6763_s22 + $0x24] sm:$0xf] }
  0x92   : > { %v2831_v36 = vsel %vm7011_vm7, %v2829_v13, %v2830_v6  ;;  %v5611_v44 = vrot.slane %v5595_v1, 9  ;;  %v1397_v45 = vsel %vm678_vm0, %v7050_v5, 0  ;;  %v7295_v33 = vld [vmem:[%s6763_s22 + $0x28] sm:$0xf]  ;;  %v2837_v51 = vrot.slane %v5542_v24, 5 }
  0x93   : > { %v5358_v47 = vcombine.low %v6652_v26, %v7295_v33  ;;  %v5627_v49 = vcombine.low %v2828_v21, %v2831_v36  ;;  %v6654_v8 = vld [vmem:[%s6763_s22 + $0x30] sm:$0xf]  ;;  %v7300_v15 = vld [vmem:[%s6763_s22 + $0x34] sm:$0xf]  ;;  %v5612_v31 = vrot.slane %v5596_v40, 9  ;;  %v2843_v55 = vrot.slane %v2841_v28, 4 }
  0x94   : > { %6202 = vmatmul.mubr.msk.bf16.gmra.mrb[16].mxu0 %vm629_vm3, %v5624_v50  ;;  %v5359_v50 = vcombine.low %v6654_v8, %v7300_v15  ;;  %v2844_v39 = vrot.slane %v5545_v38, 5  ;;  %v5547_v5 = vld [vmem:[%s6763_s22 + $0xc4] sm:$0xf]  ;;  %v2835_v63 = vsel %vm7011_vm7, %v5611_v44, %v2834_v7  ;;  %v5548_v41 = vld [vmem:[%s6763_s22 + $0xc8] sm:$0x1]  ;;  %v5361_v38 = vcombine.low %v6924_v25, %v6927_v35  ;;  %v6607_v26 = vld [vmem:[%s6763_s22 + $0x18] sm:$0xff]  }
  0x95   : > { %6050 = vmatmul.mubr.msk.bf16.vlgmr.msra.gmra.mrb[0].mxu1 %vm629_vm3, %v5356_v58  ;;  %6205 = vmatprep.mubr.msk.bf16.mxu0 %vm629_vm3, %v5625_v0  ;;  %v2836_v58 = vrot.slane %v2834_v7, 4  ;;  %v5597_v0 = vld [vmem:[%s6763_s22 + $0xc0] sm:$0xe]  ;;  %v2848_v4 = vrot.slane %v5547_v5, 5  ;;  %v2842_v6 = vsel %vm7011_vm7, %v5612_v31, %v2841_v28  ;;  %v6656_v14 = vld [vmem:[%s6763_s22 + $0x3c] sm:$0xf] }
  0x96   : > { %6053 = vmatprep.mubr.msk.bf16.mxu1 %vm629_vm3, %v5357_v12  ;;  %6082 = vmatpush3.bf16.msra.mxu1 %v1397_v45  ;;  %v2845_v9 = vsel %vm7011_vm7, %v2843_v55, %v2844_v39  ;;  %v5613_v11 = vrot.slane %v5597_v0, 9  ;;  %v7322_v24 = vld [vmem:[%s6763_s22 + $0x40] sm:$0xf]  ;;  %v2851_v36 = vrot.slane %v5548_v41, 5  ;;  %v2225_v28 = vshll.u32 %v7226_v46, 16 }
  0x97   : > { %6580 = vmatprep.subr.msk.bf16.mxu1 %vm678_vm0, %v7289_v60  ;;  %v2838_v12 = vsel %vm7011_vm7, %v2836_v58, %v2837_v51  ;;  %v5360_v1 = vcombine.low %v6656_v14, %v7322_v24  ;;  %v5629_v7 = vcombine.low %v2842_v6, %v2845_v9  ;;  %v2850_v21 = vrot.slane %v2848_v4, 4  ;;  %v1136_v51 = vld [vmem:[%s6763_s22 + $0xc] sm:$0xe]  ;;  %v6658_v55 = vld [vmem:[%s6763_s22 + $0x8] sm:$0x1]  ;;  %v6611_v9 = vld [vmem:[%s6763_s22 + $0x30] sm:$0xff]  }
  0x98   : > { %v5628_v13 = vcombine.low %v2835_v63, %v2838_v12  ;;  %v2229_v40 = vshrl.u32 %v7226_v46, 16  ;;  %v7337_v25 = vrot.slane %v2225_v28, 5  ;;  %v5362_v45 = vcombine.low %v6953_v23, %v6959_v17  ;;  %v1137_v23 = vld [vmem:[%s6763_s22 + $0x18] sm:$0xe]  ;;  %v1138_v5 = vld [vmem:[%s6763_s22 + $0x24] sm:$0xe] }
  0x99   : > { %v2852_v44 = vsel %vm7011_vm7, %v2850_v21, %v2851_v36  ;;  %v5363_v58 = vcombine.low %v6984_v18, %v6990_v34  ;;  %v1195_v8 = vrot.slane %v7256_v48, 5  ;;  %v1202_v17 = vrot.slane %v7265_v3, 5  ;;  %v6659_v18 = vld [vmem:[%s6763_s22 + $0x14] sm:$0x1] }
  0x9a   : > { %8990 = vst [vmem:[#allocation3_spill] sm:$0xff] %v7337_v25  ;;  %v2231_v35 = vrot.slane %v2229_v40, 4  ;;  %v1198_v34 = vrot.slane %v6659_v18, 5  ;;  %v5388_v63 = vrot.slane %v1136_v51, 9  ;;  %v5389_v0 = vrot.slane %v1137_v23, 9  ;;  %v6615_v18 = vld [vmem:[%s6763_s22 + $0x48] sm:$0xff]  }
  0x9b   : > { %v1197_v12 = vrot.slane %v1195_v8, 4  ;;  %v1204_v41 = vrot.slane %v1202_v17, 4  ;;  %v1209_v14 = vrot.slane %v7295_v33, 5  ;;  %v5365_v21 = vcombine.low %v7037_v52, %v7044_v56 }
  0x9c   : > { %6206 = vmatmul.mubr.msk.bf16.gmra.mrb[20].mxu0 %vm629_vm3, %v5626_v42  ;;  %v2849_v42 = vsel %vm7011_vm7, %v5613_v11, %v2848_v4  ;;  %v2232_v31 = vor.u32 %v2231_v35, %v7337_v25  ;;  %v1139_v4 = vld [vmem:[%s6763_s22 + $0x30] sm:$0xe]  ;;  %v1216_v36 = vrot.slane %v7300_v15, 5  ;;  %v5366_v28 = vcombine.low %v7070_v30, %v7078_v22  ;;  %v7402_v15 = vld [vmem:[%s8968_s1 + $0x20] sm:$0xf] }
  0x9d   : > { %6054 = vmatmul.mubr.msk.bf16.gmra.mrb[4].mxu1 %vm629_vm3, %v5358_v47  ;;  %6209 = vmatprep.mubr.msk.bf16.mxu0 %vm629_vm3, %v5627_v49  ;;  %v5630_v46 = vcombine.low %v2849_v42, %v2852_v44  ;;  %v1135_v47 = vld [vmem:[%s6763_s22] sm:$0xe]  ;;  %v2235_v49 = vshll.u32 %v7229_v59, 16  ;;  %v1191_v59 = vrot.slane %v6658_v55, 5  ;;  %v5390_v33 = vrot.slane %v1138_v5, 9 }
  0x9e   : > { %6057 = vmatprep.mubr.msk.bf16.mxu1 %vm629_vm3, %v5359_v50  ;;  %v1188_v50 = vrot.slane %v7222_v16, 5  ;;  %v6609_v16 = vld [vmem:[%s6763_s22 + $0x24] sm:$0xff]   ;;  %v5387_v39 = vrot.slane %v1135_v47, 9  ;;  %v7363_v6 = vrot.slane %v2232_v31, 4  ;;  %v7389_v52 = vsel %vm7011_vm7, %v5388_v63, %v1195_v8  ;;  %v6661_v44 = vld [vmem:[%s6763_s22 + $0x2c] sm:$0x1] }
  0x9f   : > { %v7357_v48 = vrot.slane %v2235_v49, 5  ;;  %v7393_v56 = vsel %vm7011_vm7, %v1197_v12, %v1198_v34  ;;  %v1211_v42 = vrot.slane %v1209_v14, 4  ;;  %v1212_v35 = vrot.slane %v6661_v44, 5  ;;  %v6613_v8 = vld [vmem:[%s6763_s22 + $0x3c] sm:$0xff]   ;;  %v1145_v25 = vld [vmem:[%s6763_s22 + $0x78] sm:$0xe] }
  0xa0   : > { %v1190_v3 = vrot.slane %v1188_v50, 4  ;;  %8992 = vst [vmem:[#allocation5_spill] sm:$0xff] %v7363_v6  ;;  %v7380_v40 = vsel %vm7011_vm7, %v5387_v39, %v1188_v50  ;;  %v5367_v50 = vcombine.low %v7102_v10, %v7108_v20  ;;  %v5712_v20 = vld [vmem:[%s6763_s22 + $0x18] sm:$0xf]  ;;  %v5713_v5 = vld [vmem:[%s6763_s22 + $0x1c] sm:$0xf]  ;;  %v7439_v63 = vsel %vm7011_vm7, %v5390_v33, %v1209_v14 }
  0xa1   : > { %8991 = vst [vmem:[#allocation4_spill] sm:$0xff] %v7357_v48  ;;  %v7443_v12 = vsel %vm7011_vm7, %v1211_v42, %v1212_v35  ;;  %v3558_v33 = vshll.u32 %v5712_v20, 16  ;;  %v3564_v42 = vshll.u32 %v5713_v5, 16  ;;  %v3568_v44 = vshrl.u32 %v5713_v5, 16  ;;  %v7491_v22 = vld [vmem:[%s6763_s22 + $0x60] sm:$0xe] }
  0xa2   : > { %v5719_v5 = vld [vmem:[%s6763_s22 + $0x34] sm:$0xf] }
  0xa4   : > { %6210 = vmatmul.mubr.msk.bf16.gmra.mrb[24].mxu0 %vm629_vm3, %v5628_v13  ;;  %v6660_v13 = vld [vmem:[%s6763_s22 + $0x20] sm:$0x1] }
  0xa5   : > { %6058 = vmatmul.mubr.msk.bf16.gmra.mrb[8].mxu1 %vm629_vm3, %v5360_v1  ;;  %6213 = vmatprep.mubr.msk.bf16.mxu0 %vm629_vm3, %v5629_v7  ;;  %v1205_v11 = vrot.slane %v6660_v13, 5  ;;  %v5364_v1 = vcombine.low %v7005_v61, %v7018_v27  ;;  %v4037_v7 = vsel %vm678_vm0, %v7083_v43, 0  ;;  %v1223_v61 = vrot.slane %v7322_v24, 5 }
  0xa6   : > { %6061 = vmatprep.mubr.msk.bf16.mxu1 %vm629_vm3, %v5361_v38  ;;  %v1140_v38 = vld [vmem:[%s6763_s22 + $0x3c] sm:$0xe]  ;;  %v7385_v27 = vsel %vm7011_vm7, %v1190_v3, %v1191_v59  ;;  %v7397_v43 = vsel %vm7011_vm7, %v5389_v0, %v1202_v17  ;;  %v6664_v17 = vld [vmem:[%s6763_s22 + $0x44] sm:$0x1]  ;;  %v1141_v59 = vld [vmem:[%s6763_s22 + $0x48] sm:$0xe] }
  0xa7   : > { %v7407_v24 = vsel %vm7011_vm7, %v1204_v41, %v1205_v11  ;;  %v5392_v49 = vrot.slane %v1140_v38, 9  ;;  %v1225_v23 = vrot.slane %v1223_v61, 4  ;;  %v1226_v55 = vrot.slane %v6664_v17, 5  ;;  %v7487_v17 = vld [vmem:[%s6763_s22 + $0x5c] sm:$0x1] }
  0xa8   : > { %v5393_v11 = vrot.slane %v1141_v59, 9  ;;  %v3555_v38 = vshrl.u32 %v5712_v20, 16  ;;  %v5718_v20 = vld [vmem:[%s6763_s22 + $0x30] sm:$0xf] }
  0xa9   : > { %v7457_v13 = vsel %vm7011_vm7, %v5392_v49, %v1223_v61  ;;  %v3603_v10 = vshrl.u32 %v5718_v20, 16  ;;  %v3606_v39 = vshll.u32 %v5718_v20, 16 }
  0xaa   : > { %v3557_v59 = vrot.slane %v3555_v38, 4 }
  0xac   : > { %6214 = vmatmul.mubr.msk.bf16.gmra.mrb[28].mxu0 %vm629_vm3, %v5630_v46  ;;  %v5391_v46 = vrot.slane %v1139_v4, 9  ;;  %v5715_v4 = vld [vmem:[%s6763_s22 + $0x24] sm:$0xf] }
  0xad   : > { %6062 = vmatmul.mubr.msk.bf16.gmra.mrb[12].mxu1 %vm629_vm3, %v5362_v45  ;;  %6219 = vmatprep.mubr.msk.bf16.mxu0 %vm629_vm3, %v6607_v26  ;;  %v1218_v45 = vrot.slane %v1216_v36, 4  ;;  %v6662_v26 = vld [vmem:[%s6763_s22 + $0x38] sm:$0x1]  ;;  %v3579_v35 = vshrl.u32 %v5715_v4, 16  ;;  %v3582_v61 = vshll.u32 %v5715_v4, 16  ;;  %v6619_v4 = vld [vmem:[%s6763_s22 + $0x60] sm:$0xff]  }
  0xae   : > { %6065 = vmatprep.mubr.msk.bf16.mxu1 %vm629_vm3, %v5363_v58  ;;  %v1219_v47 = vrot.slane %v6662_v26, 5  ;;  %v6663_v58 = vld [vmem:[%s6763_s22 + $0x4c] sm:$0xf]  ;;  %v7447_v0 = vsel %vm7011_vm7, %v5391_v46, %v1216_v36  ;;  %v7465_v36 = vld [vmem:[%s6763_s22 + $0x54] sm:$0xe]  ;;  %v5395_v46 = vrot.slane %v7491_v22, 9 }
  0xaf   : > { %v1230_v51 = vrot.slane %v6663_v58, 5  ;;  %v6669_v22 = vld [vmem:[%s6763_s22 + $0x70] sm:$0xf] }
  0xb0   : > { %v7453_v41 = vsel %vm7011_vm7, %v1218_v45, %v1219_v47  ;;  %v3584_v45 = vrot.slane %v3582_v61, 5  ;;  %v1251_v30 = vrot.slane %v6669_v22, 5 }
  0xb1   : > { %v1232_v14 = vrot.slane %v1230_v51, 4  ;;  %v7479_v49 = vsel %vm7011_vm7, %v5393_v11, %v1230_v51  ;;  %v7505_v11 = vrot.slane %v3564_v42, 5  ;;  %v6668_v51 = vld [vmem:[%s6763_s22 + $0x64] sm:$0xf]  ;;  %v3616_v42 = vshrl.u32 %v5719_v5, 16 }
  0xb2   : > { %v1244_v3 = vrot.slane %v6668_v51, 5  ;;  %v6670_v51 = vld [vmem:[%s6763_s22 + $0x68] sm:$0x1] }
  0xb3   : > { %v1247_v58 = vrot.slane %v6670_v51, 5 }
  0xb4   : > { %6220 = vmatmul.mubr.msk.bf16.vlgmr.msra.gmra.mrb[0].mxu0 %vm629_vm3, %v6609_v16  ;;  %v3612_v16 = vshll.u32 %v5719_v5, 16  ;;  %v1246_v20 = vrot.slane %v1244_v3, 4 }
  0xb5   : > { %6066 = vmatmul.mubr.msk.bf16.gmra.mrb[16].mxu1 %vm629_vm3, %v5364_v1  ;;  %6252 = vmatpush3.bf16.msra.mxu0 %v4037_v7  ;;  %v7461_v1 = vsel %vm7011_vm7, %v1225_v23, %v1226_v55  ;;  %v6665_v7 = vld [vmem:[%s6763_s22 + $0x50] sm:$0x1] }
  0xb6   : > { %6069 = vmatprep.mubr.msk.bf16.mxu1 %vm629_vm3, %v5365_v21  ;;  %6223 = vmatprep.mubr.msk.bf16.mxu0 %vm629_vm3, %v6611_v9  ;;  %v5716_v9 = vld [vmem:[%s6763_s22 + $0x28] sm:$0xf]  ;;  %v1233_v21 = vrot.slane %v6665_v7, 5  ;;  %v3570_v7 = vrot.slane %v3568_v44, 4 }
  0xb7   : > { %6586 = vmatprep.subr.msk.bf16.mxu0 %vm678_vm0, %v7402_v15  ;;  %v3588_v26 = vshll.u32 %v5716_v9, 16  ;;  %v3592_v47 = vshrl.u32 %v5716_v9, 16  ;;  %v5714_v9 = vld [vmem:[%s6763_s22 + $0x20] sm:$0x1] }
  0xb8   : > { %v7499_v55 = vsel %vm7011_vm7, %v1232_v14, %v1233_v21  ;;  %v5717_v14 = vld [vmem:[%s6763_s22 + $0x2c] sm:$0x1]  ;;  %v3574_v61 = vshll.u32 %v5714_v9, 16  ;;  %v3605_v9 = vrot.slane %v3603_v10, 4  ;;  %v5397_v10 = vrot.slane %v1145_v25, 9 }
  0xb9   : > { %v7510_v21 = vrot.slane %v3588_v26, 5  ;;  %v3594_v38 = vrot.slane %v3592_v47, 4  ;;  %v3571_v26 = vor.u32 %v3570_v7, %v7505_v11  ;;  %v3598_v34 = vshll.u32 %v5717_v14, 16 }
  0xba   : > { %v3608_v7 = vrot.slane %v3606_v39, 5  ;;  %v8994_v14 = vcombine.low %v7155_v62, %v7160_v57  ;;  %v6621_v39 = vld [vmem:[%s6763_s22 + $0x6c] sm:$0xff]   ;;  %v6622_v62 = vld [vmem:[%s6763_s22 + $0x78] sm:$0xff]  }
  0xbb   : > { %v3595_v5 = vor.u32 %v3594_v38, %v7510_v21  ;;  %v6672_v38 = vld [vmem:[%s6763_s22 + $0x74] sm:$0x1]  ;;  %v3600_v51 = vrot.slane %v3598_v34, 5  ;;  %v7548_v34 = vsel %vm678_vm0, %v7289_v60, 0 }
  0xbc   : > { %6224 = vmatmul.mubr.msk.bf16.gmra.mrb[4].mxu0 %vm629_vm3, %v6613_v8  ;;  %v7483_v8 = vld [vmem:[%s6763_s22 + $0x58] sm:$0xf]  ;;  %v3609_v25 = vor.u32 %v3608_v7, %v3605_v9  ;;  %v1146_v7 = vld [vmem:[%s6763_s22 + $0x84] sm:$0xe] }
  0xbd   : > { %6070 = vmatmul.mubr.msk.bf16.gmra.mrb[20].mxu1 %vm629_vm3, %v5366_v28  ;;  %6227 = vmatprep.mubr.msk.bf16.mxu0 %vm629_vm3, %v6615_v18  ;;  %v8971_v23 = vrot.slane %v7483_v8, 5  ;;  %v6617_v28 = vld [vmem:[%s6763_s22 + $0x54] sm:$0xff]   ;;  %v3560_v18 = vrot.slane %v3558_v33, 5  ;;  %v1144_v33 = vld [vmem:[%s6763_s22 + $0x6c] sm:$0xe] }
  0xbe   : > { %6073 = vmatprep.mubr.msk.bf16.mxu1 %vm629_vm3, %v5367_v50  ;;  %v3581_v50 = vrot.slane %v3579_v35, 4  ;;  %v5396_v31 = vrot.slane %v1144_v33, 9  ;;  %v1254_v33 = vrot.slane %v6672_v38, 5  ;;  %v3610_v9 = vrot.slane %v3609_v25, 4  ;;  %v5724_v38 = vld [vmem:[%s6763_s22 + $0x48] sm:$0xf] }
  0xbf   : > { %v1239_v44 = vrot.slane %v8971_v23, 4  ;;  %v3561_v35 = vor.u32 %v3560_v18, %v3557_v59  ;;  %v6671_v23 = vld [vmem:[%s6763_s22 + $0x7c] sm:$0xf]  ;;  %v8993_v18 = vcombine.low %v7123_v54, %v7134_v53  ;;  %v3576_v54 = vrot.slane %v3574_v61, 5 }
  0xc0   : > { %v3585_v47 = vor.u32 %v3584_v45, %v3581_v50  ;;  %v1258_v59 = vrot.slane %v6671_v23, 5  ;;  %v5720_v45 = vld [vmem:[%s6763_s22 + $0x38] sm:$0x1]  ;;  %v3618_v50 = vrot.slane %v3616_v42, 4  ;;  %v1253_v53 = vrot.slane %v1251_v30, 4 }
  0xc1   : > { %v3562_v23 = vrot.slane %v3561_v35, 4  ;;  %v6673_v42 = vld [vmem:[%s6763_s22 + $0x80] sm:$0x1]  ;;  %v3622_v6 = vshll.u32 %v5720_v45, 16  ;;  %v8996_v35 = vrot.slane %v7465_v36, 9  ;;  %v7559_v36 = vsel %vm7011_vm7, %v5395_v46, %v1244_v3 }
  0xc2   : > { %v3586_v22 = vrot.slane %v3585_v47, 4  ;;  %v1261_v2 = vrot.slane %v6673_v42, 5  ;;  %v8997_v47 = vrot.slane %v7487_v17, 5  ;;  %v7567_v60 = vsel %vm7011_vm7, %v5396_v31, %v1251_v30  ;;  %v5721_v45 = vld [vmem:[%s6763_s22 + $0x3c] sm:$0xf] }
  0xc3   : > { %v3567_v17 = vsel %vm6789_vm4, %v3562_v23, %v7505_v11  ;;  %v7577_v3 = vsel %vm7011_vm7, %v1253_v53, %v1254_v33  ;;  %v3624_v11 = vrot.slane %v3622_v6, 5  ;;  %v3630_v23 = vshll.u32 %v5721_v45, 16  ;;  %v6678_v53 = vld [vmem:[%s6763_s22 + $0x98] sm:$0x1] }
  0xc4   : > { %6228 = vmatmul.mubr.msk.bf16.gmra.mrb[8].mxu0 %vm629_vm3, %v6617_v28  ;;  %v7528_v28 = vrot.slane %v3612_v16, 5  ;;  %v3596_v16 = vrot.slane %v3595_v5, 4  ;;  %v7555_v5 = vsel %vm7011_vm7, %v1239_v44, %v8997_v47  ;;  %v3591_v46 = vsel %vm6789_vm4, %v3586_v22, %v7510_v21  ;;  %v7624_v22 = vld [vmem:[%s6763_s22 + $0x4c] sm:$0xf]  ;;  %v7640_v47 = vld [vmem:[%s6763_s22 + $0x58] sm:$0xf] }
  0xc5   : > { %6074 = vmatmul.mubr.msk.bf16.gmra.mrb[24].mxu1 %vm629_vm3, %v8993_v18  ;;  %6231 = vmatprep.mubr.msk.bf16.mxu0 %vm629_vm3, %v6619_v4  ;;  %v3572_v4 = vrot.slane %v3571_v26, 4  ;;  %v1260_v18 = vrot.slane %v1258_v59, 4  ;;  %v8999_v21 = vcombine.low %v7175_v29, %v7184_v19 }
  0xc6   : > { %6077 = vmatprep.mubr.msk.bf16.mxu1 %vm629_vm3, %v8994_v14  ;;  %v8995_v14 = vrot.slane %v7483_v8, 5  ;;  %v3619_v26 = vor.u32 %v3618_v50, %v7528_v28  ;;  %v7563_v8 = vsel %vm7011_vm7, %v1246_v20, %v1247_v58  ;;  %v3601_v31 = vsel %vm6789_vm4, %v3596_v16, %v3600_v51  ;;  %v7594_v20 = vld [vmem:[%s6763_s22 + $0x40] sm:$0xf]  ;;  %v6623_v51 = vld [vmem:[%s6763_s22 + $0x84] sm:$0xff]  }
  0xc7   : > { %v3577_v44 = vsel %vm6789_vm4, %v3572_v4, %v3576_v54  ;;  %v7587_v58 = vsel %vm7011_vm7, %v5397_v10, %v1258_v59  ;;  %v7591_v30 = vsel %vm7011_vm7, %v1260_v18, %v1261_v2  ;;  %8998 = vst [vmem:[#allocation6_spill] sm:$0xff] %v7594_v20  ;;  %v3627_v50 = vshrl.u32 %v5721_v45, 16  ;;  %v6674_v18 = vld [vmem:[%s6763_s22 + $0x88] sm:$0xf]  ;;  %v7643_v45 = vld [vmem:[%s6763_s22 + $0x44] sm:$0x1] }
  0xc8   : > { %v7544_v61 = vsel %vm7011_vm7, %v8996_v35, %v8995_v14  ;;  %v3620_v59 = vrot.slane %v3619_v26, 4  ;;  %v9000_v2 = vcombine.low %v7380_v40, %v7385_v27  ;;  %v7615_v33 = vcombine.low %v3567_v17, %v3577_v44  ;;  %9001 = vst [vmem:[#allocation7_spill] sm:$0xff] %v7643_v45 }
  0xc9   : > { %v7619_v40 = vsel %vm678_vm0, %v7402_v15, 0  ;;  %v3636_v27 = vshll.u32 %v7594_v20, 16  ;;  %v3640_v4 = vshrl.u32 %v7594_v20, 16  ;;  %v7627_v10 = vcombine.low %v3591_v46, %v3601_v31  ;;  %v6624_v15 = vld [vmem:[%s6763_s22 + $0x90] sm:$0xff]  }
  0xca   : > { %v5398_v16 = vrot.slane %v1146_v7, 9  ;;  %v1265_v42 = vrot.slane %v6674_v18, 5  ;;  %v3615_v14 = vsel %vm6789_vm4, %v3610_v9, %v7528_v28  ;;  %v3625_v35 = vsel %vm6789_vm4, %v3620_v59, %v3624_v11  ;;  %v6675_v59 = vld [vmem:[%s6763_s22 + $0x8c] sm:$0x1] }
  0xcb   : > { %v3629_v25 = vrot.slane %v3627_v50, 4  ;;  %v3632_v26 = vrot.slane %v3630_v23, 5  ;;  %v3651_v17 = vshrl.u32 %v5724_v38, 16  ;;  %v3654_v44 = vshll.u32 %v5724_v38, 16 }
  0xcc   : > { %6232 = vmatmul.mubr.msk.bf16.gmra.mrb[12].mxu0 %vm629_vm3, %v6621_v39  ;;  %v3660_v46 = vshll.u32 %v7624_v22, 16  ;;  %v3664_v31 = vshrl.u32 %v7624_v22, 16  ;;  %v3642_v28 = vrot.slane %v3640_v4, 4  ;;  %v1267_v11 = vrot.slane %v1265_v42, 4 }
  0xcd   : > { %6078 = vmatmul.mubr.msk.bf16.gmra.mrb[28].mxu1 %vm629_vm3, %v8999_v21  ;;  %6235 = vmatprep.mubr.msk.bf16.mxu0 %vm629_vm3, %v6622_v62  ;;  %v5727_v62 = vld [vmem:[%s6763_s22 + $0x54] sm:$0xf]  ;;  %v7647_v21 = vrot.slane %v3636_v27, 5  ;;  %v1268_v50 = vrot.slane %v6675_v59, 5  ;;  %v3684_v23 = vshll.u32 %v7640_v47, 16  ;;  %v9002_v38 = vcombine.low %v7389_v52, %v7393_v56 }
  0xce   : > { %6083 = vmatprep.mubr.msk.bf16.mxu1 %vm629_vm3, %v9000_v2  ;;  %v3675_v9 = vshrl.u32 %v5727_v62, 16  ;;  %v3678_v7 = vshll.u32 %v5727_v62, 16  ;;  %v3688_v2 = vshrl.u32 %v7640_v47, 16  ;;  %v7658_v27 = vcombine.low %v3615_v14, %v3625_v35  ;;  %v1147_v62 = vld [vmem:[%s6763_s22 + $0x90] sm:$0xe]  ;;  %v6625_v35 = vld [vmem:[%s6763_s22 + $0x9c] sm:$0xff]  }
  0xcf   : > { %v7662_v4 = vsel %vm7011_vm7, %v5398_v16, %v1265_v42  ;;  %v3646_v18 = vshll.u32 %v7643_v45, 16  ;;  %v7667_v59 = vld [vmem:[%s6763_s22 + $0x50] sm:$0x1]  ;;  %v9003_v52 = vcombine.low %v7397_v43, %v7407_v24  ;;  %v3653_v56 = vrot.slane %v3651_v17, 4  ;;  %v5730_v42 = vld [vmem:[%s6763_s22 + $0x60] sm:$0xf] }
  0xd0   : > { %v7674_v14 = vrot.slane %v3660_v46, 5  ;;  %v3666_v16 = vrot.slane %v3664_v31, 4  ;;  %v3677_v43 = vrot.slane %v3675_v9, 4  ;;  %v3680_v24 = vrot.slane %v3678_v7, 5  ;;  %v6626_v17 = vld [vmem:[%s6763_s22 + $0xa8] sm:$0xff]  }
  0xd1   : > { %v5399_v46 = vrot.slane %v1147_v62, 9  ;;  %v7690_v31 = vld [vmem:[%s6763_s22 + $0x5c] sm:$0x1]  ;;  %v3690_v9 = vrot.slane %v3688_v2, 4  ;;  %v7694_v7 = vrot.slane %v3646_v18, 5  ;;  %v3702_v39 = vshll.u32 %v5730_v42, 16 }
  0xd2   : > { %v1275_v54 = vrot.slane %v6678_v53, 5  ;;  %v6679_v62 = vld [vmem:[%s6763_s22 + $0xa0] sm:$0xf]  ;;  %v3681_v2 = vor.u32 %v3680_v24, %v3677_v43  ;;  %v9006_v43 = vcombine.low %v7447_v0, %v7453_v41  ;;  %v1149_v0 = vld [vmem:[%s6763_s22 + $0xa8] sm:$0xe]  ;;  %v1286_v41 = vrot.slane %v7160_v57, 5 }
  0xd3   : > { %v1279_v29 = vrot.slane %v6679_v62, 5 }
  0xd4   : > { %6236 = vmatmul.mubr.msk.bf16.gmra.mrb[16].mxu0 %vm629_vm3, %v6623_v51  ;;  %v3633_v51 = vor.u32 %v3632_v26, %v3629_v25  ;;  %v3643_v25 = vor.u32 %v3642_v28, %v7647_v21  ;;  %v6676_v26 = vld [vmem:[%s6763_s22 + $0x94] sm:$0xf]  ;;  %v7692_v28 = vrot.slane %v3684_v23, 5 }
  0xd5   : > { %6084 = vmatmul.mubr.msk.bf16.vlgmr.msra.gmra.mrb[0].mxu1 %vm629_vm3, %v9002_v38  ;;  %6239 = vmatprep.mubr.msk.bf16.mxu0 %vm629_vm3, %v6624_v15  ;;  %v3656_v15 = vrot.slane %v3654_v44, 5  ;;  %v1272_v38 = vrot.slane %v6676_v26, 5  ;;  %v7687_v44 = vsel %vm7011_vm7, %v1267_v11, %v1268_v50  ;;  %v7698_v26 = vld [vmem:[%s6763_s22 + $0x64] sm:$0xf]  ;;  %v3667_v11 = vor.u32 %v3666_v16, %v7674_v14  ;;  %v1148_v50 = vld [vmem:[%s6763_s22 + $0x9c] sm:$0xe] }
  0xd6   : > { %6087 = vmatprep.mubr.msk.bf16.mxu1 %vm629_vm3, %v9003_v52  ;;  %6116 = vmatpush3.bf16.msra.mxu1 %v7548_v34  ;;  %v6677_v34 = vld [vmem:[%s8968_s1 + $0x10] sm:$0xf]  ;;  %v3670_v52 = vshll.u32 %v7667_v59, 16  ;;  %9004 = vst [vmem:[#allocation8_spill] sm:$0xff] %v7698_v26  ;;  %v3634_v45 = vrot.slane %v3633_v51, 4  ;;  %v3644_v23 = vrot.slane %v3643_v25, 4  ;;  %v3691_v18 = vor.u32 %v3690_v9, %v7692_v28 }
  0xd7   : > { %6582 = vmatprep.subr.msk.bf16.mxu1 %vm678_vm0, %v6677_v34  ;;  %v3699_v34 = vshrl.u32 %v5730_v42, 16  ;;  %v3657_v6 = vor.u32 %v3656_v15, %v3653_v56  ;;  %v1274_v20 = vrot.slane %v1272_v38, 4  ;;  %v3694_v42 = vshll.u32 %v7690_v31, 16 }
  0xd8   : > { %v3708_v53 = vshll.u32 %v7698_v26, 16  ;;  %v3712_v56 = vshrl.u32 %v7698_v26, 16  ;;  %v9005_v15 = vcombine.low %v7439_v63, %v7443_v12  ;;  %v3672_v51 = vrot.slane %v3670_v52, 5  ;;  %v6680_v63 = vld [vmem:[%s6763_s22 + $0xa4] sm:$0x1] }
  0xd9   : > { %v5400_v16 = vrot.slane %v1148_v50, 9  ;;  %v3704_v25 = vrot.slane %v3702_v39, 5  ;;  %v3658_v24 = vrot.slane %v3657_v6, 4  ;;  %v3668_v9 = vrot.slane %v3667_v11, 4  ;;  %v7730_v11 = vld [vmem:[%s6763_s22 + $0x68] sm:$0x1] }
  0xda   : > { %v1281_v62 = vrot.slane %v1279_v29, 4  ;;  %v1282_v12 = vrot.slane %v6680_v63, 5  ;;  %v7725_v39 = vsel %vm7011_vm7, %v5399_v46, %v1272_v38  ;;  %v3682_v52 = vrot.slane %v3681_v2, 4  ;;  %9007 = vst [vmem:[#allocation9_spill] sm:$0xff] %v7730_v11  ;;  %v6628_v63 = vld [vmem:[%s6763_s22 + $0xc0] sm:$0xff]  }
  0xdb   : > { %v3692_v6 = vrot.slane %v3691_v18, 4  ;;  %v7732_v50 = vrot.slane %v3708_v53, 5  ;;  %v7744_v57 = vsel %vm7011_vm7, %v5400_v16, %v1279_v29  ;;  %v1150_v46 = vld [vmem:[%s6763_s22 + $0xb4] sm:$0xe]  ;;  %v3663_v2 = vsel %vm6789_vm4, %v3658_v24, %v7674_v14 }
  0xdc   : > { %6240 = vmatmul.mubr.msk.bf16.gmra.mrb[20].mxu0 %vm629_vm3, %v6625_v35  ;;  %v3701_v35 = vrot.slane %v3699_v34, 4  ;;  %v3696_v34 = vrot.slane %v3694_v42, 5  ;;  %v3673_v18 = vsel %vm6789_vm4, %v3668_v9, %v3672_v51  ;;  %v3687_v29 = vsel %vm6789_vm4, %v3682_v52, %v7692_v28  ;;  %v6681_v42 = vld [vmem:[%s6763_s22 + $0xb0] sm:$0x1] }
  0xdd   : > { %6088 = vmatmul.mubr.msk.bf16.gmra.mrb[4].mxu1 %vm629_vm3, %v9005_v15  ;;  %6243 = vmatprep.mubr.msk.bf16.mxu0 %vm629_vm3, %v6626_v17  ;;  %v6627_v15 = vld [vmem:[%s6763_s22 + $0xb4] sm:$0xff]   ;;  %v3639_v17 = vsel %vm6789_vm4, %v3634_v45, %v7647_v21  ;;  %v3649_v45 = vsel %vm6789_vm4, %v3644_v23, %v7694_v7  ;;  %v7740_v21 = vsel %vm7011_vm7, %v1274_v20, %v1275_v54  ;;  %v5401_v23 = vrot.slane %v1149_v0, 9  ;;  %v5733_v20 = vld [vmem:[%s6763_s22 + $0x6c] sm:$0xf]  ;;  %v7793_v52 = vld [vmem:[%s6763_s22 + $0x70] sm:$0xf] }
  0xde   : > { %6091 = vmatprep.mubr.msk.bf16.mxu1 %vm629_vm3, %v9006_v43  ;;  %v3714_v43 = vrot.slane %v3712_v56, 4  ;;  %v3705_v38 = vor.u32 %v3704_v25, %v3701_v35  ;;  %v7754_v7 = vsel %vm7011_vm7, %v1281_v62, %v1282_v12  ;;  %v1288_v54 = vrot.slane %v1286_v41, 4  ;;  %9010 = vst [vmem:[#allocation10_spill] sm:$0xff] %v7793_v52  ;;  %v5736_v0 = vld [vmem:[%s6763_s22 + $0x78] sm:$0xf] }
  0xdf   : > { %v1289_v53 = vrot.slane %v6681_v42, 5  ;;  %v3718_v56 = vshll.u32 %v7730_v11, 16  ;;  %v3697_v14 = vsel %vm6789_vm4, %v3692_v6, %v3696_v34  ;;  %v5402_v16 = vrot.slane %v1150_v46, 9 }
  0xe0   : > { %v3715_v51 = vor.u32 %v3714_v43, %v7732_v50  ;;  %v1293_v35 = vrot.slane %v7184_v19, 5  ;;  %v9008_v28 = vcombine.low %v7457_v13, %v7461_v1  ;;  %v7776_v9 = vrot.slane %v3705_v38, 4  ;;  %v7806_v43 = vld [vmem:[%s6763_s22 + $0x7c] sm:$0xf] }
  0xe1   : > { %v3723_v19 = vshrl.u32 %v5733_v20, 16  ;;  %v9009_v13 = vcombine.low %v7479_v49, %v7499_v55  ;;  %v7782_v1 = vcombine.low %v3639_v17, %v3649_v45  ;;  %v7784_v62 = vcombine.low %v3663_v2, %v3673_v18  ;;  %v6682_v17 = vld [vmem:[%s6763_s22 + $0xbc] sm:$0x1]  ;;  %9011 = vst [vmem:[#allocation11_spill] sm:$0xff] %v7806_v43  ;;  %v7817_v18 = vld [vmem:[%s6763_s22 + $0x88] sm:$0xf] }
  0xe2   : > { %v7796_v6 = vcombine.low %v3687_v29, %v3697_v14  ;;  %v7800_v49 = vsel %vm7011_vm7, %v1288_v54, %v1289_v53  ;;  %v7802_v55 = vrot.slane %v3718_v56, 5  ;;  %v1296_v34 = vrot.slane %v6682_v17, 5  ;;  %9012 = vst [vmem:[#allocation12_spill] sm:$0xff] %v7817_v18  ;;  %v5742_v53 = vld [vmem:[%s6763_s22 + $0x90] sm:$0xf] }
  0xe3   : > { %v7810_v45 = vrot.slane %v3715_v51, 4  ;;  %v7814_v38 = vsel %vm7011_vm7, %v5402_v16, %v1293_v35  ;;  %v1295_v46 = vrot.slane %v1293_v35, 4  ;;  %v3726_v2 = vshll.u32 %v5733_v20, 16  ;;  %v7831_v16 = vld [vmem:[%s6763_s22 + $0x94] sm:$0xf] }
  0xe4   : > { %6244 = vmatmul.mubr.msk.bf16.gmra.mrb[24].mxu0 %vm629_vm3, %v6627_v15  ;;  %v7790_v15 = vsel %vm7011_vm7, %v5401_v23, %v1286_v41  ;;  %v6629_v41 = vld [vmem:[%s6763_s22 + $0xcc] sm:$0xff]   ;;  %v7823_v29 = vrot.slane %v3723_v19, 4  ;;  %v3732_v54 = vshll.u32 %v7793_v52, 16  ;;  %v3736_v42 = vshrl.u32 %v7793_v52, 16  ;;  %9013 = vst [vmem:[#allocation13_spill] sm:$0xff] %v7831_v16 }
  0xe5   : > { %6092 = vmatmul.mubr.msk.bf16.gmra.mrb[8].mxu1 %vm629_vm3, %v9008_v28  ;;  %6247 = vmatprep.mubr.msk.bf16.mxu0 %vm629_vm3, %v6628_v63  ;;  %v5739_v63 = vld [vmem:[%s6763_s22 + $0x84] sm:$0xf]  ;;  %v3747_v56 = vshrl.u32 %v5736_v0, 16  ;;  %v3750_v14 = vshll.u32 %v5736_v0, 16  ;;  %v3756_v51 = vshll.u32 %v7806_v43, 16  ;;  %v3760_v20 = vshrl.u32 %v7806_v43, 16 }
  0xe6   : > { %6095 = vmatprep.mubr.msk.bf16.mxu1 %vm629_vm3, %v9009_v13  ;;  %v3771_v35 = vshrl.u32 %v5739_v63, 16  ;;  %v3774_v28 = vshll.u32 %v5739_v63, 16  ;;  %v3780_v13 = vshll.u32 %v7817_v18, 16  ;;  %v3784_v19 = vshrl.u32 %v7817_v18, 16  ;;  %v7841_v0 = vld [vmem:[%s6763_s22 + $0x74] sm:$0x1] }
  0xe7   : > { %v7838_v17 = vsel %vm7011_vm7, %v1295_v46, %v1296_v34  ;;  %v3728_v12 = vrot.slane %v3726_v2, 5  ;;  %v3795_v23 = vshrl.u32 %v5742_v53, 16  ;;  %v3798_v24 = vshll.u32 %v5742_v53, 16  ;;  %v5745_v2 = vld [vmem:[%s6763_s22 + $0x9c] sm:$0xf] }
  0xe8   : > { %v9014_v25 = vcombine.low %v7544_v61, %v7555_v5  ;;  %v7849_v63 = vrot.slane %v3732_v54, 5  ;;  %v3804_v34 = vshll.u32 %v7831_v16, 16  ;;  %v3808_v46 = vshrl.u32 %v7831_v16, 16  ;;  %v7859_v61 = vld [vmem:[%s6763_s22 + $0x80] sm:$0x1] }
  0xe9   : > { %v9015_v53 = vcombine.low %v7559_v36, %v7563_v8  ;;  %9016 = vst [vmem:[#allocation14_spill] sm:$0xff] %v7859_v61  ;;  %v3749_v5 = vrot.slane %v3747_v56, 4  ;;  %v3762_v54 = vrot.slane %v3760_v20, 4  ;;  %v3773_v18 = vrot.slane %v3771_v35, 4  ;;  %v7866_v16 = vld [vmem:[%s6763_s22 + $0xa0] sm:$0xf] }
  0xea   : > { %v7863_v48 = vrot.slane %v3780_v13, 5  ;;  %v3786_v43 = vrot.slane %v3784_v19, 4  ;;  %v7869_v52 = vld [vmem:[%s6763_s22 + $0x8c] sm:$0x1]  ;;  %v3797_v36 = vrot.slane %v3795_v23, 4  ;;  %v3800_v8 = vrot.slane %v3798_v24, 5 }
  0xeb   : > { %v3822_v11 = vshll.u32 %v5745_v2, 16  ;;  %v3729_v56 = vor.u32 %v3728_v12, %v7823_v29  ;;  %v3810_v20 = vrot.slane %v3808_v46, 4  ;;  %v7878_v13 = vld [vmem:[%s6763_s22 + $0x98] sm:$0x1]  ;;  %v3828_v19 = vshll.u32 %v7866_v16, 16 }
  0xec   : > { %6248 = vmatmul.mubr.msk.bf16.gmra.mrb[28].mxu0 %vm629_vm3, %v6629_v41  ;;  %v3738_v41 = vrot.slane %v3736_v42, 4  ;;  %v3776_v42 = vrot.slane %v3774_v28, 5  ;;  %v3766_v28 = vshll.u32 %v7859_v61, 16  ;;  %v3832_v23 = vshrl.u32 %v7866_v16, 16 }
  0xed   : > { %6096 = vmatmul.mubr.msk.bf16.gmra.mrb[12].mxu1 %vm629_vm3, %v9014_v25  ;;  %6253 = vmatprep.mubr.msk.bf16.mxu0 %vm629_vm3, %v7615_v33  ;;  %v3752_v25 = vrot.slane %v3750_v14, 5  ;;  %v7861_v33 = vrot.slane %v3756_v51, 5  ;;  %v3742_v14 = vshll.u32 %v7841_v0, 16  ;;  %v7873_v51 = vrot.slane %v3804_v34, 5 }
  0xee   : > { %6099 = vmatprep.mubr.msk.bf16.mxu1 %vm629_vm3, %v9015_v53  ;;  %v3819_v53 = vshrl.u32 %v5745_v2, 16  ;;  %v3739_v35 = vor.u32 %v3738_v41, %v7849_v63  ;;  %v3777_v26 = vor.u32 %v3776_v42, %v3773_v18  ;;  %v3790_v12 = vshll.u32 %v7869_v52, 16 }
  0xef   : > { %v3753_v24 = vor.u32 %v3752_v25, %v3749_v5  ;;  %v3763_v2 = vor.u32 %v3762_v54, %v7861_v33  ;;  %v3787_v29 = vor.u32 %v3786_v43, %v7863_v48  ;;  %v3801_v41 = vor.u32 %v3800_v8, %v3797_v36  ;;  %v7908_v36 = vld [vmem:[%s6763_s22 + $0xa4] sm:$0x1] }
  0xf0   : > { %v3821_v34 = vrot.slane %v3819_v53, 4  ;;  %v3824_v46 = vrot.slane %v3822_v11, 5  ;;  %v9017_v61 = vcombine.low %v7567_v60, %v7577_v3  ;;  %v3721_v18 = vsel %vm6789_vm4, %v7810_v45, %v7802_v55  ;;  %v5748_v55 = vld [vmem:[%s6763_s22 + $0xa8] sm:$0xf] }
  0xf1   : > { %v3811_v43 = vor.u32 %v3810_v20, %v7873_v51  ;;  %v3814_v5 = vshll.u32 %v7878_v13, 16  ;;  %v9018_v11 = vcombine.low %v7587_v58, %v7591_v30  ;;  %v3730_v60 = vrot.slane %v3729_v56, 4 }
  0xf2   : > { %v3740_v3 = vrot.slane %v3739_v35, 4  ;;  %v3754_v45 = vrot.slane %v3753_v24, 4  ;;  %v3764_v25 = vrot.slane %v3763_v2, 4  ;;  %v3768_v54 = vrot.slane %v3766_v28, 5  ;;  %v7921_v24 = vld [vmem:[%s6763_s22 + $0xb0] sm:$0x1] }
  0xf3   : > { %v3792_v42 = vrot.slane %v3790_v12, 5  ;;  %v3778_v58 = vrot.slane %v3777_v26, 4  ;;  %v3788_v30 = vrot.slane %v3787_v29, 4  ;;  %v3802_v8 = vrot.slane %v3801_v41, 4 }
  0xf4   : > { %6254 = vmatmul.mubr.msk.bf16.vlgmr.msra.gmra.mrb[0].mxu0 %vm629_vm3, %v7627_v10  ;;  %v3744_v10 = vrot.slane %v3742_v14, 5  ;;  %v3825_v53 = vor.u32 %v3824_v46, %v3821_v34  ;;  %v7911_v14 = vld [vmem:[%s6763_s22 + $0xac] sm:$0xf]  ;;  %v3816_v56 = vrot.slane %v3814_v5, 5  ;;  %v3843_v20 = vshrl.u32 %v5748_v55, 16 }
  0xf5   : > { %6100 = vmatmul.mubr.msk.bf16.gmra.mrb[16].mxu1 %vm629_vm3, %v9017_v61  ;;  %6286 = vmatpush3.bf16.msra.mxu0 %v7619_v40  ;;  %v7904_v40 = vrot.slane %v3828_v19, 5  ;;  %v3834_v61 = vrot.slane %v3832_v23, 4  ;;  %v3846_v35 = vshll.u32 %v5748_v55, 16  ;;  %v3735_v19 = vsel %vm6789_vm4, %v3730_v60, %v7849_v63 }
  0xf6   : > { %6103 = vmatprep.mubr.msk.bf16.mxu1 %vm629_vm3, %v9018_v11  ;;  %6257 = vmatprep.mubr.msk.bf16.mxu0 %vm629_vm3, %v7658_v27  ;;  %v3812_v27 = vrot.slane %v3811_v43, 4  ;;  %v3745_v28 = vsel %vm6789_vm4, %v3740_v3, %v3744_v10  ;;  %v3838_v26 = vshll.u32 %v7908_v36, 16  ;;  %v3759_v2 = vsel %vm6789_vm4, %v3754_v45, %v7861_v33  ;;  %v5797_v11 = vld [vmem:[%s6763_s22 + $0x48] sm:$0xe]  ;;  %v5751_v3 = vld [vmem:[%s6763_s22 + $0xb4] sm:$0xf] }
  0xf7   : > { %v3835_v23 = vor.u32 %v3834_v61, %v7904_v40  ;;  %v3769_v12 = vsel %vm6789_vm4, %v3764_v25, %v3768_v54  ;;  %v3852_v29 = vshll.u32 %v7911_v14, 16  ;;  %v3856_v63 = vshrl.u32 %v7911_v14, 16 }
  0xf8   : > { %v3783_v41 = vsel %vm6789_vm4, %v3778_v58, %v7863_v48  ;;  %v3793_v34 = vsel %vm6789_vm4, %v3788_v30, %v3792_v42  ;;  %v3807_v33 = vsel %vm6789_vm4, %v3802_v8, %v7873_v51  ;;  %v3826_v46 = vrot.slane %v3825_v53, 4  ;;  %v5798_v42 = vld [vmem:[%s6763_s22 + $0x54] sm:$0xe]  ;;  %v7981_v58 = vld [vmem:[%s6763_s22 + $0xb8] sm:$0xf] }
  0xf9   : > { %v9019_v10 = vcombine.low %v7662_v4, %v7687_v44  ;;  %v3817_v48 = vsel %vm6789_vm4, %v3812_v27, %v3816_v56  ;;  %v3848_v43 = vrot.slane %v3846_v35, 5  ;;  %v3862_v5 = vshll.u32 %v7921_v24, 16 }
  0xfa   : > { %v9020_v51 = vcombine.low %v7725_v39, %v7740_v21  ;;  %v5418_v4 = vcombine.low %v7790_v15, %v7800_v49  ;;  %v5419_v44 = vcombine.low %v7814_v38, %v7838_v17  ;;  %v3840_v60 = vrot.slane %v3838_v26, 5  ;;  %v9028_v17 = vld [vmem:[#allocation4_spill] sm:$0xff] }
  0xfb   : > { %v9021_v61 = vsel %vm6789_vm4, %v7776_v9, %v7732_v50  ;;  %v7964_v45 = vcombine.low %v3735_v19, %v3745_v28  ;;  %v7966_v39 = vrot.slane %v3852_v29, 5  ;;  %v3858_v21 = vrot.slane %v3856_v63, 4  ;;  %v5754_v63 = vld [vmem:[%s6763_s22 + $0xc0] sm:$0xf] }
  0xfc   : > { %6258 = vmatmul.mubr.msk.bf16.gmra.mrb[4].mxu0 %vm629_vm3, %v7782_v1  ;;  %v3845_v1 = vrot.slane %v3843_v20, 4  ;;  %v5767_v55 = vcombine.low %v9021_v61, %v3721_v18  ;;  %v7968_v15 = vcombine.low %v3759_v2, %v3769_v12  ;;  %v7970_v49 = vcombine.low %v3783_v41, %v3793_v34  ;;  %v5799_v20 = vld [vmem:[%s6763_s22 + $0x60] sm:$0xe]  ;;  %v9024_v34 = vld [vmem:[#allocation9_spill] sm:$0xff] }
  0xfd   : > { %6104 = vmatmul.mubr.msk.bf16.gmra.mrb[20].mxu1 %vm629_vm3, %v9019_v10  ;;  %6261 = vmatprep.mubr.msk.bf16.mxu0 %vm629_vm3, %v7784_v62  ;;  %v3836_v62 = vrot.slane %v3835_v23, 4  ;;  %v7972_v25 = vcombine.low %v3807_v33, %v3817_v48  ;;  %v5813_v54 = vrot.slane %v5797_v11, 9  ;;  %v3831_v50 = vsel %vm6789_vm4, %v3826_v46, %v7904_v40  ;;  %v5800_v23 = vld [vmem:[%s6763_s22 + $0x6c] sm:$0xe] }
  0xfe   : > { %6107 = vmatprep.mubr.msk.bf16.mxu1 %vm629_vm3, %v9020_v51  ;;  %v3849_v9 = vor.u32 %v3848_v43, %v3845_v1  ;;  %v7978_v18 = vrot.slane %v3862_v5, 5  ;;  %v3867_v30 = vshrl.u32 %v5751_v3, 16  ;;  %v3870_v53 = vshll.u32 %v5751_v3, 16  ;;  %v9025_v1 = vld [vmem:[#allocation10_spill] sm:$0xff]  ;;  %v8030_v51 = vld [vmem:[%s6763_s22 + $0xbc] sm:$0x1] }
  0xff   : > { %v3841_v8 = vsel %vm6789_vm4, %v3836_v62, %v3840_v60  ;;  %v4326_v27 = vrot.slane %v7624_v22, 5  ;;  %v4329_v56 = vrot.slane %v7667_v59, 5  ;;  %v3859_v35 = vor.u32 %v3858_v21, %v7966_v39 }
 0x100   : > { %v5814_v19 = vrot.slane %v5798_v42, 9  ;;  %v4333_v40 = vrot.slane %v7640_v47, 5  ;;  %v4336_v28 = vrot.slane %v7690_v31, 5  ;;  %v3876_v26 = vshll.u32 %v7981_v58, 16  ;;  %v6630_v42 = vld [vmem:[%s6763_s22 + $0xc] sm:$0xff]  }
 0x101   : > { %v3880_v2 = vshrl.u32 %v7981_v58, 16  ;;  %v7998_v22 = vsel %vm7011_vm7, %v5813_v54, %v4326_v27  ;;  %v4328_v59 = vrot.slane %v4326_v27, 4  ;;  %v9022_v12 = vcombine.low %v7744_v57, %v7754_v7  ;;  %v9023_v7 = vld [vmem:[#allocation8_spill] sm:$0xff]  ;;  %v5801_v54 = vld [vmem:[%s6763_s22 + $0x78] sm:$0xe] }
 0x102   : > { %v8005_v47 = vcombine.low %v3831_v50, %v3841_v8  ;;  %v8009_v31 = vsel %vm7011_vm7, %v5814_v19, %v4333_v40  ;;  %v5815_v29 = vrot.slane %v5799_v20, 9  ;;  %v4340_v41 = vrot.slane %v9023_v7, 5 }
 0x103   : > { %v8015_v57 = vsel %vm7011_vm7, %v4328_v59, %v4329_v56  ;;  %v4343_v33 = vrot.slane %v9024_v34, 5  ;;  %v5816_v46 = vrot.slane %v5800_v23, 9  ;;  %v4347_v43 = vrot.slane %v9025_v1, 5  ;;  %v9026_v59 = vld [vmem:[#allocation11_spill] sm:$0xff] }
 0x104   : > { %6262 = vmatmul.mubr.msk.bf16.gmra.mrb[8].mxu0 %vm629_vm3, %v7796_v6  ;;  %v4335_v6 = vrot.slane %v4333_v40, 4  ;;  %v5830_v10 = vcombine.low %v7998_v22, %v8015_v57  ;;  %v4350_v5 = vrot.slane %v7841_v0, 5  ;;  %v8027_v11 = vrot.slane %v3849_v9, 4 }
 0x105   : > { %6108 = vmatmul.mubr.msk.bf16.gmra.mrb[24].mxu1 %vm629_vm3, %v9022_v12  ;;  %6265 = vmatprep.mubr.msk.bf16.mxu0 %vm629_vm3, %v5767_v55  ;;  %v8039_v60 = vsel %vm7011_vm7, %v5815_v29, %v4340_v41  ;;  %v4342_v3 = vrot.slane %v4340_v41, 4  ;;  %v8041_v61 = vrot.slane %v3867_v30, 4  ;;  %v3891_v55 = vshrl.u32 %v5754_v63, 16  ;;  %v5528_v30 = vld [vmem:[%s6763_s22 + $0x78] sm:$0xf]  ;;  %v9027_v12 = vld [vmem:[#allocation14_spill] sm:$0xff] }
 0x106   : > { %6111 = vmatprep.mubr.msk.bf16.mxu1 %vm629_vm3, %v5418_v4  ;;  %v8023_v48 = vsel %vm7011_vm7, %v4335_v6, %v4336_v28  ;;  %v8033_v4 = vld [vmem:[%s6763_s22 + $0xc4] sm:$0xf]  ;;  %v8045_v0 = vsel %vm7011_vm7, %v5816_v46, %v4347_v43  ;;  %v4349_v21 = vrot.slane %v4347_v43, 4  ;;  %v8049_v50 = vrot.slane %v3859_v35, 4 }
 0x107   : > { %v5831_v62 = vcombine.low %v8009_v31, %v8023_v48  ;;  %v8051_v9 = vrot.slane %v3870_v53, 5  ;;  %v3894_v8 = vshll.u32 %v5754_v63, 16  ;;  %v8055_v27 = vsel %vm7011_vm7, %v4342_v3, %v4343_v33  ;;  %v9030_v3 = vld [vmem:[#allocation12_spill] sm:$0xff]  ;;  %v6693_v48 = vld [vmem:[%s6763_s22 + $0xa0] sm:$0xf] }
 0x108   : > { %v8058_v56 = vrot.slane %v3876_v26, 5  ;;  %v8060_v20 = vrot.slane %v3880_v2, 4  ;;  %v5832_v19 = vcombine.low %v8039_v60, %v8055_v27  ;;  %v8066_v40 = vsel %vm7011_vm7, %v4349_v21, %v4350_v5  ;;  %v5802_v26 = vld [vmem:[%s6763_s22 + $0x84] sm:$0xe]  ;;  %v6631_v21 = vld [vmem:[%s6763_s22 + $0x18] sm:$0xff]  }
 0x109   : > { %v3886_v53 = vshll.u32 %v8030_v51, 16  ;;  %v3900_v35 = vshll.u32 %v8033_v4, 16  ;;  %v5833_v28 = vcombine.low %v8045_v0, %v8066_v40  ;;  %v5817_v23 = vrot.slane %v5801_v54, 9  ;;  %v6697_v40 = vld [vmem:[%s6763_s22 + $0xac] sm:$0xf] }
 0x10a   : > { %v3893_v2 = vrot.slane %v3891_v55, 4  ;;  %v4357_v6 = vrot.slane %v9027_v12, 5  ;;  %v2216_v29 = vshrl.u32 %v5528_v30, 16  ;;  %v3896_v63 = vrot.slane %v3894_v8, 5  ;;  %v5757_v8 = vld [vmem:[%s6763_s22 + $0xcc] sm:$0xf] }
 0x10b   : > { %v3904_v7 = vshrl.u32 %v8033_v4, 16  ;;  %v2219_v38 = vshll.u32 %v5528_v30, 16  ;;  %v5818_v46 = vrot.slane %v5802_v26, 9  ;;  %v3855_v1 = vsel %vm6789_vm4, %v8027_v11, %v7966_v39  ;;  %v8109_v30 = vld [vmem:[%s6763_s22 + $0xd0] sm:$0xf] }
 0x10c   : > { %6266 = vmatmul.mubr.msk.bf16.gmra.mrb[12].mxu0 %vm629_vm3, %v7964_v45  ;;  %v4354_v45 = vrot.slane %v9026_v59, 5  ;;  %v2218_v33 = vrot.slane %v2216_v29, 4  ;;  %v3873_v43 = vor.u32 %v8051_v9, %v8041_v61  ;;  %v4361_v55 = vrot.slane %v9030_v3, 5  ;;  %v6632_v61 = vld [vmem:[%s6763_s22 + $0x24] sm:$0xff]  }
 0x10d   : > { %6112 = vmatmul.mubr.msk.bf16.gmra.mrb[28].mxu1 %vm629_vm3, %v5419_v44  ;;  %6269 = vmatprep.mubr.msk.bf16.mxu0 %vm629_vm3, %v7968_v15  ;;  %v9029_v44 = vld [vmem:[#allocation5_spill] sm:$0xff]  ;;  %v2221_v5 = vrot.slane %v2219_v38, 5  ;;  %v3865_v54 = vsel %vm6789_vm4, %v8049_v50, %v7978_v18  ;;  %v4364_v11 = vrot.slane %v7869_v52, 5  ;;  %v8117_v9 = vrot.slane %v3900_v35, 5  ;;  %v5803_v50 = vld [vmem:[%s6763_s22 + $0x90] sm:$0xe] }
 0x10e   : > { %6117 = vmatprep.mubr.msk.bf16.mxu1 %vm629_vm3, %v6630_v42  ;;  %v2238_v15 = vsel %vm6789_vm4, %v9029_v44, %v9028_v17  ;;  %v8091_v41 = vsel %vm7011_vm7, %v5817_v23, %v4354_v45  ;;  %v4356_v34 = vrot.slane %v4354_v45, 4  ;;  %v3883_v42 = vor.u32 %v8060_v20, %v8058_v56  ;;  %v8123_v20 = vld [vmem:[%s6763_s22 + $0xc8] sm:$0x1] }
 0x10f   : > { %v3906_v23 = vrot.slane %v3904_v7, 4  ;;  %v2222_v18 = vor.u32 %v2221_v5, %v2218_v33  ;;  %v3888_v59 = vrot.slane %v3886_v53, 5  ;;  %v3897_v45 = vor.u32 %v3896_v63, %v3893_v2  ;;  %v9033_v33 = vld [vmem:[#allocation3_spill] sm:$0xff] }
 0x110   : > { %v8113_v39 = vsel %vm7011_vm7, %v4356_v34, %v4357_v6  ;;  %v8127_v12 = vsel %vm7011_vm7, %v5818_v46, %v4361_v55  ;;  %v4363_v6 = vrot.slane %v4361_v55, 4  ;;  %v3915_v52 = vshrl.u32 %v5757_v8, 16  ;;  %v9032_v34 = vld [vmem:[#allocation2_spill] sm:$0xff] }
 0x111   : > { %v5834_v26 = vcombine.low %v8091_v41, %v8113_v39  ;;  %v3918_v35 = vshll.u32 %v5757_v8, 16  ;;  %v3924_v29 = vshll.u32 %v8109_v30, 16  ;;  %v2223_v7 = vrot.slane %v2222_v18, 4  ;;  %v6633_v8 = vld [vmem:[%s6763_s22 + $0x30] sm:$0xff]  }
 0x112   : > { %v3928_v53 = vshrl.u32 %v8109_v30, 16  ;;  %v8138_v2 = vsel %vm7011_vm7, %v4363_v6, %v4364_v11  ;;  %v5819_v63 = vrot.slane %v5803_v50, 9  ;;  %v3907_v17 = vor.u32 %v3906_v23, %v8117_v9 }
 0x113   : > { %v3910_v44 = vshll.u32 %v8123_v20, 16  ;;  %v5835_v46 = vcombine.low %v8127_v12, %v8138_v2  ;;  %v5773_v5 = vcombine.low %v3855_v1, %v3865_v54  ;;  %v3874_v3 = vrot.slane %v3873_v43, 4  ;;  %v5804_v43 = vld [vmem:[%s6763_s22 + $0x9c] sm:$0xe] }
 0x114   : > { %6270 = vmatmul.mubr.msk.bf16.gmra.mrb[16].mxu0 %vm629_vm3, %v7970_v49  ;;  %v9031_v49 = vld [vmem:[#allocation13_spill] sm:$0xff]  ;;  %v3884_v55 = vrot.slane %v3883_v42, 4  ;;  %v3898_v11 = vrot.slane %v3897_v45, 4  ;;  %v4371_v50 = vrot.slane %v7878_v13, 5  ;;  %v3917_v6 = vrot.slane %v3915_v52, 4 }
 0x115   : > { %6118 = vmatmul.mubr.msk.bf16.vlgmr.msra.gmra.mrb[0].mxu1 %vm629_vm3, %v6631_v21  ;;  %6273 = vmatprep.mubr.msk.bf16.mxu0 %vm629_vm3, %v7972_v25  ;;  %v4368_v38 = vrot.slane %v9031_v49, 5  ;;  %v2228_v25 = vsel %vm6789_vm4, %v2223_v7, %v9033_v33  ;;  %v3920_v7 = vrot.slane %v3918_v35, 5  ;;  %v8161_v49 = vrot.slane %v3924_v29, 5  ;;  %v6634_v54 = vld [vmem:[%s6763_s22 + $0x3c] sm:$0xff]  }
 0x116   : > { %6121 = vmatprep.mubr.msk.bf16.mxu1 %vm629_vm3, %v6632_v61  ;;  %6320 = vmatpush3.bf16.msra.mxu1 %v9032_v34  ;;  %v8150_v21 = vcombine.low %v2228_v25, %v2238_v15  ;;  %v8154_v61 = vld [vmem:[%s6763_s22 + $0xd4] sm:$0x1]  ;;  %v3930_v1 = vrot.slane %v3928_v53, 4  ;;  %v3908_v15 = vrot.slane %v3907_v17, 4  ;;  %v3912_v42 = vrot.slane %v3910_v44, 5 }
 0x117   : > { %v8158_v23 = vsel %vm7011_vm7, %v5819_v63, %v4368_v38  ;;  %v4370_v18 = vrot.slane %v4368_v38, 4  ;;  %v3879_v63 = vsel %vm6789_vm4, %v3874_v3, %v8058_v56  ;;  %v3889_v52 = vsel %vm6789_vm4, %v3884_v55, %v3888_v59  ;;  %v6683_v17 = vld [vmem:[%s6763_s22 + $0x1c] sm:$0xf]  ;;  %v5805_v3 = vld [vmem:[%s6763_s22 + $0xa8] sm:$0xe] }
 0x118   : > { %v3934_v35 = vshll.u32 %v8154_v61, 16  ;;  %v5820_v29 = vrot.slane %v5804_v43, 9  ;;  %v4375_v53 = vrot.slane %v7866_v16, 5  ;;  %v3903_v56 = vsel %vm6789_vm4, %v3898_v11, %v8117_v9  ;;  %v5793_v9 = vld [vmem:[%s6763_s22 + $0x18] sm:$0xe]  ;;  %v6635_v55 = vld [vmem:[%s6763_s22 + $0x48] sm:$0xff]  }
 0x119   : > { %v8167_v45 = vsel %vm7011_vm7, %v4370_v18, %v4371_v50  ;;  %v3931_v38 = vor.u32 %v3930_v1, %v8161_v49  ;;  %v4378_v59 = vrot.slane %v7908_v36, 5  ;;  %v3913_v16 = vsel %vm6789_vm4, %v3908_v15, %v3912_v42  ;;  %v6684_v43 = vld [vmem:[%s6763_s22 + $0x20] sm:$0x1] }
 0x11a   : > { %v5836_v13 = vcombine.low %v8158_v23, %v8167_v45  ;;  %v4298_v44 = vrot.slane %v6683_v17, 5  ;;  %v8193_v34 = vsel %vm7011_vm7, %v5820_v29, %v4375_v53  ;;  %v4377_v33 = vrot.slane %v4375_v53, 4  ;;  %v5806_v53 = vld [vmem:[%s6763_s22 + $0xb4] sm:$0xe] }
 0x11b   : > { %v5774_v25 = vcombine.low %v3879_v63, %v3889_v52  ;;  %v3932_v18 = vrot.slane %v3931_v38, 4  ;;  %v5821_v15 = vrot.slane %v5805_v3, 9  ;;  %v4382_v42 = vrot.slane %v7911_v14, 5  ;;  %v5794_v52 = vld [vmem:[%s6763_s22 + $0x24] sm:$0xe] }
 0x11c   : > { %6274 = vmatmul.mubr.msk.bf16.gmra.mrb[20].mxu0 %vm629_vm3, %v8005_v47  ;;  %v3921_v47 = vor.u32 %v3920_v7, %v3917_v6  ;;  %v8198_v36 = vsel %vm7011_vm7, %v4377_v33, %v4378_v59  ;;  %v6636_v6 = vld [vmem:[%s6763_s22 + $0x54] sm:$0xff]   ;;  %v5809_v7 = vrot.slane %v5793_v9, 9  ;;  %v4300_v1 = vrot.slane %v4298_v44, 4  ;;  %v6687_v3 = vld [vmem:[%s6763_s22 + $0x2c] sm:$0x1] }
 0x11d   : > { %6122 = vmatmul.mubr.msk.bf16.gmra.mrb[4].mxu1 %vm629_vm3, %v6633_v8  ;;  %6277 = vmatprep.mubr.msk.bf16.mxu0 %vm629_vm3, %v5773_v5  ;;  %v3936_v5 = vrot.slane %v3934_v35, 5  ;;  %v5775_v8 = vcombine.low %v3903_v56, %v3913_v16  ;;  %v5837_v50 = vcombine.low %v8193_v34, %v8198_v36  ;;  %v4385_v63 = vrot.slane %v7921_v24, 5  ;;  %v6685_v35 = vld [vmem:[%s6763_s22 + $0x28] sm:$0xf]  ;;  %v5795_v16 = vld [vmem:[%s6763_s22 + $0x30] sm:$0xe] }
 0x11e   : > { %6125 = vmatprep.mubr.msk.bf16.mxu1 %vm629_vm3, %v6634_v54  ;;  %v3922_v11 = vrot.slane %v3921_v47, 4  ;;  %v4301_v54 = vrot.slane %v6684_v43, 5  ;;  %v4305_v29 = vrot.slane %v6685_v35, 5  ;;  %v8221_v24 = vsel %vm7011_vm7, %v5821_v15, %v4382_v42  ;;  %v6638_v43 = vld [vmem:[%s6763_s22 + $0x6c] sm:$0xff]   ;;  %v6688_v15 = vld [vmem:[%s6763_s22 + $0x38] sm:$0x1] }
 0x11f   : > { %v3937_v14 = vsel %vm6789_vm4, %v3932_v18, %v3936_v5  ;;  %v4384_v47 = vrot.slane %v4382_v42, 4  ;;  %v4299_v38 = vsel %vm7011_vm7, %v5809_v7, %v4298_v44  ;;  %v5810_v33 = vrot.slane %v5794_v52, 9  ;;  %v5807_v35 = vld [vmem:[%s6763_s22 + $0xc0] sm:$0xe]  ;;  %v6702_v34 = vld [vmem:[%s6763_s22 + $0xc8] sm:$0x1] }
 0x120   : > { %v3927_v56 = vsel %vm6789_vm4, %v3922_v11, %v8161_v49  ;;  %v4302_v59 = vsel %vm7011_vm7, %v4300_v1, %v4301_v54  ;;  %v6686_v49 = vld [vmem:[%s6763_s22 + $0x34] sm:$0xf]  ;;  %v6637_v11 = vld [vmem:[%s6763_s22 + $0x60] sm:$0xff]   ;;  %v5811_v7 = vrot.slane %v5795_v16, 9  ;;  %v4392_v1 = vrot.slane %v8030_v51, 5 }
 0x121   : > { %v4312_v17 = vrot.slane %v6686_v49, 5  ;;  %v8232_v9 = vsel %vm7011_vm7, %v4384_v47, %v4385_v63  ;;  %v5776_v5 = vcombine.low %v3927_v56, %v3937_v14  ;;  %v5826_v18 = vcombine.low %v4299_v38, %v4302_v59  ;;  %v5796_v47 = vld [vmem:[%s6763_s22 + $0x3c] sm:$0xe] }
 0x122   : > { %v5838_v44 = vcombine.low %v8221_v24, %v8232_v9  ;;  %v4315_v42 = vrot.slane %v6688_v15, 5  ;;  %v4306_v51 = vsel %vm7011_vm7, %v5810_v33, %v4305_v29  ;;  %v5823_v49 = vrot.slane %v5807_v35, 9 }
 0x123   : > { %v4314_v54 = vrot.slane %v4312_v17, 4  ;;  %v4313_v59 = vsel %vm7011_vm7, %v5811_v7, %v4312_v17  ;;  %v4399_v33 = vrot.slane %v8123_v20, 5  ;;  %v2379_v36 = vshll.u32 %v6702_v34, 16 }
 0x124   : > { %6278 = vmatmul.mubr.msk.bf16.gmra.mrb[24].mxu0 %vm629_vm3, %v5774_v25  ;;  %v5822_v25 = vrot.slane %v5806_v53, 9 }
 0x125   : > { %6126 = vmatmul.mubr.msk.bf16.gmra.mrb[8].mxu1 %vm629_vm3, %v6635_v55  ;;  %6281 = vmatprep.mubr.msk.bf16.mxu0 %vm629_vm3, %v5775_v8  ;;  %v4308_v55 = vrot.slane %v6687_v3, 5  ;;  %v4389_v8 = vrot.slane %v7981_v58, 5  ;;  %v9034_v58 = vld [vmem:[#allocation6_spill] sm:$0xff]  ;;  %v4316_v16 = vsel %vm7011_vm7, %v4314_v54, %v4315_v42  ;;  %v5812_v3 = vrot.slane %v5796_v47, 9 }
 0x126   : > { %6129 = vmatprep.mubr.msk.bf16.mxu1 %vm629_vm3, %v6636_v6  ;;  %v4307_v6 = vrot.slane %v4305_v29, 4  ;;  %v4319_v53 = vrot.slane %v9034_v58, 5  ;;  %v4396_v29 = vrot.slane %v8033_v4, 5  ;;  %v6689_v58 = vld [vmem:[%s6763_s22 + $0x70] sm:$0xf]  ;;  %v4403_v47 = vrot.slane %v8109_v30, 5 }
 0x127   : > { %v8244_v63 = vsel %vm7011_vm7, %v5822_v25, %v4389_v8  ;;  %v4391_v52 = vrot.slane %v4389_v8, 4  ;;  %v5525_v25 = vld [vmem:[%s6763_s22 + $0x6c] sm:$0xf] }
 0x128   : > { %v4309_v14 = vsel %vm7011_vm7, %v4307_v6, %v4308_v55  ;;  %v4321_v55 = vrot.slane %v4319_v53, 4  ;;  %v9035_v8 = vld [vmem:[#allocation7_spill] sm:$0xff]  ;;  %v6639_v6 = vld [vmem:[%s6763_s22 + $0x78] sm:$0xff]   ;;  %v8275_v17 = vsel %vm7011_vm7, %v5823_v49, %v4396_v29  ;;  %v4398_v7 = vrot.slane %v4396_v29, 4 }
 0x129   : > { %v8251_v56 = vsel %vm7011_vm7, %v4391_v52, %v4392_v1  ;;  %v5828_v1 = vcombine.low %v4313_v59, %v4316_v16  ;;  %v2192_v54 = vshrl.u32 %v5525_v25, 16  ;;  %v2195_v15 = vshll.u32 %v5525_v25, 16 }
 0x12a   : > { %v5839_v38 = vcombine.low %v8244_v63, %v8251_v56  ;;  %v8280_v4 = vsel %vm7011_vm7, %v4398_v7, %v4399_v33  ;;  %v4320_v42 = vsel %vm7011_vm7, %v5812_v3, %v4319_v53  ;;  %v4406_v53 = vrot.slane %v8154_v61, 5  ;;  %v6641_v33 = vld [vmem:[%s6763_s22 + $0x90] sm:$0xff]   ;;  %v6642_v61 = vld [vmem:[%s6763_s22 + $0x9c] sm:$0xff]  }
 0x12b   : > { %v5840_v35 = vcombine.low %v8275_v17, %v8280_v4  ;;  %v2194_v59 = vrot.slane %v2192_v54, 4  ;;  %v2197_v16 = vrot.slane %v2195_v15, 5  ;;  %v4405_v25 = vrot.slane %v4403_v47, 4 }
 0x12c   : > { %6282 = vmatmul.mubr.msk.bf16.gmra.mrb[28].mxu0 %vm629_vm3, %v5776_v5  ;;  %v5827_v5 = vcombine.low %v4306_v51, %v4309_v14  ;;  %v2201_v51 = vshll.u32 %v6689_v58, 16  ;;  %v2205_v14 = vshrl.u32 %v6689_v58, 16 }
 0x12d   : > { %6130 = vmatmul.mubr.msk.bf16.gmra.mrb[12].mxu1 %vm629_vm3, %v6637_v11  ;;  %6287 = vmatprep.mubr.msk.bf16.mxu0 %vm629_vm3, %v5826_v18  ;;  %v4322_v11 = vrot.slane %v9035_v8, 5  ;;  %v5808_v18 = vld [vmem:[%s6763_s22 + $0xcc] sm:$0xe]  ;;  %v8302_v30 = vsel %vm7011_vm7, %v4405_v25, %v4406_v53 }
 0x12e   : > { %6133 = vmatprep.mubr.msk.bf16.mxu1 %vm629_vm3, %v6638_v43  ;;  %v6640_v43 = vld [vmem:[%s6763_s22 + $0x84] sm:$0xff]   ;;  %v5824_v20 = vrot.slane %v5808_v18, 9  ;;  %v2207_v3 = vrot.slane %v2205_v14, 4  ;;  %v6690_v18 = vld [vmem:[%s6763_s22 + $0x74] sm:$0x1] }
 0x12f   : > { %v4323_v52 = vsel %vm7011_vm7, %v4321_v55, %v4322_v11  ;;  %v5531_v55 = vld [vmem:[%s6763_s22 + $0x84] sm:$0xf]  ;;  %v2198_v11 = vor.u32 %v2197_v16, %v2194_v59  ;;  %v6644_v14 = vld [vmem:[%s6763_s22 + $0xb4] sm:$0xff]  }
 0x130   : > { %v8297_v49 = vsel %vm7011_vm7, %v5824_v20, %v4403_v47  ;;  %v5829_v29 = vcombine.low %v4320_v42, %v4323_v52  ;;  %v2243_v7 = vshll.u32 %v5531_v55, 16  ;;  %v5534_v42 = vld [vmem:[%s6763_s22 + $0x90] sm:$0xf]  ;;  %v6643_v52 = vld [vmem:[%s6763_s22 + $0xa8] sm:$0xff]  }
 0x131   : > { %v5841_v8 = vcombine.low %v8297_v49, %v8302_v30  ;;  %v2199_v20 = vrot.slane %v2198_v11, 4  ;;  %v2264_v59 = vshrl.u32 %v5534_v42, 16  ;;  %v2267_v16 = vshll.u32 %v5534_v42, 16 }
 0x132   : > { %v2297_v11 = vshll.u32 %v6693_v48, 16 }
 0x133   : > { %v2269_v60 = vrot.slane %v2267_v16, 5  ;;  %v6696_v16 = vld [vmem:[%s6763_s22 + $0xa4] sm:$0x1] }
 0x134   : > { %6288 = vmatmul.mubr.msk.bf16.vlgmr.msra.gmra.mrb[0].mxu0 %vm629_vm3, %v5827_v5  ;;  %v2203_v5 = vrot.slane %v2201_v51, 5  ;;  %v5537_v51 = vld [vmem:[%s6763_s22 + $0x9c] sm:$0xf]  ;;  %v8344_v42 = vrot.slane %v2297_v11, 5 }
 0x135   : > { %6134 = vmatmul.mubr.msk.bf16.gmra.mrb[16].mxu1 %vm629_vm3, %v6639_v6  ;;  %6291 = vmatprep.mubr.msk.bf16.mxu0 %vm629_vm3, %v5828_v1  ;;  %v2211_v6 = vshll.u32 %v6690_v18, 16  ;;  %v2240_v1 = vshrl.u32 %v5531_v55, 16  ;;  %v2291_v55 = vshll.u32 %v5537_v51, 16  ;;  %v6694_v18 = vld [vmem:[%s6763_s22 + $0x8c] sm:$0x1] }
 0x136   : > { %6137 = vmatprep.mubr.msk.bf16.mxu1 %vm629_vm3, %v6640_v43  ;;  %v2208_v37 = vor.u32 %v2207_v3, %v2203_v5  ;;  %v6691_v43 = vld [vmem:[%s6763_s22 + $0x88] sm:$0xf]  ;;  %v2204_v25 = vsel %vm6789_vm4, %v2199_v20, %v2203_v5 }
 0x137   : > { %v2249_v54 = vshll.u32 %v6691_v43, 16  ;;  %v2253_v15 = vshrl.u32 %v6691_v43, 16  ;;  %v2213_v22 = vrot.slane %v2211_v6, 5  ;;  %v2242_v57 = vrot.slane %v2240_v1, 4 }
 0x138   : > { %v2209_v58 = vrot.slane %v2208_v37, 4  ;;  %v2259_v6 = vshll.u32 %v6694_v18, 16  ;;  %v2266_v1 = vrot.slane %v2264_v59, 4  ;;  %v2293_v43 = vrot.slane %v2291_v55, 5 }
 0x139   : > { %v8321_v47 = vrot.slane %v2249_v54, 5  ;;  %v2255_v53 = vrot.slane %v2253_v15, 4  ;;  %v6645_v54 = vld [vmem:[%s6763_s22 + $0xc0] sm:$0xff]  }
 0x13a   : > { %v2214_v5 = vsel %vm6789_vm4, %v2209_v58, %v2213_v22  ;;  %v5540_v58 = vld [vmem:[%s6763_s22 + $0xa8] sm:$0xf] }
 0x13b   : > { %v2256_v37 = vor.u32 %v2255_v53, %v8321_v47  ;;  %v5558_v15 = vcombine.low %v2204_v25, %v2214_v5  ;;  %v2307_v25 = vshll.u32 %v6696_v16, 16  ;;  %v2315_v0 = vshll.u32 %v5540_v58, 16 }
 0x13c   : > { %6292 = vmatmul.mubr.msk.bf16.gmra.mrb[4].mxu0 %vm629_vm3, %v5829_v29  ;;  %v6692_v29 = vld [vmem:[%s6763_s22 + $0x94] sm:$0xf] }
 0x13d   : > { %6138 = vmatmul.mubr.msk.bf16.gmra.mrb[20].mxu1 %vm629_vm3, %v6641_v33  ;;  %6295 = vmatprep.mubr.msk.bf16.mxu0 %vm629_vm3, %v5830_v10  ;;  %v2245_v10 = vrot.slane %v2243_v7, 5  ;;  %v2273_v33 = vshll.u32 %v6692_v29, 16  ;;  %v2277_v3 = vshrl.u32 %v6692_v29, 16  ;;  %v2257_v22 = vrot.slane %v2256_v37, 4 }
 0x13e   : > { %6141 = vmatprep.mubr.msk.bf16.mxu1 %vm629_vm3, %v6642_v61  ;;  %v2288_v61 = vshrl.u32 %v5537_v51, 16  ;;  %v6695_v51 = vld [vmem:[%s6763_s22 + $0x98] sm:$0x1]  ;;  %v2312_v29 = vshrl.u32 %v5540_v58, 16  ;;  %v5546_v58 = vld [vmem:[%s6763_s22 + $0xc0] sm:$0xf] }
 0x13f   : > { %v2246_v31 = vor.u32 %v2245_v10, %v2242_v57  ;;  %v8341_v27 = vrot.slane %v2273_v33, 5  ;;  %v2261_v57 = vrot.slane %v2259_v6, 5  ;;  %v2270_v10 = vor.u32 %v2269_v60, %v2266_v1  ;;  %v5543_v33 = vld [vmem:[%s6763_s22 + $0xb4] sm:$0xf] }
 0x140   : > { %v2290_v7 = vrot.slane %v2288_v61, 4  ;;  %v2325_v61 = vshrl.u32 %v6697_v40, 16  ;;  %v2336_v41 = vshrl.u32 %v5543_v33, 16  ;;  %v2339_v39 = vshll.u32 %v5543_v33, 16 }
 0x141   : > { %v2247_v20 = vrot.slane %v2246_v31, 4  ;;  %v2262_v5 = vsel %vm6789_vm4, %v2257_v22, %v2261_v57  ;;  %v2271_v31 = vrot.slane %v2270_v10, 4  ;;  %v2309_v6 = vrot.slane %v2307_v25, 5 }
 0x142   : > { %v2294_v59 = vor.u32 %v2293_v43, %v2290_v7  ;;  %v2314_v1 = vrot.slane %v2312_v29, 4  ;;  %v2327_v43 = vrot.slane %v2325_v61, 4  ;;  %v6701_v29 = vld [vmem:[%s6763_s22 + $0xbc] sm:$0x1] }
 0x143   : > { %v2252_v55 = vsel %vm6789_vm4, %v2247_v20, %v8321_v47  ;;  %v2276_v22 = vsel %vm6789_vm4, %v2271_v31, %v8341_v27  ;;  %v2355_v23 = vshll.u32 %v6701_v29, 16 }
 0x144   : > { %6296 = vmatmul.mubr.msk.bf16.gmra.mrb[8].mxu0 %vm629_vm3, %v5831_v62  ;;  %v2301_v62 = vshrl.u32 %v6693_v48, 16  ;;  %v2295_v18 = vrot.slane %v2294_v59, 4  ;;  %v5560_v47 = vcombine.low %v2252_v55, %v2262_v5 }
 0x145   : > { %6142 = vmatmul.mubr.msk.bf16.gmra.mrb[24].mxu1 %vm629_vm3, %v6643_v52  ;;  %6299 = vmatprep.mubr.msk.bf16.mxu0 %vm629_vm3, %v5832_v19  ;;  %v2279_v19 = vrot.slane %v2277_v3, 4 }
 0x146   : > { %6145 = vmatprep.mubr.msk.bf16.mxu1 %vm629_vm3, %v6644_v14  ;;  %v2303_v52 = vrot.slane %v2301_v62, 4  ;;  %v2283_v14 = vshll.u32 %v6695_v51, 16  ;;  %v2300_v10 = vsel %vm6789_vm4, %v2295_v18, %v8344_v42  ;;  %v2381_v18 = vrot.slane %v2379_v36, 5 }
 0x147   : > { %v2280_v53 = vor.u32 %v2279_v19, %v8341_v27  ;;  %v2317_v19 = vrot.slane %v2315_v0, 5  ;;  %v6699_v27 = vld [vmem:[%s6763_s22 + $0xb0] sm:$0x1] }
 0x148   : > { %v2304_v3 = vor.u32 %v2303_v52, %v8344_v42  ;;  %v2285_v48 = vrot.slane %v2283_v14, 5  ;;  %v2331_v51 = vshll.u32 %v6699_v27, 16  ;;  %v2360_v14 = vshrl.u32 %v5546_v58, 16 }
 0x149   : > { %v2281_v37 = vrot.slane %v2280_v53, 4  ;;  %v2318_v2 = vor.u32 %v2317_v19, %v2314_v1  ;;  %v2363_v42 = vshll.u32 %v5546_v58, 16  ;;  %v6700_v53 = vld [vmem:[%s6763_s22 + $0xc4] sm:$0xf] }
 0x14a   : > { %v2305_v60 = vrot.slane %v2304_v3, 4  ;;  %v2369_v59 = vshll.u32 %v6700_v53, 16  ;;  %v2373_v16 = vshrl.u32 %v6700_v53, 16  ;;  %v2333_v0 = vrot.slane %v2331_v51, 5 }
 0x14b   : > { %v2286_v57 = vsel %vm6789_vm4, %v2281_v37, %v2285_v48  ;;  %v2319_v33 = vrot.slane %v2318_v2, 4  ;;  %v2357_v48 = vrot.slane %v2355_v23, 5 }
 0x14c   : > { %6300 = vmatmul.mubr.msk.bf16.gmra.mrb[12].mxu0 %vm629_vm3, %v5833_v28  ;;  %v2321_v28 = vshll.u32 %v6697_v40, 16  ;;  %v2310_v12 = vsel %vm6789_vm4, %v2305_v60, %v2309_v6  ;;  %v5561_v45 = vcombine.low %v2276_v22, %v2286_v57  ;;  %v2362_v40 = vrot.slane %v2360_v14, 4 }
 0x14d   : > { %6146 = vmatmul.mubr.msk.bf16.gmra.mrb[28].mxu1 %vm629_vm3, %v6645_v54  ;;  %6303 = vmatprep.mubr.msk.bf16.mxu0 %vm629_vm3, %v5834_v26  ;;  %v6698_v26 = vld [vmem:[%s6763_s22 + $0xb8] sm:$0xf]  ;;  %v2338_v54 = vrot.slane %v2336_v41, 4  ;;  %v2371_v61 = vrot.slane %v2369_v59, 5  ;;  %v2375_v55 = vrot.slane %v2373_v16, 4 }
 0x14e   : > { %6167 = vmatprep.mubr.msk.bf16.mxu1 %vm629_vm3, %v5558_v15  ;;  %v2345_v11 = vshll.u32 %v6698_v26, 16  ;;  %v2349_v62 = vshrl.u32 %v6698_v26, 16  ;;  %v2323_v7 = vrot.slane %v2321_v28, 5  ;;  %v2341_v15 = vrot.slane %v2339_v39, 5 }
 0x14f   : > { %v2365_v28 = vrot.slane %v2363_v42, 5 }
 0x150   : > { %v2347_v20 = vrot.slane %v2345_v11, 5  ;;  %v2351_v52 = vrot.slane %v2349_v62, 4  ;;  %v2324_v41 = vsel %vm6789_vm4, %v2319_v33, %v2323_v7  ;;  %v2376_v11 = vor.u32 %v2375_v55, %v2371_v61 }
 0x151   : > { %v2366_v26 = vor.u32 %v2365_v28, %v2362_v40 }
 0x152   : > { %v2352_v25 = vor.u32 %v2351_v52, %v2347_v20  ;;  %v2377_v37 = vrot.slane %v2376_v11, 4 }
 0x153   : > { %v2367_v62 = vrot.slane %v2366_v26, 4 }
 0x154   : > { %6304 = vmatmul.mubr.msk.bf16.gmra.mrb[16].mxu0 %vm629_vm3, %v5835_v46  ;;  %v2328_v46 = vor.u32 %v2327_v43, %v2323_v7  ;;  %v2353_v31 = vrot.slane %v2352_v25, 4  ;;  %v2382_v1 = vsel %vm6789_vm4, %v2377_v37, %v2381_v18 }
 0x155   : > { %6168 = vmatmul.mubr.msk.bf16.vlgmr.msra.gmra.mrb[16].mxu1 %vm629_vm3, %v8150_v21  ;;  %6307 = vmatprep.mubr.msk.bf16.mxu0 %vm629_vm3, %v5836_v13  ;;  %v2342_v21 = vor.u32 %v2341_v15, %v2338_v54  ;;  %v5562_v13 = vcombine.low %v2300_v10, %v2310_v12  ;;  %v2372_v6 = vsel %vm6789_vm4, %v2367_v62, %v2371_v61 }
 0x156   : > { %6171 = vmatprep.mubr.msk.bf16.mxu1 %vm629_vm3, %v5560_v47  ;;  %v2329_v3 = vrot.slane %v2328_v46, 4  ;;  %v2358_v24 = vsel %vm6789_vm4, %v2353_v31, %v2357_v48  ;;  %v5565_v60 = vcombine.low %v2372_v6, %v2382_v1 }
 0x157   : > { %v2343_v5 = vrot.slane %v2342_v21, 4 }
 0x158   : > { %v2334_v39 = vsel %vm6789_vm4, %v2329_v3, %v2333_v0 }
 0x159   : > { %v5563_v9 = vcombine.low %v2324_v41, %v2334_v39 }
 0x15c   : > { %6308 = vmatmul.mubr.msk.bf16.gmra.mrb[20].mxu0 %vm629_vm3, %v5837_v50  ;;  %v2348_v50 = vsel %vm6789_vm4, %v2343_v5, %v2347_v20 }
 0x15d   : > { %6172 = vmatmul.mubr.msk.bf16.gmra.mrb[20].mxu1 %vm629_vm3, %v5561_v45  ;;  %6311 = vmatprep.mubr.msk.bf16.mxu0 %vm629_vm3, %v5838_v44  ;;  %v5564_v44 = vcombine.low %v2348_v50, %v2358_v24 }
 0x15e   : > { %6175 = vmatprep.mubr.msk.bf16.mxu1 %vm629_vm3, %v5562_v13 }
 0x164   : > { %6312 = vmatmul.mubr.msk.bf16.gmra.mrb[24].mxu0 %vm629_vm3, %v5839_v38 }
 0x165   : > { %6176 = vmatmul.mubr.msk.bf16.gmra.mrb[24].mxu1 %vm629_vm3, %v5563_v9  ;;  %6315 = vmatprep.mubr.msk.bf16.mxu0 %vm629_vm3, %v5840_v35 }
 0x166   : > { %6179 = vmatprep.mubr.msk.bf16.mxu1 %vm629_vm3, %v5564_v44 }
 0x16c   : > { %6316 = vmatmul.mubr.msk.bf16.gmra.mrb[28].mxu0 %vm629_vm3, %v5841_v8 }
 0x16d   : > { %6180 = vmatmul.mubr.msk.bf16.gmra.mrb[28].mxu1 %vm629_vm3, %v5565_v60 }
 0x1e8   : > { %v6119_v63 = vpop.f32.mrb[0].mxu1 }
 0x1e9   : > { %v1792_v56 = vpop.f32.mrb[1].mxu1 }
 0x1ea   : > { %v6120_v38 = vpop.f32.mrb[2].mxu1 }
 0x1eb   : > { %v1795_v17 = vpop.f32.mrb[3].mxu1 }
 0x1f0   : > { %v6123_v4 = vpop.f32.mrb[4].mxu1 }
 0x1f1   : > { %v1808_v35 = vpop.f32.mrb[5].mxu1 }
 0x1f2   : > { %v6124_v19 = vpop.f32.mrb[6].mxu1 }
 0x1f3   : > { %v1811_v7 = vpop.f32.mrb[7].mxu1 }
 0x1f8   : > { %v6127_v43 = vpop.f32.mrb[8].mxu1 }
 0x1f9   : > { %v1824_v47 = vpop.f32.mrb[9].mxu1 }
 0x1fa   : > { %v6128_v32 = vpop.f32.mrb[10].mxu1 }
 0x1fb   : > { %v1827_v54 = vpop.f32.mrb[11].mxu1 }
 0x200   : > { %v6131_v15 = vpop.f32.mrb[12].mxu1 }
 0x201   : > { %v1840_v20 = vpop.f32.mrb[13].mxu1 }
 0x202   : > { %v6132_v52 = vpop.f32.mrb[14].mxu1 }
 0x203   : > { %v1843_v49 = vpop.f32.mrb[15].mxu1 }
 0x207   : > { %v6289_v30 = vpop.f32.mrb[0].mxu0 }
 0x208   : > { %v8432_v8 = vadd.f32 %v6289_v30, %v6119_v63  ;;  %v4543_v58 = vpop.f32.mrb[1].mxu0 }
 0x209   : > { %v8434_v22 = vadd.f32 %v4543_v58, %v1792_v56  ;;  %v6290_v57 = vpop.f32.mrb[2].mxu0 }
 0x20a   : > { %v8436_v10 = vadd.f32 %v6290_v57, %v6120_v38  ;;  %v4546_v12 = vpop.f32.mrb[3].mxu0  ;;  %4898 = vrot.lane.b32.xlu0 %v8432_v8, %s6711_s7  ;;  %4738 = vrot.lane.b32.xlu1 %v8432_v8, %s6712_s8 }
 0x20b   : > { %v8442_v2 = vadd.f32 %v4546_v12, %v1795_v17 }
 0x20e   : > { %4894 = vrot.lane.b32.xlu1 %v8434_v22, %s6711_s7  ;;  %4734 = vrot.lane.b32.xlu0 %v8434_v22, %s6712_s8 }
 0x20f   : > { %v6293_v46 = vpop.f32.mrb[4].mxu0 }
 0x210   : > { %v8448_v27 = vadd.f32 %v6293_v46, %v6123_v4  ;;  %v4559_v51 = vpop.f32.mrb[5].mxu0 }
 0x211   : > { %v8450_v14 = vadd.f32 %v4559_v51, %v1808_v35  ;;  %v6294_v42 = vpop.f32.mrb[6].mxu0 }
 0x212   : > { %v8452_v53 = vadd.f32 %v6294_v42, %v6124_v19  ;;  %v4562_v59 = vpop.f32.mrb[7].mxu0  ;;  %4900 = vrot.lane.b32.xlu0 %v8436_v10, %s6711_s7  ;;  %4740 = vrot.lane.b32.xlu1 %v8436_v10, %s6712_s8 }
 0x213   : > { %v8458_v16 = vadd.f32 %v4562_v59, %v1811_v7 }
 0x216   : > { %4736 = vrot.lane.b32.xlu0 %v8442_v2, %s6712_s8  ;;  %4746 = vrot.lane.b32.xlu1 %v8448_v27, %s6712_s8 }
 0x217   : > { %v6297_v21 = vpop.f32.mrb[8].mxu0 }
 0x218   : > { %v8464_v25 = vadd.f32 %v6297_v21, %v6127_v43  ;;  %v4575_v29 = vpop.f32.mrb[9].mxu0 }
 0x219   : > { %v8466_v23 = vadd.f32 %v4575_v29, %v1824_v47  ;;  %v6298_v45 = vpop.f32.mrb[10].mxu0 }
 0x21a   : > { %v8468_v13 = vadd.f32 %v6298_v45, %v6128_v32  ;;  %v4578_v33 = vpop.f32.mrb[11].mxu0  ;;  %4896 = vrot.lane.b32.xlu0 %v8442_v2, %s6711_s7  ;;  %4742 = vrot.lane.b32.xlu1 %v8450_v14, %s6712_s8 }
 0x21b   : > { %v8474_v3 = vadd.f32 %v4578_v33, %v1827_v54 }
 0x21e   : > { %4906 = vrot.lane.b32.xlu0 %v8448_v27, %s6711_s7  ;;  %4748 = vrot.lane.b32.xlu1 %v8452_v53, %s6712_s8 }
 0x21f   : > { %v6301_v0 = vpop.f32.mrb[12].mxu0 }
 0x220   : > { %v8480_v40 = vadd.f32 %v6301_v0, %v6131_v15  ;;  %v4591_v28 = vpop.f32.mrb[13].mxu0 }
 0x221   : > { %v8482_v61 = vadd.f32 %v4591_v28, %v1840_v20  ;;  %v6302_v55 = vpop.f32.mrb[14].mxu0 }
 0x222   : > { %v8484_v5 = vadd.f32 %v6302_v55, %v6132_v52  ;;  %v4594_v31 = vpop.f32.mrb[15].mxu0  ;;  %4902 = vrot.lane.b32.xlu0 %v8450_v14, %s6711_s7  ;;  %4744 = vrot.lane.b32.xlu1 %v8458_v16, %s6712_s8 }
 0x223   : > { %v8490_v48 = vadd.f32 %v4594_v31, %v1843_v49 }
 0x226   : > { %4908 = vrot.lane.b32.xlu0 %v8452_v53, %s6711_s7  ;;  %4754 = vrot.lane.b32.xlu1 %v8464_v25, %s6712_s8 }
 0x227   : > { %v6305_v41 = vpop.f32.mrb[16].mxu0 }
 0x228   : > { %v6169_v39 = vpop.f32.mrb[16].mxu1  ;;  %v4607_v26 = vpop.f32.mrb[17].mxu0 }
 0x229   : > { %v8496_v11 = vadd.f32 %v6305_v41, %v6169_v39  ;;  %v2582_v34 = vpop.f32.mrb[17].mxu1  ;;  %v6306_v36 = vpop.f32.mrb[18].mxu0 }
 0x22a   : > { %v8498_v50 = vadd.f32 %v4607_v26, %v2582_v34  ;;  %v6170_v24 = vpop.f32.mrb[18].mxu1  ;;  %v4610_v9 = vpop.f32.mrb[19].mxu0  ;;  %4904 = vrot.lane.b32.xlu0 %v8458_v16, %s6711_s7  ;;  %4750 = vrot.lane.b32.xlu1 %v8466_v23, %s6712_s8 }
 0x22b   : > { %v8504_v44 = vadd.f32 %v6306_v36, %v6170_v24  ;;  %v2585_v62 = vpop.f32.mrb[19].mxu1 }
 0x22c   : > { %v8506_v37 = vadd.f32 %v4610_v9, %v2585_v62 }
 0x22e   : > { %4914 = vrot.lane.b32.xlu0 %v8464_v25, %s6711_s7  ;;  %4756 = vrot.lane.b32.xlu1 %v8468_v13, %s6712_s8 }
 0x22f   : > { %v6309_v18 = vpop.f32.mrb[20].mxu0 }
 0x230   : > { %v6173_v6 = vpop.f32.mrb[20].mxu1  ;;  %v4623_v1 = vpop.f32.mrb[21].mxu0 }
 0x231   : > { %v8512_v60 = vadd.f32 %v6309_v18, %v6173_v6  ;;  %v2598_v63 = vpop.f32.mrb[21].mxu1  ;;  %v6310_v56 = vpop.f32.mrb[22].mxu0 }
 0x232   : > { %v8514_v38 = vadd.f32 %v4623_v1, %v2598_v63  ;;  %v6174_v17 = vpop.f32.mrb[22].mxu1  ;;  %v4626_v4 = vpop.f32.mrb[23].mxu0  ;;  %4910 = vrot.lane.b32.xlu0 %v8466_v23, %s6711_s7  ;;  %4752 = vrot.lane.b32.xlu1 %v8474_v3, %s6712_s8 }
 0x233   : > { %v8520_v35 = vadd.f32 %v6310_v56, %v6174_v17  ;;  %v2601_v19 = vpop.f32.mrb[23].mxu1 }
 0x234   : > { %v8522_v7 = vadd.f32 %v4626_v4, %v2601_v19 }
 0x236   : > { %4916 = vrot.lane.b32.xlu0 %v8468_v13, %s6711_s7  ;;  %4762 = vrot.lane.b32.xlu1 %v8480_v40, %s6712_s8 }
 0x237   : > { %v6313_v43 = vpop.f32.mrb[24].mxu0 }
 0x238   : > { %v6177_v47 = vpop.f32.mrb[24].mxu1  ;;  %v4639_v32 = vpop.f32.mrb[25].mxu0 }
 0x239   : > { %v8528_v54 = vadd.f32 %v6313_v43, %v6177_v47  ;;  %v2614_v15 = vpop.f32.mrb[25].mxu1  ;;  %v6314_v20 = vpop.f32.mrb[26].mxu0 }
 0x23a   : > { %v8530_v52 = vadd.f32 %v4639_v32, %v2614_v15  ;;  %v6178_v49 = vpop.f32.mrb[26].mxu1  ;;  %v4642_v30 = vpop.f32.mrb[27].mxu0  ;;  %4912 = vrot.lane.b32.xlu0 %v8474_v3, %s6711_s7  ;;  %4758 = vrot.lane.b32.xlu1 %v8482_v61, %s6712_s8 }
 0x23b   : > { %v8536_v58 = vadd.f32 %v6314_v20, %v6178_v49  ;;  %v2617_v57 = vpop.f32.mrb[27].mxu1 }
 0x23c   : > { %v8538_v12 = vadd.f32 %v4642_v30, %v2617_v57 }
 0x23e   : > { %4922 = vrot.lane.b32.xlu0 %v8480_v40, %s6711_s7  ;;  %4764 = vrot.lane.b32.xlu1 %v8484_v5, %s6712_s8 }
 0x23f   : > { %v6317_v46 = vpop.f32.mrb[28].mxu0 }
 0x240   : > { %v6181_v51 = vpop.f32.mrb[28].mxu1  ;;  %v4655_v42 = vpop.f32.mrb[29].mxu0 }
 0x241   : > { %v8544_v59 = vadd.f32 %v6317_v46, %v6181_v51  ;;  %v2630_v21 = vpop.f32.mrb[29].mxu1  ;;  %v6318_v29 = vpop.f32.mrb[30].mxu0 }
 0x242   : > { %v8546_v45 = vadd.f32 %v4655_v42, %v2630_v21  ;;  %v6182_v33 = vpop.f32.mrb[30].mxu1  ;;  %v4658_v0 = vpop.f32.mrb[31].mxu0  ;;  %4918 = vrot.lane.b32.xlu0 %v8482_v61, %s6711_s7  ;;  %4760 = vrot.lane.b32.xlu1 %v8490_v48, %s6712_s8 }
 0x243   : > { %v8552_v28 = vadd.f32 %v6318_v29, %v6182_v33  ;;  %v2633_v55 = vpop.f32.mrb[31].mxu1 }
 0x244   : > { %v8554_v31 = vadd.f32 %v4658_v0, %v2633_v55 }
 0x245   : > { %9036 = vst [vmem:[#allocation8_spill] sm:$0xff] %v8552_v28 }
 0x246   : > { %4924 = vrot.lane.b32.xlu0 %v8484_v5, %s6711_s7  ;;  %4770 = vrot.lane.b32.xlu1 %v8496_v11, %s6712_s8 }
 0x24a   : > { %4920 = vrot.lane.b32.xlu0 %v8490_v48, %s6711_s7  ;;  %4766 = vrot.lane.b32.xlu1 %v8498_v50, %s6712_s8 }
 0x24e   : > { %4930 = vrot.lane.b32.xlu0 %v8496_v11, %s6711_s7  ;;  %4772 = vrot.lane.b32.xlu1 %v8504_v44, %s6712_s8 }
 0x252   : > { %4926 = vrot.lane.b32.xlu0 %v8498_v50, %s6711_s7  ;;  %4768 = vrot.lane.b32.xlu1 %v8506_v37, %s6712_s8 }
 0x256   : > { %4932 = vrot.lane.b32.xlu0 %v8504_v44, %s6711_s7  ;;  %4778 = vrot.lane.b32.xlu1 %v8512_v60, %s6712_s8 }
 0x25a   : > { %4928 = vrot.lane.b32.xlu0 %v8506_v37, %s6711_s7  ;;  %4774 = vrot.lane.b32.xlu1 %v8514_v38, %s6712_s8 }
 0x25e   : > { %4938 = vrot.lane.b32.xlu0 %v8512_v60, %s6711_s7  ;;  %4780 = vrot.lane.b32.xlu1 %v8520_v35, %s6712_s8 }
 0x262   : > { %4934 = vrot.lane.b32.xlu0 %v8514_v38, %s6711_s7  ;;  %4776 = vrot.lane.b32.xlu1 %v8522_v7, %s6712_s8 }
 0x266   : > { %4940 = vrot.lane.b32.xlu0 %v8520_v35, %s6711_s7  ;;  %4786 = vrot.lane.b32.xlu1 %v8528_v54, %s6712_s8 }
 0x26a   : > { %4936 = vrot.lane.b32.xlu0 %v8522_v7, %s6711_s7  ;;  %4782 = vrot.lane.b32.xlu1 %v8530_v52, %s6712_s8 }
 0x26e   : > { %4946 = vrot.lane.b32.xlu0 %v8528_v54, %s6711_s7  ;;  %4788 = vrot.lane.b32.xlu1 %v8536_v58, %s6712_s8 }
 0x272   : > { %4942 = vrot.lane.b32.xlu0 %v8530_v52, %s6711_s7  ;;  %4784 = vrot.lane.b32.xlu1 %v8538_v12, %s6712_s8 }
 0x276   : > { %4948 = vrot.lane.b32.xlu0 %v8536_v58, %s6711_s7  ;;  %4794 = vrot.lane.b32.xlu1 %v8544_v59, %s6712_s8 }
 0x27a   : > { %4944 = vrot.lane.b32.xlu0 %v8538_v12, %s6711_s7  ;;  %4790 = vrot.lane.b32.xlu1 %v8546_v45, %s6712_s8 }
 0x27c   : > { %v4899_v41 = vpop.permute.xlu0 %4898  ;;  %v4739_v39 = vpop.permute.xlu1 %4738 }
 0x27d   : > { %v4864_v26 = vmax.f32 %v8432_v8, %v4739_v39  ;;  %v4832_v34 = vmin.f32 %v8432_v8, %v4739_v39 }
 0x27e   : > { %4950 = vrot.lane.b32.xlu0 %v8546_v45, %s6711_s7  ;;  %4792 = vrot.lane.b32.xlu1 %v8554_v31, %s6712_s8 }
 0x27f   : > { %v4992_v36 = vmin.f32 %v4864_v26, %v4899_v41 }
 0x280   : > { %v4895_v24 = vpop.permute.xlu1 %4894  ;;  %v4735_v9 = vpop.permute.xlu0 %4734 }
 0x281   : > { %v8618_v62 = vmax.f32 %v4832_v34, %v4992_v36  ;;  %v4862_v49 = vmax.f32 %v8434_v22, %v4735_v9  ;;  %v4830_v29 = vmin.f32 %v8434_v22, %v4735_v9 }
 0x282   : > { %4952 = vrot.lane.b32.xlu0 %v8554_v31, %s6711_s7  ;;  %4796 = vrot.lane.b32.xlu1 %v8552_v28, %s6712_s8 }
 0x283   : > { %v4990_v42 = vmin.f32 %v4862_v49, %v4895_v24 }
 0x284   : > { %v4901_v18 = vpop.permute.xlu0 %4900  ;;  %v4741_v6 = vpop.permute.xlu1 %4740 }
 0x285   : > { %v8642_v41 = vmax.f32 %v4830_v29, %v4990_v42  ;;  %v4865_v39 = vmax.f32 %v8436_v10, %v4741_v6  ;;  %v4833_v49 = vmin.f32 %v8436_v10, %v4741_v6  ;;  %v5057_v29 = vsel %vm629_vm3, %v8618_v62, 0.0 }
 0x286   : > { %4954 = vrot.lane.b32.xlu0 %v8544_v59, %s6711_s7  ;;  %4956 = vrot.lane.b32.xlu1 %v8552_v28, %s6711_s7 }
 0x287   : > { %v5054_v22 = vsel %vm629_vm3, %v8642_v41, 0.0 }
 0x288   : > { %v4737_v8 = vpop.permute.xlu0 %4736  ;;  %v4747_v1 = vpop.permute.xlu1 %4746 }
 0x289   : > { %v4863_v30 = vmax.f32 %v8442_v2, %v4737_v8  ;;  %v4831_v21 = vmin.f32 %v8442_v2, %v4737_v8  ;;  %v4993_v2 = vmin.f32 %v4865_v39, %v4901_v18  ;;  %v4868_v39 = vmax.f32 %v8448_v27, %v4747_v1 }
 0x28c   : > { %v4897_v63 = vpop.permute.xlu0 %4896  ;;  %v4743_v56 = vpop.permute.xlu1 %4742 }
 0x28d   : > { %v4991_v57 = vmin.f32 %v4863_v30, %v4897_v63  ;;  %v4866_v34 = vmax.f32 %v8450_v14, %v4743_v56  ;;  %v4834_v30 = vmin.f32 %v8450_v14, %v4743_v56 }
 0x28f   : > { %v8640_v33 = vmax.f32 %v4831_v21, %v4991_v57 }
 0x290   : > { %v4907_v17 = vpop.permute.xlu0 %4906  ;;  %v8628_v4 = vpop.permute.xlu1 %4748 }
 0x291   : > { %9037 = vst [vmem:[#allocation9_spill] sm:$0xff] %v8640_v33  ;;  %v5055_v26 = vsel %vm629_vm3, %v8640_v33, 0.0  ;;  %v8661_v33 = vmax.f32 %v4833_v49, %v4993_v2  ;;  %v4996_v56 = vmin.f32 %v4868_v39, %v4907_v17 }
 0x292   : > { %v5056_v63 = vadd.f32 %v5055_v26, %v5054_v22  ;;  %v4836_v22 = vmin.f32 %v8448_v27, %v4747_v1  ;;  %v4837_v27 = vmin.f32 %v8452_v53, %v8628_v4 }
 0x293   : > { %v5059_v6 = vsel %vm629_vm3, %v8661_v33, 0.0 }
 0x294   : > { %v4903_v19 = vpop.permute.xlu0 %4902  ;;  %v4745_v43 = vpop.permute.xlu1 %4744  ;;  %v8683_v49 = vmax.f32 %v4836_v22, %v4996_v56 }
 0x295   : > { %v4994_v9 = vmin.f32 %v4866_v34, %v4903_v19  ;;  %v4867_v8 = vmax.f32 %v8458_v16, %v4745_v43  ;;  %v4835_v18 = vmin.f32 %v8458_v16, %v4745_v43  ;;  %v5058_v19 = vadd.f32 %v5057_v29, %v5056_v63 }
 0x296   : > { %v4869_v16 = vmax.f32 %v8452_v53, %v8628_v4 }
 0x297   : > { %v8663_v28 = vmax.f32 %v4834_v30, %v4994_v9  ;;  %v5060_v34 = vadd.f32 %v5059_v6, %v5058_v19  ;;  %v5065_v6 = vsel %vm629_vm3, %v8683_v49, 0.0 }
 0x298   : > { %v4909_v47 = vpop.permute.xlu0 %4908  ;;  %v8630_v32 = vpop.permute.xlu1 %4754 }
 0x299   : > { %v4997_v17 = vmin.f32 %v4869_v16, %v4909_v47 }
 0x29c   : > { %v4905_v15 = vpop.permute.xlu0 %4904  ;;  %v4751_v20 = vpop.permute.xlu1 %4750 }
 0x29d   : > { %v4995_v57 = vmin.f32 %v4867_v8, %v4905_v15  ;;  %v5061_v15 = vsel %vm629_vm3, %v8663_v28, 0.0  ;;  %v4870_v2 = vmax.f32 %v8466_v23, %v4751_v20  ;;  %v4838_v1 = vmin.f32 %v8466_v23, %v4751_v20 }
 0x29e   : > { %v5062_v9 = vadd.f32 %v5061_v15, %v5060_v34  ;;  %v8693_v15 = vmax.f32 %v4837_v27, %v4997_v17  ;;  %v4872_v34 = vmax.f32 %v8464_v25, %v8630_v32 }
 0x29f   : > { %v8667_v26 = vmax.f32 %v4835_v18, %v4995_v57 }
 0x2a0   : > { %v8634_v46 = vpop.permute.xlu0 %4914  ;;  %v8636_v51 = vpop.permute.xlu1 %4756  ;;  %v5067_v20 = vsel %vm629_vm3, %v8693_v15, 0.0 }
 0x2a1   : > { %v5063_v43 = vsel %vm629_vm3, %v8667_v26, 0.0  ;;  %v4841_v27 = vmin.f32 %v8468_v13, %v8636_v51 }
 0x2a2   : > { %v5064_v29 = vadd.f32 %v5063_v43, %v5062_v9 }
 0x2a4   : > { %v4911_v0 = vpop.permute.xlu0 %4910  ;;  %v4753_v55 = vpop.permute.xlu1 %4752 }
 0x2a5   : > { %v4998_v30 = vmin.f32 %v4870_v2, %v4911_v0  ;;  %v4871_v57 = vmax.f32 %v8474_v3, %v4753_v55  ;;  %v4839_v47 = vmin.f32 %v8474_v3, %v4753_v55  ;;  %v5066_v0 = vadd.f32 %v5065_v6, %v5064_v29 }
 0x2a6   : > { %v4840_v3 = vmin.f32 %v8464_v25, %v8630_v32  ;;  %v4873_v55 = vmax.f32 %v8468_v13, %v8636_v51 }
 0x2a7   : > { %v8695_v56 = vmax.f32 %v4838_v1, %v4998_v30  ;;  %v5068_v16 = vadd.f32 %v5067_v20, %v5066_v0 }
 0x2a8   : > { %v8648_v36 = vpop.permute.xlu0 %4916  ;;  %v8650_v24 = vpop.permute.xlu1 %4762 }
 0x2a9   : > { %v5069_v22 = vsel %vm629_vm3, %v8695_v56, 0.0 }
 0x2aa   : > { %v5070_v9 = vadd.f32 %v5069_v22, %v5068_v16 }
 0x2ac   : > { %v4913_v42 = vpop.permute.xlu0 %4912  ;;  %v8657_v21 = vpop.permute.xlu1 %4758 }
 0x2ad   : > { %v4999_v18 = vmin.f32 %v4871_v57, %v4913_v42  ;;  %v5000_v42 = vmin.f32 %v4872_v34, %v8634_v46  ;;  %v4874_v2 = vmax.f32 %v8482_v61, %v8657_v21  ;;  %v5001_v57 = vmin.f32 %v4873_v55, %v8648_v36 }
 0x2ae   : > { %v4842_v1 = vmin.f32 %v8482_v61, %v8657_v21 }
 0x2af   : > { %v8700_v53 = vmax.f32 %v4839_v47, %v4999_v18  ;;  %v8717_v46 = vmax.f32 %v4840_v3, %v5000_v42  ;;  %v8727_v34 = vmax.f32 %v4841_v27, %v5001_v57  ;;  %v4876_v42 = vmax.f32 %v8480_v40, %v8650_v24 }
 0x2b0   : > { %v8669_v10 = vpop.permute.xlu0 %4922  ;;  %v8671_v14 = vpop.permute.xlu1 %4764 }
 0x2b1   : > { %v5071_v43 = vsel %vm629_vm3, %v8700_v53, 0.0  ;;  %v5073_v0 = vsel %vm629_vm3, %v8717_v46, 0.0  ;;  %v5075_v21 = vsel %vm629_vm3, %v8727_v34, 0.0 }
 0x2b2   : > { %v5072_v32 = vadd.f32 %v5071_v43, %v5070_v9 }
 0x2b4   : > { %v4919_v8 = vpop.permute.xlu0 %4918  ;;  %v4761_v63 = vpop.permute.xlu1 %4760 }
 0x2b5   : > { %v5002_v29 = vmin.f32 %v4874_v2, %v4919_v8  ;;  %v4875_v25 = vmax.f32 %v8490_v48, %v4761_v63  ;;  %v4843_v36 = vmin.f32 %v8490_v48, %v4761_v63  ;;  %v5074_v8 = vadd.f32 %v5073_v0, %v5072_v32 }
 0x2b6   : > { %v4844_v48 = vmin.f32 %v8480_v40, %v8650_v24  ;;  %v4877_v63 = vmax.f32 %v8484_v5, %v8671_v14  ;;  %v4845_v40 = vmin.f32 %v8484_v5, %v8671_v14 }
 0x2b7   : > { %v8729_v20 = vmax.f32 %v4842_v1, %v5002_v29  ;;  %v5076_v16 = vadd.f32 %v5075_v21, %v5074_v8 }
 0x2b8   : > { %v4925_v19 = vpop.permute.xlu0 %4924  ;;  %v8689_v39 = vpop.permute.xlu1 %4770 }
 0x2b9   : > { %v5077_v22 = vsel %vm629_vm3, %v8729_v20, 0.0 }
 0x2ba   : > { %v5078_v43 = vadd.f32 %v5077_v22, %v5076_v16  ;;  %v4848_v22 = vmin.f32 %v8496_v11, %v8689_v39 }
 0x2bc   : > { %v4921_v23 = vpop.permute.xlu0 %4920  ;;  %v4767_v4 = vpop.permute.xlu1 %4766 }
 0x2bd   : > { %v5003_v18 = vmin.f32 %v4875_v25, %v4921_v23  ;;  %v5004_v23 = vmin.f32 %v4876_v42, %v8669_v10  ;;  %v4878_v55 = vmax.f32 %v8498_v50, %v4767_v4  ;;  %v5005_v10 = vmin.f32 %v4877_v63, %v4925_v19 }
 0x2be   : > { %v4846_v24 = vmin.f32 %v8498_v50, %v4767_v4 }
 0x2bf   : > { %v8734_v13 = vmax.f32 %v4843_v36, %v5003_v18  ;;  %v8750_v57 = vmax.f32 %v4844_v48, %v5004_v23  ;;  %v8758_v36 = vmax.f32 %v4845_v40, %v5005_v10 }
 0x2c0   : > { %v4931_v17 = vpop.permute.xlu0 %4930  ;;  %v8715_v30 = vpop.permute.xlu1 %4772 }
 0x2c1   : > { %v5079_v3 = vsel %vm629_vm3, %v8734_v13, 0.0  ;;  %v5081_v0 = vsel %vm629_vm3, %v8750_v57, 0.0  ;;  %v5083_v4 = vsel %vm629_vm3, %v8758_v36, 0.0 }
 0x2c2   : > { %v5080_v32 = vadd.f32 %v5079_v3, %v5078_v43 }
 0x2c4   : > { %v4927_v6 = vpop.permute.xlu0 %4926  ;;  %v4769_v47 = vpop.permute.xlu1 %4768  ;;  %v5082_v42 = vadd.f32 %v5081_v0, %v5080_v32 }
 0x2c5   : > { %v5006_v29 = vmin.f32 %v4878_v55, %v4927_v6  ;;  %v4879_v25 = vmax.f32 %v8506_v37, %v4769_v47  ;;  %v4847_v19 = vmin.f32 %v8506_v37, %v4769_v47  ;;  %v4880_v6 = vmax.f32 %v8496_v11, %v8689_v39 }
 0x2c6   : > { %v5084_v16 = vadd.f32 %v5083_v4, %v5082_v42  ;;  %v4881_v37 = vmax.f32 %v8504_v44, %v8715_v30  ;;  %v4849_v11 = vmin.f32 %v8504_v44, %v8715_v30 }
 0x2c7   : > { %v8760_v8 = vmax.f32 %v4846_v24, %v5006_v29  ;;  %v5008_v5 = vmin.f32 %v4880_v6, %v4931_v17 }
 0x2c8   : > { %v4933_v51 = vpop.permute.xlu0 %4932  ;;  %v8736_v61 = vpop.permute.xlu1 %4778 }
 0x2c9   : > { %v5085_v23 = vsel %vm629_vm3, %v8760_v8, 0.0  ;;  %v8778_v48 = vmax.f32 %v4848_v22, %v5008_v5  ;;  %v5009_v43 = vmin.f32 %v4881_v37, %v4933_v51  ;;  %v4884_v44 = vmax.f32 %v8512_v60, %v8736_v61 }
 0x2ca   : > { %v5086_v63 = vadd.f32 %v5085_v23, %v5084_v16 }
 0x2cb   : > { %v8786_v24 = vmax.f32 %v4849_v11, %v5009_v43 }
 0x2cc   : > { %v4929_v2 = vpop.permute.xlu0 %4928  ;;  %v4775_v9 = vpop.permute.xlu1 %4774 }
 0x2cd   : > { %v5007_v27 = vmin.f32 %v4879_v25, %v4929_v2  ;;  %v4882_v17 = vmax.f32 %v8514_v38, %v4775_v9  ;;  %v4850_v39 = vmin.f32 %v8514_v38, %v4775_v9  ;;  %v5089_v25 = vsel %vm629_vm3, %v8778_v48, 0.0 }
 0x2ce   : > { %v5091_v6 = vsel %vm629_vm3, %v8786_v24, 0.0 }
 0x2cf   : > { %v8765_v21 = vmax.f32 %v4847_v19, %v5007_v27 }
 0x2d0   : > { %v4939_v1 = vpop.permute.xlu0 %4938  ;;  %v4781_v18 = vpop.permute.xlu1 %4780 }
 0x2d1   : > { %v5087_v47 = vsel %vm629_vm3, %v8765_v21, 0.0  ;;  %v5012_v42 = vmin.f32 %v4884_v44, %v4939_v1 }
 0x2d2   : > { %v5088_v10 = vadd.f32 %v5087_v47, %v5086_v63  ;;  %v4853_v63 = vmin.f32 %v8520_v35, %v4781_v18 }
 0x2d4   : > { %v4935_v50 = vpop.permute.xlu0 %4934  ;;  %v4777_v14 = vpop.permute.xlu1 %4776  ;;  %v5090_v19 = vadd.f32 %v5089_v25, %v5088_v10 }
 0x2d5   : > { %v5010_v2 = vmin.f32 %v4882_v17, %v4935_v50  ;;  %v4883_v29 = vmax.f32 %v8522_v7, %v4777_v14  ;;  %v4851_v51 = vmin.f32 %v8522_v7, %v4777_v14  ;;  %v4885_v50 = vmax.f32 %v8520_v35, %v4781_v18 }
 0x2d6   : > { %v5092_v4 = vadd.f32 %v5091_v6, %v5090_v19  ;;  %v4852_v7 = vmin.f32 %v8512_v60, %v8736_v61 }
 0x2d7   : > { %v8788_v27 = vmax.f32 %v4850_v39, %v5010_v2 }
 0x2d8   : > { %v4941_v3 = vpop.permute.xlu0 %4940  ;;  %v4787_v55 = vpop.permute.xlu1 %4786  ;;  %v8805_v17 = vmax.f32 %v4852_v7, %v5012_v42 }
 0x2d9   : > { %v5093_v5 = vsel %vm629_vm3, %v8788_v27, 0.0  ;;  %v5013_v16 = vmin.f32 %v4885_v50, %v4941_v3  ;;  %v4888_v39 = vmax.f32 %v8528_v54, %v4787_v55  ;;  %v4856_v18 = vmin.f32 %v8528_v54, %v4787_v55 }
 0x2da   : > { %v5094_v22 = vadd.f32 %v5093_v5, %v5092_v4  ;;  %v5097_v11 = vsel %vm629_vm3, %v8805_v17, 0.0 }
 0x2db   : > { %v8809_v10 = vmax.f32 %v4853_v63, %v5013_v16 }
 0x2dc   : > { %v4937_v32 = vpop.permute.xlu0 %4936  ;;  %v4783_v40 = vpop.permute.xlu1 %4782 }
 0x2dd   : > { %v5011_v0 = vmin.f32 %v4883_v29, %v4937_v32  ;;  %v4886_v23 = vmax.f32 %v8530_v52, %v4783_v40  ;;  %v4854_v2 = vmin.f32 %v8530_v52, %v4783_v40  ;;  %v5099_v52 = vsel %vm629_vm3, %v8809_v10, 0.0 }
 0x2df   : > { %v8793_v30 = vmax.f32 %v4851_v51, %v5011_v0 }
 0x2e0   : > { %v4947_v38 = vpop.permute.xlu0 %4946  ;;  %v4789_v9 = vpop.permute.xlu1 %4788 }
 0x2e1   : > { %v5095_v14 = vsel %vm629_vm3, %v8793_v30, 0.0  ;;  %v5016_v25 = vmin.f32 %v4888_v39, %v4947_v38  ;;  %v4889_v32 = vmax.f32 %v8536_v58, %v4789_v9  ;;  %v4857_v5 = vmin.f32 %v8536_v58, %v4789_v9 }
 0x2e2   : > { %v5096_v43 = vadd.f32 %v5095_v14, %v5094_v22 }
 0x2e3   : > { %v8824_v38 = vmax.f32 %v4856_v18, %v5016_v25  ;;  %v9038_v25 = vld [vmem:[#allocation8_spill] sm:$0xff] }
 0x2e4   : > { %v4943_v37 = vpop.permute.xlu0 %4942  ;;  %v4785_v47 = vpop.permute.xlu1 %4784  ;;  %v5098_v29 = vadd.f32 %v5097_v11, %v5096_v43 }
 0x2e5   : > { %v5014_v1 = vmin.f32 %v4886_v23, %v4943_v37  ;;  %v4887_v35 = vmax.f32 %v8538_v12, %v4785_v47  ;;  %v4855_v19 = vmin.f32 %v8538_v12, %v4785_v47  ;;  %v5105_v37 = vsel %vm629_vm3, %v8824_v38, 0.0 }
 0x2e6   : > { %v5100_v42 = vadd.f32 %v5099_v52, %v5098_v29 }
 0x2e7   : > { %v8814_v3 = vmax.f32 %v4854_v2, %v5014_v1 }
 0x2e8   : > { %v4949_v60 = vpop.permute.xlu0 %4948  ;;  %v4795_v61 = vpop.permute.xlu1 %4794 }
 0x2e9   : > { %v5101_v0 = vsel %vm629_vm3, %v8814_v3, 0.0  ;;  %v5017_v44 = vmin.f32 %v4889_v32, %v4949_v60 }
 0x2ea   : > { %v5102_v7 = vadd.f32 %v5101_v0, %v5100_v42 }
 0x2eb   : > { %v8830_v14 = vmax.f32 %v4857_v5, %v5017_v44 }
 0x2ec   : > { %v4945_v40 = vpop.permute.xlu0 %4944  ;;  %v4791_v51 = vpop.permute.xlu1 %4790 }
 0x2ed   : > { %v5015_v6 = vmin.f32 %v4887_v35, %v4945_v40  ;;  %v4890_v4 = vmax.f32 %v8546_v45, %v4791_v51  ;;  %v4858_v12 = vmin.f32 %v8546_v45, %v4791_v51  ;;  %v5107_v43 = vsel %vm629_vm3, %v8830_v14, 0.0 }
 0x2ee   : > { %v4892_v45 = vmax.f32 %v8544_v59, %v4795_v61  ;;  %v4860_v35 = vmin.f32 %v8544_v59, %v4795_v61 }
 0x2ef   : > { %v8827_v50 = vmax.f32 %v4855_v19, %v5015_v6 }
 0x2f0   : > { %v4951_v54 = vpop.permute.xlu0 %4950  ;;  %v4793_v55 = vpop.permute.xlu1 %4792 }
 0x2f1   : > { %v5103_v23 = vsel %vm629_vm3, %v8827_v50, 0.0  ;;  %v5018_v22 = vmin.f32 %v4890_v4, %v4951_v54  ;;  %v4891_v9 = vmax.f32 %v8554_v31, %v4793_v55  ;;  %v4859_v2 = vmin.f32 %v8554_v31, %v4793_v55 }
 0x2f2   : > { %v5104_v16 = vadd.f32 %v5103_v23, %v5102_v7 }
 0x2f3   : > { %v8837_v58 = vmax.f32 %v4858_v12, %v5018_v22 }
 0x2f4   : > { %v5106_v47 = vadd.f32 %v5105_v37, %v5104_v16  ;;  %v4953_v1 = vpop.permute.xlu0 %4952  ;;  %v4797_v63 = vpop.permute.xlu1 %4796 }
 0x2f5   : > { %v5019_v60 = vmin.f32 %v4891_v9, %v4953_v1  ;;  %v5109_v39 = vsel %vm629_vm3, %v8837_v58, 0.0  ;;  %v4893_v32 = vmax.f32 %v9038_v25, %v4797_v63  ;;  %v4861_v31 = vmin.f32 %v9038_v25, %v4797_v63  ;;  %v9039_v9 = vld [vmem:[#allocation9_spill] sm:$0xff] }
 0x2f6   : > { %v5108_v11 = vadd.f32 %v5107_v43, %v5106_v47 }
 0x2f7   : > { %v8846_v29 = vmax.f32 %v4859_v2, %v5019_v60 }
 0x2f8   : > { %v5110_v52 = vadd.f32 %v5109_v39, %v5108_v11  ;;  %v4955_v18 = vpop.permute.xlu0 %4954  ;;  %v4957_v40 = vpop.permute.xlu1 %4956 }
 0x2f9   : > { %v5111_v51 = vsel %vm629_vm3, %v8846_v29, 0.0  ;;  %v5020_v0 = vmin.f32 %v4892_v45, %v4955_v18  ;;  %v5021_v19 = vmin.f32 %v4893_v32, %v4957_v40 }
 0x2fa   : > { %v5112_v42 = vadd.f32 %v5111_v51, %v5110_v52 }
 0x2fb   : > { %v8853_v44 = vmax.f32 %v4860_v35, %v5020_v0  ;;  %v8855_v6 = vmax.f32 %v4861_v31, %v5021_v19 }
 0x2fd   : > { %v5113_v5 = vsel %vm629_vm3, %v8853_v44, 0.0  ;;  %v5115_v59 = vsel %vm629_vm3, %v8855_v6, 0.0 }
 0x2fe   : > { %v5114_v4 = vadd.f32 %v5113_v5, %v5112_v42 }
 0x300   : > { %v5116_v61 = vadd.f32 %v5115_v59, %v5114_v4 }
 0x302   : > { %v5117_v7 = vrot.slane %v5116_v61, 4 }
 0x304   : > { %v5118_v54 = vadd.f32 %v5117_v7, %v5116_v61 }
 0x306   : > { %v5119_v55 = vrot.slane %v5118_v54, 2 }
 0x308   : > { %v5120_v23 = vadd.f32 %v5119_v55, %v5118_v54 }
 0x30a   : > { %v5121_v12 = vrot.slane %v5120_v23, 1 }
 0x30c   : > { %v5122_v22 = vadd.f32 %v5121_v12, %v5120_v23 }
 0x30e   : > { %v8861_v16 = vmul.f32 0.00390625, %v5122_v22 }
 0x310   : > { %v5125_v37 = vsub.f32 %v8642_v41, %v8861_v16  ;;  %v5126_v47 = vsub.f32 %v9039_v9, %v8861_v16  ;;  %v5127_v1 = vsub.f32 %v8618_v62, %v8861_v16  ;;  %v5128_v63 = vsub.f32 %v8661_v33, %v8861_v16 }
 0x311   : > { %v5129_v60 = vsub.f32 %v8663_v28, %v8861_v16  ;;  %v5130_v45 = vsub.f32 %v8667_v26, %v8861_v16  ;;  %v5131_v62 = vsub.f32 %v8683_v49, %v8861_v16  ;;  %v5132_v28 = vsub.f32 %v8693_v15, %v8861_v16 }
 0x312   : > { %v5157_v43 = vmul.f32 %v5125_v37, %v5125_v37  ;;  %v5158_v2 = vmul.f32 %v5126_v47, %v5126_v47  ;;  %v5159_v11 = vmul.f32 %v5127_v1, %v5127_v1  ;;  %v5160_v39 = vmul.f32 %v5128_v63, %v5128_v63 }
 0x313   : > { %v5161_v35 = vmul.f32 %v5129_v60, %v5129_v60  ;;  %v5162_v18 = vmul.f32 %v5130_v45, %v5130_v45  ;;  %v5133_v51 = vsub.f32 %v8695_v56, %v8861_v16  ;;  %v5163_v31 = vmul.f32 %v5131_v62, %v5131_v62 }
 0x314   : > { %v5189_v41 = vsel %vm629_vm3, %v5157_v43, 0.0  ;;  %v5190_v25 = vsel %vm629_vm3, %v5158_v2, 0.0  ;;  %v5192_v33 = vsel %vm629_vm3, %v5159_v11, 0.0  ;;  %v5194_v40 = vsel %vm629_vm3, %v5160_v39, 0.0 }
 0x315   : > { %v5191_v32 = vadd.f32 %v5190_v25, %v5189_v41  ;;  %v5196_v0 = vsel %vm629_vm3, %v5161_v35, 0.0  ;;  %v5134_v49 = vsub.f32 %v8700_v53, %v8861_v16  ;;  %v5164_v42 = vmul.f32 %v5132_v28, %v5132_v28 }
 0x316   : > { %v5198_v5 = vsel %vm629_vm3, %v5162_v18, 0.0  ;;  %v5135_v15 = vsub.f32 %v8717_v46, %v8861_v16  ;;  %v5165_v59 = vmul.f32 %v5133_v51, %v5133_v51  ;;  %v5200_v61 = vsel %vm629_vm3, %v5163_v31, 0.0 }
 0x317   : > { %v5193_v52 = vadd.f32 %v5192_v33, %v5191_v32  ;;  %v5136_v56 = vsub.f32 %v8727_v34, %v8861_v16  ;;  %v5166_v54 = vmul.f32 %v5134_v49, %v5134_v49  ;;  %v5202_v55 = vsel %vm629_vm3, %v5164_v42, 0.0 }
 0x318   : > { %v5137_v53 = vsub.f32 %v8729_v20, %v8861_v16  ;;  %v5167_v12 = vmul.f32 %v5135_v15, %v5135_v15  ;;  %v5204_v22 = vsel %vm629_vm3, %v5165_v59, 0.0  ;;  %v5138_v46 = vsub.f32 %v8734_v13, %v8861_v16 }
 0x319   : > { %v5195_v26 = vadd.f32 %v5194_v40, %v5193_v52  ;;  %v5168_v9 = vmul.f32 %v5136_v56, %v5136_v56  ;;  %v5206_v47 = vsel %vm629_vm3, %v5166_v54, 0.0  ;;  %v5139_v34 = vsub.f32 %v8750_v57, %v8861_v16 }
 0x31a   : > { %v5169_v63 = vmul.f32 %v5137_v53, %v5137_v53  ;;  %v5208_v43 = vsel %vm629_vm3, %v5167_v12, 0.0  ;;  %v5140_v20 = vsub.f32 %v8758_v36, %v8861_v16  ;;  %v5170_v60 = vmul.f32 %v5138_v46, %v5138_v46 }
 0x31b   : > { %v5197_v19 = vadd.f32 %v5196_v0, %v5195_v26  ;;  %v5210_v11 = vsel %vm629_vm3, %v5168_v9, 0.0  ;;  %v5141_v13 = vsub.f32 %v8760_v8, %v8861_v16  ;;  %v5171_v39 = vmul.f32 %v5139_v34, %v5139_v34 }
 0x31c   : > { %v5212_v41 = vsel %vm629_vm3, %v5169_v63, 0.0  ;;  %v5142_v57 = vsub.f32 %v8765_v21, %v8861_v16  ;;  %v5172_v32 = vmul.f32 %v5140_v20, %v5140_v20  ;;  %v5214_v62 = vsel %vm629_vm3, %v5170_v60, 0.0 }
 0x31d   : > { %v5199_v4 = vadd.f32 %v5198_v5, %v5197_v19  ;;  %v5143_v36 = vsub.f32 %v8778_v48, %v8861_v16  ;;  %v5173_v33 = vmul.f32 %v5141_v13, %v5141_v13  ;;  %v5216_v52 = vsel %vm629_vm3, %v5171_v39, 0.0 }
 0x31e   : > { %v5144_v8 = vsub.f32 %v8786_v24, %v8861_v16  ;;  %v5174_v18 = vmul.f32 %v5142_v57, %v5142_v57  ;;  %v5218_v40 = vsel %vm629_vm3, %v5172_v32, 0.0  ;;  %v5145_v21 = vsub.f32 %v8788_v27, %v8861_v16 }
 0x31f   : > { %v5201_v7 = vadd.f32 %v5200_v61, %v5199_v4  ;;  %v5175_v51 = vmul.f32 %v5143_v36, %v5143_v36  ;;  %v5220_v31 = vsel %vm629_vm3, %v5173_v33, 0.0  ;;  %v5146_v48 = vsub.f32 %v8793_v30, %v8861_v16 }
 0x320   : > { %v5176_v19 = vmul.f32 %v5144_v8, %v5144_v8  ;;  %v5222_v49 = vsel %vm629_vm3, %v5174_v18, 0.0  ;;  %v5147_v24 = vsub.f32 %v8805_v17, %v8861_v16  ;;  %v5177_v5 = vmul.f32 %v5145_v21, %v5145_v21 }
 0x321   : > { %v5203_v23 = vadd.f32 %v5202_v55, %v5201_v7  ;;  %v5224_v4 = vsel %vm629_vm3, %v5175_v51, 0.0  ;;  %v5148_v27 = vsub.f32 %v8809_v10, %v8861_v16  ;;  %v5178_v59 = vmul.f32 %v5146_v48, %v5146_v48 }
 0x322   : > { %v5226_v61 = vsel %vm629_vm3, %v5176_v19, 0.0  ;;  %v5149_v30 = vsub.f32 %v8814_v3, %v8861_v16  ;;  %v5179_v56 = vmul.f32 %v5147_v24, %v5147_v24  ;;  %v5228_v54 = vsel %vm629_vm3, %v5177_v5, 0.0 }
 0x323   : > { %v5205_v37 = vadd.f32 %v5204_v22, %v5203_v23  ;;  %v5150_v17 = vsub.f32 %v8827_v50, %v8861_v16  ;;  %v5180_v23 = vmul.f32 %v5148_v27, %v5148_v27  ;;  %v5230_v53 = vsel %vm629_vm3, %v5178_v59, 0.0 }
 0x324   : > { %v5151_v10 = vsub.f32 %v8824_v38, %v8861_v16  ;;  %v5181_v22 = vmul.f32 %v5149_v30, %v5149_v30  ;;  %v5152_v3 = vsub.f32 %v8830_v14, %v8861_v16  ;;  %v5153_v50 = vsub.f32 %v8837_v58, %v8861_v16 }
 0x325   : > { %v5207_v1 = vadd.f32 %v5206_v47, %v5205_v37  ;;  %v5232_v37 = vsel %vm629_vm3, %v5179_v56, 0.0  ;;  %v5182_v9 = vmul.f32 %v5150_v17, %v5150_v17  ;;  %v5234_v47 = vsel %vm629_vm3, %v5180_v23, 0.0 }
 0x326   : > { %v5183_v34 = vmul.f32 %v5151_v10, %v5151_v10  ;;  %v5236_v63 = vsel %vm629_vm3, %v5181_v22, 0.0  ;;  %v5154_v38 = vsub.f32 %v8846_v29, %v8861_v16  ;;  %v5155_v14 = vsub.f32 %v8853_v44, %v8861_v16 }
 0x327   : > { %v5209_v2 = vadd.f32 %v5208_v43, %v5207_v1  ;;  %v5238_v20 = vsel %vm629_vm3, %v5182_v9, 0.0  ;;  %v5156_v58 = vsub.f32 %v8855_v6, %v8861_v16 }
 0x328   : > { %v5186_v39 = vmul.f32 %v5154_v38, %v5154_v38  ;;  %v5187_v29 = vmul.f32 %v5155_v14, %v5155_v14 }
 0x329   : > { %v5211_v45 = vadd.f32 %v5210_v11, %v5209_v2  ;;  %v5184_v2 = vmul.f32 %v5152_v3, %v5152_v3  ;;  %v5185_v11 = vmul.f32 %v5153_v50, %v5153_v50 }
 0x32a   : > { %v5248_v36 = vsel %vm629_vm3, %v5187_v29, 0.0 }
 0x32b   : > { %v5213_v25 = vadd.f32 %v5212_v41, %v5211_v45  ;;  %v5240_v45 = vsel %vm629_vm3, %v5183_v34, 0.0  ;;  %v5242_v41 = vsel %vm629_vm3, %v5184_v2, 0.0  ;;  %v5244_v57 = vsel %vm629_vm3, %v5185_v11, 0.0 }
 0x32d   : > { %v5215_v35 = vadd.f32 %v5214_v62, %v5213_v25  ;;  %v5188_v62 = vmul.f32 %v5156_v58, %v5156_v58 }
 0x32f   : > { %v5217_v28 = vadd.f32 %v5216_v52, %v5215_v35  ;;  %v5246_v35 = vsel %vm629_vm3, %v5186_v39, 0.0  ;;  %v5250_v52 = vsel %vm629_vm3, %v5188_v62, 0.0 }
 0x331   : > { %v5219_v26 = vadd.f32 %v5218_v40, %v5217_v28 }
 0x333   : > { %v5221_v0 = vadd.f32 %v5220_v31, %v5219_v26 }
 0x335   : > { %v5223_v42 = vadd.f32 %v5222_v49, %v5221_v0 }
 0x337   : > { %v5225_v15 = vadd.f32 %v5224_v4, %v5223_v42 }
 0x339   : > { %v5227_v7 = vadd.f32 %v5226_v61, %v5225_v15 }
 0x33b   : > { %v5229_v55 = vadd.f32 %v5228_v54, %v5227_v7 }
 0x33d   : > { %v5231_v12 = vadd.f32 %v5230_v53, %v5229_v55 }
 0x33f   : > { %v5233_v46 = vadd.f32 %v5232_v37, %v5231_v12 }
 0x341   : > { %v5235_v1 = vadd.f32 %v5234_v47, %v5233_v46 }
 0x343   : > { %v5237_v43 = vadd.f32 %v5236_v63, %v5235_v1 }
 0x345   : > { %v5239_v60 = vadd.f32 %v5238_v20, %v5237_v43 }
 0x347   : > { %v5241_v13 = vadd.f32 %v5240_v45, %v5239_v60 }
 0x349   : > { %v5243_v25 = vadd.f32 %v5242_v41, %v5241_v13 }
 0x34b   : > { %v5245_v32 = vadd.f32 %v5244_v57, %v5243_v25 }
 0x34d   : > { %v5247_v44 = vadd.f32 %v5246_v35, %v5245_v32 }
 0x34f   : > { %v5249_v33 = vadd.f32 %v5248_v36, %v5247_v44 }
 0x351   : > { %v5251_v28 = vadd.f32 %v5250_v52, %v5249_v33 }
 0x353   : > { %v5252_v6 = vrot.slane %v5251_v28, 4 }
 0x355   : > { %v5253_v8 = vadd.f32 %v5252_v6, %v5251_v28 }
 0x357   : > { %v5254_v18 = vrot.slane %v5253_v8, 2 }
 0x359   : > { %v5255_v40 = vadd.f32 %v5254_v18, %v5253_v8 }
 0x35b   : > { %v5256_v26 = vrot.slane %v5255_v40, 1 }
 0x35d   : > { %v5257_v21 = vadd.f32 %v5256_v26, %v5255_v40 }
 0x35f   : > { %v5259_v51 = vsel %vm5258_vm8, %v8861_v16, %v5257_v21 }
 0x360   : > { %5261 = vst.msk [vmem:[%s141_s14] sm:$0x3] %vm5260_vm9, %v5259_v51 }
 0x361 PF: > { %s12_s9 = sadd.s32 1, %s6709_s9  }
 0x362   : > { %p9_p4 = scmp.ge.s32.totalorder %s12_s9, 4  }
 0x364   :  { %11 = sbr.rel (!%p9_p4) target bundleno = 1 (0x1), region = 68 }

// kernel: sketch3_residual_block.3
= control target key start
LH: loop header
LB: loop body
LE: loop exit
PB: predicated region body
PF: predicated region fallthrough
CT: control target
= control target key end

     0   :  { %s6788_s12 = smov 0   ;;  %s9012_s0 = inlined_call_operand.vmem [shape: bf16[2,18,18,8], index: 0, kind: input, shape index: {}]   ;;  %s9013_s1 = inlined_call_operand.vmem [shape: bf16[9,8,24], index: 1, kind: input, shape index: {}]   ;;  %s9014_s2 = inlined_call_operand.vmem [shape: f32[2,8], index: 2, kind: input, shape index: {}]   ;;  %s9015_s3 = inlined_call_operand.vmem [shape: f32[2,16,16,8], index: 3, kind: output, shape index: {}]  }
   0x1 LB: > { %s5372_s13 = sadd.s32 4294967295, %s6764_s12   ;;  %p5376_p0 = scmp.ge.s32.totalorder %s6764_s12, 1  ;;  %s6764_s12 = sphi %s6788_s12, %s13_s12  }
   0x2   : > { %p137_p1 = scmp.lt.s32.totalorder %s6764_s12, 3 }
   0x4   : > { %p138_p2 = pnand %p5376_p0, %p137_p1 }
   0x6   : > { %141 = sbr.rel (%p138_p2) target bundleno = 775 (0x307), region = 32 }
   0xd   : > { %vm707_vm0 = vcmask 1043456   ;;  %v5607_v0 = vld [vmem:[%s9013_s1 + $0x10] sm:$0xf]  ;;  %v5380_v1 = vld [vmem:[%s9013_s1 + $0x4] sm:$0xf]  ;;  %p161_p3 = scmp.lt.s32.totalorder %s5372_s13, 1 }
   0xe   : > { %6642 = vmatprep.subr.msk.bf16.mxu0 %vm707_vm0, %v5607_v0  ;;  %6638 = vmatprep.subr.msk.bf16.mxu1 %vm707_vm0, %v5380_v1  ;;  %v6805_v2 = vsel %vm707_vm0, %v5607_v0, 0  ;;  %v709_v3 = vsel %vm707_vm0, %v5380_v1, 0  ;;  %v6814_v4 = vld [vmem:[%s9013_s1 + $0x14] sm:$0xf]  ;;  %v6819_v5 = vld [vmem:[%s9013_s1] sm:$0xf] }
   0xf   : > { %9054 = vst [vmem:[#allocation2_spill] sm:$0xff] %v6805_v2  ;;  %6211 = vmatpush3.bf16.msra.mxu0 %v6805_v2  ;;  %6075 = vmatpush3.bf16.msra.mxu1 %v709_v3  ;;  %s9162_s13 = smov (!%p161_p3, %s5372_s13), 1  ;;  %vm221_vm1 = vsmask.f32 3328  ;;  %vm222_vm2 = vsmask.f32 7440 }
  0x10   : > { %6644 = vmatprep.subr.msk.bf16.mxu0 %vm707_vm0, %v6814_v4  ;;  %6639 = vmatprep.subr.msk.bf16.mxu1 %vm707_vm0, %v6819_v5  ;;  %s6648_s22 = smul.u32 216, %s9162_s13  ;;  %vm6847_vm3 = vmor %vm221_vm1, %vm222_vm2  ;;  %vm658_vm4 = vcmask 64512   ;;  %vm1212_vm5 = vcmask 1042432   ;;  %vm1213_vm6 = vcmask 1046532   ;;  %s6766_s11 = smov 112  }
  0x11   : > { %vm7116_vm7 = vmor %vm1212_vm5, %vm1213_vm6  ;;  %s6767_s14 = smov 120   ;;  %s5920_s19 = sshll.u32 %s9162_s13, 8 }
  0x12   : > { %s6829_s25 = scalar_lea.vmem %s9012_s0, %s6648_s22  ;;  %s8792_s22 = scalar_lea.vmem %s9015_s3, %s5920_s19 }
  0x13   : > { %v172_v6 = vld [vmem:[%s6829_s25] sm:$0xf]  ;;  %v173_v7 = vld [vmem:[%s6829_s25 + $0x4] sm:$0xf]  ;;  %v205_v8 = vld [vmem:[%s6829_s25 + $0x8] sm:$0x1] }
  0x14   : > { %v225_v9 = vshrl.u32 %v172_v6, 16  ;;  %v228_v10 = vshll.u32 %v172_v6, 16  ;;  %v234_v11 = vshll.u32 %v173_v7, 16  ;;  %v238_v12 = vshrl.u32 %v173_v7, 16  ;;  %v5559_v13 = vld [vmem:[%s6829_s25 + $0xc] sm:$0xf] }
  0x15   : > { %v244_v14 = vshll.u32 %v205_v8, 16  ;;  %v6836_v15 = vld [vmem:[%s6829_s25 + $0x10] sm:$0xf]  ;;  %v6839_v16 = vld [vmem:[%s6829_s25 + $0x14] sm:$0x1]  ;;  %v2029_v22 = vshrl.u32 %v5559_v13, 16 }
  0x16   : > { %v227_v17 = vrot.slane %v225_v9, 4  ;;  %v230_v18 = vrot.slane %v228_v10, 5  ;;  %v236_v19 = vrot.slane %v234_v11, 5  ;;  %v240_v20 = vrot.slane %v238_v12, 4  ;;  %v174_v29 = vld [vmem:[%s6829_s25 + $0xc] sm:$0xf] }
  0x17   : > { %v246_v21 = vrot.slane %v244_v14, 5  ;;  %v2032_v23 = vshll.u32 %v5559_v13, 16  ;;  %v2038_v24 = vshll.u32 %v6836_v15, 16  ;;  %v2042_v27 = vshrl.u32 %v6836_v15, 16  ;;  %v175_v34 = vld [vmem:[%s6829_s25 + $0x10] sm:$0xf] }
  0x18   : > { %v231_v25 = vor.u32 %v230_v18, %v227_v17  ;;  %v241_v26 = vor.u32 %v240_v20, %v236_v19  ;;  %v2048_v28 = vshll.u32 %v6839_v16, 16  ;;  %v2031_v31 = vrot.slane %v2029_v22, 4  ;;  %v206_v40 = vld [vmem:[%s6829_s25 + $0x14] sm:$0x1]  ;;  %v5562_v55 = vld [vmem:[%s6829_s25 + $0x18] sm:$0xf] }
  0x19   : > { %v2034_v32 = vrot.slane %v2032_v23, 5  ;;  %v2040_v33 = vrot.slane %v2038_v24, 5  ;;  %v2044_v37 = vrot.slane %v2042_v27, 4  ;;  %v249_v41 = vshrl.u32 %v174_v29, 16  ;;  %v6864_v58 = vld [vmem:[%s6829_s25 + $0x1c] sm:$0xf] }
  0x1a   : > { %v232_v35 = vrot.slane %v231_v25, 4  ;;  %v242_v36 = vrot.slane %v241_v26, 4  ;;  %v2050_v39 = vrot.slane %v2048_v28, 5  ;;  %v252_v42 = vshll.u32 %v174_v29, 16  ;;  %v6871_v61 = vld [vmem:[%s6829_s25 + $0x20] sm:$0x1] }
  0x1b   : > { %v2035_v38 = vor.u32 %v2034_v32, %v2031_v31  ;;  %v2045_v45 = vor.u32 %v2044_v37, %v2040_v33  ;;  %v258_v46 = vshll.u32 %v175_v34, 16  ;;  %v251_v49 = vrot.slane %v249_v41, 4  ;;  %v176_v9 = vld [vmem:[%s6829_s25 + $0x18] sm:$0xf]  ;;  %v5565_v28 = vld [vmem:[%s6829_s25 + $0x24] sm:$0xf] }
  0x1c   : > { %v237_v43 = vsel %vm6847_vm3, %v232_v35, %v236_v19  ;;  %v247_v44 = vsel %vm6847_vm3, %v242_v36, %v246_v21  ;;  %v254_v50 = vrot.slane %v252_v42, 5  ;;  %v262_v53 = vshrl.u32 %v175_v34, 16  ;;  %v177_v19 = vld [vmem:[%s6829_s25 + $0x1c] sm:$0xf]  ;;  %v207_v21 = vld [vmem:[%s6829_s25 + $0x20] sm:$0x1] }
  0x1d   : > { %v5381_v47 = vcombine.low %v237_v43, %v247_v44  ;;  %v2036_v48 = vrot.slane %v2035_v38, 4  ;;  %v2046_v51 = vrot.slane %v2045_v45, 4  ;;  %v260_v52 = vrot.slane %v258_v46, 5  ;;  %v6902_v45 = vld [vmem:[%s6829_s25 + $0x2c] sm:$0x1] }
  0x1e   : > { %v268_v54 = vshll.u32 %v206_v40, 16  ;;  %v255_v57 = vor.u32 %v254_v50, %v251_v49  ;;  %v264_v60 = vrot.slane %v262_v53, 4  ;;  %v2053_v1 = vshrl.u32 %v5562_v55, 16  ;;  %v178_v46 = vld [vmem:[%s6829_s25 + $0x24] sm:$0xf] }
  0x1f   : > { %6076 = vmatprep.mubr.msk.bf16.mxu1 %vm658_vm4, %v5381_v47  ;;  %v6861_v56 = vsel %vm6847_vm3, %v2036_v48, %v2040_v33  ;;  %v6868_v59 = vsel %vm6847_vm3, %v2046_v51, %v2050_v39  ;;  %v2056_v6 = vshll.u32 %v5562_v55, 16  ;;  %v2062_v7 = vshll.u32 %v6864_v58, 16  ;;  %v6891_v39 = vld [vmem:[%s6829_s25 + $0x28] sm:$0xf]  ;;  %v6913_v55 = vld [vmem:[%s9013_s1 + $0x18] sm:$0xf] }
  0x20   : > { %9057 = vst [vmem:[#allocation3_spill] sm:$0xff] %v6861_v56  ;;  %9058 = vst [vmem:[#allocation4_spill] sm:$0xff] %v6868_v59  ;;  %v5608_v62 = vcombine.low %v6861_v56, %v6868_v59  ;;  %v256_v63 = vrot.slane %v255_v57, 4  ;;  %v270_v0 = vrot.slane %v268_v54, 5  ;;  %v265_v3 = vor.u32 %v264_v60, %v260_v52 }
  0x21   : > { %v2066_v8 = vshrl.u32 %v6864_v58, 16  ;;  %v2055_v11 = vrot.slane %v2053_v1, 4  ;;  %v2072_v12 = vshll.u32 %v6871_v61, 16  ;;  %v2058_v14 = vrot.slane %v2056_v6, 5  ;;  %v208_v6 = vld [vmem:[%s6829_s25 + $0x2c] sm:$0x1] }
  0x22   : > { %6212 = vmatprep.mubr.msk.bf16.mxu0 %vm658_vm4, %v5608_v62  ;;  %v261_v10 = vsel %vm6847_vm3, %v256_v63, %v260_v52  ;;  %v266_v13 = vrot.slane %v265_v3, 4  ;;  %v2064_v17 = vrot.slane %v2062_v7, 5  ;;  %v273_v22 = vshrl.u32 %v176_v9, 16  ;;  %v179_v62 = vld [vmem:[%s6829_s25 + $0x28] sm:$0xf] }
  0x23   : > { %v2068_v18 = vrot.slane %v2066_v8, 4  ;;  %v2074_v20 = vrot.slane %v2072_v12, 5  ;;  %v1001_v23 = vsel %vm707_vm0, %v6819_v5, 0  ;;  %v2059_v25 = vor.u32 %v2058_v14, %v2055_v11  ;;  %v5568_v8 = vld [vmem:[%s6829_s25 + $0x30] sm:$0xf] }
  0x24   : > { %v271_v24 = vsel %vm6847_vm3, %v266_v13, %v270_v0  ;;  %v276_v27 = vshll.u32 %v176_v9, 16  ;;  %v275_v31 = vrot.slane %v273_v22, 4  ;;  %v282_v32 = vshll.u32 %v177_v19, 16  ;;  %v6928_v22 = vld [vmem:[%s6829_s25 + $0x34] sm:$0xf] }
  0x25   : > { %v2069_v26 = vor.u32 %v2068_v18, %v2064_v17  ;;  %v5382_v29 = vcombine.low %v261_v10, %v271_v24  ;;  %v286_v33 = vshrl.u32 %v177_v19, 16  ;;  %v2060_v34 = vrot.slane %v2059_v25, 4 }
  0x26   : > { %v278_v36 = vrot.slane %v276_v27, 5  ;;  %v292_v37 = vshll.u32 %v207_v21, 16  ;;  %v284_v5 = vrot.slane %v282_v32, 5  ;;  %v2077_v40 = vshrl.u32 %v5565_v28, 16 }
  0x27   : > { %v2070_v35 = vrot.slane %v2069_v26, 4  ;;  %6077 = vmatmul.mubr.msk.bf16.vlgmr.msra.gmra.mrb[0].mxu1 %vm658_vm4, %v5382_v29  ;;  %v288_v38 = vrot.slane %v286_v33, 4  ;;  %v2080_v41 = vshll.u32 %v5565_v28, 16  ;;  %v6895_v42 = vsel %vm6847_vm3, %v2060_v34, %v2064_v17  ;;  %v6932_v26 = vld [vmem:[%s6829_s25 + $0x38] sm:$0x1] }
  0x28   : > { %9059 = vst [vmem:[#allocation5_spill] sm:$0xff] %v6895_v42  ;;  %v279_v44 = vor.u32 %v278_v36, %v275_v31  ;;  %6109 = vmatpush3.bf16.msra.mxu1 %v1001_v23  ;;  %v3013_v48 = vsel %vm707_vm0, %v6814_v4, 0  ;;  %v294_v50 = vrot.slane %v292_v37, 5  ;;  %v2079_v52 = vrot.slane %v2077_v40, 4 }
  0x29   : > { %v6899_v43 = vsel %vm6847_vm3, %v2070_v35, %v2074_v20  ;;  %v289_v49 = vor.u32 %v288_v38, %v284_v5  ;;  %v2082_v53 = vrot.slane %v2080_v41, 5  ;;  %v2086_v54 = vshll.u32 %v6891_v39, 16  ;;  %v180_v41 = vld [vmem:[%s6829_s25 + $0x30] sm:$0xf] }
  0x2a   : > { %9060 = vst [vmem:[#allocation6_spill] sm:$0xff] %v6899_v43  ;;  %v5609_v47 = vcombine.low %v6895_v42, %v6899_v43  ;;  %v280_v51 = vrot.slane %v279_v44, 4  ;;  %v2090_v60 = vshrl.u32 %v6891_v39, 16  ;;  %v2096_v4 = vshll.u32 %v6902_v45, 16  ;;  %v181_v44 = vld [vmem:[%s6829_s25 + $0x34] sm:$0xf] }
  0x2b   : > { %v290_v57 = vrot.slane %v289_v49, 4  ;;  %v297_v63 = vshrl.u32 %v178_v46, 16  ;;  %v2083_v1 = vor.u32 %v2082_v53, %v2079_v52  ;;  %v2088_v3 = vrot.slane %v2086_v54, 5  ;;  %v209_v49 = vld [vmem:[%s6829_s25 + $0x38] sm:$0x1] }
  0x2c   : > { %6213 = vmatmul.mubr.msk.bf16.vlgmr.msra.gmra.mrb[0].mxu0 %vm658_vm4, %v5609_v47  ;;  %v285_v0 = vsel %vm6847_vm3, %v280_v51, %v284_v5  ;;  %v300_v7 = vshll.u32 %v178_v46, 16  ;;  %v2092_v10 = vrot.slane %v2090_v60, 4  ;;  %v2098_v11 = vrot.slane %v2096_v4, 5  ;;  %v5775_v43 = vld [vmem:[%s6829_s25 + $0x2c] sm:$0x1] }
  0x2d   : > { %6245 = vmatpush3.bf16.msra.mxu0 %v3013_v48  ;;  %v295_v9 = vsel %vm6847_vm3, %v290_v57, %v294_v50  ;;  %v299_v12 = vrot.slane %v297_v63, 4  ;;  %v2084_v14 = vrot.slane %v2083_v1, 4  ;;  %v306_v18 = vshll.u32 %v179_v62, 16 }
  0x2e   : > { %6645 = vmatprep.subr.msk.bf16.mxu0 %vm707_vm0, %v6913_v55  ;;  %v5383_v13 = vcombine.low %v285_v0, %v295_v9  ;;  %v302_v17 = vrot.slane %v300_v7, 5  ;;  %v2093_v19 = vor.u32 %v2092_v10, %v2088_v3  ;;  %v310_v20 = vshrl.u32 %v179_v62, 16  ;;  %v6957_v9 = vld [vmem:[%s6829_s25 + $0x40] sm:$0xf] }
  0x2f   : > { %v316_v21 = vshll.u32 %v208_v6, 16  ;;  %v2101_v23 = vshrl.u32 %v5568_v8, 16  ;;  %v308_v25 = vrot.slane %v306_v18, 5  ;;  %v2104_v27 = vshll.u32 %v5568_v8, 16 }
  0x30   : > { %6080 = vmatprep.mubr.msk.bf16.mxu1 %vm658_vm4, %v5383_v13  ;;  %v303_v24 = vor.u32 %v302_v17, %v299_v12  ;;  %v6936_v28 = vsel %vm6847_vm3, %v2084_v14, %v2088_v3  ;;  %v2094_v29 = vrot.slane %v2093_v19, 4  ;;  %v312_v31 = vrot.slane %v310_v20, 4  ;;  %v5571_v3 = vld [vmem:[%s6829_s25 + $0x3c] sm:$0xf] }
  0x31   : > { %9061 = vst [vmem:[#allocation7_spill] sm:$0xff] %v6936_v28  ;;  %v318_v32 = vrot.slane %v316_v21, 5  ;;  %v2103_v34 = vrot.slane %v2101_v23, 4  ;;  %v2106_v35 = vrot.slane %v2104_v27, 5  ;;  %v2110_v36 = vshll.u32 %v6928_v22, 16 }
  0x32   : > { %v304_v33 = vrot.slane %v303_v24, 4  ;;  %v6941_v37 = vsel %vm6847_vm3, %v2094_v29, %v2098_v11  ;;  %v313_v5 = vor.u32 %v312_v31, %v308_v25  ;;  %v2114_v38 = vshrl.u32 %v6928_v22, 16  ;;  %v6969_v23 = vld [vmem:[%s6829_s25 + $0x44] sm:$0x1]  ;;  %v182_v27 = vld [vmem:[%s6829_s25 + $0x3c] sm:$0xf] }
  0x33   : > { %9062 = vst [vmem:[#allocation8_spill] sm:$0xff] %v6941_v37  ;;  %v2120_v40 = vshll.u32 %v6932_v26, 16  ;;  %v5610_v46 = vcombine.low %v6936_v28, %v6941_v37  ;;  %v2107_v48 = vor.u32 %v2106_v35, %v2103_v34  ;;  %v2112_v51 = vrot.slane %v2110_v36, 5 }
  0x34   : > { %v309_v47 = vsel %vm6847_vm3, %v304_v33, %v308_v25  ;;  %v314_v50 = vrot.slane %v313_v5, 4  ;;  %v2116_v52 = vrot.slane %v2114_v38, 4  ;;  %v321_v57 = vshrl.u32 %v180_v41, 16  ;;  %v183_v33 = vld [vmem:[%s6829_s25 + $0x40] sm:$0xf] }
  0x35   : > { %v2122_v53 = vrot.slane %v2120_v40, 5  ;;  %6216 = vmatprep.mubr.msk.bf16.mxu0 %vm658_vm4, %v5610_v46  ;;  %v2108_v54 = vrot.slane %v2107_v48, 4  ;;  %v324_v60 = vshll.u32 %v180_v41, 16  ;;  %v330_v4 = vshll.u32 %v181_v44, 16 }
  0x36   : > { %v319_v62 = vsel %vm6847_vm3, %v314_v50, %v318_v32  ;;  %v2117_v63 = vor.u32 %v2116_v52, %v2112_v51  ;;  %v334_v0 = vshrl.u32 %v181_v44, 16  ;;  %v340_v1 = vshll.u32 %v209_v49, 16  ;;  %v210_v49 = vld [vmem:[%s6829_s25 + $0x44] sm:$0x1] }
  0x37   : > { %v5384_v6 = vcombine.low %v309_v47, %v319_v62  ;;  %v323_v7 = vrot.slane %v321_v57, 4  ;;  %v326_v8 = vrot.slane %v324_v60, 5  ;;  %v6961_v10 = vsel %vm6847_vm3, %v2108_v54, %v2112_v51  ;;  %v5574_v51 = vld [vmem:[%s6829_s25 + $0x48] sm:$0xf]  ;;  %v6986_v60 = vld [vmem:[%s6829_s25 + $0x4c] sm:$0xf] }
  0x38   : > { %9063 = vst [vmem:[#allocation9_spill] sm:$0xff] %v6961_v10  ;;  %v2118_v11 = vrot.slane %v2117_v63, 4  ;;  %v332_v12 = vrot.slane %v330_v4, 5  ;;  %v336_v13 = vrot.slane %v334_v0, 4  ;;  %v342_v17 = vrot.slane %v340_v1, 5 }
  0x39   : > { %6081 = vmatmul.mubr.msk.bf16.gmra.mrb[4].mxu1 %vm658_vm4, %v5384_v6  ;;  %v327_v14 = vor.u32 %v326_v8, %v323_v7  ;;  %v2125_v18 = vshrl.u32 %v5571_v3, 16  ;;  %v2128_v19 = vshll.u32 %v5571_v3, 16  ;;  %v2134_v24 = vshll.u32 %v6957_v9, 16 }
  0x3a   : > { %v6966_v20 = vsel %vm6847_vm3, %v2118_v11, %v2122_v53  ;;  %v337_v21 = vor.u32 %v336_v13, %v332_v12  ;;  %v2138_v25 = vshrl.u32 %v6957_v9, 16  ;;  %v2144_v40 = vshll.u32 %v6969_v23, 16  ;;  %v6998_v13 = vld [vmem:[%s6829_s25 + $0x50] sm:$0x1] }
  0x3b   : > { %9064 = vst [vmem:[#allocation10_spill] sm:$0xff] %v6966_v20  ;;  %v5611_v29 = vcombine.low %v6961_v10, %v6966_v20  ;;  %v328_v31 = vrot.slane %v327_v14, 4  ;;  %v2127_v32 = vrot.slane %v2125_v18, 4  ;;  %v2130_v35 = vrot.slane %v2128_v19, 5  ;;  %v1173_v20 = vld [vmem:[%s6829_s25 + $0x6c] sm:$0xe] }
  0x3c   : > { %v338_v34 = vrot.slane %v337_v21, 4  ;;  %v2136_v36 = vrot.slane %v2134_v24, 5  ;;  %v2140_v5 = vrot.slane %v2138_v25, 4  ;;  %v345_v41 = vshrl.u32 %v182_v27, 16  ;;  %v7006_v24 = vld [vmem:[%s6829_s25 + $0x48] sm:$0xf] }
  0x3d   : > { %6217 = vmatmul.mubr.msk.bf16.gmra.mrb[4].mxu0 %vm658_vm4, %v5611_v29  ;;  %v333_v38 = vsel %vm6847_vm3, %v328_v31, %v332_v12  ;;  %v348_v44 = vshll.u32 %v182_v27, 16  ;;  %v2131_v47 = vor.u32 %v2130_v35, %v2127_v32  ;;  %v354_v50 = vshll.u32 %v183_v33, 16  ;;  %v7009_v32 = vld [vmem:[%s6829_s25 + $0x4c] sm:$0xf] }
  0x3e   : > { %v343_v46 = vsel %vm6847_vm3, %v338_v34, %v342_v17  ;;  %v2141_v48 = vor.u32 %v2140_v5, %v2136_v36  ;;  %v2146_v53 = vrot.slane %v2144_v40, 5  ;;  %v347_v54 = vrot.slane %v345_v41, 4  ;;  %v211_v40 = vld [vmem:[%s6829_s25 + $0x50] sm:$0x1] }
  0x3f   : > { %v5385_v52 = vcombine.low %v333_v38, %v343_v46  ;;  %v350_v57 = vrot.slane %v348_v44, 5  ;;  %v2132_v4 = vrot.slane %v2131_v47, 4  ;;  %v356_v63 = vrot.slane %v354_v50, 5  ;;  %v5577_v50 = vld [vmem:[%s6829_s25 + $0x54] sm:$0xf] }
  0x40   : > { %v2142_v62 = vrot.slane %v2141_v48, 4  ;;  %v358_v0 = vshrl.u32 %v183_v33, 16  ;;  %v364_v3 = vshll.u32 %v210_v49, 16  ;;  %v2149_v6 = vshrl.u32 %v5574_v51, 16 }
  0x41   : > { %6084 = vmatprep.mubr.msk.bf16.mxu1 %vm658_vm4, %v5385_v52  ;;  %v351_v1 = vor.u32 %v350_v57, %v347_v54  ;;  %v2152_v7 = vshll.u32 %v5574_v51, 16  ;;  %v6991_v8 = vsel %vm6847_vm3, %v2132_v4, %v2136_v36  ;;  %v2158_v14 = vshll.u32 %v6986_v60, 16 }
  0x42   : > { %9065 = vst [vmem:[#allocation11_spill] sm:$0xff] %v6991_v8  ;;  %v6995_v11 = vsel %vm6847_vm3, %v2142_v62, %v2146_v53  ;;  %v360_v12 = vrot.slane %v358_v0, 4  ;;  %v2804_v17 = vrot.slane %v6836_v15, 5  ;;  %v366_v27 = vrot.slane %v364_v3, 5  ;;  %v7025_v0 = vld [vmem:[%s6829_s25 + $0x58] sm:$0xf] }
  0x43   : > { %9066 = vst [vmem:[#allocation12_spill] sm:$0xff] %v6995_v11  ;;  %v5612_v19 = vcombine.low %v6991_v8, %v6995_v11  ;;  %v352_v21 = vrot.slane %v351_v1, 4  ;;  %v2151_v29 = vrot.slane %v2149_v6, 4  ;;  %v2154_v31 = vrot.slane %v2152_v7, 5 }
  0x44   : > { %v361_v25 = vor.u32 %v360_v12, %v356_v63  ;;  %v2160_v34 = vrot.slane %v2158_v14, 5  ;;  %v2162_v35 = vshrl.u32 %v6986_v60, 16  ;;  %v2168_v36 = vshll.u32 %v6998_v13, 16 }
  0x45   : > { %6220 = vmatprep.mubr.msk.bf16.mxu0 %vm658_vm4, %v5612_v19  ;;  %v357_v33 = vsel %vm6847_vm3, %v352_v21, %v356_v63  ;;  %v2155_v38 = vor.u32 %v2154_v31, %v2151_v29  ;;  %v369_v41 = vshrl.u32 %v7006_v24, 16  ;;  %v372_v44 = vshll.u32 %v7006_v24, 16  ;;  %v7034_v21 = vld [vmem:[%s6829_s25 + $0x5c] sm:$0x1] }
  0x46   : > { %v362_v5 = vrot.slane %v361_v25, 4  ;;  %v2164_v46 = vrot.slane %v2162_v35, 4  ;;  %v2170_v47 = vrot.slane %v2168_v36, 5  ;;  %v378_v48 = vshll.u32 %v7009_v32, 16  ;;  %v7038_v35 = vld [vmem:[%s6829_s25 + $0x54] sm:$0xf] }
  0x47   : > { %v382_v49 = vshrl.u32 %v7009_v32, 16  ;;  %v2156_v52 = vrot.slane %v2155_v38, 4  ;;  %v371_v53 = vrot.slane %v369_v41, 4  ;;  %v374_v54 = vrot.slane %v372_v44, 5 }
  0x48   : > { %v367_v51 = vsel %vm6847_vm3, %v362_v5, %v366_v27  ;;  %v2165_v4 = vor.u32 %v2164_v46, %v2160_v34  ;;  %v380_v62 = vrot.slane %v378_v48, 5  ;;  %v9016_v1 = vrot.slane %v6864_v58, 5 }
  0x49   : > { %v5386_v57 = vcombine.low %v357_v33, %v367_v51  ;;  %v384_v63 = vrot.slane %v382_v49, 4  ;;  %v375_v3 = vor.u32 %v374_v54, %v371_v53  ;;  %v388_v6 = vshll.u32 %v211_v40, 16  ;;  %v7046_v40 = vld [vmem:[%s6829_s25 + $0x58] sm:$0xf] }
  0x4a   : > { %v2173_v7 = vshrl.u32 %v5577_v50, 16  ;;  %v7031_v12 = vsel %vm6847_vm3, %v2156_v52, %v2160_v34  ;;  %v2166_v14 = vrot.slane %v2165_v4, 4  ;;  %v2176_v25 = vshll.u32 %v5577_v50, 16  ;;  %v212_v52 = vld [vmem:[%s6829_s25 + $0x5c] sm:$0x1] }
  0x4b   : > { %6085 = vmatmul.mubr.msk.bf16.gmra.mrb[8].mxu1 %vm658_vm4, %v5386_v57  ;;  %9067 = vst [vmem:[#allocation13_spill] sm:$0xff] %v7031_v12  ;;  %v385_v19 = vor.u32 %v384_v63, %v380_v62  ;;  %v376_v27 = vrot.slane %v375_v3, 4  ;;  %v390_v29 = vrot.slane %v388_v6, 5  ;;  %v2182_v33 = vshll.u32 %v7025_v0, 16 }
  0x4c   : > { %v2175_v31 = vrot.slane %v2173_v7, 4  ;;  %v7042_v36 = vsel %vm6847_vm3, %v2166_v14, %v2170_v47  ;;  %v2178_v34 = vrot.slane %v2176_v25, 5  ;;  %v2186_v38 = vshrl.u32 %v7025_v0, 16 }
  0x4d   : > { %9068 = vst [vmem:[#allocation14_spill] sm:$0xff] %v7042_v36  ;;  %v386_v5 = vrot.slane %v385_v19, 4  ;;  %v7050_v41 = vrot.slane %v9016_v1, 4  ;;  %v5613_v44 = vcombine.low %v7031_v12, %v7042_v36  ;;  %v381_v46 = vsel %vm6847_vm3, %v376_v27, %v380_v62  ;;  %v5580_v62 = vld [vmem:[%s6829_s25 + $0x60] sm:$0xf] }
  0x4e   : > { %v2184_v48 = vrot.slane %v2182_v33, 5  ;;  %v2179_v49 = vor.u32 %v2178_v34, %v2175_v31  ;;  %v2188_v50 = vrot.slane %v2186_v38, 4  ;;  %v2192_v51 = vshll.u32 %v7034_v21, 16  ;;  %v7111_v1 = vld [vmem:[%s6829_s25 + $0x6c] sm:$0xf] }
  0x4f   : > { %v391_v47 = vsel %vm6847_vm3, %v386_v5, %v390_v29  ;;  %6221 = vmatmul.mubr.msk.bf16.gmra.mrb[8].mxu0 %vm658_vm4, %v5613_v44  ;;  %v393_v54 = vshrl.u32 %v7038_v35, 16  ;;  %v396_v57 = vshll.u32 %v7038_v35, 16  ;;  %v402_v4 = vshll.u32 %v7046_v40, 16  ;;  %v7068_v29 = vld [vmem:[%s6829_s25 + $0x64] sm:$0xf] }
  0x50   : > { %v5387_v53 = vcombine.low %v381_v46, %v391_v47  ;;  %v2180_v63 = vrot.slane %v2179_v49, 4  ;;  %v2189_v3 = vor.u32 %v2188_v50, %v2184_v48  ;;  %v2194_v6 = vrot.slane %v2192_v51, 5  ;;  %v7076_v47 = vld [vmem:[%s6829_s25 + $0x68] sm:$0x1] }
  0x51   : > { %v406_v7 = vshrl.u32 %v7046_v40, 16  ;;  %v395_v14 = vrot.slane %v393_v54, 4  ;;  %v398_v19 = vrot.slane %v396_v57, 5  ;;  %v404_v25 = vrot.slane %v402_v4, 5 }
  0x52   : > { %6088 = vmatprep.mubr.msk.bf16.mxu1 %vm658_vm4, %v5387_v53  ;;  %v412_v27 = vshll.u32 %v212_v52, 16  ;;  %v7072_v31 = vsel %vm6847_vm3, %v2180_v63, %v2184_v48  ;;  %v2190_v33 = vrot.slane %v2189_v3, 4  ;;  %v2197_v34 = vshrl.u32 %v5580_v62, 16  ;;  %v7084_v53 = vld [vmem:[%s6829_s25 + $0x60] sm:$0xf] }
  0x53   : > { %9069 = vst [vmem:[#allocation15_spill] sm:$0xff] %v7072_v31  ;;  %v408_v5 = vrot.slane %v406_v7, 4  ;;  %v399_v44 = vor.u32 %v398_v19, %v395_v14  ;;  %v2200_v49 = vshll.u32 %v5580_v62, 16  ;;  %v2206_v52 = vshll.u32 %v7068_v29, 16  ;;  %v7089_v63 = vld [vmem:[%s6829_s25 + $0x64] sm:$0xf] }
  0x54   : > { %v414_v46 = vrot.slane %v412_v27, 5  ;;  %v7080_v50 = vsel %vm6847_vm3, %v2190_v33, %v2194_v6  ;;  %v2199_v48 = vrot.slane %v2197_v34, 4  ;;  %v213_v3 = vld [vmem:[%s6829_s25 + $0x68] sm:$0x1]  ;;  %v2210_v14 = vshrl.u32 %v7068_v29, 16 }
  0x55   : > { %9070 = vst [vmem:[#allocation16_spill] sm:$0xff] %v7080_v50  ;;  %v409_v51 = vor.u32 %v408_v5, %v404_v25  ;;  %v5614_v54 = vcombine.low %v7072_v31, %v7080_v50  ;;  %v400_v57 = vrot.slane %v399_v44, 4  ;;  %v2202_v4 = vrot.slane %v2200_v49, 5  ;;  %v5640_v19 = vld [vmem:[%s6829_s25 + $0xc] sm:$0xe] }
  0x56   : > { %v2208_v62 = vrot.slane %v2206_v52, 5  ;;  %v2216_v6 = vshll.u32 %v7076_v47, 16  ;;  %v417_v5 = vshrl.u32 %v7084_v53, 16  ;;  %v420_v34 = vshll.u32 %v7084_v53, 16  ;;  %v7103_v44 = vld [vmem:[%s9013_s1 + $0x8] sm:$0xf] }
  0x57   : > { %v410_v7 = vrot.slane %v409_v51, 4  ;;  %6224 = vmatprep.mubr.msk.bf16.mxu0 %vm658_vm4, %v5614_v54  ;;  %v405_v27 = vsel %vm6847_vm3, %v400_v57, %v404_v25  ;;  %v2203_v33 = vor.u32 %v2202_v4, %v2199_v48  ;;  %v2212_v51 = vrot.slane %v2210_v14, 4  ;;  %6640 = vmatprep.subr.msk.bf16.mxu1 %vm707_vm0, %v7103_v44  ;;  %v5641_v50 = vld [vmem:[%s6829_s25 + $0x18] sm:$0xe] }
  0x58   : > { %v2218_v52 = vrot.slane %v2216_v6, 5  ;;  %v426_v54 = vshll.u32 %v7089_v63, 16  ;;  %v419_v57 = vrot.slane %v417_v5, 4  ;;  %v422_v4 = vrot.slane %v420_v34, 5  ;;  %v7124_v5 = vld [vmem:[%s6829_s25 + $0x70] sm:$0xf] }
  0x59   : > { %v415_v49 = vsel %vm6847_vm3, %v410_v7, %v414_v46  ;;  %v2204_v48 = vrot.slane %v2203_v33, 4  ;;  %v2213_v38 = vor.u32 %v2212_v51, %v2208_v62  ;;  %v430_v46 = vshrl.u32 %v7089_v63, 16  ;;  %v7133_v31 = vld [vmem:[%s6829_s25 + $0x78] sm:$0xf] }
  0x5a   : > { %v5388_v25 = vcombine.low %v405_v27, %v415_v49  ;;  %v428_v18 = vrot.slane %v426_v54, 5  ;;  %v436_v7 = vshll.u32 %v213_v3, 16  ;;  %v423_v6 = vor.u32 %v422_v4, %v419_v57  ;;  %v214_v54 = vld [vmem:[%s6829_s25 + $0x74] sm:$0x1] }
  0x5b   : > { %v5656_v27 = vrot.slane %v5640_v19, 9  ;;  %v2806_v33 = vrot.slane %v2804_v17, 4  ;;  %v7128_v34 = vsel %vm6847_vm3, %v2204_v48, %v2208_v62  ;;  %v2214_v3 = vrot.slane %v2213_v38, 4 }
  0x5c   : > { %6089 = vmatmul.mubr.msk.bf16.gmra.mrb[12].mxu1 %vm658_vm4, %v5388_v25  ;;  %9073 = vst [vmem:[#allocation17_spill] sm:$0xff] %v7128_v34  ;;  %v432_v49 = vrot.slane %v430_v46, 4  ;;  %v438_v51 = vrot.slane %v436_v7, 5  ;;  %v424_v11 = vrot.slane %v423_v6, 4  ;;  %v9074_v25 = vrot.slane %v6839_v16, 5 }
  0x5d   : > { %v2805_v19 = vsel %vm7116_vm7, %v5656_v27, %v2804_v17  ;;  %v441_v38 = vshrl.u32 %v7111_v1, 16  ;;  %v7146_v48 = vsel %vm6847_vm3, %v2214_v3, %v2218_v52  ;;  %v444_v15 = vshll.u32 %v7111_v1, 16  ;;  %v7158_v3 = vld [vmem:[%s6829_s25 + $0x7c] sm:$0xf] }
  0x5e   : > { %v2808_v62 = vsel %vm7116_vm7, %v2806_v33, %v9074_v25  ;;  %9075 = vst [vmem:[#allocation18_spill] sm:$0xff] %v7146_v48  ;;  %v433_v57 = vor.u32 %v432_v49, %v428_v18  ;;  %v5615_v17 = vcombine.low %v7128_v34, %v7146_v48  ;;  %v429_v16 = vsel %vm6847_vm3, %v424_v11, %v428_v18  ;;  %v215_v49 = vld [vmem:[%s6829_s25 + $0x80] sm:$0x1] }
  0x5f   : > { %v5673_v4 = vcombine.low %v2805_v19, %v2808_v62  ;;  %v443_v46 = vrot.slane %v441_v38, 4  ;;  %v3372_v7 = vsel %vm707_vm0, %v6913_v55, 0  ;;  %v446_v27 = vrot.slane %v444_v15, 5  ;;  %v5642_v19 = vld [vmem:[%s6829_s25 + $0x24] sm:$0xe] }
  0x60   : > { %v434_v6 = vrot.slane %v433_v57, 4  ;;  %v450_v33 = vshll.u32 %v7124_v5, 16  ;;  %v454_v52 = vshrl.u32 %v7124_v5, 16  ;;  %6225 = vmatmul.mubr.msk.bf16.gmra.mrb[12].mxu0 %vm658_vm4, %v5615_v17  ;;  %v460_v25 = vshll.u32 %v214_v54, 16 }
  0x61   : > { %v5657_v62 = vrot.slane %v5641_v50, 9  ;;  %v9076_v11 = vrot.slane %v6871_v61, 5  ;;  %v465_v18 = vshrl.u32 %v7133_v31, 16  ;;  %6246 = vmatprep.mubr.msk.bf16.mxu0 %vm658_vm4, %v5673_v4  ;;  %v447_v57 = vor.u32 %v446_v27, %v443_v46 }
  0x62   : > { %v439_v38 = vsel %vm6847_vm3, %v434_v6, %v438_v51  ;;  %v452_v15 = vrot.slane %v450_v33, 5  ;;  %v456_v17 = vrot.slane %v454_v52, 4  ;;  %v462_v50 = vrot.slane %v460_v25, 5  ;;  %v7178_v51 = vld [vmem:[%s6829_s25 + $0x84] sm:$0xf] }
  0x63   : > { %v2815_v55 = vsel %vm7116_vm7, %v7050_v41, %v9076_v11  ;;  %v5389_v54 = vcombine.low %v429_v16, %v439_v38  ;;  %v9077_v61 = vrot.slane %v6864_v58, 5  ;;  %v467_v34 = vrot.slane %v465_v18, 4  ;;  %v7184_v6 = vld [vmem:[%s6829_s25 + $0x88] sm:$0xf]  ;;  %v216_v38 = vld [vmem:[%s6829_s25 + $0x8c] sm:$0x1] }
  0x64   : > { %v448_v41 = vrot.slane %v447_v57, 4  ;;  %v457_v11 = vor.u32 %v456_v17, %v452_v15  ;;  %v468_v36 = vshll.u32 %v7133_v31, 16  ;;  %v474_v4 = vshll.u32 %v7158_v3, 16 }
  0x65   : > { %v2812_v48 = vsel %vm7116_vm7, %v5657_v62, %v9077_v61  ;;  %6092 = vmatprep.mubr.msk.bf16.mxu1 %vm658_vm4, %v5389_v54  ;;  %v478_v16 = vshrl.u32 %v7158_v3, 16  ;;  %v484_v46 = vshll.u32 %v215_v49, 16  ;;  %v5658_v58 = vrot.slane %v5642_v19, 9  ;;  %v7194_v49 = vld [vmem:[%s9013_s1 + $0x1c] sm:$0xf] }
  0x66   : > { %v5674_v8 = vcombine.low %v2812_v48, %v2815_v55  ;;  %v453_v27 = vsel %vm6847_vm3, %v448_v41, %v452_v15  ;;  %v458_v33 = vrot.slane %v457_v11, 4  ;;  %v470_v48 = vrot.slane %v468_v36, 5  ;;  %v5643_v61 = vld [vmem:[%s6829_s25 + $0x30] sm:$0xe] }
  0x67   : > { %v2818_v52 = vrot.slane %v6891_v39, 5  ;;  %v476_v25 = vrot.slane %v474_v4, 5  ;;  %v480_v62 = vrot.slane %v478_v16, 4  ;;  %v486_v55 = vrot.slane %v484_v46, 5  ;;  %v7209_v4 = vld [vmem:[%s6829_s25 + $0x90] sm:$0xf] }
  0x68   : > { %v2821_v18 = vrot.slane %v6902_v45, 5  ;;  %v463_v19 = vsel %vm6847_vm3, %v458_v33, %v462_v50  ;;  %v471_v57 = vor.u32 %v470_v48, %v467_v34  ;;  %6247 = vmatmul.mubr.msk.bf16.vlgmr.msra.gmra.mrb[0].mxu0 %vm658_vm4, %v5674_v8  ;;  %v489_v17 = vshrl.u32 %v7178_v51, 16 }
  0x69   : > { %v2819_v39 = vsel %vm7116_vm7, %v5658_v58, %v2818_v52  ;;  %v2820_v36 = vrot.slane %v2818_v52, 4  ;;  %v5390_v15 = vcombine.low %v453_v27, %v463_v19  ;;  %v481_v45 = vor.u32 %v480_v62, %v476_v25  ;;  %6279 = vmatpush3.bf16.msra.mxu0 %v3372_v7  ;;  %v7213_v27 = vld [vmem:[%s6829_s25 + $0x94] sm:$0xf] }
  0x6a   : > { %v492_v54 = vshll.u32 %v7178_v51, 16  ;;  %v472_v41 = vrot.slane %v471_v57, 4  ;;  %v498_v34 = vshll.u32 %v7184_v6, 16  ;;  %v502_v11 = vshrl.u32 %v7184_v6, 16  ;;  %6646 = vmatprep.subr.msk.bf16.mxu0 %vm707_vm0, %v7194_v49 }
  0x6b   : > { %v2822_v50 = vsel %vm7116_vm7, %v2820_v36, %v2821_v18  ;;  %6093 = vmatmul.mubr.msk.bf16.gmra.mrb[16].mxu1 %vm658_vm4, %v5390_v15  ;;  %v482_v8 = vrot.slane %v481_v45, 4  ;;  %v491_v46 = vrot.slane %v489_v17, 4  ;;  %v508_v52 = vshll.u32 %v216_v38, 16 }
  0x6c   : > { %v5675_v16 = vcombine.low %v2819_v39, %v2822_v50  ;;  %v494_v58 = vrot.slane %v492_v54, 5  ;;  %v477_v7 = vsel %vm6847_vm3, %v472_v41, %v476_v25  ;;  %v500_v33 = vrot.slane %v498_v34, 5  ;;  %v217_v39 = vld [vmem:[%s6829_s25 + $0x98] sm:$0x1]  ;;  %v5644_v25 = vld [vmem:[%s6829_s25 + $0x3c] sm:$0xe] }
  0x6d   : > { %v504_v48 = vrot.slane %v502_v11, 4  ;;  %v487_v62 = vsel %vm6847_vm3, %v482_v8, %v486_v55  ;;  %v5659_v19 = vrot.slane %v5643_v61, 9  ;;  %v2825_v57 = vrot.slane %v6928_v22, 5  ;;  %v7230_v50 = vld [vmem:[%s6829_s25 + $0x9c] sm:$0xf] }
  0x6e   : > { %6250 = vmatprep.mubr.msk.bf16.mxu0 %vm658_vm4, %v5675_v16  ;;  %v495_v18 = vor.u32 %v494_v58, %v491_v46  ;;  %v5391_v36 = vcombine.low %v477_v7, %v487_v62  ;;  %v510_v45 = vrot.slane %v508_v52, 5  ;;  %v2828_v17 = vrot.slane %v6932_v26, 5  ;;  %v7241_v58 = vld [vmem:[%s6829_s25 + $0xa0] sm:$0xf] }
  0x6f   : > { %v505_v15 = vor.u32 %v504_v48, %v500_v33  ;;  %v2826_v38 = vsel %vm7116_vm7, %v5659_v19, %v2825_v57  ;;  %v2827_v41 = vrot.slane %v2825_v57, 4  ;;  %v513_v55 = vshrl.u32 %v7209_v4, 16 }
  0x70   : > { %v496_v54 = vrot.slane %v495_v18, 4  ;;  %6096 = vmatprep.mubr.msk.bf16.mxu1 %vm658_vm4, %v5391_v36  ;;  %v516_v61 = vshll.u32 %v7209_v4, 16  ;;  %v522_v34 = vshll.u32 %v7213_v27, 16  ;;  %v526_v26 = vshrl.u32 %v7213_v27, 16 }
  0x71   : > { %v506_v22 = vrot.slane %v505_v15, 4  ;;  %v2829_v8 = vsel %vm7116_vm7, %v2827_v41, %v2828_v17  ;;  %v515_v16 = vrot.slane %v513_v55, 4  ;;  %v532_v46 = vshll.u32 %v217_v39, 16  ;;  %v7249_v17 = vld [vmem:[%s6829_s25 + $0xa4] sm:$0x1] }
  0x72   : > { %v501_v11 = vsel %vm6847_vm3, %v496_v54, %v500_v33  ;;  %v5676_v48 = vcombine.low %v2826_v38, %v2829_v8  ;;  %v518_v52 = vrot.slane %v516_v61, 5  ;;  %v524_v62 = vrot.slane %v522_v34, 5  ;;  %v5645_v55 = vld [vmem:[%s6829_s25 + $0x48] sm:$0xe] }
  0x73   : > { %v511_v7 = vsel %vm6847_vm3, %v506_v22, %v510_v45  ;;  %v528_v19 = vrot.slane %v526_v26, 4  ;;  %v534_v57 = vrot.slane %v532_v46, 5  ;;  %v5660_v36 = vrot.slane %v5644_v25, 9 }
  0x74   : > { %v5392_v18 = vcombine.low %v501_v11, %v511_v7  ;;  %6251 = vmatmul.mubr.msk.bf16.gmra.mrb[4].mxu0 %vm658_vm4, %v5676_v48  ;;  %v519_v33 = vor.u32 %v518_v52, %v515_v16  ;;  %v2832_v15 = vrot.slane %v6957_v9, 5  ;;  %v2835_v39 = vrot.slane %v6969_v23, 5  ;;  %v7265_v52 = vld [vmem:[%s6829_s25 + $0xa8] sm:$0xf] }
  0x75   : > { %v537_v54 = vshrl.u32 %v7230_v50, 16  ;;  %v529_v45 = vor.u32 %v528_v19, %v524_v62  ;;  %v540_v38 = vshll.u32 %v7230_v50, 16  ;;  %v546_v41 = vshll.u32 %v7241_v58, 16 }
  0x76   : > { %6097 = vmatmul.mubr.msk.bf16.gmra.mrb[20].mxu1 %vm658_vm4, %v5392_v18  ;;  %v550_v25 = vshrl.u32 %v7241_v58, 16  ;;  %v520_v22 = vrot.slane %v519_v33, 4  ;;  %v2833_v9 = vsel %vm7116_vm7, %v5660_v36, %v2832_v15  ;;  %v2834_v23 = vrot.slane %v2832_v15, 4  ;;  %v7270_v15 = vld [vmem:[%s6829_s25 + $0xac] sm:$0xf] }
  0x77   : > { %v539_v61 = vrot.slane %v537_v54, 4  ;;  %v530_v34 = vrot.slane %v529_v45, 4  ;;  %v542_v26 = vrot.slane %v540_v38, 5  ;;  %v548_v11 = vrot.slane %v546_v41, 5 }
  0x78   : > { %v552_v8 = vrot.slane %v550_v25, 4  ;;  %v525_v16 = vsel %vm6847_vm3, %v520_v22, %v524_v62  ;;  %v2836_v46 = vsel %vm7116_vm7, %v2834_v23, %v2835_v39  ;;  %v556_v7 = vshll.u32 %v7249_v17, 16  ;;  %v7276_v25 = vld [vmem:[%s6829_s25 + $0xb0] sm:$0x1]  ;;  %v5646_v23 = vld [vmem:[%s6829_s25 + $0x54] sm:$0xe] }
  0x79   : > { %v5661_v48 = vrot.slane %v5645_v55, 9  ;;  %v535_v18 = vsel %vm6847_vm3, %v530_v34, %v534_v57  ;;  %v5677_v19 = vcombine.low %v2833_v9, %v2836_v46  ;;  %v543_v36 = vor.u32 %v542_v26, %v539_v61 }
  0x7a   : > { %v553_v33 = vor.u32 %v552_v8, %v548_v11  ;;  %v5393_v54 = vcombine.low %v525_v16, %v535_v18  ;;  %v558_v62 = vrot.slane %v556_v7, 5  ;;  %v2839_v45 = vrot.slane %v6986_v60, 5  ;;  %v7291_v16 = vld [vmem:[%s6829_s25 + $0xb4] sm:$0xf] }
  0x7b   : > { %v2842_v39 = vrot.slane %v6998_v13, 5  ;;  %6254 = vmatprep.mubr.msk.bf16.mxu0 %vm658_vm4, %v5677_v19  ;;  %v544_v38 = vrot.slane %v543_v36, 4  ;;  %v561_v57 = vshrl.u32 %v7265_v52, 16  ;;  %v564_v55 = vshll.u32 %v7265_v52, 16  ;;  %v7296_v19 = vld [vmem:[%s6829_s25 + $0xb8] sm:$0xf] }
  0x7c   : > { %v554_v41 = vrot.slane %v553_v33, 4  ;;  %6100 = vmatprep.mubr.msk.bf16.mxu1 %vm658_vm4, %v5393_v54  ;;  %v2840_v22 = vsel %vm7116_vm7, %v5661_v48, %v2839_v45  ;;  %v2841_v60 = vrot.slane %v2839_v45, 4  ;;  %v570_v13 = vshll.u32 %v7270_v15, 16 }
  0x7d   : > { %v574_v9 = vshrl.u32 %v7270_v15, 16  ;;  %v549_v61 = vsel %vm6847_vm3, %v544_v38, %v548_v11  ;;  %v563_v26 = vrot.slane %v561_v57, 4  ;;  %v566_v8 = vrot.slane %v564_v55, 5 }
  0x7e   : > { %v559_v34 = vsel %vm6847_vm3, %v554_v41, %v558_v62  ;;  %v2843_v7 = vsel %vm7116_vm7, %v2841_v60, %v2842_v39  ;;  %v572_v48 = vrot.slane %v570_v13, 5  ;;  %v580_v11 = vshll.u32 %v7276_v25, 16  ;;  %v220_v41 = vld [vmem:[%s6829_s25 + $0xbc] sm:$0x1]  ;;  %v5647_v13 = vld [vmem:[%s6829_s25 + $0x60] sm:$0xe] }
  0x7f   : > { %v5394_v46 = vcombine.low %v549_v61, %v559_v34  ;;  %v576_v18 = vrot.slane %v574_v9, 4  ;;  %v5678_v36 = vcombine.low %v2840_v22, %v2843_v7  ;;  %v567_v33 = vor.u32 %v566_v8, %v563_v26 }
  0x80   : > { %v5662_v54 = vrot.slane %v5646_v23, 9  ;;  %v2846_v45 = vrot.slane %v7025_v0, 5  ;;  %v2849_v38 = vrot.slane %v7034_v21, 5  ;;  %v585_v39 = vshrl.u32 %v7291_v16, 16 }
  0x81   : > { %6101 = vmatmul.mubr.msk.bf16.gmra.mrb[24].mxu1 %vm658_vm4, %v5394_v46  ;;  %v577_v62 = vor.u32 %v576_v18, %v572_v48  ;;  %6255 = vmatmul.mubr.msk.bf16.gmra.mrb[8].mxu0 %vm658_vm4, %v5678_v36  ;;  %v568_v57 = vrot.slane %v567_v33, 4  ;;  %v582_v55 = vrot.slane %v580_v11, 5  ;;  %v588_v22 = vshll.u32 %v7291_v16, 16  ;;  %v5648_v46 = vld [vmem:[%s6829_s25 + $0x6c] sm:$0xe] }
  0x82   : > { %v594_v60 = vshll.u32 %v7296_v19, 16  ;;  %v2847_v0 = vsel %vm7116_vm7, %v5662_v54, %v2846_v45  ;;  %v2848_v21 = vrot.slane %v2846_v45, 4  ;;  %v587_v23 = vrot.slane %v585_v39, 4  ;;  %v5584_v11 = vld [vmem:[%s6829_s25 + $0x70] sm:$0xf] }
  0x83   : > { %v578_v9 = vrot.slane %v577_v62, 4  ;;  %v573_v61 = vsel %vm6847_vm3, %v568_v57, %v572_v48  ;;  %v590_v34 = vrot.slane %v588_v22, 5  ;;  %v598_v8 = vshrl.u32 %v7296_v19, 16  ;;  %v5585_v54 = vld [vmem:[%s6829_s25 + $0x74] sm:$0x1] }
  0x84   : > { %v596_v26 = vrot.slane %v594_v60, 5  ;;  %v2850_v18 = vsel %vm7116_vm7, %v2848_v21, %v2849_v38  ;;  %v604_v36 = vshll.u32 %v220_v41, 16  ;;  %v5663_v33 = vrot.slane %v5647_v13, 9 }
  0x85   : > { %v583_v7 = vsel %vm6847_vm3, %v578_v9, %v582_v55  ;;  %v5679_v45 = vcombine.low %v2847_v0, %v2850_v18  ;;  %v591_v39 = vor.u32 %v590_v34, %v587_v23  ;;  %v600_v48 = vrot.slane %v598_v8, 4  ;;  %v7332_v8 = vld [vmem:[%s6829_s25 + $0x7c] sm:$0xf]  ;;  %v6707_v18 = vld [vmem:[%s6829_s25] sm:$0xf] }
  0x86   : > { %v5395_v62 = vcombine.low %v573_v61, %v583_v7  ;;  %v606_v57 = vrot.slane %v604_v36, 5  ;;  %v2853_v22 = vrot.slane %v7068_v29, 5  ;;  %v2856_v60 = vrot.slane %v7076_v47, 5  ;;  %v5649_v47 = vld [vmem:[%s6829_s25 + $0x78] sm:$0xe] }
  0x87   : > { %v5664_v55 = vrot.slane %v5648_v46, 9  ;;  %6258 = vmatprep.mubr.msk.bf16.mxu0 %vm658_vm4, %v5679_v45  ;;  %v592_v38 = vrot.slane %v591_v39, 4  ;;  %v601_v41 = vor.u32 %v600_v48, %v596_v26  ;;  %v2860_v13 = vrot.slane %v5584_v11, 5  ;;  %v7335_v46 = vld [vmem:[%s6829_s25 + $0x80] sm:$0x1] }
  0x88   : > { %6104 = vmatprep.mubr.msk.bf16.mxu1 %vm658_vm4, %v5395_v62  ;;  %v2863_v9 = vrot.slane %v5585_v54, 5  ;;  %v2854_v29 = vsel %vm7116_vm7, %v5663_v33, %v2853_v22  ;;  %v2855_v0 = vrot.slane %v2853_v22, 4  ;;  %v7341_v36 = vld [vmem:[%s6829_s25 + $0x4] sm:$0xf]  ;;  %v5591_v11 = vld [vmem:[%s6829_s25 + $0x8c] sm:$0x1] }
  0x89   : > { %v597_v21 = vsel %vm6847_vm3, %v592_v38, %v596_v26  ;;  %v602_v23 = vrot.slane %v601_v41, 4  ;;  %v2861_v61 = vsel %vm7116_vm7, %v5664_v55, %v2860_v13  ;;  %v2862_v34 = vrot.slane %v2860_v13, 4  ;;  %v5590_v26 = vld [vmem:[%s6829_s25 + $0x88] sm:$0xf]  ;;  %v5650_v54 = vld [vmem:[%s6829_s25 + $0x84] sm:$0xe] }
  0x8a   : > { %v2857_v7 = vsel %vm7116_vm7, %v2855_v0, %v2856_v60  ;;  %v5413_v33 = vcombine.low %v6707_v18, %v7341_v36  ;;  %v5665_v48 = vrot.slane %v5649_v47, 9  ;;  %v5593_v55 = vld [vmem:[%s6829_s25 + $0x94] sm:$0xf]  ;;  %v2867_v38 = vrot.slane %v7332_v8, 5  ;;  %v5651_v0 = vld [vmem:[%s6829_s25 + $0x90] sm:$0xe] }
  0x8b   : > { %v607_v62 = vsel %vm6847_vm3, %v602_v23, %v606_v57  ;;  %v5680_v45 = vcombine.low %v2854_v29, %v2857_v7  ;;  %v2864_v39 = vsel %vm7116_vm7, %v2862_v34, %v2863_v9  ;;  %v2870_v41 = vrot.slane %v7335_v46, 5  ;;  %v5594_v57 = vld [vmem:[%s6829_s25 + $0x98] sm:$0x1]  ;;  %v5597_v18 = vld [vmem:[%s6829_s25 + $0xa4] sm:$0x1] }
  0x8c   : > { %v5396_v22 = vcombine.low %v597_v21, %v607_v62  ;;  %v5681_v60 = vcombine.low %v2861_v61, %v2864_v39  ;;  %v5666_v13 = vrot.slane %v5650_v54, 9  ;;  %v2874_v9 = vrot.slane %v5590_v26, 5  ;;  %v5596_v61 = vld [vmem:[%s6829_s25 + $0xa0] sm:$0xf]  ;;  %v5652_v54 = vld [vmem:[%s6829_s25 + $0x9c] sm:$0xe] }
  0x8d   : > { %6259 = vmatmul.mubr.msk.bf16.gmra.mrb[12].mxu0 %vm658_vm4, %v5680_v45  ;;  %v2877_v29 = vrot.slane %v5591_v11, 5  ;;  %v2868_v47 = vsel %vm7116_vm7, %v5665_v48, %v2867_v38  ;;  %v2869_v21 = vrot.slane %v2867_v38, 4  ;;  %v2881_v23 = vrot.slane %v5593_v55, 5  ;;  %v6709_v62 = vld [vmem:[%s6829_s25 + $0xc] sm:$0xf] }
  0x8e   : > { %6105 = vmatmul.mubr.msk.bf16.gmra.mrb[28].mxu1 %vm658_vm4, %v5396_v22  ;;  %6262 = vmatprep.mubr.msk.bf16.mxu0 %vm658_vm4, %v5681_v60  ;;  %v2875_v34 = vsel %vm7116_vm7, %v5666_v13, %v2874_v9  ;;  %v2876_v7 = vrot.slane %v2874_v9, 4  ;;  %v7369_v26 = vld [vmem:[%s6829_s25 + $0x10] sm:$0xf]  ;;  %v5667_v45 = vrot.slane %v5651_v0, 9  ;;  %v2884_v39 = vrot.slane %v5594_v57, 5 }
  0x8f   : > { %6110 = vmatprep.mubr.msk.bf16.mxu1 %vm658_vm4, %v5413_v33  ;;  %v5414_v33 = vcombine.low %v6709_v62, %v7369_v26  ;;  %v2871_v11 = vsel %vm7116_vm7, %v2869_v21, %v2870_v41  ;;  %v2883_v60 = vrot.slane %v2881_v23, 4  ;;  %v2888_v55 = vrot.slane %v5596_v61, 5  ;;  %v6711_v38 = vld [vmem:[%s6829_s25 + $0x18] sm:$0xf]  ;;  %v7378_v13 = vld [vmem:[%s6829_s25 + $0x1c] sm:$0xf] }
  0x90   : > { %v5682_v48 = vcombine.low %v2868_v47, %v2871_v11  ;;  %v2878_v22 = vsel %vm7116_vm7, %v2876_v7, %v2877_v29  ;;  %v5415_v9 = vcombine.low %v6711_v38, %v7378_v13  ;;  %v5668_v62 = vrot.slane %v5652_v54, 9  ;;  %v5599_v41 = vld [vmem:[%s6829_s25 + $0xac] sm:$0xf]  ;;  %v5602_v57 = vld [vmem:[%s6829_s25 + $0xb8] sm:$0xf] }
  0x91   : > { %v5683_v12 = vcombine.low %v2875_v34, %v2878_v22  ;;  %v2891_v37 = vrot.slane %v5597_v18, 5  ;;  %v2890_v0 = vrot.slane %v2888_v55, 4  ;;  %v2882_v29 = vsel %vm7116_vm7, %v5667_v45, %v2881_v23  ;;  %v5653_v21 = vld [vmem:[%s6829_s25 + $0xa8] sm:$0xe]  ;;  %v5600_v18 = vld [vmem:[%s6829_s25 + $0xb0] sm:$0x1] }
  0x92   : > { %v2885_v47 = vsel %vm7116_vm7, %v2883_v60, %v2884_v39  ;;  %v2895_v61 = vrot.slane %v5599_v41, 5  ;;  %v2889_v34 = vsel %vm7116_vm7, %v5668_v62, %v2888_v55  ;;  %v5654_v54 = vld [vmem:[%s6829_s25 + $0xb4] sm:$0xe]  ;;  %v5603_v23 = vld [vmem:[%s6829_s25 + $0xbc] sm:$0x1]  ;;  %v5669_v22 = vrot.slane %v5653_v21, 9 }
  0x93   : > { %v2892_v7 = vsel %vm7116_vm7, %v2890_v0, %v2891_v37  ;;  %v6713_v11 = vld [vmem:[%s6829_s25 + $0x24] sm:$0xf]  ;;  %v7406_v45 = vld [vmem:[%s6829_s25 + $0x28] sm:$0xf]  ;;  %v1426_v37 = vsel %vm707_vm0, %v7103_v44, 0  ;;  %v2898_v38 = vrot.slane %v5600_v18, 5 }
  0x94   : > { %v5416_v39 = vcombine.low %v6713_v11, %v7406_v45  ;;  %v5685_v60 = vcombine.low %v2889_v34, %v2892_v7  ;;  %v2897_v55 = vrot.slane %v2895_v61, 4  ;;  %v5605_v62 = vld [vmem:[%s6829_s25 + $0xc4] sm:$0xf]  ;;  %v6715_v41 = vld [vmem:[%s6829_s25 + $0x30] sm:$0xf]  ;;  %v2896_v44 = vsel %vm7116_vm7, %v5669_v22, %v2895_v61 }
  0x95   : > { %6263 = vmatmul.mubr.msk.bf16.gmra.mrb[16].mxu0 %vm658_vm4, %v5682_v48  ;;  %v5684_v48 = vcombine.low %v2882_v29, %v2885_v47  ;;  %v2905_v47 = vrot.slane %v5603_v23, 5  ;;  %v2909_v34 = vrot.slane %v5605_v62, 5  ;;  %v5655_v23 = vld [vmem:[%s6829_s25 + $0xc0] sm:$0xe]  ;;  %v6717_v11 = vld [vmem:[%s6829_s25 + $0x3c] sm:$0xf] }
  0x96   : > { %6111 = vmatmul.mubr.msk.bf16.vlgmr.msra.gmra.mrb[0].mxu1 %vm658_vm4, %v5414_v33  ;;  %6266 = vmatprep.mubr.msk.bf16.mxu0 %vm658_vm4, %v5683_v12  ;;  %v2902_v12 = vrot.slane %v5602_v57, 5  ;;  %v7402_v33 = vld [vmem:[%s9013_s1 + $0xc] sm:$0xf]  ;;  %v7414_v57 = vld [vmem:[%s6829_s25 + $0x34] sm:$0xf]  ;;  %v2899_v21 = vsel %vm7116_vm7, %v2897_v55, %v2898_v38  ;;  %v5419_v38 = vcombine.low %v7006_v24, %v7009_v32  ;;  %v2254_v62 = vshll.u32 %v7332_v8, 16 }
  0x97   : > { %6114 = vmatprep.mubr.msk.bf16.mxu1 %vm658_vm4, %v5415_v9  ;;  %v5670_v9 = vrot.slane %v5654_v54, 9  ;;  %6143 = vmatpush3.bf16.msra.mxu1 %v1426_v37  ;;  %v5417_v0 = vcombine.low %v6715_v41, %v7414_v57  ;;  %v5606_v54 = vld [vmem:[%s6829_s25 + $0xc8] sm:$0x1]  ;;  %v5686_v61 = vcombine.low %v2896_v44, %v2899_v21  ;;  %v5671_v37 = vrot.slane %v5655_v23, 9 }
  0x98   : > { %v2904_v29 = vrot.slane %v2902_v12, 4  ;;  %6641 = vmatprep.subr.msk.bf16.mxu1 %vm707_vm0, %v7402_v33  ;;  %v2912_v55 = vrot.slane %v5606_v54, 5  ;;  %v2258_v24 = vshrl.u32 %v7332_v8, 16  ;;  %v5420_v41 = vcombine.low %v7038_v35, %v7046_v40  ;;  %v1164_v35 = vld [vmem:[%s6829_s25] sm:$0xe]  ;;  %v6670_v23 = vld [vmem:[%s6829_s25 + $0x24] sm:$0xff]  }
  0x99   : > { %v2903_v7 = vsel %vm7116_vm7, %v5670_v9, %v2902_v12  ;;  %v2910_v12 = vsel %vm7116_vm7, %v5671_v37, %v2909_v34  ;;  %v1224_v21 = vrot.slane %v7369_v26, 5  ;;  %v1217_v40 = vrot.slane %v7341_v36, 5 }
  0x9a   : > { %v2906_v18 = vsel %vm7116_vm7, %v2904_v29, %v2905_v47  ;;  %v5421_v29 = vcombine.low %v7084_v53, %v7089_v63  ;;  %v7455_v47 = vrot.slane %v2254_v62, 5  ;;  %v2260_v44 = vrot.slane %v2258_v24, 4  ;;  %v1165_v53 = vld [vmem:[%s6829_s25 + $0xc] sm:$0xe]  ;;  %v6719_v63 = vld [vmem:[%s6829_s25 + $0x8] sm:$0x1] }
  0x9b   : > { %v5687_v22 = vcombine.low %v2903_v7, %v2906_v18  ;;  %v1220_v8 = vrot.slane %v6719_v63, 5  ;;  %v2264_v18 = vshll.u32 %v7335_v46, 16  ;;  %v1231_v26 = vrot.slane %v7378_v13, 5 }
  0x9c   : > { %9078 = vst [vmem:[#allocation19_spill] sm:$0xff] %v7455_v47  ;;  %v2261_v54 = vor.u32 %v2260_v44, %v7455_v47  ;;  %v5422_v36 = vcombine.low %v7111_v1, %v7124_v5  ;;  %v1226_v37 = vrot.slane %v1224_v21, 4  ;;  %v4098_v46 = vsel %vm707_vm0, %v7194_v49, 0  ;;  %v6721_v1 = vld [vmem:[%s6829_s25 + $0x20] sm:$0x1] }
  0x9d   : > { %6267 = vmatmul.mubr.msk.bf16.gmra.mrb[20].mxu0 %vm658_vm4, %v5684_v48  ;;  %v5423_v13 = vcombine.low %v7133_v31, %v7158_v3  ;;  %v1233_v62 = vrot.slane %v1231_v26, 4  ;;  %v1234_v24 = vrot.slane %v6721_v1, 5  ;;  %v5424_v49 = vcombine.low %v7178_v51, %v7184_v6  ;;  %v6722_v31 = vld [vmem:[%s6829_s25 + $0x2c] sm:$0x1]  ;;  %v5773_v1 = vld [vmem:[%s6829_s25 + $0x24] sm:$0xf] }
  0x9e   : > { %6115 = vmatmul.mubr.msk.bf16.gmra.mrb[4].mxu1 %vm658_vm4, %v5416_v39  ;;  %6270 = vmatprep.mubr.msk.bf16.mxu0 %vm658_vm4, %v5685_v60  ;;  %v7435_v39 = vld [vmem:[%s6829_s25 + $0x40] sm:$0xf]  ;;  %v2911_v60 = vrot.slane %v2909_v34, 4  ;;  %v6720_v34 = vld [vmem:[%s6829_s25 + $0x14] sm:$0x1]  ;;  %v7495_v44 = vrot.slane %v2261_v54, 4  ;;  %v5425_v54 = vcombine.low %v7209_v4, %v7213_v27 }
  0x9f   : > { %6118 = vmatprep.mubr.msk.bf16.mxu1 %vm658_vm4, %v5417_v0  ;;  %v5418_v48 = vcombine.low %v6717_v11, %v7435_v39  ;;  %v6668_v0 = vld [vmem:[%s6829_s25 + $0x18] sm:$0xff]   ;;  %v1227_v7 = vrot.slane %v6720_v34, 5 }
  0xa0   : > { %v2913_v9 = vsel %vm7116_vm7, %v2911_v60, %v2912_v55  ;;  %v1166_v11 = vld [vmem:[%s6829_s25 + $0x18] sm:$0xe]  ;;  %v1167_v60 = vld [vmem:[%s6829_s25 + $0x24] sm:$0xe]  ;;  %v6672_v55 = vld [vmem:[%s6829_s25 + $0x30] sm:$0xff]   ;;  %9080 = vst [vmem:[#allocation21_spill] sm:$0xff] %v7495_v44 }
  0xa1   : > { %v5688_v32 = vcombine.low %v2910_v12, %v2913_v9  ;;  %v1245_v12 = vrot.slane %v7414_v57, 5  ;;  %v5447_v9 = vrot.slane %v1166_v11, 9  ;;  %v7493_v57 = vld [vmem:[%s9013_s1 + $0x20] sm:$0xf]  ;;  %v7508_v6 = vsel %vm7116_vm7, %v1226_v37, %v1227_v7  ;;  %v1170_v11 = vld [vmem:[%s6829_s25 + $0x48] sm:$0xe] }
  0xa3   : > { %v1247_v34 = vrot.slane %v1245_v12, 4  ;;  %v7522_v7 = vsel %vm7116_vm7, %v5447_v9, %v1231_v26 }
  0xa5   : > { %6271 = vmatmul.mubr.msk.bf16.gmra.mrb[24].mxu0 %vm658_vm4, %v5686_v61  ;;  %v5445_v61 = vrot.slane %v1164_v35, 9 }
  0xa6   : > { %6119 = vmatmul.mubr.msk.bf16.gmra.mrb[8].mxu1 %vm658_vm4, %v5418_v48  ;;  %6274 = vmatprep.mubr.msk.bf16.mxu0 %vm658_vm4, %v5687_v22  ;;  %v1238_v48 = vrot.slane %v7406_v45, 5  ;;  %v5446_v22 = vrot.slane %v1165_v53, 9  ;;  %v7482_v45 = vrot.slane %v2264_v18, 5  ;;  %v1169_v53 = vld [vmem:[%s6829_s25 + $0x3c] sm:$0xe] }
  0xa7   : > { %6122 = vmatprep.mubr.msk.bf16.mxu1 %vm658_vm4, %v5419_v38  ;;  %v1219_v38 = vrot.slane %v1217_v40, 4  ;;  %v7500_v35 = vsel %vm7116_vm7, %v5445_v61, %v1217_v40  ;;  %v6723_v18 = vld [vmem:[%s6829_s25 + $0x38] sm:$0x1]  ;;  %v5450_v61 = vrot.slane %v1169_v53, 9  ;;  %v5774_v53 = vld [vmem:[%s6829_s25 + $0x28] sm:$0xf] }
  0xa8   : > { %9079 = vst [vmem:[#allocation20_spill] sm:$0xff] %v7482_v45  ;;  %v7504_v51 = vsel %vm7116_vm7, %v5446_v22, %v1224_v21  ;;  %v1248_v21 = vrot.slane %v6723_v18, 5  ;;  %v5772_v22 = vld [vmem:[%s6829_s25 + $0x20] sm:$0x1] }
  0xa9   : > { %v7515_v63 = vsel %vm7116_vm7, %v1219_v38, %v1220_v8  ;;  %v1252_v8 = vrot.slane %v7435_v39, 5  ;;  %v6676_v39 = vld [vmem:[%s6829_s25 + $0x48] sm:$0xff]   ;;  %v3635_v42 = vshll.u32 %v5772_v22, 16 }
  0xaa   : > { %v7562_v9 = vsel %vm7116_vm7, %v1247_v34, %v1248_v21  ;;  %v6680_v21 = vld [vmem:[%s6829_s25 + $0x60] sm:$0xff]  }
  0xad   : > { %6275 = vmatmul.mubr.msk.bf16.gmra.mrb[28].mxu0 %vm658_vm4, %v5688_v32  ;;  %v1168_v32 = vld [vmem:[%s6829_s25 + $0x30] sm:$0xe] }
  0xae   : > { %6123 = vmatmul.mubr.msk.bf16.gmra.mrb[12].mxu1 %vm658_vm4, %v5420_v41  ;;  %6280 = vmatprep.mubr.msk.bf16.mxu0 %vm658_vm4, %v6668_v0  ;;  %v5448_v41 = vrot.slane %v1167_v60, 9  ;;  %v1240_v0 = vrot.slane %v1238_v48, 4  ;;  %v5449_v40 = vrot.slane %v1168_v32, 9  ;;  %v1254_v32 = vrot.slane %v1252_v8, 4  ;;  %v6728_v60 = vld [vmem:[%s6829_s25 + $0x64] sm:$0xf] }
  0xaf   : > { %6126 = vmatprep.mubr.msk.bf16.mxu1 %vm658_vm4, %v5421_v29  ;;  %v1241_v29 = vrot.slane %v6722_v31, 5  ;;  %v6725_v31 = vld [vmem:[%s6829_s25 + $0x4c] sm:$0xf]  ;;  %v1273_v37 = vrot.slane %v6728_v60, 5 }
  0xb0   : > { %v7537_v27 = vsel %vm7116_vm7, %v5448_v41, %v1238_v48  ;;  %v7558_v38 = vsel %vm7116_vm7, %v5449_v40, %v1245_v12  ;;  %v6724_v41 = vld [vmem:[%s6829_s25 + $0x44] sm:$0x1]  ;;  %v7573_v12 = vsel %vm7116_vm7, %v5450_v61, %v1252_v8  ;;  %v6678_v8 = vld [vmem:[%s6829_s25 + $0x54] sm:$0xff]   ;;  %v1172_v48 = vld [vmem:[%s6829_s25 + $0x60] sm:$0xe] }
  0xb1   : > { %v7541_v26 = vsel %vm7116_vm7, %v1240_v0, %v1241_v29  ;;  %v1255_v0 = vrot.slane %v6724_v41, 5  ;;  %v1259_v29 = vrot.slane %v6725_v31, 5  ;;  %v3643_v31 = vshll.u32 %v5773_v1, 16 }
  0xb5   : > { %6281 = vmatmul.mubr.msk.bf16.vlgmr.msra.gmra.mrb[0].mxu0 %vm658_vm4, %v6670_v23  ;;  %v7526_v23 = vsel %vm7116_vm7, %v1233_v62, %v1234_v24  ;;  %v5451_v62 = vrot.slane %v1170_v11, 9  ;;  %v1171_v11 = vld [vmem:[%s6829_s25 + $0x54] sm:$0xe]  ;;  %v3653_v24 = vshrl.u32 %v5774_v53, 16 }
  0xb6   : > { %6127 = vmatmul.mubr.msk.bf16.gmra.mrb[16].mxu1 %vm658_vm4, %v5422_v36  ;;  %6313 = vmatpush3.bf16.msra.mxu0 %v4098_v46  ;;  %v6674_v36 = vld [vmem:[%s6829_s25 + $0x3c] sm:$0xff]   ;;  %v5770_v46 = vld [vmem:[%s6829_s25 + $0x18] sm:$0xf] }
  0xb7   : > { %6130 = vmatprep.mubr.msk.bf16.mxu1 %vm658_vm4, %v5423_v13  ;;  %6284 = vmatprep.mubr.msk.bf16.mxu0 %vm658_vm4, %v6672_v55  ;;  %v5771_v13 = vld [vmem:[%s6829_s25 + $0x1c] sm:$0xf]  ;;  %v3616_v40 = vshrl.u32 %v5770_v46, 16  ;;  %v3619_v34 = vshll.u32 %v5770_v46, 16  ;;  %v7584_v61 = vsel %vm7116_vm7, %v5451_v62, %v1259_v29  ;;  %v3649_v46 = vshll.u32 %v5774_v53, 16 }
  0xb8   : > { %6647 = vmatprep.subr.msk.bf16.mxu0 %vm707_vm0, %v7493_v57  ;;  %v3625_v18 = vshll.u32 %v5771_v13, 16  ;;  %v3629_v41 = vshrl.u32 %v5771_v13, 16  ;;  %v7590_v13 = vsel %vm7116_vm7, %v1254_v32, %v1255_v0  ;;  %v1261_v55 = vrot.slane %v1259_v29, 4 }
  0xb9   : > { %v5452_v62 = vrot.slane %v1171_v11, 9  ;;  %v3618_v4 = vrot.slane %v3616_v40, 4  ;;  %v1280_v32 = vrot.slane %v7124_v5, 5  ;;  %v3645_v29 = vrot.slane %v3643_v31, 5  ;;  %v6731_v31 = vld [vmem:[%s6829_s25 + $0x74] sm:$0x1] }
  0xba   : > { %v7596_v28 = vrot.slane %v3625_v18, 5  ;;  %v3631_v53 = vrot.slane %v3629_v41, 4  ;;  %v7602_v56 = vrot.slane %v3649_v46, 5  ;;  %v3655_v60 = vrot.slane %v3653_v24, 4  ;;  %v7730_v5 = vld [vmem:[%s6829_s25 + $0x58] sm:$0xf] }
  0xbb   : > { %v5453_v11 = vrot.slane %v1172_v48, 9  ;;  %v1275_v40 = vrot.slane %v1273_v37, 4  ;;  %v1283_v47 = vrot.slane %v6731_v31, 5  ;;  %v9081_v46 = vcombine.low %v7230_v50, %v7241_v58  ;;  %9089 = vst [vmem:[#allocation26_spill] sm:$0xff] %v7730_v5 }
  0xbc   : > { %v3632_v22 = vor.u32 %v3631_v53, %v7596_v28  ;;  %v1282_v48 = vrot.slane %v1280_v32, 4  ;;  %v1287_v53 = vrot.slane %v7158_v3, 5 }
  0xbd   : > { %6285 = vmatmul.mubr.msk.bf16.gmra.mrb[4].mxu0 %vm658_vm4, %v6674_v36  ;;  %v3640_v36 = vshrl.u32 %v5773_v1, 16  ;;  %v6727_v1 = vld [vmem:[%s6829_s25 + $0x50] sm:$0x1] }
  0xbe   : > { %6131 = vmatmul.mubr.msk.bf16.gmra.mrb[20].mxu1 %vm658_vm4, %v5424_v49  ;;  %6288 = vmatprep.mubr.msk.bf16.mxu0 %vm658_vm4, %v6676_v39  ;;  %v6726_v49 = vld [vmem:[%s6829_s25 + $0x58] sm:$0xf]  ;;  %v1289_v31 = vrot.slane %v1287_v53, 4 }
  0xbf   : > { %6134 = vmatprep.mubr.msk.bf16.mxu1 %vm658_vm4, %v5425_v54  ;;  %v1266_v39 = vrot.slane %v6726_v49, 5  ;;  %v1262_v54 = vrot.slane %v6727_v1, 5  ;;  %v3621_v49 = vrot.slane %v3619_v34, 5  ;;  %v3642_v0 = vrot.slane %v3640_v36, 4  ;;  %v6729_v1 = vld [vmem:[%s6829_s25 + $0x5c] sm:$0x1] }
  0xc0   : > { %v1269_v59 = vrot.slane %v6729_v1, 5  ;;  %v6730_v34 = vld [vmem:[%s6829_s25 + $0x68] sm:$0x1]  ;;  %v5454_v36 = vrot.slane %v1173_v20, 9  ;;  %v5776_v1 = vld [vmem:[%s6829_s25 + $0x30] sm:$0xf]  ;;  %v9082_v20 = vcombine.low %v7265_v52, %v7270_v15  ;;  %v7635_v52 = vsel %vm7116_vm7, %v5453_v11, %v1273_v37 }
  0xc1   : > { %v1268_v10 = vrot.slane %v1266_v39, 4  ;;  %v1276_v18 = vrot.slane %v6730_v34, 5  ;;  %v3622_v41 = vor.u32 %v3621_v49, %v3618_v4  ;;  %v3646_v24 = vor.u32 %v3645_v29, %v3642_v0  ;;  %v6683_v29 = vld [vmem:[%s6829_s25 + $0x78] sm:$0xff]  }
  0xc2   : > { %v7622_v50 = vsel %vm7116_vm7, %v1261_v55, %v1262_v54  ;;  %v7626_v4 = vsel %vm7116_vm7, %v5452_v62, %v1266_v39  ;;  %v3637_v55 = vrot.slane %v3635_v42, 5  ;;  %v1174_v54 = vld [vmem:[%s6829_s25 + $0x78] sm:$0xe]  ;;  %v7644_v39 = vld [vmem:[%s6829_s25 + $0x34] sm:$0xf]  ;;  %v6682_v62 = vld [vmem:[%s6829_s25 + $0x6c] sm:$0xff]   ;;  %v7654_v42 = vsel %vm7116_vm7, %v1282_v48, %v1283_v47 }
  0xc3   : > { %v7639_v49 = vsel %vm7116_vm7, %v1275_v40, %v1276_v18  ;;  %9083 = vst [vmem:[#allocation22_spill] sm:$0xff] %v7644_v39  ;;  %v3623_v0 = vrot.slane %v3622_v41, 4  ;;  %v3667_v37 = vshll.u32 %v5776_v1, 16  ;;  %v3647_v11 = vrot.slane %v3646_v24, 4  ;;  %v7670_v24 = vld [vmem:[%s6829_s25 + $0x38] sm:$0x1] }
  0xc4   : > { %v5455_v34 = vrot.slane %v1174_v54, 9  ;;  %v3673_v18 = vshll.u32 %v7644_v39, 16  ;;  %v3677_v41 = vshrl.u32 %v7644_v39, 16  ;;  %9084 = vst [vmem:[#allocation23_spill] sm:$0xff] %v7670_v24  ;;  %v1785_v54 = vsel %vm707_vm0, %v7402_v33, 0 }
  0xc5   : > { %6289 = vmatmul.mubr.msk.bf16.gmra.mrb[8].mxu0 %vm658_vm4, %v6678_v8  ;;  %v3659_v8 = vshll.u32 %v5775_v43, 16  ;;  %v3656_v43 = vor.u32 %v3655_v60, %v7602_v56  ;;  %v3633_v60 = vrot.slane %v3632_v22, 4  ;;  %v3628_v48 = vsel %vm6847_vm3, %v3623_v0, %v7596_v28  ;;  %v6733_v22 = vld [vmem:[%s6829_s25 + $0x88] sm:$0xf] }
  0xc6   : > { %6135 = vmatmul.mubr.msk.bf16.gmra.mrb[24].mxu1 %vm658_vm4, %v9081_v46  ;;  %6292 = vmatprep.mubr.msk.bf16.mxu0 %vm658_vm4, %v6680_v21  ;;  %v7630_v21 = vsel %vm7116_vm7, %v1268_v10, %v1269_v59  ;;  %v7649_v59 = vsel %vm7116_vm7, %v5454_v36, %v1280_v32  ;;  %v3664_v10 = vshrl.u32 %v5776_v1, 16  ;;  %v6732_v46 = vld [vmem:[%s6829_s25 + $0x80] sm:$0x1]  ;;  %v3669_v1 = vrot.slane %v3667_v37, 5 }
  0xc7   : > { %6138 = vmatprep.mubr.msk.bf16.mxu1 %vm658_vm4, %v9082_v20  ;;  %v3661_v3 = vrot.slane %v3659_v8, 5  ;;  %v3657_v40 = vrot.slane %v3656_v43, 4  ;;  %v1290_v47 = vrot.slane %v6732_v46, 5  ;;  %v5779_v20 = vld [vmem:[%s6829_s25 + $0x3c] sm:$0xf]  ;;  %v9085_v43 = vcombine.low %v7291_v16, %v7296_v19  ;;  %v6685_v46 = vld [vmem:[%s6829_s25 + $0x90] sm:$0xff]  }
  0xc8   : > { %v3666_v8 = vrot.slane %v3664_v10, 4  ;;  %v3638_v28 = vsel %vm6847_vm3, %v3633_v60, %v3637_v55  ;;  %v3652_v0 = vsel %vm6847_vm3, %v3647_v11, %v7602_v56  ;;  %v7688_v16 = vld [vmem:[%s6829_s25 + $0x40] sm:$0xf]  ;;  %v9087_v19 = vcombine.low %v7500_v35, %v7515_v63  ;;  %v7704_v56 = vld [vmem:[%s6829_s25 + $0x4c] sm:$0xf] }
  0xc9   : > { %9086 = vst [vmem:[#allocation24_spill] sm:$0xff] %v7688_v16  ;;  %v3662_v33 = vsel %vm6847_vm3, %v3657_v40, %v3661_v3  ;;  %v7698_v55 = vsel %vm7116_vm7, %v5455_v34, %v1287_v53  ;;  %v7700_v10 = vrot.slane %v3673_v18, 5  ;;  %v3679_v37 = vrot.slane %v3677_v41, 4  ;;  %9088 = vst [vmem:[#allocation25_spill] sm:$0xff] %v7704_v56  ;;  %v1175_v63 = vld [vmem:[%s6829_s25 + $0x84] sm:$0xe] }
  0xca   : > { %v7708_v60 = vsel %vm7116_vm7, %v1289_v31, %v1290_v47  ;;  %v3683_v35 = vshll.u32 %v7670_v24, 16  ;;  %v3688_v11 = vshrl.u32 %v5779_v20, 16  ;;  %v3691_v3 = vshll.u32 %v5779_v20, 16  ;;  %v6684_v40 = vld [vmem:[%s6829_s25 + $0x84] sm:$0xff]  }
  0xcb   : > { %v7713_v53 = vcombine.low %v3628_v48, %v3638_v28  ;;  %v3670_v34 = vor.u32 %v3669_v1, %v3666_v8  ;;  %v3697_v18 = vshll.u32 %v7688_v16, 16  ;;  %v3701_v41 = vshrl.u32 %v7688_v16, 16  ;;  %v5785_v28 = vld [vmem:[%s6829_s25 + $0x54] sm:$0xf]  ;;  %v1177_v16 = vld [vmem:[%s6829_s25 + $0x9c] sm:$0xe] }
  0xcc   : > { %v3721_v47 = vshll.u32 %v7704_v56, 16  ;;  %v7720_v20 = vcombine.low %v3652_v0, %v3662_v33  ;;  %v3680_v8 = vor.u32 %v3679_v37, %v7700_v10  ;;  %v5456_v1 = vrot.slane %v1175_v63, 9  ;;  %v7736_v33 = vld [vmem:[%s6829_s25 + $0x8c] sm:$0x1]  ;;  %v7740_v37 = vld [vmem:[%s6829_s25 + $0x44] sm:$0x1] }
  0xcd   : > { %6293 = vmatmul.mubr.msk.bf16.gmra.mrb[12].mxu0 %vm658_vm4, %v6682_v62  ;;  %v7726_v62 = vrot.slane %v3683_v35, 5  ;;  %v3690_v36 = vrot.slane %v3688_v11, 4  ;;  %v3693_v32 = vrot.slane %v3691_v3, 5  ;;  %v7733_v0 = vrot.slane %v3670_v34, 4  ;;  %9090 = vst [vmem:[#allocation27_spill] sm:$0xff] %v7740_v37 }
  0xce   : > { %6139 = vmatmul.mubr.msk.bf16.gmra.mrb[28].mxu1 %vm658_vm4, %v9085_v43  ;;  %6296 = vmatprep.mubr.msk.bf16.mxu0 %vm658_vm4, %v6683_v29  ;;  %v5782_v29 = vld [vmem:[%s6829_s25 + $0x48] sm:$0xf]  ;;  %v7742_v63 = vrot.slane %v3697_v18, 5  ;;  %v3703_v35 = vrot.slane %v3701_v41, 4  ;;  %v7750_v11 = vld [vmem:[%s6829_s25 + $0x50] sm:$0x1]  ;;  %v9093_v18 = vcombine.low %v7522_v7, %v7526_v23 }
  0xcf   : > { %6144 = vmatprep.mubr.msk.bf16.mxu1 %vm658_vm4, %v9087_v19  ;;  %v3712_v43 = vshrl.u32 %v5782_v29, 16  ;;  %v3715_v31 = vshll.u32 %v5782_v29, 16  ;;  %v3725_v19 = vshrl.u32 %v7704_v56, 16  ;;  %v1294_v29 = vrot.slane %v6733_v22, 5  ;;  %9092 = vst [vmem:[#allocation28_spill] sm:$0xff] %v7750_v11 }
  0xd0   : > { %v9091_v22 = vcombine.low %v7504_v51, %v7508_v6  ;;  %v7752_v34 = vrot.slane %v3721_v47, 5  ;;  %v3736_v51 = vshrl.u32 %v5785_v28, 16  ;;  %v3739_v6 = vshll.u32 %v5785_v28, 16  ;;  %v6686_v47 = vld [vmem:[%s6829_s25 + $0x9c] sm:$0xff]  }
  0xd1   : > { %v3714_v3 = vrot.slane %v3712_v43, 4  ;;  %v3727_v48 = vrot.slane %v3725_v19, 4  ;;  %v3745_v41 = vshll.u32 %v7730_v5, 16  ;;  %v7760_v43 = vrot.slane %v3680_v8, 4  ;;  %v1176_v8 = vld [vmem:[%s6829_s25 + $0x90] sm:$0xe] }
  0xd2   : > { %v3694_v7 = vor.u32 %v3693_v32, %v3690_v36  ;;  %v3707_v23 = vshll.u32 %v7740_v37, 16  ;;  %v1296_v19 = vrot.slane %v1294_v29, 4  ;;  %v3704_v28 = vor.u32 %v3703_v35, %v7742_v63  ;;  %v6687_v32 = vld [vmem:[%s6829_s25 + $0xa8] sm:$0xff]   ;;  %v7788_v56 = vld [vmem:[%s6829_s25 + $0x5c] sm:$0x1] }
  0xd3   : > { %v3676_v36 = vsel %vm6847_vm3, %v7733_v0, %v7700_v10  ;;  %v3738_v35 = vrot.slane %v3736_v51, 4  ;;  %v3741_v24 = vrot.slane %v3739_v6, 5  ;;  %v7784_v39 = vrot.slane %v3745_v41, 5  ;;  %v5788_v41 = vld [vmem:[%s6829_s25 + $0x60] sm:$0xf] }
  0xd4   : > { %v3695_v2 = vrot.slane %v3694_v7, 4  ;;  %v3709_v44 = vrot.slane %v3707_v23, 5  ;;  %v5457_v45 = vrot.slane %v1176_v8, 9  ;;  %v3705_v10 = vrot.slane %v3704_v28, 4 }
  0xd5   : > { %6297 = vmatmul.mubr.msk.bf16.gmra.mrb[16].mxu0 %vm658_vm4, %v6684_v40  ;;  %v3717_v40 = vrot.slane %v3715_v31, 5  ;;  %v7764_v31 = vsel %vm7116_vm7, %v5456_v1, %v1294_v29  ;;  %v3731_v1 = vshll.u32 %v7750_v11, 16  ;;  %v1308_v29 = vrot.slane %v7241_v58, 5 }
  0xd6   : > { %6145 = vmatmul.mubr.msk.bf16.vlgmr.msra.gmra.mrb[0].mxu1 %vm658_vm4, %v9091_v22  ;;  %6300 = vmatprep.mubr.msk.bf16.mxu0 %vm658_vm4, %v6685_v46  ;;  %v3749_v46 = vshrl.u32 %v7730_v5, 16  ;;  %v6736_v22 = vld [vmem:[%s6829_s25 + $0x94] sm:$0xf]  ;;  %v6737_v5 = vld [vmem:[%s6829_s25 + $0x98] sm:$0x1]  ;;  %v9094_v58 = vcombine.low %v7537_v27, %v7541_v26  ;;  %v1311_v6 = vrot.slane %v7249_v17, 5  ;;  %v3686_v27 = vsel %vm6847_vm3, %v7760_v43, %v7726_v62 }
  0xd7   : > { %6148 = vmatprep.mubr.msk.bf16.mxu1 %vm658_vm4, %v9093_v18  ;;  %6177 = vmatpush3.bf16.msra.mxu1 %v1785_v54  ;;  %v6735_v54 = vld [vmem:[%s9013_s1 + $0x10] sm:$0xf]  ;;  %v1301_v18 = vrot.slane %v6736_v22, 5  ;;  %v3718_v37 = vor.u32 %v3717_v40, %v3714_v3  ;;  %v1304_v11 = vrot.slane %v6737_v5, 5  ;;  %v3733_v0 = vrot.slane %v3731_v1, 5  ;;  %v6688_v43 = vld [vmem:[%s6829_s25 + $0xb4] sm:$0xff]  }
  0xd8   : > { %6643 = vmatprep.subr.msk.bf16.mxu1 %vm707_vm0, %v6735_v54  ;;  %v3728_v54 = vor.u32 %v3727_v48, %v7752_v34  ;;  %v3751_v22 = vrot.slane %v3749_v46, 4  ;;  %v5458_v3 = vrot.slane %v1177_v16, 9  ;;  %v1310_v5 = vrot.slane %v1308_v29, 4  ;;  %v1178_v62 = vld [vmem:[%s6829_s25 + $0xa8] sm:$0xe] }
  0xd9   : > { %v1303_v48 = vrot.slane %v1301_v18, 4  ;;  %v3719_v40 = vrot.slane %v3718_v37, 4  ;;  %v9095_v46 = vcombine.low %v7558_v38, %v7562_v9  ;;  %v3742_v26 = vor.u32 %v3741_v24, %v3738_v35 }
  0xda   : > { %v3729_v51 = vrot.slane %v3728_v54, 4  ;;  %v3752_v16 = vor.u32 %v3751_v22, %v7784_v39  ;;  %v3755_v37 = vshll.u32 %v7788_v56, 16  ;;  %v9096_v7 = vrot.slane %v7736_v33, 5 }
  0xdb   : > { %v3700_v38 = vsel %vm6847_vm3, %v3695_v2, %v7742_v63  ;;  %v7819_v9 = vsel %vm7116_vm7, %v5457_v45, %v1301_v18  ;;  %v1315_v24 = vrot.slane %v7270_v15, 5  ;;  %v3710_v23 = vsel %vm6847_vm3, %v3705_v10, %v3709_v44  ;;  %v6689_v2 = vld [vmem:[%s6829_s25 + $0xc0] sm:$0xff]   ;;  %v7862_v10 = vld [vmem:[%s6829_s25 + $0x68] sm:$0x1] }
  0xdc   : > { %v7812_v17 = vsel %vm7116_vm7, %v1296_v19, %v9096_v7  ;;  %v7828_v33 = vsel %vm7116_vm7, %v1303_v48, %v1304_v11  ;;  %v3760_v19 = vshrl.u32 %v5788_v41, 16  ;;  %v3763_v28 = vshll.u32 %v5788_v41, 16  ;;  %9098 = vst [vmem:[#allocation30_spill] sm:$0xff] %v7862_v10  ;;  %v5797_v7 = vld [vmem:[%s6829_s25 + $0x84] sm:$0xf] }
  0xdd   : > { %6301 = vmatmul.mubr.msk.bf16.gmra.mrb[20].mxu0 %vm658_vm4, %v6686_v47  ;;  %v7831_v47 = vld [vmem:[%s6829_s25 + $0x64] sm:$0xf]  ;;  %v3724_v45 = vsel %vm6847_vm3, %v3719_v40, %v7752_v34  ;;  %v3734_v15 = vsel %vm6847_vm3, %v3729_v51, %v3733_v0  ;;  %v7841_v44 = vsel %vm7116_vm7, %v5458_v3, %v1308_v29  ;;  %v7845_v63 = vsel %vm7116_vm7, %v1310_v5, %v1311_v6  ;;  %v7884_v51 = vld [vmem:[%s6829_s25 + $0xb4] sm:$0xe]  ;;  %v5800_v5 = vld [vmem:[%s6829_s25 + $0x90] sm:$0xf] }
  0xde   : > { %6149 = vmatmul.mubr.msk.bf16.gmra.mrb[4].mxu1 %vm658_vm4, %v9094_v58  ;;  %6304 = vmatprep.mubr.msk.bf16.mxu0 %vm658_vm4, %v6687_v32  ;;  %9097 = vst [vmem:[#allocation29_spill] sm:$0xff] %v7831_v47  ;;  %v7847_v11 = vrot.slane %v3742_v26, 4  ;;  %v7849_v8 = vrot.slane %v3752_v16, 4  ;;  %v7851_v18 = vrot.slane %v3755_v37, 5  ;;  %v5459_v1 = vrot.slane %v1178_v62, 9 }
  0xdf   : > { %6152 = vmatprep.mubr.msk.bf16.mxu1 %vm658_vm4, %v9095_v46  ;;  %v1317_v32 = vrot.slane %v1315_v24, 4  ;;  %v1318_v34 = vrot.slane %v7276_v25, 5  ;;  %v3769_v54 = vshll.u32 %v7831_v47, 16  ;;  %v3773_v29 = vshrl.u32 %v7831_v47, 16  ;;  %v7910_v46 = vld [vmem:[%s6829_s25 + $0x7c] sm:$0xf] }
  0xe0   : > { %v7857_v35 = vcombine.low %v3676_v36, %v3686_v27  ;;  %v7864_v48 = vrot.slane %v3760_v19, 4  ;;  %v7866_v0 = vrot.slane %v3763_v28, 5  ;;  %v9099_v25 = vcombine.low %v7573_v12, %v7590_v13  ;;  %v5791_v12 = vld [vmem:[%s6829_s25 + $0x6c] sm:$0xf]  ;;  %9102 = vst [vmem:[#allocation32_spill] sm:$0xff] %v7910_v46 }
  0xe1   : > { %v7875_v36 = vsel %vm707_vm0, %v7493_v57, 0  ;;  %v7877_v3 = vcombine.low %v3700_v38, %v3710_v23  ;;  %v7881_v40 = vcombine.low %v3724_v45, %v3734_v15  ;;  %v9100_v13 = vcombine.low %v7584_v61, %v7622_v50  ;;  %v7906_v61 = vld [vmem:[%s6829_s25 + $0x70] sm:$0xf]  ;;  %v5794_v50 = vld [vmem:[%s6829_s25 + $0x78] sm:$0xf] }
  0xe2   : > { %v7903_v41 = vsel %vm7116_vm7, %v5459_v1, %v1315_v24  ;;  %9101 = vst [vmem:[#allocation31_spill] sm:$0xff] %v7906_v61  ;;  %v7914_v27 = vsel %vm7116_vm7, %v1317_v32, %v1318_v34  ;;  %v7916_v26 = vrot.slane %v3769_v54, 5  ;;  %v7918_v16 = vrot.slane %v3773_v29, 4  ;;  %v6690_v38 = vld [vmem:[%s6829_s25 + $0xcc] sm:$0xff]   ;;  %v7927_v19 = vld [vmem:[%s6829_s25 + $0x88] sm:$0xf] }
  0xe3   : > { %v3779_v37 = vshll.u32 %v7862_v10, 16  ;;  %v3766_v62 = vor.u32 %v7866_v0, %v7864_v48  ;;  %v3787_v23 = vshll.u32 %v5791_v12, 16  ;;  %9103 = vst [vmem:[#allocation33_spill] sm:$0xff] %v7927_v19  ;;  %v3793_v28 = vshll.u32 %v7906_v61, 16  ;;  %v7936_v48 = vld [vmem:[%s6829_s25 + $0xb8] sm:$0xf] }
  0xe4   : > { %v3808_v45 = vshrl.u32 %v5794_v50, 16  ;;  %v3811_v15 = vshll.u32 %v5794_v50, 16  ;;  %v3817_v1 = vshll.u32 %v7910_v46, 16  ;;  %v3821_v32 = vshrl.u32 %v7910_v46, 16  ;;  %v7945_v50 = vld [vmem:[%s6829_s25 + $0xbc] sm:$0x1] }
  0xe5   : > { %6305 = vmatmul.mubr.msk.bf16.gmra.mrb[24].mxu0 %vm658_vm4, %v6688_v43  ;;  %v3784_v43 = vshrl.u32 %v5791_v12, 16  ;;  %v3832_v34 = vshrl.u32 %v5797_v7, 16  ;;  %v3835_v54 = vshll.u32 %v5797_v7, 16  ;;  %v3776_v29 = vor.u32 %v7918_v16, %v7916_v26  ;;  %v7949_v57 = vld [vmem:[%s6829_s25 + $0x74] sm:$0x1] }
  0xe6   : > { %6153 = vmatmul.mubr.msk.bf16.gmra.mrb[8].mxu1 %vm658_vm4, %v9099_v25  ;;  %6308 = vmatprep.mubr.msk.bf16.mxu0 %vm658_vm4, %v6689_v2  ;;  %v3797_v2 = vshrl.u32 %v7906_v61, 16  ;;  %v3841_v25 = vshll.u32 %v7927_v19, 16  ;;  %v3845_v12 = vshrl.u32 %v7927_v19, 16  ;;  %v3789_v58 = vrot.slane %v3787_v23, 5  ;;  %v7961_v7 = vld [vmem:[%s6829_s25 + $0x94] sm:$0xf] }
  0xe7   : > { %6156 = vmatprep.mubr.msk.bf16.mxu1 %vm658_vm4, %v9100_v13  ;;  %v7942_v13 = vrot.slane %v3779_v37, 5  ;;  %v3786_v16 = vrot.slane %v3784_v43, 4  ;;  %v9104_v6 = vcombine.low %v7626_v4, %v7630_v21  ;;  %v7958_v37 = vrot.slane %v3793_v28, 5  ;;  %9105 = vst [vmem:[#allocation34_spill] sm:$0xff] %v7961_v7  ;;  %v7968_v23 = vld [vmem:[%s6829_s25 + $0x80] sm:$0x1] }
  0xe8   : > { %v3810_v22 = vrot.slane %v3808_v45, 4  ;;  %v3813_v24 = vrot.slane %v3811_v15, 5  ;;  %v9106_v43 = vcombine.low %v7635_v52, %v7639_v49  ;;  %v7970_v4 = vrot.slane %v3817_v1, 5  ;;  %v7973_v28 = vld [vmem:[%s6829_s25 + $0x8c] sm:$0x1] }
  0xe9   : > { %v3823_v21 = vrot.slane %v3821_v32, 4  ;;  %v3847_v45 = vrot.slane %v3845_v12, 4  ;;  %v3856_v15 = vshrl.u32 %v5800_v5, 16  ;;  %v3859_v0 = vshll.u32 %v5800_v5, 16  ;;  %v5803_v32 = vld [vmem:[%s6829_s25 + $0x9c] sm:$0xf] }
  0xea   : > { %v7977_v19 = vrot.slane %v3766_v62, 4  ;;  %v9107_v52 = vrot.slane %v7936_v48, 5  ;;  %v3869_v1 = vshrl.u32 %v7961_v7, 16  ;;  %v3827_v12 = vshll.u32 %v7968_v23, 16 }
  0xeb   : > { %v3814_v46 = vor.u32 %v3813_v24, %v3810_v22  ;;  %v3824_v5 = vor.u32 %v3823_v21, %v7970_v4  ;;  %v3851_v61 = vshll.u32 %v7973_v28, 16  ;;  %v3858_v10 = vrot.slane %v3856_v15, 4  ;;  %v8003_v15 = vld [vmem:[%s6829_s25 + $0xa0] sm:$0xf] }
  0xec   : > { %v1324_v49 = vrot.slane %v9107_v52, 4  ;;  %v3880_v47 = vshrl.u32 %v5803_v32, 16  ;;  %v3871_v22 = vrot.slane %v3869_v1, 4  ;;  %v3883_v24 = vshll.u32 %v5803_v32, 16 }
  0xed   : > { %6309 = vmatmul.mubr.msk.bf16.gmra.mrb[28].mxu0 %vm658_vm4, %v6690_v38  ;;  %v3799_v38 = vrot.slane %v3797_v2, 4  ;;  %v7975_v2 = vrot.slane %v3841_v25, 5  ;;  %v3803_v25 = vshll.u32 %v7949_v57, 16  ;;  %v9108_v21 = vcombine.low %v7649_v59, %v7654_v42 }
  0xee   : > { %6157 = vmatmul.mubr.msk.bf16.gmra.mrb[12].mxu1 %vm658_vm4, %v9104_v6  ;;  %6314 = vmatprep.mubr.msk.bf16.mxu0 %vm658_vm4, %v7713_v53  ;;  %v3834_v6 = vrot.slane %v3832_v34, 4  ;;  %v3837_v53 = vrot.slane %v3835_v54, 5  ;;  %v3790_v34 = vor.u32 %v3789_v58, %v3786_v16  ;;  %v3777_v58 = vrot.slane %v3776_v29, 4  ;;  %v7993_v16 = vld [vmem:[%s6829_s25 + $0x98] sm:$0x1] }
  0xef   : > { %6160 = vmatprep.mubr.msk.bf16.mxu1 %vm658_vm4, %v9106_v43  ;;  %v3865_v43 = vshll.u32 %v7961_v7, 16  ;;  %v3800_v54 = vor.u32 %v3799_v38, %v7958_v37  ;;  %v3848_v52 = vor.u32 %v3847_v45, %v7975_v2  ;;  %v3861_v7 = vrot.slane %v3859_v0, 5 }
  0xf0   : > { %v3838_v62 = vor.u32 %v3837_v53, %v3834_v6  ;;  %v3791_v6 = vrot.slane %v3790_v34, 4  ;;  %v3805_v53 = vrot.slane %v3803_v25, 5  ;;  %v3829_v45 = vrot.slane %v3827_v12, 5 }
  0xf1   : > { %v7995_v38 = vrot.slane %v3865_v43, 5  ;;  %v3801_v0 = vrot.slane %v3800_v54, 4  ;;  %v3815_v29 = vrot.slane %v3814_v46, 4  ;;  %v3825_v59 = vrot.slane %v3824_v5, 4 }
  0xf2   : > { %v3839_v42 = vrot.slane %v3838_v62, 4  ;;  %v3853_v43 = vrot.slane %v3851_v61, 5  ;;  %v3849_v1 = vrot.slane %v3848_v52, 4  ;;  %v3875_v32 = vshll.u32 %v7993_v16, 16  ;;  %v8056_v52 = vld [vmem:[%s6829_s25 + $0xac] sm:$0xf] }
  0xf3   : > { %v3882_v34 = vrot.slane %v3880_v47, 4  ;;  %v3872_v54 = vor.u32 %v3871_v22, %v7995_v38  ;;  %v3885_v25 = vrot.slane %v3883_v24, 5  ;;  %v9110_v61 = vrot.slane %v7936_v48, 5 }
  0xf4   : > { %v9111_v47 = vrot.slane %v7884_v51, 9  ;;  %v3820_v51 = vsel %vm6847_vm3, %v3815_v29, %v7970_v4  ;;  %v3830_v48 = vsel %vm6847_vm3, %v3825_v59, %v3829_v45  ;;  %v3877_v62 = vrot.slane %v3875_v32, 5 }
  0xf5   : > { %6315 = vmatmul.mubr.msk.bf16.vlgmr.msra.gmra.mrb[0].mxu0 %vm658_vm4, %v7720_v20  ;;  %v9109_v20 = vcombine.low %v7698_v55, %v7708_v60  ;;  %v3889_v55 = vshll.u32 %v8003_v15, 16  ;;  %v3893_v60 = vshrl.u32 %v8003_v15, 16  ;;  %v3873_v4 = vrot.slane %v3872_v54, 4 }
  0xf6   : > { %6161 = vmatmul.mubr.msk.bf16.gmra.mrb[16].mxu1 %vm658_vm4, %v9108_v21  ;;  %6347 = vmatpush3.bf16.msra.mxu0 %v7875_v36  ;;  %v3862_v36 = vor.u32 %v3861_v7, %v3858_v10  ;;  %v3782_v10 = vsel %vm6847_vm3, %v3777_v58, %v7942_v13  ;;  %v8028_v46 = vsel %vm7116_vm7, %v9111_v47, %v9110_v61  ;;  %v9112_v7 = vrot.slane %v7945_v50, 5  ;;  %v8047_v13 = vld [vmem:[%s6829_s25 + $0xa4] sm:$0x1]  ;;  %v5806_v50 = vld [vmem:[%s6829_s25 + $0xa8] sm:$0xf] }
  0xf7   : > { %6164 = vmatprep.mubr.msk.bf16.mxu1 %vm658_vm4, %v9109_v20  ;;  %6318 = vmatprep.mubr.msk.bf16.mxu0 %vm658_vm4, %v7857_v35  ;;  %v3772_v35 = vsel %vm6847_vm3, %v7977_v19, %v7916_v26  ;;  %v3796_v26 = vsel %vm6847_vm3, %v3791_v6, %v7958_v37  ;;  %v3806_v19 = vsel %vm6847_vm3, %v3801_v0, %v3805_v53  ;;  %v8060_v22 = vrot.slane %v3889_v55, 5  ;;  %v5855_v53 = vld [vmem:[%s6829_s25 + $0x48] sm:$0xe] }
  0xf8   : > { %v8034_v12 = vsel %vm7116_vm7, %v1324_v49, %v9112_v7  ;;  %v3844_v49 = vsel %vm6847_vm3, %v3839_v42, %v7975_v2  ;;  %v3854_v37 = vsel %vm6847_vm3, %v3849_v1, %v3853_v43  ;;  %v3863_v5 = vrot.slane %v3862_v36, 4  ;;  %v5856_v43 = vld [vmem:[%s6829_s25 + $0x54] sm:$0xe]  ;;  %v9119_v7 = vld [vmem:[#allocation26_spill] sm:$0xff] }
  0xf9   : > { %v3886_v58 = vor.u32 %v3885_v25, %v3882_v34  ;;  %v3895_v24 = vrot.slane %v3893_v60, 4  ;;  %v9113_v21 = vcombine.low %v7764_v31, %v7812_v17  ;;  %v9114_v2 = vsel %vm6847_vm3, %v7849_v8, %v7851_v18  ;;  %v9117_v25 = vld [vmem:[#allocation25_spill] sm:$0xff]  ;;  %v9118_v60 = vld [vmem:[#allocation28_spill] sm:$0xff] }
  0xfa   : > { %v3899_v0 = vshll.u32 %v8047_v13, 16  ;;  %v3904_v31 = vshrl.u32 %v5806_v50, 16  ;;  %v3907_v17 = vshll.u32 %v5806_v50, 16  ;;  %v5476_v8 = vcombine.low %v7903_v41, %v7914_v27 }
  0xfb   : > { %v5825_v18 = vcombine.low %v3772_v35, %v3782_v10  ;;  %v5477_v45 = vcombine.low %v8028_v46, %v8034_v12  ;;  %v8091_v20 = vcombine.low %v3820_v51, %v3830_v48  ;;  %v8093_v29 = vcombine.low %v3844_v49, %v3854_v37  ;;  %v5857_v10 = vld [vmem:[%s6829_s25 + $0x60] sm:$0xe]  ;;  %v5858_v51 = vld [vmem:[%s6829_s25 + $0x6c] sm:$0xe] }
  0xfc   : > { %v3878_v41 = vsel %vm6847_vm3, %v3873_v4, %v3877_v62  ;;  %v3887_v27 = vrot.slane %v3886_v58, 4  ;;  %v3896_v59 = vor.u32 %v3895_v24, %v8060_v22  ;;  %v5871_v42 = vrot.slane %v5855_v53, 9 }
  0xfd   : > { %6319 = vmatmul.mubr.msk.bf16.gmra.mrb[4].mxu0 %vm658_vm4, %v7877_v3  ;;  %v9115_v3 = vsel %vm6847_vm3, %v7847_v11, %v7784_v39  ;;  %v3913_v39 = vshll.u32 %v8056_v52, 16  ;;  %v8089_v11 = vcombine.low %v3796_v26, %v3806_v19  ;;  %v3901_v1 = vrot.slane %v3899_v0, 5 }
  0xfe   : > { %6165 = vmatmul.mubr.msk.bf16.gmra.mrb[20].mxu1 %vm658_vm4, %v9113_v21  ;;  %6322 = vmatprep.mubr.msk.bf16.mxu0 %vm658_vm4, %v7881_v40  ;;  %v5824_v6 = vcombine.low %v9115_v3, %v9114_v2  ;;  %v9116_v40 = vcombine.low %v7819_v9, %v7828_v33  ;;  %v3868_v9 = vsel %vm6847_vm3, %v3863_v5, %v7995_v38  ;;  %v8099_v33 = vld [vmem:[%s6829_s25 + $0xb0] sm:$0x1]  ;;  %v3906_v36 = vrot.slane %v3904_v31, 4  ;;  %v9122_v21 = vld [vmem:[#allocation30_spill] sm:$0xff]  ;;  %v9123_v31 = vld [vmem:[#allocation31_spill] sm:$0xff] }
  0xff   : > { %v3909_v32 = vrot.slane %v3907_v17, 5  ;;  %v3917_v34 = vshrl.u32 %v8056_v52, 16  ;;  %v8106_v54 = vrot.slane %v3913_v39, 5  ;;  %v3923_v38 = vshll.u32 %v8099_v33, 16 }
 0x100   : > { %6168 = vmatprep.mubr.msk.bf16.mxu1 %vm658_vm4, %v9116_v40  ;;  %v4387_v55 = vrot.slane %v9117_v25, 5  ;;  %v4390_v35 = vrot.slane %v9118_v60, 5  ;;  %v8112_v61 = vcombine.low %v3868_v9, %v3878_v41  ;;  %v5872_v47 = vrot.slane %v5856_v43, 9  ;;  %v6691_v43 = vld [vmem:[%s6829_s25 + $0xc] sm:$0xff]   ;;  %v5812_v25 = vld [vmem:[%s6829_s25 + $0xc0] sm:$0xf] }
 0x101   : > { %v4394_v26 = vrot.slane %v9119_v7, 5  ;;  %v4397_v19 = vrot.slane %v7788_v56, 5  ;;  %v3892_v48 = vsel %vm6847_vm3, %v3887_v27, %v8060_v22  ;;  %v3897_v50 = vrot.slane %v3896_v59, 4  ;;  %v5809_v22 = vld [vmem:[%s6829_s25 + $0xb4] sm:$0xf] }
 0x102   : > { %v8123_v49 = vsel %vm7116_vm7, %v5871_v42, %v4387_v55  ;;  %v4389_v37 = vrot.slane %v4387_v55, 4  ;;  %v9120_v5 = vcombine.low %v7841_v44, %v7845_v63  ;;  %v3919_v56 = vrot.slane %v3917_v34, 4  ;;  %v9121_v44 = vld [vmem:[#allocation29_spill] sm:$0xff] }
 0x103   : > { %v8132_v62 = vsel %vm7116_vm7, %v5872_v47, %v4394_v26  ;;  %v4396_v4 = vrot.slane %v4394_v26, 4  ;;  %v5873_v58 = vrot.slane %v5857_v10, 9  ;;  %v4401_v63 = vrot.slane %v9121_v44, 5  ;;  %v5859_v42 = vld [vmem:[%s6829_s25 + $0x78] sm:$0xe] }
 0x104   : > { %v8138_v24 = vsel %vm7116_vm7, %v4389_v37, %v4390_v35  ;;  %v4404_v2 = vrot.slane %v9122_v21, 5  ;;  %v5874_v3 = vrot.slane %v5858_v51, 9  ;;  %v4408_v17 = vrot.slane %v9123_v31, 5  ;;  %v8178_v35 = vld [vmem:[%s6829_s25 + $0xc4] sm:$0xf] }
 0x105   : > { %6323 = vmatmul.mubr.msk.bf16.gmra.mrb[8].mxu0 %vm658_vm4, %v5824_v6  ;;  %v5888_v6 = vcombine.low %v8123_v49, %v8138_v24  ;;  %v8146_v0 = vsel %vm7116_vm7, %v4396_v4, %v4397_v19  ;;  %v4411_v53 = vrot.slane %v7949_v57, 5  ;;  %v3910_v40 = vor.u32 %v3909_v32, %v3906_v36  ;;  %v5860_v51 = vld [vmem:[%s6829_s25 + $0x84] sm:$0xe]  ;;  %v5815_v31 = vld [vmem:[%s6829_s25 + $0xcc] sm:$0xf] }
 0x106   : > { %6169 = vmatmul.mubr.msk.bf16.gmra.mrb[24].mxu1 %vm658_vm4, %v9120_v5  ;;  %6326 = vmatprep.mubr.msk.bf16.mxu0 %vm658_vm4, %v5825_v18  ;;  %v5889_v18 = vcombine.low %v8132_v62, %v8146_v0  ;;  %v8157_v39 = vsel %vm7116_vm7, %v5873_v58, %v4401_v63  ;;  %v4403_v9 = vrot.slane %v4401_v63, 4  ;;  %v3902_v41 = vsel %vm6847_vm3, %v3897_v50, %v3901_v1  ;;  %v9124_v5 = vld [vmem:[#allocation32_spill] sm:$0xff]  ;;  %v6749_v0 = vld [vmem:[%s6829_s25 + $0x8c] sm:$0x1] }
 0x107   : > { %6172 = vmatprep.mubr.msk.bf16.mxu1 %vm658_vm4, %v5476_v8  ;;  %v8151_v8 = vld [vmem:[%s6829_s25 + $0xb8] sm:$0xf]  ;;  %v3928_v27 = vshrl.u32 %v5809_v22, 16  ;;  %v8163_v59 = vsel %vm7116_vm7, %v5874_v3, %v4408_v17  ;;  %v4410_v57 = vrot.slane %v4408_v17, 4  ;;  %v3920_v36 = vor.u32 %v3919_v56, %v8106_v54  ;;  %v8203_v56 = vld [vmem:[%s6829_s25 + $0xbc] sm:$0x1] }
 0x108   : > { %v8168_v32 = vrot.slane %v3923_v38, 5  ;;  %v3931_v34 = vshll.u32 %v5809_v22, 16  ;;  %v8173_v55 = vsel %vm7116_vm7, %v4403_v9, %v4404_v2  ;;  %v3937_v1 = vshll.u32 %v8151_v8, 16  ;;  %v9127_v17 = vld [vmem:[#allocation33_spill] sm:$0xff] }
 0x109   : > { %v3941_v60 = vshrl.u32 %v8151_v8, 16  ;;  %v5890_v10 = vcombine.low %v8157_v39, %v8173_v55  ;;  %v8184_v38 = vsel %vm7116_vm7, %v4410_v57, %v4411_v53  ;;  %v8188_v47 = vcombine.low %v3892_v48, %v3902_v41  ;;  %v9134_v55 = vld [vmem:[#allocation19_spill] sm:$0xff] }
 0x10a   : > { %v3911_v7 = vrot.slane %v3910_v40, 4  ;;  %v5891_v26 = vcombine.low %v8163_v59, %v8184_v38  ;;  %v5875_v19 = vrot.slane %v5859_v42, 9  ;;  %v3930_v50 = vrot.slane %v3928_v27, 4  ;;  %v6692_v40 = vld [vmem:[%s6829_s25 + $0x18] sm:$0xff]   ;;  %v8224_v27 = vld [vmem:[%s6829_s25 + $0xd0] sm:$0xf] }
 0x10b   : > { %v3952_v37 = vshrl.u32 %v5812_v25, 16  ;;  %v4418_v48 = vrot.slane %v7968_v23, 5  ;;  %v3955_v4 = vshll.u32 %v5812_v25, 16  ;;  %v3961_v46 = vshll.u32 %v8178_v35, 16 }
 0x10c   : > { %v3965_v12 = vshrl.u32 %v8178_v35, 16  ;;  %v3933_v22 = vrot.slane %v3931_v34, 5  ;;  %v5876_v63 = vrot.slane %v5860_v51, 9  ;;  %v3921_v21 = vrot.slane %v3920_v36, 4 }
 0x10d   : > { %6327 = vmatmul.mubr.msk.bf16.gmra.mrb[12].mxu0 %vm658_vm4, %v8089_v11  ;;  %v4415_v11 = vrot.slane %v9124_v5, 5  ;;  %v8217_v2 = vrot.slane %v3937_v1, 5  ;;  %v3943_v3 = vrot.slane %v3941_v60, 4  ;;  %v4422_v53 = vrot.slane %v9127_v17, 5  ;;  %v5861_v60 = vld [vmem:[%s6829_s25 + $0x90] sm:$0xe] }
 0x10e   : > { %6173 = vmatmul.mubr.msk.bf16.gmra.mrb[28].mxu1 %vm658_vm4, %v5477_v45  ;;  %6330 = vmatprep.mubr.msk.bf16.mxu0 %vm658_vm4, %v8091_v20  ;;  %v9125_v45 = vld [vmem:[#allocation20_spill] sm:$0xff]  ;;  %v9126_v20 = vld [vmem:[#allocation21_spill] sm:$0xff]  ;;  %v3947_v9 = vshll.u32 %v8203_v56, 16  ;;  %v3954_v41 = vrot.slane %v3952_v37, 4  ;;  %v4425_v42 = vrot.slane %v7973_v28, 5  ;;  %v3957_v36 = vrot.slane %v3955_v4, 5 }
 0x10f   : > { %6178 = vmatprep.mubr.msk.bf16.mxu1 %vm658_vm4, %v6691_v43  ;;  %v8211_v58 = vsel %vm6847_vm3, %v9126_v20, %v9125_v45  ;;  %v8215_v23 = vsel %vm7116_vm7, %v5875_v19, %v4415_v11  ;;  %v4417_v44 = vrot.slane %v4415_v11, 4  ;;  %v6693_v43 = vld [vmem:[%s6829_s25 + $0x24] sm:$0xff]   ;;  %v8232_v34 = vrot.slane %v3961_v46, 5 }
 0x110   : > { %v3967_v25 = vrot.slane %v3965_v12, 4  ;;  %v3916_v19 = vsel %vm6847_vm3, %v3911_v7, %v8106_v54  ;;  %v3934_v51 = vor.u32 %v3933_v22, %v3930_v50  ;;  %v8241_v37 = vld [vmem:[%s6829_s25 + $0xc8] sm:$0x1]  ;;  %v8245_v5 = vsel %vm7116_vm7, %v5876_v63, %v4422_v53  ;;  %v9128_v20 = vld [vmem:[#allocation2_spill] sm:$0xff] }
 0x111   : > { %v8228_v57 = vsel %vm7116_vm7, %v4417_v44, %v4418_v48  ;;  %v4424_v28 = vrot.slane %v4422_v53, 4  ;;  %v3926_v11 = vsel %vm6847_vm3, %v3921_v21, %v8168_v32  ;;  %v3944_v48 = vor.u32 %v3943_v3, %v8217_v2  ;;  %v9129_v21 = vld [vmem:[#allocation34_spill] sm:$0xff] }
 0x112   : > { %v5892_v1 = vcombine.low %v8215_v23, %v8228_v57  ;;  %v3976_v4 = vshrl.u32 %v5815_v31, 16  ;;  %v3979_v46 = vshll.u32 %v5815_v31, 16  ;;  %v3985_v54 = vshll.u32 %v8224_v27, 16 }
 0x113   : > { %v3989_v7 = vshrl.u32 %v8224_v27, 16  ;;  %v5877_v50 = vrot.slane %v5861_v60, 9  ;;  %v3958_v32 = vor.u32 %v3957_v36, %v3954_v41  ;;  %v3968_v12 = vor.u32 %v3967_v25, %v8232_v34  ;;  %v6694_v41 = vld [vmem:[%s6829_s25 + $0x30] sm:$0xff]  }
 0x114   : > { %v3971_v45 = vshll.u32 %v8241_v37, 16  ;;  %v5831_v22 = vcombine.low %v3916_v19, %v3926_v11  ;;  %v3935_v44 = vrot.slane %v3934_v51, 4  ;;  %v3949_v63 = vrot.slane %v3947_v9, 5  ;;  %v6695_v9 = vld [vmem:[%s6829_s25 + $0x3c] sm:$0xff]  }
 0x115   : > { %6331 = vmatmul.mubr.msk.bf16.gmra.mrb[16].mxu0 %vm658_vm4, %v8093_v29  ;;  %v8260_v29 = vsel %vm7116_vm7, %v4424_v28, %v4425_v42  ;;  %v4429_v3 = vrot.slane %v9129_v21, 5  ;;  %v3945_v31 = vrot.slane %v3944_v48, 4  ;;  %v3978_v17 = vrot.slane %v3976_v4, 4  ;;  %v8272_v42 = vld [vmem:[%s6829_s25 + $0xd4] sm:$0x1] }
 0x116   : > { %6179 = vmatmul.mubr.msk.bf16.vlgmr.msra.gmra.mrb[0].mxu1 %vm658_vm4, %v6692_v40  ;;  %6334 = vmatprep.mubr.msk.bf16.mxu0 %vm658_vm4, %v8112_v61  ;;  %v5893_v61 = vcombine.low %v8245_v5, %v8260_v29  ;;  %v3981_v53 = vrot.slane %v3979_v46, 5  ;;  %v4432_v40 = vrot.slane %v7993_v16, 5  ;;  %v3991_v36 = vrot.slane %v3989_v7, 4  ;;  %v5862_v11 = vld [vmem:[%s6829_s25 + $0x9c] sm:$0xe] }
 0x117   : > { %6182 = vmatprep.mubr.msk.bf16.mxu1 %vm658_vm4, %v6693_v43  ;;  %6381 = vmatpush3.bf16.msra.mxu1 %v9128_v20  ;;  %v8274_v43 = vrot.slane %v3985_v54, 5  ;;  %v8278_v25 = vsel %vm7116_vm7, %v5877_v50, %v4429_v3  ;;  %v4431_v60 = vrot.slane %v4429_v3, 4  ;;  %v3959_v19 = vrot.slane %v3958_v32, 4  ;;  %v5851_v50 = vld [vmem:[%s6829_s25 + $0x18] sm:$0xe] }
 0x118   : > { %v3969_v51 = vrot.slane %v3968_v12, 4  ;;  %v3973_v28 = vrot.slane %v3971_v45, 5  ;;  %v3940_v16 = vsel %vm6847_vm3, %v3935_v44, %v8217_v2  ;;  %v3950_v4 = vsel %vm6847_vm3, %v3945_v31, %v3949_v63  ;;  %v6696_v31 = vld [vmem:[%s6829_s25 + $0x48] sm:$0xff]  }
 0x119   : > { %v8287_v48 = vsel %vm7116_vm7, %v4431_v60, %v4432_v40  ;;  %v3982_v46 = vor.u32 %v3981_v53, %v3978_v17  ;;  %v3995_v54 = vshll.u32 %v8272_v42, 16  ;;  %v3992_v2 = vor.u32 %v3991_v36, %v8274_v43  ;;  %v6697_v36 = vld [vmem:[%s6829_s25 + $0x54] sm:$0xff]  }
 0x11a   : > { %v5894_v7 = vcombine.low %v8278_v25, %v8287_v48  ;;  %v5878_v32 = vrot.slane %v5862_v11, 9  ;;  %v4439_v12 = vrot.slane %v8047_v13, 5  ;;  %v3964_v45 = vsel %vm6847_vm3, %v3959_v19, %v8232_v34  ;;  %v6756_v25 = vld [vmem:[%s6829_s25 + $0xbc] sm:$0x1] }
 0x11b   : > { %v3974_v20 = vsel %vm6847_vm3, %v3969_v51, %v3973_v28  ;;  %v5832_v13 = vcombine.low %v3940_v16, %v3950_v4  ;;  %v3997_v21 = vrot.slane %v3995_v54, 5  ;;  %v5867_v3 = vrot.slane %v5851_v50, 9 }
 0x11c   : > { %v5833_v17 = vcombine.low %v3964_v45, %v3974_v20  ;;  %v3983_v53 = vrot.slane %v3982_v46, 4  ;;  %v3993_v40 = vrot.slane %v3992_v2, 4  ;;  %v4443_v11 = vrot.slane %v8056_v52, 5  ;;  %v5852_v2 = vld [vmem:[%s6829_s25 + $0x24] sm:$0xe] }
 0x11d   : > { %6335 = vmatmul.mubr.msk.bf16.gmra.mrb[20].mxu0 %vm658_vm4, %v8188_v47  ;;  %v4436_v47 = vrot.slane %v8003_v15, 5  ;;  %v4446_v16 = vrot.slane %v8099_v33, 5  ;;  %v6742_v52 = vld [vmem:[%s6829_s25 + $0x28] sm:$0xf]  ;;  %v5853_v45 = vld [vmem:[%s6829_s25 + $0x30] sm:$0xe] }
 0x11e   : > { %6183 = vmatmul.mubr.msk.bf16.gmra.mrb[4].mxu1 %vm658_vm4, %v6694_v41  ;;  %6338 = vmatprep.mubr.msk.bf16.mxu0 %vm658_vm4, %v5831_v22  ;;  %v6740_v22 = vld [vmem:[%s6829_s25 + $0x1c] sm:$0xf]  ;;  %v5863_v41 = vld [vmem:[%s6829_s25 + $0xa8] sm:$0xe]  ;;  %v3988_v4 = vsel %vm6847_vm3, %v3983_v53, %v8274_v43  ;;  %v3998_v46 = vsel %vm6847_vm3, %v3993_v40, %v3997_v21  ;;  %v4366_v33 = vrot.slane %v6742_v52, 5  ;;  %v6699_v40 = vld [vmem:[%s6829_s25 + $0x6c] sm:$0xff]  }
 0x11f   : > { %6186 = vmatprep.mubr.msk.bf16.mxu1 %vm658_vm4, %v6695_v9  ;;  %v4359_v44 = vrot.slane %v6740_v22, 5  ;;  %v8311_v63 = vsel %vm7116_vm7, %v5878_v32, %v4436_v47  ;;  %v4438_v15 = vrot.slane %v4436_v47, 4  ;;  %v6741_v9 = vld [vmem:[%s6829_s25 + $0x20] sm:$0x1]  ;;  %v5879_v28 = vrot.slane %v5863_v41, 9 }
 0x120   : > { %v4362_v19 = vrot.slane %v6741_v9, 5  ;;  %v9130_v32 = vld [vmem:[#allocation22_spill] sm:$0xff]  ;;  %v5834_v20 = vcombine.low %v3988_v4, %v3998_v46  ;;  %v5868_v22 = vrot.slane %v5852_v2, 9  ;;  %v5869_v41 = vrot.slane %v5853_v45, 9  ;;  %v9132_v4 = vld [vmem:[#allocation24_spill] sm:$0xff] }
 0x121   : > { %v8316_v34 = vsel %vm7116_vm7, %v4438_v15, %v4439_v12  ;;  %v4361_v60 = vrot.slane %v4359_v44, 4  ;;  %v4360_v54 = vsel %vm7116_vm7, %v5867_v3, %v4359_v44  ;;  %v4373_v47 = vrot.slane %v9130_v32, 5  ;;  %v5864_v15 = vld [vmem:[%s6829_s25 + $0xb4] sm:$0xe]  ;;  %v5865_v52 = vld [vmem:[%s6829_s25 + $0xc0] sm:$0xe] }
 0x122   : > { %v5895_v51 = vcombine.low %v8311_v63, %v8316_v34  ;;  %v8343_v43 = vsel %vm7116_vm7, %v5879_v28, %v4443_v11  ;;  %v4445_v12 = vrot.slane %v4443_v11, 4  ;;  %v4368_v3 = vrot.slane %v4366_v33, 4 }
 0x123   : > { %v4363_v50 = vsel %vm7116_vm7, %v4361_v60, %v4362_v19  ;;  %v9131_v60 = vld [vmem:[#allocation23_spill] sm:$0xff]  ;;  %v5880_v19 = vrot.slane %v5864_v15, 9  ;;  %v4450_v28 = vrot.slane %v8151_v8, 5  ;;  %v4453_v11 = vrot.slane %v8203_v56, 5 }
 0x124   : > { %v8348_v44 = vsel %vm7116_vm7, %v4445_v12, %v4446_v16  ;;  %v5884_v21 = vcombine.low %v4360_v54, %v4363_v50  ;;  %v4376_v9 = vrot.slane %v9131_v60, 5  ;;  %v5854_v16 = vld [vmem:[%s6829_s25 + $0x3c] sm:$0xe]  ;;  %v4380_v46 = vrot.slane %v9132_v4, 5  ;;  %v9133_v12 = vld [vmem:[#allocation27_spill] sm:$0xff] }
 0x125   : > { %6339 = vmatmul.mubr.msk.bf16.gmra.mrb[24].mxu0 %vm658_vm4, %v5832_v13  ;;  %v6698_v13 = vld [vmem:[%s6829_s25 + $0x60] sm:$0xff]   ;;  %v5896_v53 = vcombine.low %v8343_v43, %v8348_v44  ;;  %v4367_v54 = vsel %vm7116_vm7, %v5868_v22, %v4366_v33  ;;  %v8370_v8 = vsel %vm7116_vm7, %v5880_v19, %v4450_v28  ;;  %v4452_v56 = vrot.slane %v4450_v28, 4 }
 0x126   : > { %6187 = vmatmul.mubr.msk.bf16.gmra.mrb[8].mxu1 %vm658_vm4, %v6696_v31  ;;  %6342 = vmatprep.mubr.msk.bf16.mxu0 %vm658_vm4, %v5833_v17  ;;  %v6743_v31 = vld [vmem:[%s6829_s25 + $0x2c] sm:$0x1]  ;;  %v4374_v50 = vsel %vm7116_vm7, %v5869_v41, %v4373_v47  ;;  %v5870_v33 = vrot.slane %v5854_v16, 9  ;;  %v4383_v45 = vrot.slane %v9133_v12, 5  ;;  %v4382_v15 = vrot.slane %v4380_v46, 4 }
 0x127   : > { %6190 = vmatprep.mubr.msk.bf16.mxu1 %vm658_vm4, %v6697_v36  ;;  %v4369_v17 = vrot.slane %v6743_v31, 5  ;;  %v4375_v36 = vrot.slane %v4373_v47, 4  ;;  %v6701_v31 = vld [vmem:[%s6829_s25 + $0x84] sm:$0xff]   ;;  %v4460_v41 = vrot.slane %v8241_v37, 5  ;;  %v2384_v48 = vshll.u32 %v6756_v25, 16 }
 0x128   : > { %v4384_v60 = vsel %vm7116_vm7, %v4382_v15, %v4383_v45  ;;  %v5589_v15 = vld [vmem:[%s6829_s25 + $0x84] sm:$0xf] }
 0x129   : > { %v4370_v2 = vsel %vm7116_vm7, %v4368_v3, %v4369_v17  ;;  %v4377_v32 = vsel %vm7116_vm7, %v4375_v36, %v4376_v9  ;;  %v6700_v3 = vld [vmem:[%s6829_s25 + $0x78] sm:$0xff]   ;;  %v5583_v17 = vld [vmem:[%s6829_s25 + $0x6c] sm:$0xf]  ;;  %v4381_v36 = vsel %vm7116_vm7, %v5870_v33, %v4380_v46 }
 0x12a   : > { %v5885_v22 = vcombine.low %v4367_v54, %v4370_v2  ;;  %v5886_v47 = vcombine.low %v4374_v50, %v4377_v32  ;;  %v5586_v9 = vld [vmem:[%s6829_s25 + $0x78] sm:$0xf]  ;;  %v2224_v37 = vshll.u32 %v5583_v17, 16  ;;  %v6702_v50 = vld [vmem:[%s6829_s25 + $0x90] sm:$0xff]  }
 0x12b   : > { %v2245_v54 = vshrl.u32 %v5586_v9, 16  ;;  %v2248_v2 = vshll.u32 %v5586_v9, 16 }
 0x12c   : > { %v2226_v33 = vrot.slane %v2224_v37, 5  ;;  %v5592_v37 = vld [vmem:[%s6829_s25 + $0x90] sm:$0xf] }
 0x12d   : > { %6343 = vmatmul.mubr.msk.bf16.gmra.mrb[28].mxu0 %vm658_vm4, %v5834_v20  ;;  %v8381_v20 = vsel %vm7116_vm7, %v4452_v56, %v4453_v11  ;;  %v6744_v11 = vld [vmem:[%s6829_s25 + $0x70] sm:$0xf] }
 0x12e   : > { %6191 = vmatmul.mubr.msk.bf16.gmra.mrb[12].mxu1 %vm658_vm4, %v6698_v13  ;;  %6348 = vmatprep.mubr.msk.bf16.mxu0 %vm658_vm4, %v5884_v21  ;;  %v5897_v13 = vcombine.low %v8370_v8, %v8381_v20  ;;  %v5881_v21 = vrot.slane %v5865_v52, 9  ;;  %v2230_v16 = vshll.u32 %v6744_v11, 16  ;;  %v2234_v4 = vshrl.u32 %v6744_v11, 16  ;;  %v6704_v11 = vld [vmem:[%s6829_s25 + $0xa8] sm:$0xff]  }
 0x12f   : > { %6194 = vmatprep.mubr.msk.bf16.mxu1 %vm658_vm4, %v6699_v40  ;;  %v4457_v40 = vrot.slane %v8178_v35, 5  ;;  %v2221_v35 = vshrl.u32 %v5583_v17, 16  ;;  %v5887_v52 = vcombine.low %v4381_v36, %v4384_v60  ;;  %v2272_v36 = vshll.u32 %v5589_v15, 16  ;;  %v6746_v60 = vld [vmem:[%s6829_s25 + $0x88] sm:$0xf] }
 0x130   : > { %v2232_v12 = vrot.slane %v2230_v16, 5  ;;  %v2236_v45 = vrot.slane %v2234_v4, 4  ;;  %v2278_v9 = vshll.u32 %v6746_v60, 16 }
 0x131   : > { %v8398_v19 = vsel %vm7116_vm7, %v5881_v21, %v4457_v40  ;;  %v4459_v28 = vrot.slane %v4457_v40, 4  ;;  %v2223_v32 = vrot.slane %v2221_v35, 4  ;;  %v2247_v21 = vrot.slane %v2245_v54, 4  ;;  %v5595_v54 = vld [vmem:[%s6829_s25 + $0x9c] sm:$0xf] }
 0x132   : > { %v2237_v40 = vor.u32 %v2236_v45, %v2232_v12 }
 0x133   : > { %v8406_v46 = vsel %vm7116_vm7, %v4459_v28, %v4460_v41  ;;  %v2227_v17 = vor.u32 %v2226_v33, %v2223_v32  ;;  %v2269_v41 = vshrl.u32 %v5589_v15, 16  ;;  %v2282_v28 = vshrl.u32 %v6746_v60, 16 }
 0x134   : > { %v5898_v56 = vcombine.low %v8398_v19, %v8406_v46  ;;  %v2238_v49 = vrot.slane %v2237_v40, 4  ;;  %v2293_v32 = vshrl.u32 %v5592_v37, 16  ;;  %v2296_v33 = vshll.u32 %v5592_v37, 16 }
 0x135   : > { %6349 = vmatmul.mubr.msk.bf16.vlgmr.msra.gmra.mrb[0].mxu0 %vm658_vm4, %v5885_v22  ;;  %v6703_v22 = vld [vmem:[%s6829_s25 + $0x9c] sm:$0xff]   ;;  %v2228_v4 = vrot.slane %v2227_v17, 4  ;;  %v2271_v24 = vrot.slane %v2269_v41, 4 }
 0x136   : > { %6195 = vmatmul.mubr.msk.bf16.gmra.mrb[16].mxu1 %vm658_vm4, %v6700_v3  ;;  %6352 = vmatprep.mubr.msk.bf16.mxu0 %vm658_vm4, %v5886_v47  ;;  %v2250_v3 = vrot.slane %v2248_v2, 5  ;;  %v6745_v47 = vld [vmem:[%s6829_s25 + $0x74] sm:$0x1]  ;;  %v2298_v39 = vrot.slane %v2296_v33, 5  ;;  %v5598_v33 = vld [vmem:[%s6829_s25 + $0xa8] sm:$0xf] }
 0x137   : > { %6198 = vmatprep.mubr.msk.bf16.mxu1 %vm658_vm4, %v6701_v31  ;;  %v2240_v31 = vshll.u32 %v6745_v47, 16  ;;  %v6705_v2 = vld [vmem:[%s6829_s25 + $0xb4] sm:$0xff]   ;;  %v8439_v41 = vsel %vm6847_vm3, %v2228_v4, %v2232_v12  ;;  %v6706_v4 = vld [vmem:[%s6829_s25 + $0xc0] sm:$0xff]  }
 0x138   : > { %v2251_v35 = vor.u32 %v2250_v3, %v2247_v21  ;;  %v2317_v21 = vshrl.u32 %v5595_v54, 16  ;;  %v2320_v3 = vshll.u32 %v5595_v54, 16 }
 0x139   : > { %v2242_v16 = vrot.slane %v2240_v31, 5  ;;  %v6748_v31 = vld [vmem:[%s6829_s25 + $0xa0] sm:$0xf] }
 0x13a   : > { %v2252_v45 = vrot.slane %v2251_v35, 4  ;;  %v2326_v17 = vshll.u32 %v6748_v31, 16  ;;  %v2330_v40 = vshrl.u32 %v6748_v31, 16  ;;  %v2319_v35 = vrot.slane %v2317_v21, 4  ;;  %v6751_v21 = vld [vmem:[%s6829_s25 + $0xa4] sm:$0x1] }
 0x13b   : > { %v8443_v62 = vsel %vm6847_vm3, %v2238_v49, %v2242_v16  ;;  %v2322_v37 = vrot.slane %v2320_v3, 5  ;;  %v2336_v3 = vshll.u32 %v6751_v21, 16  ;;  %v5601_v31 = vld [vmem:[%s6829_s25 + $0xb4] sm:$0xf] }
 0x13c   : > { %v2332_v16 = vrot.slane %v2330_v40, 4  ;;  %v5616_v49 = vcombine.low %v8439_v41, %v8443_v62  ;;  %v2344_v40 = vshll.u32 %v5598_v33, 16  ;;  %v2365_v23 = vshrl.u32 %v5601_v31, 16 }
 0x13d   : > { %6353 = vmatmul.mubr.msk.bf16.gmra.mrb[4].mxu0 %vm658_vm4, %v5887_v52  ;;  %v2280_v52 = vrot.slane %v2278_v9, 5  ;;  %v2295_v9 = vrot.slane %v2293_v32, 4  ;;  %v2368_v57 = vshll.u32 %v5601_v31, 16 }
 0x13e   : > { %6199 = vmatmul.mubr.msk.bf16.gmra.mrb[20].mxu1 %vm658_vm4, %v6702_v50  ;;  %6356 = vmatprep.mubr.msk.bf16.mxu0 %vm658_vm4, %v5888_v6  ;;  %v2274_v6 = vrot.slane %v2272_v36, 5  ;;  %v2284_v50 = vrot.slane %v2282_v28, 4 }
 0x13f   : > { %6202 = vmatprep.mubr.msk.bf16.mxu1 %vm658_vm4, %v6703_v22  ;;  %v6747_v22 = vld [vmem:[%s6829_s25 + $0x94] sm:$0xf] }
 0x140   : > { %v2302_v15 = vshll.u32 %v6747_v22, 16  ;;  %v2306_v47 = vshrl.u32 %v6747_v22, 16  ;;  %v2275_v36 = vor.u32 %v2274_v6, %v2271_v24  ;;  %v2285_v60 = vor.u32 %v2284_v50, %v2280_v52  ;;  %v6750_v50 = vld [vmem:[%s6829_s25 + $0x98] sm:$0x1] }
 0x141   : > { %v2312_v32 = vshll.u32 %v6750_v50, 16 }
 0x142   : > { %v2304_v12 = vrot.slane %v2302_v15, 5  ;;  %v2308_v28 = vrot.slane %v2306_v47, 4  ;;  %v2276_v6 = vrot.slane %v2275_v36, 4  ;;  %v2286_v54 = vrot.slane %v2285_v60, 4 }
 0x143   : > { %v2323_v15 = vor.u32 %v2322_v37, %v2319_v35  ;;  %v2314_v60 = vrot.slane %v2312_v32, 5  ;;  %v2338_v37 = vrot.slane %v2336_v3, 5  ;;  %v5604_v32 = vld [vmem:[%s6829_s25 + $0xc0] sm:$0xf]  ;;  %v6755_v3 = vld [vmem:[%s6829_s25 + $0xc4] sm:$0xf] }
 0x144   : > { %v2309_v22 = vor.u32 %v2308_v28, %v2304_v12  ;;  %v2392_v21 = vshll.u32 %v5604_v32, 16  ;;  %v2398_v31 = vshll.u32 %v6755_v3, 16 }
 0x145   : > { %6357 = vmatmul.mubr.msk.bf16.gmra.mrb[8].mxu0 %vm658_vm4, %v5889_v18  ;;  %v2288_v18 = vshll.u32 %v6749_v0, 16  ;;  %v6752_v0 = vld [vmem:[%s6829_s25 + $0xac] sm:$0xf]  ;;  %v2324_v28 = vrot.slane %v2323_v15, 4 }
 0x146   : > { %6203 = vmatmul.mubr.msk.bf16.gmra.mrb[24].mxu1 %vm658_vm4, %v6704_v11  ;;  %6360 = vmatprep.mubr.msk.bf16.mxu0 %vm658_vm4, %v5890_v10  ;;  %v8450_v10 = vsel %vm6847_vm3, %v2252_v45, %v9134_v55  ;;  %v2328_v11 = vrot.slane %v2326_v17, 5  ;;  %v2341_v17 = vshrl.u32 %v5598_v33, 16  ;;  %v2350_v59 = vshll.u32 %v6752_v0, 16 }
 0x147   : > { %6206 = vmatprep.mubr.msk.bf16.mxu1 %vm658_vm4, %v6705_v2  ;;  %v2290_v24 = vrot.slane %v2288_v18, 5  ;;  %v2299_v2 = vor.u32 %v2298_v39, %v2295_v9  ;;  %v5617_v45 = vcombine.low %v8450_v10, %v8211_v58  ;;  %v2354_v38 = vshrl.u32 %v6752_v0, 16 }
 0x148   : > { %v2333_v47 = vor.u32 %v2332_v16, %v2328_v11  ;;  %v2310_v55 = vrot.slane %v2309_v22, 4  ;;  %v2343_v16 = vrot.slane %v2341_v17, 4  ;;  %v8498_v15 = vsel %vm6847_vm3, %v2324_v28, %v2328_v11 }
 0x149   : > { %v8478_v18 = vsel %vm6847_vm3, %v2286_v54, %v2290_v24  ;;  %v2300_v36 = vrot.slane %v2299_v2, 4  ;;  %v2370_v54 = vrot.slane %v2368_v57, 5  ;;  %v2389_v11 = vshrl.u32 %v5604_v32, 16 }
 0x14a   : > { %v2334_v35 = vrot.slane %v2333_v47, 4  ;;  %v8494_v22 = vsel %vm6847_vm3, %v2310_v55, %v2314_v60  ;;  %v2400_v57 = vrot.slane %v2398_v31, 5  ;;  %v2386_v55 = vrot.slane %v2384_v48, 5 }
 0x14b   : > { %v8490_v33 = vsel %vm6847_vm3, %v2300_v36, %v2304_v12  ;;  %v6754_v12 = vld [vmem:[%s6829_s25 + $0xb0] sm:$0x1]  ;;  %v2391_v60 = vrot.slane %v2389_v11, 4 }
 0x14c   : > { %v8507_v5 = vsel %vm6847_vm3, %v2334_v35, %v2338_v37  ;;  %v2360_v47 = vshll.u32 %v6754_v12, 16  ;;  %v4464_v35 = vrot.slane %v8224_v27, 5  ;;  %v6757_v37 = vld [vmem:[%s6829_s25 + $0xc8] sm:$0x1] }
 0x14d   : > { %6361 = vmatmul.mubr.msk.bf16.gmra.mrb[12].mxu0 %vm658_vm4, %v5891_v26  ;;  %v8474_v26 = vsel %vm6847_vm3, %v2276_v6, %v2280_v52  ;;  %v2352_v52 = vrot.slane %v2350_v59, 5  ;;  %v2367_v6 = vrot.slane %v2365_v23, 4  ;;  %v5620_v0 = vcombine.low %v8498_v15, %v8507_v5 }
 0x14e   : > { %6207 = vmatmul.mubr.msk.bf16.gmra.mrb[28].mxu1 %vm658_vm4, %v6706_v4  ;;  %6364 = vmatprep.mubr.msk.bf16.mxu0 %vm658_vm4, %v5892_v1  ;;  %v6753_v1 = vld [vmem:[%s6829_s25 + $0xb8] sm:$0xf]  ;;  %v2346_v4 = vrot.slane %v2344_v40, 5  ;;  %v5618_v24 = vcombine.low %v8474_v26, %v8478_v18  ;;  %v2362_v36 = vrot.slane %v2360_v47, 5  ;;  %v2394_v23 = vrot.slane %v2392_v21, 5 }
 0x14f   : > { %6228 = vmatprep.mubr.msk.bf16.mxu1 %vm658_vm4, %v5616_v49  ;;  %v2374_v9 = vshll.u32 %v6753_v1, 16  ;;  %v2378_v39 = vshrl.u32 %v6753_v1, 16  ;;  %v2356_v49 = vrot.slane %v2354_v38, 4  ;;  %v2371_v17 = vor.u32 %v2370_v54, %v2367_v6 }
 0x150   : > { %v2347_v29 = vor.u32 %v2346_v4, %v2343_v16  ;;  %v2395_v34 = vor.u32 %v2394_v23, %v2391_v60  ;;  %v2408_v16 = vshll.u32 %v6757_v37, 16  ;;  %v5866_v4 = vld [vmem:[%s6829_s25 + $0xcc] sm:$0xe] }
 0x151   : > { %v2376_v2 = vrot.slane %v2374_v9, 5  ;;  %v2380_v50 = vrot.slane %v2378_v39, 4  ;;  %v2372_v9 = vrot.slane %v2371_v17, 4 }
 0x152   : > { %v2348_v59 = vrot.slane %v2347_v29, 4  ;;  %v2396_v6 = vrot.slane %v2395_v34, 4 }
 0x153   : > { %v2381_v40 = vor.u32 %v2380_v50, %v2376_v2  ;;  %v8540_v43 = vsel %vm6847_vm3, %v2372_v9, %v2376_v2  ;;  %v2410_v50 = vrot.slane %v2408_v16, 5 }
 0x154   : > { %v8528_v28 = vsel %vm6847_vm3, %v2348_v59, %v2352_v52  ;;  %9135 = vst [vmem:[#allocation25_spill] sm:$0xff] %v8540_v43  ;;  %v8567_v8 = vsel %vm6847_vm3, %v2396_v6, %v2400_v57 }
 0x155   : > { %6365 = vmatmul.mubr.msk.bf16.gmra.mrb[16].mxu0 %vm658_vm4, %v5893_v61  ;;  %v2357_v61 = vor.u32 %v2356_v49, %v2352_v52  ;;  %v2382_v39 = vrot.slane %v2381_v40, 4  ;;  %v4466_v52 = vrot.slane %v4464_v35, 4  ;;  %v4467_v49 = vrot.slane %v8272_v42, 5  ;;  %9137 = vst [vmem:[#allocation26_spill] sm:$0xff] %v8567_v8 }
 0x156   : > { %6229 = vmatmul.mubr.msk.bf16.vlgmr.msra.gmra.mrb[16].mxu1 %vm658_vm4, %v5617_v45  ;;  %6368 = vmatprep.mubr.msk.bf16.mxu0 %vm658_vm4, %v5894_v7  ;;  %v2402_v45 = vshrl.u32 %v6755_v3, 16  ;;  %v5619_v7 = vcombine.low %v8490_v33, %v8494_v22 }
 0x157   : > { %6232 = vmatprep.mubr.msk.bf16.mxu1 %vm658_vm4, %v5618_v24  ;;  %v2358_v38 = vrot.slane %v2357_v61, 4  ;;  %v8544_v44 = vsel %vm6847_vm3, %v2382_v39, %v2386_v55  ;;  %v4468_v2 = vsel %vm7116_vm7, %v4466_v52, %v4467_v49 }
 0x158   : > { %v2404_v1 = vrot.slane %v2402_v45, 4  ;;  %9136 = vst [vmem:[#allocation28_spill] sm:$0xff] %v8544_v44  ;;  %v5622_v24 = vcombine.low %v8540_v43, %v8544_v44 }
 0x159   : > { %v8534_v63 = vsel %vm6847_vm3, %v2358_v38, %v2362_v36 }
 0x15a   : > { %v5621_v27 = vcombine.low %v8528_v28, %v8534_v63 }
 0x15d   : > { %6369 = vmatmul.mubr.msk.bf16.gmra.mrb[20].mxu0 %vm658_vm4, %v5895_v51  ;;  %v2405_v51 = vor.u32 %v2404_v1, %v2400_v57 }
 0x15e   : > { %6233 = vmatmul.mubr.msk.bf16.gmra.mrb[20].mxu1 %vm658_vm4, %v5619_v7  ;;  %6372 = vmatprep.mubr.msk.bf16.mxu0 %vm658_vm4, %v5896_v53  ;;  %v5882_v53 = vrot.slane %v5866_v4, 9 }
 0x15f   : > { %6236 = vmatprep.mubr.msk.bf16.mxu1 %vm658_vm4, %v5620_v0  ;;  %v2406_v54 = vrot.slane %v2405_v51, 4 }
 0x160   : > { %v4465_v42 = vsel %vm7116_vm7, %v5882_v53, %v4464_v35 }
 0x161   : > { %v8571_v20 = vsel %vm6847_vm3, %v2406_v54, %v2410_v50 }
 0x162   : > { %9138 = vst [vmem:[#allocation29_spill] sm:$0xff] %v8571_v20  ;;  %v5623_v19 = vcombine.low %v8567_v8, %v8571_v20 }
 0x165   : > { %6373 = vmatmul.mubr.msk.bf16.gmra.mrb[24].mxu0 %vm658_vm4, %v5897_v13  ;;  %v5899_v13 = vcombine.low %v4465_v42, %v4468_v2 }
 0x166   : > { %6237 = vmatmul.mubr.msk.bf16.gmra.mrb[24].mxu1 %vm658_vm4, %v5621_v27  ;;  %6376 = vmatprep.mubr.msk.bf16.mxu0 %vm658_vm4, %v5898_v56 }
 0x167   : > { %6240 = vmatprep.mubr.msk.bf16.mxu1 %vm658_vm4, %v5622_v24 }
 0x16d   : > { %6377 = vmatmul.mubr.msk.bf16.gmra.mrb[28].mxu0 %vm658_vm4, %v5899_v13 }
 0x16e   : > { %6241 = vmatmul.mubr.msk.bf16.gmra.mrb[28].mxu1 %vm658_vm4, %v5623_v19 }
 0x1e9   : > { %v6180_v14 = vpop.f32.mrb[0].mxu1 }
 0x1ea   : > { %v1821_v46 = vpop.f32.mrb[1].mxu1 }
 0x1eb   : > { %v6181_v56 = vpop.f32.mrb[2].mxu1 }
 0x1ec   : > { %v1824_v32 = vpop.f32.mrb[3].mxu1 }
 0x1f1   : > { %v6184_v29 = vpop.f32.mrb[4].mxu1 }
 0x1f2   : > { %v1837_v61 = vpop.f32.mrb[5].mxu1 }
 0x1f3   : > { %v6185_v12 = vpop.f32.mrb[6].mxu1 }
 0x1f4   : > { %v1840_v47 = vpop.f32.mrb[7].mxu1 }
 0x1f9   : > { %v6188_v11 = vpop.f32.mrb[8].mxu1 }
 0x1fa   : > { %v1853_v30 = vpop.f32.mrb[9].mxu1 }
 0x1fb   : > { %v6189_v21 = vpop.f32.mrb[10].mxu1 }
 0x1fc   : > { %v1856_v3 = vpop.f32.mrb[11].mxu1 }
 0x201   : > { %v6192_v31 = vpop.f32.mrb[12].mxu1 }
 0x202   : > { %v1869_v45 = vpop.f32.mrb[13].mxu1 }
 0x203   : > { %v6193_v17 = vpop.f32.mrb[14].mxu1 }
 0x204   : > { %v1872_v40 = vpop.f32.mrb[15].mxu1 }
 0x208   : > { %v6350_v25 = vpop.f32.mrb[0].mxu0 }
 0x209   : > { %v8577_v48 = vadd.f32 %v6350_v25, %v6180_v14  ;;  %v4604_v7 = vpop.f32.mrb[1].mxu0 }
 0x20a   : > { %v8579_v0 = vadd.f32 %v4604_v7, %v1821_v46  ;;  %v6351_v59 = vpop.f32.mrb[2].mxu0 }
 0x20b   : > { %v8581_v38 = vadd.f32 %v6351_v59, %v6181_v56  ;;  %v4607_v36 = vpop.f32.mrb[3].mxu0  ;;  %4959 = vrot.lane.b32.xlu0 %v8577_v48, %s6766_s11  ;;  %4799 = vrot.lane.b32.xlu1 %v8577_v48, %s6767_s14 }
 0x20c   : > { %v8587_v60 = vadd.f32 %v4607_v36, %v1824_v32 }
 0x20f   : > { %4795 = vrot.lane.b32.xlu0 %v8579_v0, %s6767_s14  ;;  %4801 = vrot.lane.b32.xlu1 %v8581_v38, %s6767_s14 }
 0x210   : > { %v6354_v23 = vpop.f32.mrb[4].mxu0 }
 0x211   : > { %v8593_v57 = vadd.f32 %v6354_v23, %v6184_v29  ;;  %v4620_v1 = vpop.f32.mrb[5].mxu0 }
 0x212   : > { %v8595_v9 = vadd.f32 %v4620_v1, %v1837_v61  ;;  %v6355_v39 = vpop.f32.mrb[6].mxu0 }
 0x213   : > { %v8597_v55 = vadd.f32 %v6355_v39, %v6185_v12  ;;  %v4623_v35 = vpop.f32.mrb[7].mxu0  ;;  %4955 = vrot.lane.b32.xlu0 %v8579_v0, %s6766_s11  ;;  %4961 = vrot.lane.b32.xlu1 %v8581_v38, %s6766_s11 }
 0x214   : > { %v8603_v34 = vadd.f32 %v4623_v35, %v1840_v47 }
 0x217   : > { %4957 = vrot.lane.b32.xlu1 %v8587_v60, %s6766_s11  ;;  %4797 = vrot.lane.b32.xlu0 %v8587_v60, %s6767_s14 }
 0x218   : > { %v6358_v51 = vpop.f32.mrb[8].mxu0 }
 0x219   : > { %v8609_v37 = vadd.f32 %v6358_v51, %v6188_v11  ;;  %v4636_v16 = vpop.f32.mrb[9].mxu0 }
 0x21a   : > { %v8611_v4 = vadd.f32 %v4636_v16, %v1853_v30  ;;  %v6359_v27 = vpop.f32.mrb[10].mxu0 }
 0x21b   : > { %v8613_v53 = vadd.f32 %v6359_v27, %v6189_v21  ;;  %v4639_v52 = vpop.f32.mrb[11].mxu0  ;;  %4807 = vrot.lane.b32.xlu0 %v8593_v57, %s6767_s14  ;;  %4809 = vrot.lane.b32.xlu1 %v8597_v55, %s6767_s14 }
 0x21c   : > { %v8619_v49 = vadd.f32 %v4639_v52, %v1856_v3 }
 0x21f   : > { %4967 = vrot.lane.b32.xlu0 %v8593_v57, %s6766_s11  ;;  %4969 = vrot.lane.b32.xlu1 %v8597_v55, %s6766_s11 }
 0x220   : > { %v6362_v24 = vpop.f32.mrb[12].mxu0 }
 0x221   : > { %v8625_v6 = vadd.f32 %v6362_v24, %v6192_v31  ;;  %v4652_v54 = vpop.f32.mrb[13].mxu0 }
 0x222   : > { %v8627_v50 = vadd.f32 %v4652_v54, %v1869_v45  ;;  %v6363_v42 = vpop.f32.mrb[14].mxu0 }
 0x223   : > { %v8629_v2 = vadd.f32 %v6363_v42, %v6193_v17  ;;  %v4655_v13 = vpop.f32.mrb[15].mxu0  ;;  %4803 = vrot.lane.b32.xlu0 %v8595_v9, %s6767_s14  ;;  %4805 = vrot.lane.b32.xlu1 %v8603_v34, %s6767_s14 }
 0x224   : > { %v8635_v19 = vadd.f32 %v4655_v13, %v1872_v40 }
 0x227   : > { %4963 = vrot.lane.b32.xlu0 %v8595_v9, %s6766_s11  ;;  %4965 = vrot.lane.b32.xlu1 %v8603_v34, %s6766_s11 }
 0x228   : > { %v6366_v14 = vpop.f32.mrb[16].mxu0 }
 0x229   : > { %v6230_v46 = vpop.f32.mrb[16].mxu1  ;;  %v4668_v56 = vpop.f32.mrb[17].mxu0 }
 0x22a   : > { %v8641_v32 = vadd.f32 %v6366_v14, %v6230_v46  ;;  %v2643_v29 = vpop.f32.mrb[17].mxu1  ;;  %v6367_v61 = vpop.f32.mrb[18].mxu0 }
 0x22b   : > { %v8643_v12 = vadd.f32 %v4668_v56, %v2643_v29  ;;  %v6231_v47 = vpop.f32.mrb[18].mxu1  ;;  %v4671_v11 = vpop.f32.mrb[19].mxu0  ;;  %4815 = vrot.lane.b32.xlu0 %v8609_v37, %s6767_s14  ;;  %4817 = vrot.lane.b32.xlu1 %v8613_v53, %s6767_s14 }
 0x22c   : > { %v8649_v30 = vadd.f32 %v6367_v61, %v6231_v47  ;;  %v2646_v21 = vpop.f32.mrb[19].mxu1 }
 0x22d   : > { %v8651_v3 = vadd.f32 %v4671_v11, %v2646_v21 }
 0x22f   : > { %4975 = vrot.lane.b32.xlu0 %v8609_v37, %s6766_s11  ;;  %4977 = vrot.lane.b32.xlu1 %v8613_v53, %s6766_s11 }
 0x230   : > { %v6370_v31 = vpop.f32.mrb[20].mxu0 }
 0x231   : > { %v6234_v45 = vpop.f32.mrb[20].mxu1  ;;  %v4684_v17 = vpop.f32.mrb[21].mxu0 }
 0x232   : > { %v8657_v40 = vadd.f32 %v6370_v31, %v6234_v45  ;;  %v2659_v25 = vpop.f32.mrb[21].mxu1  ;;  %v6371_v7 = vpop.f32.mrb[22].mxu0 }
 0x233   : > { %v8659_v59 = vadd.f32 %v4684_v17, %v2659_v25  ;;  %v6235_v36 = vpop.f32.mrb[22].mxu1  ;;  %v4687_v23 = vpop.f32.mrb[23].mxu0  ;;  %4811 = vrot.lane.b32.xlu0 %v8611_v4, %s6767_s14  ;;  %4813 = vrot.lane.b32.xlu1 %v8619_v49, %s6767_s14 }
 0x234   : > { %v8665_v1 = vadd.f32 %v6371_v7, %v6235_v36  ;;  %v2662_v39 = vpop.f32.mrb[23].mxu1 }
 0x235   : > { %v8667_v35 = vadd.f32 %v4687_v23, %v2662_v39 }
 0x237   : > { %4971 = vrot.lane.b32.xlu0 %v8611_v4, %s6766_s11  ;;  %4973 = vrot.lane.b32.xlu1 %v8619_v49, %s6766_s11 }
 0x238   : > { %v6374_v51 = vpop.f32.mrb[24].mxu0 }
 0x239   : > { %v6238_v16 = vpop.f32.mrb[24].mxu1  ;;  %v4700_v27 = vpop.f32.mrb[25].mxu0 }
 0x23a   : > { %v8673_v52 = vadd.f32 %v6374_v51, %v6238_v16  ;;  %v2675_v24 = vpop.f32.mrb[25].mxu1  ;;  %v6375_v54 = vpop.f32.mrb[26].mxu0 }
 0x23b   : > { %v8675_v42 = vadd.f32 %v4700_v27, %v2675_v24  ;;  %v6239_v13 = vpop.f32.mrb[26].mxu1  ;;  %v4703_v14 = vpop.f32.mrb[27].mxu0  ;;  %4823 = vrot.lane.b32.xlu0 %v8625_v6, %s6767_s14  ;;  %4825 = vrot.lane.b32.xlu1 %v8629_v2, %s6767_s14 }
 0x23c   : > { %v8681_v46 = vadd.f32 %v6375_v54, %v6239_v13  ;;  %v2678_v56 = vpop.f32.mrb[27].mxu1  ;;  %v8766_v13 = vld [vmem:[%s9014_s2] ss:$0 sm:$0xff] }
 0x23d   : > { %v8683_v29 = vadd.f32 %v4703_v14, %v2678_v56 }
 0x23f   : > { %4983 = vrot.lane.b32.xlu0 %v8625_v6, %s6766_s11  ;;  %4985 = vrot.lane.b32.xlu1 %v8629_v2, %s6766_s11 }
 0x240   : > { %v6378_v61 = vpop.f32.mrb[28].mxu0 }
 0x241   : > { %v6242_v47 = vpop.f32.mrb[28].mxu1  ;;  %v4716_v11 = vpop.f32.mrb[29].mxu0 }
 0x242   : > { %v8689_v21 = vadd.f32 %v6378_v61, %v6242_v47  ;;  %v2691_v31 = vpop.f32.mrb[29].mxu1  ;;  %v6379_v45 = vpop.f32.mrb[30].mxu0  ;;  %v8771_v47 = vld [vmem:[%s9014_s2 + $0x1] ss:$0 sm:$0xff] }
 0x243   : > { %v8691_v17 = vadd.f32 %v4716_v11, %v2691_v31  ;;  %v6243_v25 = vpop.f32.mrb[30].mxu1  ;;  %v4719_v7 = vpop.f32.mrb[31].mxu0  ;;  %4819 = vrot.lane.b32.xlu0 %v8627_v50, %s6767_s14  ;;  %4821 = vrot.lane.b32.xlu1 %v8635_v19, %s6767_s14 }
 0x244   : > { %v8697_v36 = vadd.f32 %v6379_v45, %v6243_v25  ;;  %v2694_v23 = vpop.f32.mrb[31].mxu1  ;;  %v9140_v45 = vld [vmem:[#allocation5_spill] sm:$0xff] }
 0x245   : > { %v8699_v39 = vadd.f32 %v4719_v7, %v2694_v23  ;;  %v5119_v25 = vunpack.c.l.bf16 %v9140_v45 }
 0x246   : > { %9139 = vst [vmem:[#allocation30_spill] sm:$0xff] %v8697_v36 }
 0x247   : > { %4979 = vrot.lane.b32.xlu0 %v8627_v50, %s6766_s11  ;;  %4981 = vrot.lane.b32.xlu1 %v8635_v19, %s6766_s11 }
 0x24b   : > { %4831 = vrot.lane.b32.xlu0 %v8641_v32, %s6767_s14  ;;  %4833 = vrot.lane.b32.xlu1 %v8649_v30, %s6767_s14 }
 0x24f   : > { %4991 = vrot.lane.b32.xlu0 %v8641_v32, %s6766_s11  ;;  %4993 = vrot.lane.b32.xlu1 %v8649_v30, %s6766_s11 }
 0x253   : > { %4827 = vrot.lane.b32.xlu0 %v8643_v12, %s6767_s14  ;;  %4829 = vrot.lane.b32.xlu1 %v8651_v3, %s6767_s14 }
 0x257   : > { %4987 = vrot.lane.b32.xlu0 %v8643_v12, %s6766_s11  ;;  %4989 = vrot.lane.b32.xlu1 %v8651_v3, %s6766_s11 }
 0x25b   : > { %4839 = vrot.lane.b32.xlu0 %v8657_v40, %s6767_s14  ;;  %4841 = vrot.lane.b32.xlu1 %v8665_v1, %s6767_s14 }
 0x25f   : > { %4999 = vrot.lane.b32.xlu0 %v8657_v40, %s6766_s11  ;;  %5001 = vrot.lane.b32.xlu1 %v8665_v1, %s6766_s11 }
 0x263   : > { %4835 = vrot.lane.b32.xlu0 %v8659_v59, %s6767_s14  ;;  %4837 = vrot.lane.b32.xlu1 %v8667_v35, %s6767_s14 }
 0x267   : > { %4995 = vrot.lane.b32.xlu0 %v8659_v59, %s6766_s11  ;;  %4997 = vrot.lane.b32.xlu1 %v8667_v35, %s6766_s11 }
 0x26b   : > { %4847 = vrot.lane.b32.xlu0 %v8673_v52, %s6767_s14  ;;  %4849 = vrot.lane.b32.xlu1 %v8681_v46, %s6767_s14 }
 0x26f   : > { %5007 = vrot.lane.b32.xlu0 %v8673_v52, %s6766_s11  ;;  %5009 = vrot.lane.b32.xlu1 %v8681_v46, %s6766_s11 }
 0x273   : > { %4843 = vrot.lane.b32.xlu0 %v8675_v42, %s6767_s14  ;;  %4845 = vrot.lane.b32.xlu1 %v8683_v29, %s6767_s14 }
 0x277   : > { %5003 = vrot.lane.b32.xlu0 %v8675_v42, %s6766_s11  ;;  %5005 = vrot.lane.b32.xlu1 %v8683_v29, %s6766_s11 }
 0x27b   : > { %4855 = vrot.lane.b32.xlu0 %v8689_v21, %s6767_s14  ;;  %4857 = vrot.lane.b32.xlu1 %v8697_v36, %s6767_s14 }
 0x27d   : > { %v4960_v51 = vpop.permute.xlu0 %4959  ;;  %v4800_v16 = vpop.permute.xlu1 %4799 }
 0x27e   : > { %v4925_v27 = vmax.f32 %v8577_v48, %v4800_v16  ;;  %v4893_v24 = vmin.f32 %v8577_v48, %v4800_v16 }
 0x27f   : > { %4851 = vrot.lane.b32.xlu0 %v8691_v17, %s6767_s14  ;;  %4853 = vrot.lane.b32.xlu1 %v8699_v39, %s6767_s14 }
 0x280   : > { %v5053_v54 = vmin.f32 %v4925_v27, %v4960_v51 }
 0x281   : > { %v4796_v14 = vpop.permute.xlu0 %4795  ;;  %v4802_v56 = vpop.permute.xlu1 %4801 }
 0x282   : > { %v5085_v61 = vmax.f32 %v4893_v24, %v5053_v54  ;;  %v4923_v11 = vmax.f32 %v8579_v0, %v4796_v14  ;;  %v4926_v31 = vmax.f32 %v8581_v38, %v4802_v56  ;;  %v4891_v7 = vmin.f32 %v8579_v0, %v4796_v14 }
 0x283   : > { %5011 = vrot.lane.b32.xlu0 %v8691_v17, %s6766_s11  ;;  %5013 = vrot.lane.b32.xlu1 %v8699_v39, %s6766_s11  ;;  %v4894_v27 = vmin.f32 %v8581_v38, %v4802_v56 }
 0x284   : > { %v5155_v48 = vmul.f32 %v8766_v13, %v5085_v61 }
 0x285   : > { %v4956_v23 = vpop.permute.xlu0 %4955  ;;  %v4962_v51 = vpop.permute.xlu1 %4961 }
 0x286   : > { %v5191_v16 = vadd.f32 %v8771_v47, %v5155_v48  ;;  %v5051_v24 = vmin.f32 %v4923_v11, %v4956_v23  ;;  %v5054_v54 = vmin.f32 %v4926_v31, %v4962_v51  ;;  %v9141_v31 = vld [vmem:[#allocation3_spill] sm:$0xff]  ;;  %v9142_v51 = vld [vmem:[#allocation6_spill] sm:$0xff] }
 0x287   : > { %5015 = vrot.lane.b32.xlu0 %v8689_v21, %s6766_s11  ;;  %5017 = vrot.lane.b32.xlu1 %v8697_v36, %s6766_s11  ;;  %v5117_v23 = vunpack.c.l.bf16 %v9141_v31 }
 0x288   : > { %v5223_v61 = vmax.f32 %v5191_v16, 0.0  ;;  %v5083_v20 = vmax.f32 %v4891_v7, %v5051_v24  ;;  %v5086_v45 = vmax.f32 %v4894_v27, %v5054_v54  ;;  %v5120_v7 = vunpack.c.l.bf16 %v9142_v51 }
 0x289   : > { %v4958_v0 = vpop.permute.xlu1 %4957  ;;  %v4798_v14 = vpop.permute.xlu0 %4797 }
 0x28a   : > { %v5255_v38 = vadd.f32 %v5223_v61, %v5119_v25  ;;  %v5153_v56 = vmul.f32 %v8766_v13, %v5083_v20  ;;  %v5156_v48 = vmul.f32 %v8766_v13, %v5086_v45  ;;  %v4924_v11 = vmax.f32 %v8587_v60, %v4798_v14 }
 0x28b   : > { %v4892_v25 = vmin.f32 %v8587_v60, %v4798_v14 }
 0x28c   : > { %5287 = vst.msk [vmem:[%s8792_s22 + $0x10] sm:$0xff] %vm658_vm4, %v5255_v38  ;;  %v5189_v16 = vadd.f32 %v8771_v47, %v5153_v56  ;;  %v5192_v27 = vadd.f32 %v8771_v47, %v5156_v48  ;;  %v5052_v24 = vmin.f32 %v4924_v11, %v4958_v0  ;;  %v9143_v11 = vld [vmem:[#allocation4_spill] sm:$0xff] }
 0x28d   : > { %v4808_v20 = vpop.permute.xlu0 %4807  ;;  %v4810_v54 = vpop.permute.xlu1 %4809 }
 0x28e   : > { %v5221_v61 = vmax.f32 %v5189_v16, 0.0  ;;  %v5224_v45 = vmax.f32 %v5192_v27, 0.0  ;;  %v5084_v8 = vmax.f32 %v4892_v25, %v5052_v24  ;;  %v4929_v51 = vmax.f32 %v8593_v57, %v4808_v20 }
 0x28f   : > { %v4930_v38 = vmax.f32 %v8597_v55, %v4810_v54  ;;  %v4897_v60 = vmin.f32 %v8593_v57, %v4808_v20  ;;  %v4898_v0 = vmin.f32 %v8597_v55, %v4810_v54  ;;  %v9145_v20 = vld [vmem:[#allocation10_spill] sm:$0xff] }
 0x290   : > { %v5253_v44 = vadd.f32 %v5221_v61, %v5117_v23  ;;  %v5256_v31 = vadd.f32 %v5224_v45, %v5120_v7  ;;  %v5154_v56 = vmul.f32 %v8766_v13, %v5084_v8  ;;  %v5118_v23 = vunpack.c.l.bf16 %v9143_v11  ;;  %v9144_v45 = vld [vmem:[#allocation9_spill] sm:$0xff] }
 0x291   : > { %v4968_v43 = vpop.permute.xlu0 %4967  ;;  %v4970_v36 = vpop.permute.xlu1 %4969  ;;  %v5123_v57 = vunpack.c.l.bf16 %v9144_v45  ;;  %v5124_v55 = vunpack.c.l.bf16 %v9145_v20  ;;  %v9147_v45 = vld [vmem:[#allocation8_spill] sm:$0xff] }
 0x292   : > { %5285 = vst.msk [vmem:[%s8792_s22] sm:$0xff] %vm658_vm4, %v5253_v44  ;;  %5288 = vst.msk [vmem:[%s8792_s22 + $0x18] sm:$0xff] %vm658_vm4, %v5256_v31  ;;  %v5057_v14 = vmin.f32 %v4929_v51, %v4968_v43  ;;  %v5058_v48 = vmin.f32 %v4930_v38, %v4970_v36  ;;  %v5190_v7 = vadd.f32 %v8771_v47, %v5154_v56  ;;  %v5122_v20 = vunpack.c.l.bf16 %v9147_v45 }
 0x294   : > { %v5089_v16 = vmax.f32 %v4897_v60, %v5057_v14  ;;  %v5090_v27 = vmax.f32 %v4898_v0, %v5058_v48  ;;  %v5222_v8 = vmax.f32 %v5190_v7, 0.0 }
 0x295   : > { %v4804_v25 = vpop.permute.xlu0 %4803  ;;  %v4806_v24 = vpop.permute.xlu1 %4805 }
 0x296   : > { %v5159_v44 = vmul.f32 %v8766_v13, %v5089_v16  ;;  %v5160_v61 = vmul.f32 %v8766_v13, %v5090_v27  ;;  %v5254_v43 = vadd.f32 %v5222_v8, %v5118_v23  ;;  %v4927_v31 = vmax.f32 %v8595_v9, %v4804_v25 }
 0x297   : > { %v4928_v51 = vmax.f32 %v8603_v34, %v4806_v24  ;;  %v4895_v38 = vmin.f32 %v8595_v9, %v4804_v25  ;;  %v4896_v56 = vmin.f32 %v8603_v34, %v4806_v24  ;;  %v9146_v25 = vld [vmem:[#allocation7_spill] sm:$0xff] }
 0x298   : > { %v5195_v36 = vadd.f32 %v8771_v47, %v5159_v44  ;;  %v5196_v54 = vadd.f32 %v8771_v47, %v5160_v61  ;;  %5286 = vst.msk [vmem:[%s8792_s22 + $0x8] sm:$0xff] %vm658_vm4, %v5254_v43  ;;  %v5121_v24 = vunpack.c.l.bf16 %v9146_v25 }
 0x299   : > { %v4964_v60 = vpop.permute.xlu0 %4963  ;;  %v4966_v0 = vpop.permute.xlu1 %4965 }
 0x29a   : > { %v5227_v14 = vmax.f32 %v5195_v36, 0.0  ;;  %v5228_v48 = vmax.f32 %v5196_v54, 0.0  ;;  %v5055_v11 = vmin.f32 %v4927_v31, %v4964_v60  ;;  %v5056_v23 = vmin.f32 %v4928_v51, %v4966_v0 }
 0x29c   : > { %v5259_v7 = vadd.f32 %v5227_v14, %v5123_v57  ;;  %v5260_v16 = vadd.f32 %v5228_v48, %v5124_v55  ;;  %v5087_v27 = vmax.f32 %v4895_v38, %v5055_v11  ;;  %v5088_v8 = vmax.f32 %v4896_v56, %v5056_v23 }
 0x29d   : > { %v4816_v44 = vpop.permute.xlu0 %4815  ;;  %v4818_v61 = vpop.permute.xlu1 %4817 }
 0x29e   : > { %5291 = vst.msk [vmem:[%s8792_s22 + $0x30] sm:$0xff] %vm658_vm4, %v5259_v7  ;;  %5292 = vst.msk [vmem:[%s8792_s22 + $0x38] sm:$0xff] %vm658_vm4, %v5260_v16  ;;  %v5157_v9 = vmul.f32 %v8766_v13, %v5087_v27  ;;  %v5158_v34 = vmul.f32 %v8766_v13, %v5088_v8  ;;  %v4933_v55 = vmax.f32 %v8609_v37, %v4816_v44  ;;  %v9148_v8 = vld [vmem:[#allocation13_spill] sm:$0xff] }
 0x29f   : > { %v4934_v36 = vmax.f32 %v8613_v53, %v4818_v61  ;;  %v4901_v54 = vmin.f32 %v8609_v37, %v4816_v44  ;;  %v4902_v31 = vmin.f32 %v8613_v53, %v4818_v61  ;;  %v5127_v44 = vunpack.c.l.bf16 %v9148_v8  ;;  %v9149_v61 = vld [vmem:[#allocation14_spill] sm:$0xff] }
 0x2a0   : > { %v5193_v43 = vadd.f32 %v8771_v47, %v5157_v9  ;;  %v5194_v57 = vadd.f32 %v8771_v47, %v5158_v34  ;;  %v5128_v9 = vunpack.c.l.bf16 %v9149_v61 }
 0x2a1   : > { %v4976_v51 = vpop.permute.xlu0 %4975  ;;  %v4978_v38 = vpop.permute.xlu1 %4977 }
 0x2a2   : > { %v5225_v56 = vmax.f32 %v5193_v43, 0.0  ;;  %v5226_v60 = vmax.f32 %v5194_v57, 0.0  ;;  %v5061_v0 = vmin.f32 %v4933_v55, %v4976_v51  ;;  %v5062_v14 = vmin.f32 %v4934_v36, %v4978_v38 }
 0x2a4   : > { %v5257_v48 = vadd.f32 %v5225_v56, %v5121_v24  ;;  %v5258_v11 = vadd.f32 %v5226_v60, %v5122_v20  ;;  %v5093_v23 = vmax.f32 %v4901_v54, %v5061_v0  ;;  %v5094_v7 = vmax.f32 %v4902_v31, %v5062_v14 }
 0x2a5   : > { %v4812_v16 = vpop.permute.xlu0 %4811  ;;  %v4814_v27 = vpop.permute.xlu1 %4813 }
 0x2a6   : > { %5289 = vst.msk [vmem:[%s8792_s22 + $0x20] sm:$0xff] %vm658_vm4, %v5257_v48  ;;  %5290 = vst.msk [vmem:[%s8792_s22 + $0x28] sm:$0xff] %vm658_vm4, %v5258_v11  ;;  %v5163_v37 = vmul.f32 %v8766_v13, %v5093_v23  ;;  %v5164_v53 = vmul.f32 %v8766_v13, %v5094_v7  ;;  %v4931_v24 = vmax.f32 %v8611_v4, %v4812_v16  ;;  %v9150_v11 = vld [vmem:[#allocation11_spill] sm:$0xff]  ;;  %v9151_v7 = vld [vmem:[#allocation12_spill] sm:$0xff] }
 0x2a7   : > { %v4932_v45 = vmax.f32 %v8619_v49, %v4814_v27  ;;  %v4899_v20 = vmin.f32 %v8611_v4, %v4812_v16  ;;  %v4900_v43 = vmin.f32 %v8619_v49, %v4814_v27  ;;  %v5125_v23 = vunpack.c.l.bf16 %v9150_v11 }
 0x2a8   : > { %v5199_v34 = vadd.f32 %v8771_v47, %v5163_v37  ;;  %v5200_v25 = vadd.f32 %v8771_v47, %v5164_v53  ;;  %v5126_v16 = vunpack.c.l.bf16 %v9151_v7 }
 0x2a9   : > { %v4972_v57 = vpop.permute.xlu0 %4971  ;;  %v4974_v55 = vpop.permute.xlu1 %4973 }
 0x2aa   : > { %v5231_v36 = vmax.f32 %v5199_v34, 0.0  ;;  %v5232_v54 = vmax.f32 %v5200_v25, 0.0  ;;  %v5059_v31 = vmin.f32 %v4931_v24, %v4972_v57  ;;  %v5060_v51 = vmin.f32 %v4932_v45, %v4974_v55 }
 0x2ac   : > { %v5263_v38 = vadd.f32 %v5231_v36, %v5127_v44  ;;  %v5264_v56 = vadd.f32 %v5232_v54, %v5128_v9  ;;  %v5091_v60 = vmax.f32 %v4899_v20, %v5059_v31  ;;  %v5092_v0 = vmax.f32 %v4900_v43, %v5060_v51  ;;  %v9152_v51 = vld [vmem:[#allocation17_spill] sm:$0xff] }
 0x2ad   : > { %v4824_v14 = vpop.permute.xlu0 %4823  ;;  %v4826_v48 = vpop.permute.xlu1 %4825 }
 0x2ae   : > { %5295 = vst.msk [vmem:[%s8792_s22 + $0x50] sm:$0xff] %vm658_vm4, %v5263_v38  ;;  %5296 = vst.msk [vmem:[%s8792_s22 + $0x58] sm:$0xff] %vm658_vm4, %v5264_v56  ;;  %v5161_v4 = vmul.f32 %v8766_v13, %v5091_v60  ;;  %v5162_v49 = vmul.f32 %v8766_v13, %v5092_v0  ;;  %v4937_v53 = vmax.f32 %v8625_v6, %v4824_v14  ;;  %v5131_v38 = vunpack.c.l.bf16 %v9152_v51  ;;  %v9153_v56 = vld [vmem:[#allocation18_spill] sm:$0xff] }
 0x2af   : > { %v4938_v8 = vmax.f32 %v8629_v2, %v4826_v48  ;;  %v4905_v44 = vmin.f32 %v8625_v6, %v4824_v14  ;;  %v4906_v61 = vmin.f32 %v8629_v2, %v4826_v48  ;;  %v5132_v60 = vunpack.c.l.bf16 %v9153_v56 }
 0x2b0   : > { %v5197_v27 = vadd.f32 %v8771_v47, %v5161_v4  ;;  %v5198_v37 = vadd.f32 %v8771_v47, %v5162_v49 }
 0x2b1   : > { %v4984_v9 = vpop.permute.xlu0 %4983  ;;  %v4986_v34 = vpop.permute.xlu1 %4985 }
 0x2b2   : > { %v5229_v25 = vmax.f32 %v5197_v27, 0.0  ;;  %v5230_v24 = vmax.f32 %v5198_v37, 0.0  ;;  %v5065_v45 = vmin.f32 %v4937_v53, %v4984_v9  ;;  %v5066_v20 = vmin.f32 %v4938_v8, %v4986_v34 }
 0x2b4   : > { %v5261_v43 = vadd.f32 %v5229_v25, %v5125_v23  ;;  %v5262_v57 = vadd.f32 %v5230_v24, %v5126_v16  ;;  %v5097_v55 = vmax.f32 %v4905_v44, %v5065_v45  ;;  %v5098_v36 = vmax.f32 %v4906_v61, %v5066_v20  ;;  %v9154_v24 = vld [vmem:[#allocation15_spill] sm:$0xff]  ;;  %v9155_v20 = vld [vmem:[#allocation16_spill] sm:$0xff] }
 0x2b5   : > { %v4820_v54 = vpop.permute.xlu0 %4819  ;;  %v4822_v31 = vpop.permute.xlu1 %4821  ;;  %v5129_v45 = vunpack.c.l.bf16 %v9154_v24 }
 0x2b6   : > { %5293 = vst.msk [vmem:[%s8792_s22 + $0x40] sm:$0xff] %vm658_vm4, %v5261_v43  ;;  %5294 = vst.msk [vmem:[%s8792_s22 + $0x48] sm:$0xff] %vm658_vm4, %v5262_v57  ;;  %v5167_v6 = vmul.f32 %v8766_v13, %v5097_v55  ;;  %v5168_v2 = vmul.f32 %v8766_v13, %v5098_v36  ;;  %v4935_v48 = vmax.f32 %v8627_v50, %v4820_v54  ;;  %v5130_v43 = vunpack.c.l.bf16 %v9155_v20 }
 0x2b7   : > { %v4936_v4 = vmax.f32 %v8635_v19, %v4822_v31  ;;  %v4903_v49 = vmin.f32 %v8627_v50, %v4820_v54  ;;  %v4904_v11 = vmin.f32 %v8635_v19, %v4822_v31 }
 0x2b8   : > { %v5203_v0 = vadd.f32 %v8771_v47, %v5167_v6  ;;  %v5204_v14 = vadd.f32 %v8771_v47, %v5168_v2 }
 0x2b9   : > { %v4980_v23 = vpop.permute.xlu0 %4979  ;;  %v4982_v7 = vpop.permute.xlu1 %4981 }
 0x2ba   : > { %v5235_v16 = vmax.f32 %v5203_v0, 0.0  ;;  %v5236_v27 = vmax.f32 %v5204_v14, 0.0  ;;  %v5063_v37 = vmin.f32 %v4935_v48, %v4980_v23  ;;  %v5064_v53 = vmin.f32 %v4936_v4, %v4982_v7 }
 0x2bb   : > { %v5135_v7 = vunpack.c.l.bf16 %v8450_v10 }
 0x2bc   : > { %v5267_v8 = vadd.f32 %v5235_v16, %v5131_v38  ;;  %v5268_v44 = vadd.f32 %v5236_v27, %v5132_v60  ;;  %v5095_v61 = vmax.f32 %v4903_v49, %v5063_v37  ;;  %v5096_v9 = vmax.f32 %v4904_v11, %v5064_v53 }
 0x2bd   : > { %v4832_v34 = vpop.permute.xlu0 %4831  ;;  %v4834_v25 = vpop.permute.xlu1 %4833  ;;  %v5136_v16 = vunpack.c.l.bf16 %v8211_v58 }
 0x2be   : > { %5299 = vst.msk [vmem:[%s8792_s22 + $0x70] sm:$0xff] %vm658_vm4, %v5267_v8  ;;  %5300 = vst.msk [vmem:[%s8792_s22 + $0x78] sm:$0xff] %vm658_vm4, %v5268_v44  ;;  %v5165_v50 = vmul.f32 %v8766_v13, %v5095_v61  ;;  %v5166_v19 = vmul.f32 %v8766_v13, %v5096_v9  ;;  %v4941_v36 = vmax.f32 %v8641_v32, %v4832_v34 }
 0x2bf   : > { %v4942_v54 = vmax.f32 %v8649_v30, %v4834_v25  ;;  %v4909_v31 = vmin.f32 %v8641_v32, %v4832_v34  ;;  %v4910_v6 = vmin.f32 %v8649_v30, %v4834_v25 }
 0x2c0   : > { %v5201_v57 = vadd.f32 %v8771_v47, %v5165_v50  ;;  %v5202_v55 = vadd.f32 %v8771_v47, %v5166_v19 }
 0x2c1   : > { %v4992_v2 = vpop.permute.xlu0 %4991  ;;  %v4994_v51 = vpop.permute.xlu1 %4993 }
 0x2c2   : > { %v5233_v38 = vmax.f32 %v5201_v57, 0.0  ;;  %v5234_v56 = vmax.f32 %v5202_v55, 0.0  ;;  %v5069_v60 = vmin.f32 %v4941_v36, %v4992_v2  ;;  %v5070_v0 = vmin.f32 %v4942_v54, %v4994_v51 }
 0x2c3   : > { %v5133_v55 = vunpack.c.l.bf16 %v8439_v41  ;;  %v5134_v36 = vunpack.c.l.bf16 %v8443_v62 }
 0x2c4   : > { %v5265_v14 = vadd.f32 %v5233_v38, %v5129_v45  ;;  %v5266_v48 = vadd.f32 %v5234_v56, %v5130_v43  ;;  %v5101_v4 = vmax.f32 %v4909_v31, %v5069_v60  ;;  %v5102_v49 = vmax.f32 %v4910_v6, %v5070_v0 }
 0x2c5   : > { %v4828_v11 = vpop.permute.xlu0 %4827  ;;  %v4830_v23 = vpop.permute.xlu1 %4829 }
 0x2c6   : > { %5297 = vst.msk [vmem:[%s8792_s22 + $0x60] sm:$0xff] %vm658_vm4, %v5265_v14  ;;  %5298 = vst.msk [vmem:[%s8792_s22 + $0x68] sm:$0xff] %vm658_vm4, %v5266_v48  ;;  %v5171_v32 = vmul.f32 %v8766_v13, %v5101_v4  ;;  %v5172_v30 = vmul.f32 %v8766_v13, %v5102_v49  ;;  %v4939_v53 = vmax.f32 %v8643_v12, %v4828_v11 }
 0x2c7   : > { %v4940_v8 = vmax.f32 %v8651_v3, %v4830_v23  ;;  %v4907_v44 = vmin.f32 %v8643_v12, %v4828_v11  ;;  %v4908_v61 = vmin.f32 %v8651_v3, %v4830_v23 }
 0x2c8   : > { %v5207_v27 = vadd.f32 %v8771_v47, %v5171_v32  ;;  %v5208_v37 = vadd.f32 %v8771_v47, %v5172_v30  ;;  %v5139_v30 = vunpack.c.l.bf16 %v8490_v33 }
 0x2c9   : > { %v4988_v9 = vpop.permute.xlu0 %4987  ;;  %v4990_v34 = vpop.permute.xlu1 %4989 }
 0x2ca   : > { %v5239_v25 = vmax.f32 %v5207_v27, 0.0  ;;  %v5240_v10 = vmax.f32 %v5208_v37, 0.0  ;;  %v5067_v50 = vmin.f32 %v4939_v53, %v4988_v9  ;;  %v5068_v58 = vmin.f32 %v4940_v8, %v4990_v34 }
 0x2cc   : > { %v5271_v19 = vadd.f32 %v5239_v25, %v5135_v7  ;;  %v5272_v24 = vadd.f32 %v5240_v10, %v5136_v16  ;;  %v5099_v45 = vmax.f32 %v4907_v44, %v5067_v50  ;;  %v5100_v20 = vmax.f32 %v4908_v61, %v5068_v58 }
 0x2cd   : > { %v4840_v43 = vpop.permute.xlu0 %4839  ;;  %v4842_v57 = vpop.permute.xlu1 %4841  ;;  %v5140_v7 = vunpack.c.l.bf16 %v8494_v22 }
 0x2ce   : > { %5303 = vst.msk [vmem:[%s8792_s22 + $0x90] sm:$0xff] %vm658_vm4, %v5271_v19  ;;  %5304 = vst.msk [vmem:[%s8792_s22 + $0x98] sm:$0xff] %vm658_vm4, %v5272_v24  ;;  %v5169_v12 = vmul.f32 %v8766_v13, %v5099_v45  ;;  %v5170_v3 = vmul.f32 %v8766_v13, %v5100_v20  ;;  %v4945_v6 = vmax.f32 %v8657_v40, %v4840_v43  ;;  %v5137_v20 = vunpack.c.l.bf16 %v8474_v26 }
 0x2cf   : > { %v4946_v2 = vmax.f32 %v8665_v1, %v4842_v57  ;;  %v4913_v51 = vmin.f32 %v8657_v40, %v4840_v43  ;;  %v4914_v38 = vmin.f32 %v8665_v1, %v4842_v57  ;;  %v5138_v43 = vunpack.c.l.bf16 %v8478_v18 }
 0x2d0   : > { %v5205_v54 = vadd.f32 %v8771_v47, %v5169_v12  ;;  %v5206_v31 = vadd.f32 %v8771_v47, %v5170_v3 }
 0x2d1   : > { %v5000_v56 = vpop.permute.xlu0 %4999  ;;  %v5002_v60 = vpop.permute.xlu1 %5001 }
 0x2d2   : > { %v5237_v0 = vmax.f32 %v5205_v54, 0.0  ;;  %v5238_v41 = vmax.f32 %v5206_v31, 0.0  ;;  %v5073_v14 = vmin.f32 %v4945_v6, %v5000_v56  ;;  %v5074_v62 = vmin.f32 %v4946_v2, %v5002_v60 }
 0x2d4   : > { %v5269_v48 = vadd.f32 %v5237_v0, %v5133_v55  ;;  %v5270_v4 = vadd.f32 %v5238_v41, %v5134_v36  ;;  %v5105_v49 = vmax.f32 %v4913_v51, %v5073_v14  ;;  %v5106_v11 = vmax.f32 %v4914_v38, %v5074_v62 }
 0x2d5   : > { %v4836_v23 = vpop.permute.xlu0 %4835  ;;  %v4838_v32 = vpop.permute.xlu1 %4837  ;;  %v5143_v62 = vunpack.c.l.bf16 %v8528_v28 }
 0x2d6   : > { %5301 = vst.msk [vmem:[%s8792_s22 + $0x80] sm:$0xff] %vm658_vm4, %v5269_v48  ;;  %5302 = vst.msk [vmem:[%s8792_s22 + $0x88] sm:$0xff] %vm658_vm4, %v5270_v4  ;;  %v5175_v40 = vmul.f32 %v8766_v13, %v5105_v49  ;;  %v5176_v1 = vmul.f32 %v8766_v13, %v5106_v11  ;;  %v4943_v37 = vmax.f32 %v8659_v59, %v4836_v23  ;;  %v5144_v48 = vunpack.c.l.bf16 %v8534_v63 }
 0x2d7   : > { %v4944_v53 = vmax.f32 %v8667_v35, %v4838_v32  ;;  %v4911_v8 = vmin.f32 %v8659_v59, %v4836_v23  ;;  %v4912_v44 = vmin.f32 %v8667_v35, %v4838_v32 }
 0x2d8   : > { %v5211_v16 = vadd.f32 %v8771_v47, %v5175_v40  ;;  %v5212_v27 = vadd.f32 %v8771_v47, %v5176_v1 }
 0x2d9   : > { %v4996_v61 = vpop.permute.xlu0 %4995  ;;  %v4998_v9 = vpop.permute.xlu1 %4997 }
 0x2da   : > { %v5243_v34 = vmax.f32 %v5211_v16, 0.0  ;;  %v5244_v33 = vmax.f32 %v5212_v27, 0.0  ;;  %v5071_v25 = vmin.f32 %v4943_v37, %v4996_v61  ;;  %v5072_v22 = vmin.f32 %v4944_v53, %v4998_v9 }
 0x2db   : > { %v5141_v9 = vunpack.c.l.bf16 %v8498_v15 }
 0x2dc   : > { %v5275_v10 = vadd.f32 %v5243_v34, %v5139_v30  ;;  %v5276_v50 = vadd.f32 %v5244_v33, %v5140_v7  ;;  %v5103_v58 = vmax.f32 %v4911_v8, %v5071_v25  ;;  %v5104_v19 = vmax.f32 %v4912_v44, %v5072_v22 }
 0x2dd   : > { %v4848_v24 = vpop.permute.xlu0 %4847  ;;  %v4850_v45 = vpop.permute.xlu1 %4849  ;;  %v5142_v34 = vunpack.c.l.bf16 %v8507_v5 }
 0x2de   : > { %5307 = vst.msk [vmem:[%s8792_s22 + $0xb0] sm:$0xff] %vm658_vm4, %v5275_v10  ;;  %5308 = vst.msk [vmem:[%s8792_s22 + $0xb8] sm:$0xff] %vm658_vm4, %v5276_v50  ;;  %v5173_v59 = vmul.f32 %v8766_v13, %v5103_v58  ;;  %v5174_v35 = vmul.f32 %v8766_v13, %v5104_v19  ;;  %v4949_v3 = vmax.f32 %v8673_v52, %v4848_v24 }
 0x2df   : > { %v4950_v55 = vmax.f32 %v8681_v46, %v4850_v45  ;;  %v4917_v36 = vmin.f32 %v8673_v52, %v4848_v24  ;;  %v4918_v54 = vmin.f32 %v8681_v46, %v4850_v45 }
 0x2e0   : > { %v5209_v57 = vadd.f32 %v8771_v47, %v5173_v59  ;;  %v5210_v12 = vadd.f32 %v8771_v47, %v5174_v35 }
 0x2e1   : > { %v5008_v31 = vpop.permute.xlu0 %5007  ;;  %v5010_v6 = vpop.permute.xlu1 %5009 }
 0x2e2   : > { %v5241_v2 = vmax.f32 %v5209_v57, 0.0  ;;  %v5242_v26 = vmax.f32 %v5210_v12, 0.0  ;;  %v5077_v51 = vmin.f32 %v4949_v3, %v5008_v31  ;;  %v5078_v18 = vmin.f32 %v4950_v55, %v5010_v6  ;;  %v9156_v3 = vld [vmem:[#allocation30_spill] sm:$0xff] }
 0x2e4   : > { %v5273_v38 = vadd.f32 %v5241_v2, %v5137_v20  ;;  %v5274_v56 = vadd.f32 %v5242_v26, %v5138_v43  ;;  %v5109_v60 = vmax.f32 %v4917_v36, %v5077_v51  ;;  %v5110_v0 = vmax.f32 %v4918_v54, %v5078_v18 }
 0x2e5   : > { %v4844_v41 = vpop.permute.xlu0 %4843  ;;  %v4846_v14 = vpop.permute.xlu1 %4845 }
 0x2e6   : > { %5305 = vst.msk [vmem:[%s8792_s22 + $0xa0] sm:$0xff] %vm658_vm4, %v5273_v38  ;;  %5306 = vst.msk [vmem:[%s8792_s22 + $0xa8] sm:$0xff] %vm658_vm4, %v5274_v56  ;;  %v5179_v52 = vmul.f32 %v8766_v13, %v5109_v60  ;;  %v5180_v46 = vmul.f32 %v8766_v13, %v5110_v0  ;;  %v4947_v11 = vmax.f32 %v8675_v42, %v4844_v41  ;;  %v9157_v38 = vld [vmem:[#allocation25_spill] sm:$0xff]  ;;  %v9158_v60 = vld [vmem:[#allocation28_spill] sm:$0xff] }
 0x2e7   : > { %v4948_v23 = vmax.f32 %v8683_v29, %v4846_v14  ;;  %v4915_v32 = vmin.f32 %v8675_v42, %v4844_v41  ;;  %v4916_v40 = vmin.f32 %v8683_v29, %v4846_v14  ;;  %v5145_v56 = vunpack.c.l.bf16 %v9157_v38 }
 0x2e8   : > { %v5215_v4 = vadd.f32 %v8771_v47, %v5179_v52  ;;  %v5216_v49 = vadd.f32 %v8771_v47, %v5180_v46  ;;  %v5146_v0 = vunpack.c.l.bf16 %v9158_v60 }
 0x2e9   : > { %v5004_v1 = vpop.permute.xlu0 %5003  ;;  %v5006_v30 = vpop.permute.xlu1 %5005 }
 0x2ea   : > { %v5247_v7 = vmax.f32 %v5215_v4, 0.0  ;;  %v5248_v28 = vmax.f32 %v5216_v49, 0.0  ;;  %v5075_v16 = vmin.f32 %v4947_v11, %v5004_v1  ;;  %v5076_v63 = vmin.f32 %v4948_v23, %v5006_v30  ;;  %v9159_v49 = vld [vmem:[#allocation26_spill] sm:$0xff]  ;;  %v9160_v23 = vld [vmem:[#allocation29_spill] sm:$0xff] }
 0x2eb   : > { %v5147_v11 = vunpack.c.l.bf16 %v9159_v49 }
 0x2ec   : > { %v5279_v27 = vadd.f32 %v5247_v7, %v5143_v62  ;;  %v5280_v37 = vadd.f32 %v5248_v28, %v5144_v48  ;;  %v5107_v53 = vmax.f32 %v4915_v32, %v5075_v16  ;;  %v5108_v8 = vmax.f32 %v4916_v40, %v5076_v63 }
 0x2ed   : > { %v4856_v44 = vpop.permute.xlu0 %4855  ;;  %v4858_v61 = vpop.permute.xlu1 %4857  ;;  %v5148_v32 = vunpack.c.l.bf16 %v9160_v23 }
 0x2ee   : > { %5311 = vst.msk [vmem:[%s8792_s22 + $0xd0] sm:$0xff] %vm658_vm4, %v5279_v27  ;;  %5312 = vst.msk [vmem:[%s8792_s22 + $0xd8] sm:$0xff] %vm658_vm4, %v5280_v37  ;;  %v5177_v42 = vmul.f32 %v8766_v13, %v5107_v53  ;;  %v5178_v29 = vmul.f32 %v8766_v13, %v5108_v8  ;;  %v4953_v12 = vmax.f32 %v8689_v21, %v4856_v44 }
 0x2ef   : > { %v4954_v55 = vmax.f32 %v9156_v3, %v4858_v61  ;;  %v4921_v31 = vmin.f32 %v8689_v21, %v4856_v44  ;;  %v4922_v6 = vmin.f32 %v9156_v3, %v4858_v61 }
 0x2f0   : > { %v5213_v33 = vadd.f32 %v8771_v47, %v5177_v42  ;;  %v5214_v25 = vadd.f32 %v8771_v47, %v5178_v29 }
 0x2f1   : > { %v4852_v22 = vpop.permute.xlu0 %4851  ;;  %v4854_v10 = vpop.permute.xlu1 %4853 }
 0x2f2   : > { %v5245_v50 = vmax.f32 %v5213_v33, 0.0  ;;  %v5246_v58 = vmax.f32 %v5214_v25, 0.0  ;;  %v4951_v45 = vmax.f32 %v8691_v17, %v4852_v22  ;;  %v4952_v59 = vmax.f32 %v8699_v39, %v4854_v10 }
 0x2f3   : > { %v4919_v15 = vmin.f32 %v8691_v17, %v4852_v22  ;;  %v4920_v5 = vmin.f32 %v8699_v39, %v4854_v10 }
 0x2f4   : > { %v5277_v19 = vadd.f32 %v5245_v50, %v5141_v9  ;;  %v5278_v24 = vadd.f32 %v5246_v58, %v5142_v34 }
 0x2f5   : > { %v5012_v35 = vpop.permute.xlu0 %5011  ;;  %v5014_v20 = vpop.permute.xlu1 %5013 }
 0x2f6   : > { %5309 = vst.msk [vmem:[%s8792_s22 + $0xc0] sm:$0xff] %vm658_vm4, %v5277_v19  ;;  %5310 = vst.msk [vmem:[%s8792_s22 + $0xc8] sm:$0xff] %vm658_vm4, %v5278_v24  ;;  %v5079_v43 = vmin.f32 %v4951_v45, %v5012_v35  ;;  %v5080_v57 = vmin.f32 %v4952_v59, %v5014_v20 }
 0x2f8   : > { %v5111_v36 = vmax.f32 %v4919_v15, %v5079_v43  ;;  %v5112_v54 = vmax.f32 %v4920_v5, %v5080_v57 }
 0x2f9   : > { %v5016_v2 = vpop.permute.xlu0 %5015  ;;  %v5018_v26 = vpop.permute.xlu1 %5017 }
 0x2fa   : > { %v5181_v51 = vmul.f32 %v8766_v13, %v5111_v36  ;;  %v5182_v17 = vmul.f32 %v8766_v13, %v5112_v54  ;;  %v5081_v18 = vmin.f32 %v4953_v12, %v5016_v2  ;;  %v5082_v39 = vmin.f32 %v4954_v55, %v5018_v26 }
 0x2fc   : > { %v5217_v41 = vadd.f32 %v8771_v47, %v5181_v51  ;;  %v5218_v21 = vadd.f32 %v8771_v47, %v5182_v17  ;;  %v5113_v14 = vmax.f32 %v4921_v31, %v5081_v18  ;;  %v5114_v52 = vmax.f32 %v4922_v6, %v5082_v39 }
 0x2fe   : > { %v5249_v46 = vmax.f32 %v5217_v41, 0.0  ;;  %v5250_v62 = vmax.f32 %v5218_v21, 0.0  ;;  %v5183_v48 = vmul.f32 %v8766_v13, %v5113_v14  ;;  %v5184_v4 = vmul.f32 %v8766_v13, %v5114_v52 }
 0x300   : > { %v5281_v40 = vadd.f32 %v5249_v46, %v5145_v56  ;;  %v5282_v1 = vadd.f32 %v5250_v62, %v5146_v0  ;;  %v5219_v30 = vadd.f32 %v8771_v47, %v5183_v48  ;;  %v5220_v7 = vadd.f32 %v8771_v47, %v5184_v4 }
 0x302   : > { %5313 = vst.msk [vmem:[%s8792_s22 + $0xe0] sm:$0xff] %vm658_vm4, %v5281_v40  ;;  %5314 = vst.msk [vmem:[%s8792_s22 + $0xe8] sm:$0xff] %vm658_vm4, %v5282_v1  ;;  %v5251_v28 = vmax.f32 %v5219_v30, 0.0  ;;  %v5252_v16 = vmax.f32 %v5220_v7, 0.0 }
 0x304   : > { %v5283_v63 = vadd.f32 %v5251_v28, %v5147_v11  ;;  %v5284_v27 = vadd.f32 %v5252_v16, %v5148_v32 }
 0x306   : > { %5315 = vst.msk [vmem:[%s8792_s22 + $0xf0] sm:$0xff] %vm658_vm4, %v5283_v63  ;;  %5316 = vst.msk [vmem:[%s8792_s22 + $0xf8] sm:$0xff] %vm658_vm4, %v5284_v27 }
 0x307 PF: > { %s13_s12 = sadd.s32 1, %s6764_s12  }
 0x308   : > { %p10_p4 = scmp.ge.s32.totalorder %s13_s12, 4  }
 0x30a   :  { %12 = sbr.rel (!%p10_p4) target bundleno = 1 (0x1), region = 72 }

</bundles_post_ra>
